<compile_context>
chip_gen: v7x
topology: tpu7x:2x2x1
jax: 0.10.0
libtpu: 0.0.40
codegen_flags: <defaults>
</compile_context>

<pallas_src>
import functools
import math

import jax
import jax.numpy as jnp
from jax.experimental import pallas as pl
from jax.experimental.pallas import tpu as pltpu

_VMEM_LIMIT = 32 * 1024 * 1024


def _round_up(x, m):
    return (x + m - 1) // m * m


def _conv_out(n, k, s, p):
    return (n + 2 * p - k) // s + 1


# ---------------------------------------------------------------------------
# Kernels
# ---------------------------------------------------------------------------

def _gemm_kernel(*refs, relu, has_res):
    """out = maybe_relu((a @ w) * scale + shift [+ residual]); one full-K dot."""
    if has_res:
        a_ref, w_ref, s_ref, c_ref, r_ref, o_ref = refs
    else:
        a_ref, w_ref, s_ref, c_ref, o_ref = refs
    y = jnp.dot(a_ref[...], w_ref[...], preferred_element_type=jnp.float32)
    y = y * s_ref[...] + c_ref[...]
    if has_res:
        y = y + r_ref[...].astype(jnp.float32)
    if relu:
        y = jnp.maximum(y, 0.0)
    o_ref[...] = y.astype(o_ref.dtype)


def _conv1_ds_kernel(a_ref, xd_ref, w1_ref, s1_ref, c1_ref,
                     wd_ref, sd_ref, cd_ref, y_ref, r_ref):
    """BasicBlock first half in one call:
       y = relu(bn1(conv1(x)));  r = bn_ds(downsample(x))  (no ReLU on r)."""
    y = jnp.dot(a_ref[...], w1_ref[...], preferred_element_type=jnp.float32)
    y_ref[...] = jnp.maximum(y * s1_ref[...] + c1_ref[...], 0.0).astype(y_ref.dtype)
    r = jnp.dot(xd_ref[...], wd_ref[...], preferred_element_type=jnp.float32)
    r_ref[...] = (r * sd_ref[...] + cd_ref[...]).astype(r_ref.dtype)


def _tail_kernel(a_ref,
                 w21, s21, c21, wd2, sd2, cd2, w22, s22, c22,
                 w31, s31, c31, wd3, sd3, cd3, w32, s32, c32,
                 f0w, f0b, f1w, f1b, o_ref, *, cin2):
    """layer2 + layer3 + avgpool + fc0 + fc1, fully fused.  All activations
    ([2, <=1024]) stay in VMEM; each (pruned) weight is read exactly once."""
    f32, bf16 = jnp.float32, jnp.bfloat16
    a = a_ref[...]                                    # [N, 8*Cin] patch of layer2.conv1
    # ---- layer2: conv1+bn+relu, 1x1 downsample+bn, conv2+bn + residual + relu
    y = jnp.dot(a, w21[...], preferred_element_type=f32) * s21[...] + c21[...]
    y = jnp.maximum(y, 0.0)
    r = jnp.dot(a[:, :cin2], wd2[...], preferred_element_type=f32) * sd2[...] + cd2[...]
    y = jnp.dot(y.astype(bf16), w22[...], preferred_element_type=f32) * s22[...] + c22[...] + r
    yb = jnp.maximum(y, 0.0).astype(bf16)
    # ---- layer3 (1x1x1 volume: centre-tap weights only)
    r = jnp.dot(yb, wd3[...], preferred_element_type=f32) * sd3[...] + cd3[...]
    z = jnp.dot(yb, w31[...], preferred_element_type=f32) * s31[...] + c31[...]
    z = jnp.maximum(z, 0.0).astype(bf16)
    y = jnp.dot(z, w32[...], preferred_element_type=f32) * s32[...] + c32[...] + r
    y = jnp.maximum(y, 0.0).astype(bf16)
    # ---- AdaptiveAvgPool3d((1,1,1)) over a 1x1x1 volume and Dropout(p=0) are identities
    h = jnp.dot(y, f0w[...], preferred_element_type=f32) + f0b[...]
    h = jnp.maximum(h, 0.0)
    # fc1 (N=1) as a lane reduction instead of a width-1 matmul
    o = jnp.sum(h * f1w[...], axis=1, keepdims=True) + f1b[...]
    o_ref[...] = o.astype(o_ref.dtype)


# ---------------------------------------------------------------------------
# Pallas-call wrappers
# ---------------------------------------------------------------------------

def _pick_tm(m):
    """Row tile: >=2 grid steps where cheap (v7x megacore), acc <= 8 vregs."""
    if m >= 256:
        tm = 128
    elif m >= 32 and (m // 2) % 8 == 0:
        tm = m // 2
    else:
        tm = m
    return tm if m % tm == 0 else m


def fused_gemm(a, w, scale, shift, *, relu, residual=None,
               out_dtype=jnp.bfloat16):
    """out = maybe_relu((a @ w) * scale + shift [+ residual]), gridded over (M, N)."""
    m, k = a.shape
    k2, n = w.shape
    assert k == k2, (k, k2)
    tm = _pick_tm(m)
    tn = n if n <= 256 else 256
    if n % tn:
        tn = n
    in_specs = [
        pl.BlockSpec((tm, k), lambda i, j: (i, 0)),
        pl.BlockSpec((k, tn), lambda i, j: (0, j)),
        pl.BlockSpec((1, tn), lambda i, j: (0, j)),
        pl.BlockSpec((1, tn), lambda i, j: (0, j)),
    ]
    args = [a, w, scale.reshape(1, n).astype(jnp.float32),
            shift.reshape(1, n).astype(jnp.float32)]
    if residual is not None:
        in_specs.append(pl.BlockSpec((tm, tn), lambda i, j: (i, j)))
        args.append(residual)
    return pl.pallas_call(
        functools.partial(_gemm_kernel, relu=relu, has_res=residual is not None),
        out_shape=jax.ShapeDtypeStruct((m, n), out_dtype),
        grid_spec=pltpu.PrefetchScalarGridSpec(
            num_scalar_prefetch=0,
            grid=(m // tm, n // tn),
            in_specs=in_specs,
            out_specs=pl.BlockSpec((tm, tn), lambda i, j: (i, j)),
        ),
        compiler_params=pltpu.CompilerParams(
            dimension_semantics=("parallel", "parallel"),
            vmem_limit_bytes=_VMEM_LIMIT),
    )(*args)


def conv1_downsample(a, xd, cp1, cpds):
    """Fused {conv1 + BN + ReLU} and {1x1 strided downsample + BN}: one call,
    two outputs.  a: [M, K] patch matrix; xd: [M, Cin] downsample input."""
    m, k = a.shape
    cin = xd.shape[1]
    n = cp1['w'].shape[1]
    tm = _pick_tm(m)
    out_sd = jax.ShapeDtypeStruct((m, n), jnp.bfloat16)
    return pl.pallas_call(
        _conv1_ds_kernel,
        out_shape=(out_sd, out_sd),
        grid_spec=pltpu.PrefetchScalarGridSpec(
            num_scalar_prefetch=0,
            grid=(m // tm,),
            in_specs=[
                pl.BlockSpec((tm, k), lambda i: (i, 0)),
                pl.BlockSpec((tm, cin), lambda i: (i, 0)),
                pl.BlockSpec((k, n), lambda i: (0, 0)),
                pl.BlockSpec((1, n), lambda i: (0, 0)),
                pl.BlockSpec((1, n), lambda i: (0, 0)),
                pl.BlockSpec((cin, n), lambda i: (0, 0)),
                pl.BlockSpec((1, n), lambda i: (0, 0)),
                pl.BlockSpec((1, n), lambda i: (0, 0)),
            ],
            out_specs=(pl.BlockSpec((tm, n), lambda i: (i, 0)),
                       pl.BlockSpec((tm, n), lambda i: (i, 0))),
        ),
        compiler_params=pltpu.CompilerParams(
            dimension_semantics=("parallel",),
            vmem_limit_bytes=_VMEM_LIMIT),
    )(a, xd, cp1['w'], cp1['scale'].reshape(1, n), cp1['shift'].reshape(1, n),
      cpds['w'], cpds['scale'].reshape(1, n), cpds['shift'].reshape(1, n))


def tail_forward(x, tp):
    """Fused layer2 + layer3 + avgpool + fc0 + fc1 as a single pallas_call."""
    n = x.shape[0]
    a = x.reshape(n, -1).astype(jnp.bfloat16)
    assert a.shape[1] == tp['l2_c1']['w'].shape[0], (a.shape, tp['l2_c1']['w'].shape)
    cin2 = tp['l2_ds']['w'].shape[0]
    args = [a]
    for name in ('l2_c1', 'l2_ds', 'l2_c2', 'l3_c1', 'l3_ds', 'l3_c2'):
        p = tp[name]
        args += [p['w'], p['scale'].reshape(1, -1), p['shift'].reshape(1, -1)]
    args += [tp['fc0_w'], tp['fc0_b'], tp['fc1_w'], tp['fc1_b']]
    return pl.pallas_call(
        functools.partial(_tail_kernel, cin2=cin2),
        out_shape=jax.ShapeDtypeStruct((n, 1), jnp.float32),
    )(*args)


# ---------------------------------------------------------------------------
# im2col helpers (XLA prologue; the GEMMs themselves are Pallas)
# ---------------------------------------------------------------------------

def _im2col(x, k, s, p):
    """Explicit im2col for NDHWC activations (channel-dense slices, cin > 1)."""
    n, d, h, w, c = x.shape
    do, ho, wo = _conv_out(d, k, s, p), _conv_out(h, k, s, p), _conv_out(w, k, s, p)
    xp = jnp.pad(x, ((0, 0), (p, p), (p, p), (p, p), (0, 0)))
    cols = []
    for i in range(k):
        for j in range(k):
            for l in range(k):
                cols.append(xp[:, i:i + s * (do - 1) + 1:s,
                                  j:j + s * (ho - 1) + 1:s,
                                  l:l + s * (wo - 1) + 1:s, :])
    a = jnp.stack(cols, axis=-2).reshape(n * do * ho * wo, k * k * k * c)
    return a, (n, do, ho, wo)


def _win(y, axis, k, s, out):
    """Expand `axis` into (out, k) sliding windows with stride s."""
    sl = []
    for t in range(k):
        idx = [slice(None)] * y.ndim
        idx[axis] = slice(t, t + s * (out - 1) + 1, s)
        sl.append(y[tuple(idx)])
    return jnp.stack(sl, axis=axis + 1)


def _conv0_patches(x_ncdhw, k, s, p):
    """im2col for the single-channel stem conv: 3*k lane-dense window slices
    instead of k^3 lane-width-1 slices (cin == 1)."""
    n, c, d, h, w = x_ncdhw.shape
    assert c == 1
    do, ho, wo = _conv_out(d, k, s, p), _conv_out(h, k, s, p), _conv_out(w, k, s, p)
    xp = jnp.pad(x_ncdhw[:, 0].astype(jnp.bfloat16),
                 ((0, 0), (p, p), (p, p), (p, p)))
    y = _win(xp, 1, k, s, do)                         # [n, do, k, Hp, Wp]
    y = _win(y, 3, k, s, ho)                          # [n, do, k, ho, k, Wp]
    y = _win(y, 5, k, s, wo)                          # [n, do, k, ho, k, wo, k]
    y = jnp.transpose(y, (0, 1, 3, 5, 2, 4, 6))       # [n, do, ho, wo, kd, kh, kw]
    a = y.reshape(n * do * ho * wo, k * k * k)
    return a, (n, do, ho, wo)


def _pad_cols(a, k_target):
    pad = k_target - a.shape[1]
    return a if pad == 0 else jnp.pad(a, ((0, 0), (0, pad)))


def head_block(x, bp, *, stride):
    """BasicBlock (with 1x1 stride-s downsample) for the M>=16 front layers:
    two pallas_calls — {conv1 + downsample} and {conv2 + residual + ReLU}."""
    assert 'downsample' in bp
    cin = x.shape[-1]
    a1, (n, do, ho, wo) = _im2col(x, 3, stride, 1)
    a1 = _pad_cols(a1, bp['conv1']['w'].shape[0])
    # The 1x1 stride-s downsample reads x at the conv output positions (the
    # centre-tap sub-matrix of a1); pass it as its own tiny aligned input.
    xd = x[:, ::stride, ::stride, ::stride, :].reshape(n * do * ho * wo, cin)
    y1, res = conv1_downsample(a1, xd, bp['conv1'], bp['downsample'])
    cout = y1.shape[-1]
    a2, _ = _im2col(y1.reshape(n, do, ho, wo, cout), 3, 1, 1)
    a2 = _pad_cols(a2, bp['conv2']['w'].shape[0])
    y = fused_gemm(a2, bp['conv2']['w'], bp['conv2']['scale'],
                   bp['conv2']['shift'], relu=True, residual=res)
    return y.reshape(n, do, ho, wo, cout)


# ---------------------------------------------------------------------------
# Parameters (PyTorch-like f32) and one-time preparation
# ---------------------------------------------------------------------------

def _conv_bn_params(key, cin, cout, k):
    k1, k2 = jax.random.split(key)
    fan_in = cin * k * k * k
    return dict(
        w=jax.random.normal(k1, (k, k, k, cin, cout), jnp.float32) / math.sqrt(fan_in),
        b=0.01 * jax.random.normal(k2, (cout,), jnp.float32),
        gamma=jnp.ones((cout,), jnp.float32),
        beta=jnp.zeros((cout,), jnp.float32),
        mean=jnp.zeros((cout,), jnp.float32),
        var=jnp.ones((cout,), jnp.float32),
    )


def init_params(key, layers=(1, 1, 1, 1)):
    keys = jax.random.split(key, 64)
    ki = iter(keys)
    params = {'conv0': _conv_bn_params(next(ki), 1, 64, 7)}
    inplanes = 64
    for li, planes in enumerate((64, 128, 256, 512)):
        blocks = []
        for bi in range(layers[li]):
            stride = 2 if bi == 0 else 1
            bp = {'conv1': _conv_bn_params(next(ki), inplanes, planes, 3),
                  'conv2': _conv_bn_params(next(ki), planes, planes, 3)}
            if stride != 1 or inplanes != planes:
                bp['downsample'] = _conv_bn_params(next(ki), inplanes, planes, 1)
            blocks.append(bp)
            inplanes = planes
        params[f'layer{li}'] = blocks
    k1, k2, k3, k4 = jax.random.split(next(ki), 4)
    params['fc0_w'] = jax.random.normal(k1, (512, 1024), jnp.float32) / math.sqrt(512)
    params['fc0_b'] = 0.01 * jax.random.normal(k2, (1024,), jnp.float32)
    params['fc1_w'] = jax.random.normal(k3, (1024, 1), jnp.float32) / math.sqrt(1024)
    params['fc1_b'] = 0.01 * jax.random.normal(k4, (1,), jnp.float32)
    return params


def prepare_params(params, *, in_spatial=16, eps=1e-5):
    """One-time (outside jit): fold BN + conv bias into per-channel scale/shift,
    reshape weights to GEMM layout, cast to bf16, and drop the structurally-zero
    weight rows of the 1x1x1-output tail convs for this input geometry."""

    def fold(p):
        inv = 1.0 / jnp.sqrt(p['var'] + eps)
        scale = (p['gamma'] * inv).astype(jnp.float32)
        shift = (p['beta'] + (p['b'] - p['mean']) * scale).astype(jnp.float32)
        return scale, shift

    def prep_full(p, pad128=True):
        kd, kh, kw, cin, cout = p['w'].shape
        kreal = kd * kh * kw * cin
        w2 = p['w'].reshape(kreal, cout)
        if pad128:
            kpad = _round_up(kreal, 128)
            if kpad > kreal:
                w2 = jnp.pad(w2, ((0, kpad - kreal), (0, 0)))
        scale, shift = fold(p)
        return {'w': w2.astype(jnp.bfloat16), 'scale': scale, 'shift': shift}

    def prep_single_pos(p, in_sp, stride, pad):
        # Conv whose output volume is 1x1x1: only the kernel taps overlapping
        # real (non-padding) voxels contribute; the rest multiply zeros.
        kd, kh, kw, cin, cout = p['w'].shape
        assert _conv_out(in_sp, kd, stride, pad) == 1
        lo, hi = pad, min(kd, pad + in_sp)
        kv = hi - lo
        w2 = p['w'][lo:hi, lo:hi, lo:hi].reshape(kv * kv * kv * cin, cout)
        scale, shift = fold(p)
        return {'w': w2.astype(jnp.bfloat16), 'scale': scale, 'shift': shift}

    # Spatial sizes along the network for this input geometry.
    d0 = _conv_out(in_spatial, 7, 2, 3)
    dl0 = _conv_out(d0, 3, 2, 1)
    dl1 = _conv_out(dl0, 3, 2, 1)
    dl2 = _conv_out(dl1, 3, 2, 1)
    dl3 = _conv_out(dl2, 3, 2, 1)
    # TODO(synk): the fused tail kernel assumes layer2/layer3 collapse to a
    # 1x1x1 output volume (true for 16^3 inputs); other geometries would need
    # the generic per-conv GEMM path.
    assert dl1 <= 2 and dl2 == 1 and dl3 == 1, (dl1, dl2, dl3)
    for li in range(4):
        assert len(params[f'layer{li}']) == 1, "layers=(1,1,1,1) expected"

    prepped = {
        'conv0': prep_full(params['conv0']),
        'layer0': {
            'conv1': prep_full(params['layer0'][0]['conv1']),
            'conv2': prep_full(params['layer0'][0]['conv2']),
            'downsample': prep_full(params['layer0'][0]['downsample'], pad128=False),
        },
        'layer1': {
            'conv1': prep_full(params['layer1'][0]['conv1']),
            'conv2': prep_full(params['layer1'][0]['conv2']),
            'downsample': prep_full(params['layer1'][0]['downsample'], pad128=False),
        },
    }
    l2, l3 = params['layer2'][0], params['layer3'][0]
    prepped['tail'] = {
        'l2_c1': prep_single_pos(l2['conv1'], dl1, 2, 1),
        'l2_ds': prep_full(l2['downsample'], pad128=False),
        'l2_c2': prep_single_pos(l2['conv2'], dl2, 1, 1),
        'l3_c1': prep_single_pos(l3['conv1'], dl2, 2, 1),
        'l3_ds': prep_full(l3['downsample'], pad128=False),
        'l3_c2': prep_single_pos(l3['conv2'], dl3, 1, 1),
        'fc0_w': params['fc0_w'].astype(jnp.bfloat16),
        'fc0_b': params['fc0_b'].reshape(1, -1).astype(jnp.float32),
        'fc1_w': params['fc1_w'].reshape(1, -1).astype(jnp.float32),
        'fc1_b': params['fc1_b'].reshape(1, -1).astype(jnp.float32),
    }
    return prepped


# ---------------------------------------------------------------------------
# Forward pass (6 pallas_calls total)
# ---------------------------------------------------------------------------

def rasternet_forward(prepped, x_ncdhw):
    # ---- conv0: Conv3d(1, 64, k=7, s=2, p=3) + BN + ReLU as one gridded GEMM
    c0 = prepped['conv0']
    a0, (n, do, ho, wo) = _conv0_patches(x_ncdhw, 7, 2, 3)
    a0 = _pad_cols(a0, c0['w'].shape[0])
    x = fused_gemm(a0, c0['w'], c0['scale'], c0['shift'], relu=True)
    x = x.reshape(n, do, ho, wo, -1)

    # ---- layer0 / layer1: BasicBlocks, 2 pallas_calls each
    x = head_block(x, prepped['layer0'], stride=2)
    # drop_block3d(block_size=3, p=0.0) is an identity.
    x = head_block(x, prepped['layer1'], stride=2)
    # drop_block3d(block_size=3, p=0.0) is an identity.

    # ---- fused tail: layer2 + layer3 + avgpool + fc0 + fc1 (one pallas_call)
    assert x.shape[1] == x.shape[2] == x.shape[3] and x.shape[1] <= 2, x.shape
    return tail_forward(x, prepped['tail'])           # [N, 1] f32


if __name__ == "__main__":
    key = jax.random.PRNGKey(0)
    pkey, xkey = jax.random.split(key)
    params = init_params(pkey, layers=(1, 1, 1, 1))
    prepped = prepare_params(params, in_spatial=16)   # one-time fold/prune/cast
    # PyTorch-style input: N=2, C=1, D=H=W=16 (NCDHW)
    x = jax.random.normal(xkey, (2, 1, 16, 16, 16), jnp.float32)
    fwd = jax.jit(rasternet_forward)
    out = jax.block_until_ready(fwd(prepped, x))
    assert out.shape == (2, 1), out.shape
    print("KERNEL_OK")
</pallas_src>

<mosaic_0001>
module attributes {stable_mosaic.version = 11 : i64} {
  func.func @_gemm_kernel(%arg0: i32, %arg1: i32, %arg2: memref<128x384xbf16, #tpu.memory_space<vmem>>, %arg3: memref<384x64xbf16, #tpu.memory_space<vmem>>, %arg4: memref<1x64xf32, #tpu.memory_space<vmem>>, %arg5: memref<1x64xf32, #tpu.memory_space<vmem>>, %arg6: memref<128x64xbf16, #tpu.memory_space<vmem>>) attributes {dimension_semantics = [#tpu.dimension_semantics<parallel>, #tpu.dimension_semantics<parallel>], iteration_bounds = array<i64: 8, 1>, scalar_prefetch = 0 : i64, scratch_operands = 0 : i64, tpu.core_type = #tpu.core_type<tc>, window_params = [{transform_indices = @transform_0, window_bounds = array<i64: 128, 384>}, {transform_indices = @transform_1, window_bounds = array<i64: 384, 64>}, {transform_indices = @transform_2, window_bounds = array<i64: 1, 64>}, {transform_indices = @transform_3, window_bounds = array<i64: 1, 64>}, {transform_indices = @transform_4, window_bounds = array<i64: 128, 64>}]} {
    %c0 = arith.constant 0 : index
    %c0_0 = arith.constant 0 : index
    %0 = vector.load %arg2[%c0, %c0_0] : memref<128x384xbf16, #tpu.memory_space<vmem>>, vector<128x384xbf16>
    %c0_1 = arith.constant 0 : index
    %c0_2 = arith.constant 0 : index
    %1 = vector.load %arg3[%c0_1, %c0_2] : memref<384x64xbf16, #tpu.memory_space<vmem>>, vector<384x64xbf16>
    %cst = arith.constant dense<0.000000e+00> : vector<128x64xf32>
    %2 = tpu.matmul %0, %1, %cst {dimension_numbers = #tpu.dot_dimension_numbers<[1], [0], [0], [1], [0, 0, 1, 1], [], []>} : vector<128x384xbf16>, vector<384x64xbf16>, vector<128x64xf32> -> vector<128x64xf32>
    %c0_3 = arith.constant 0 : index
    %c0_4 = arith.constant 0 : index
    %3 = vector.load %arg4[%c0_3, %c0_4] : memref<1x64xf32, #tpu.memory_space<vmem>>, vector<1x64xf32>
    %4 = vector.broadcast %3 : vector<1x64xf32> to vector<128x64xf32>
    %5 = arith.mulf %2, %4 : vector<128x64xf32>
    %c0_5 = arith.constant 0 : index
    %c0_6 = arith.constant 0 : index
    %6 = vector.load %arg5[%c0_5, %c0_6] : memref<1x64xf32, #tpu.memory_space<vmem>>, vector<1x64xf32>
    %7 = vector.broadcast %6 : vector<1x64xf32> to vector<128x64xf32>
    %8 = arith.addf %5, %7 : vector<128x64xf32>
    %cst_7 = arith.constant 0.000000e+00 : f32
    %9 = vector.broadcast %cst_7 : f32 to vector<128x64xf32>
    %10 = arith.maximumf %8, %9 : vector<128x64xf32>
    %11 = arith.truncf %10 : vector<128x64xf32> to vector<128x64xbf16>
    %c0_8 = arith.constant 0 : index
    %c0_9 = arith.constant 0 : index
    %12 = vector.load %arg6[%c0_8, %c0_9] : memref<128x64xbf16, #tpu.memory_space<vmem>>, vector<128x64xbf16>
    tpu.vector_store %arg6[%c0_8, %c0_9], %11 {strides = array<i32>} : memref<128x64xbf16, #tpu.memory_space<vmem>>, vector<128x64xbf16>,
    return
  }
  func.func @transform_0(%arg0: i32, %arg1: i32) -> (i32, i32) {
    %c0_i32 = arith.constant 0 : i32
    %c0_i32_0 = arith.constant 0 : i32
    return %arg0, %c0_i32 : i32, i32
  }
  func.func @transform_1(%arg0: i32, %arg1: i32) -> (i32, i32) {
    %c0_i32 = arith.constant 0 : i32
    %c0_i32_0 = arith.constant 0 : i32
    return %c0_i32, %arg1 : i32, i32
  }
  func.func @transform_2(%arg0: i32, %arg1: i32) -> (i32, i32) {
    %c0_i32 = arith.constant 0 : i32
    %c0_i32_0 = arith.constant 0 : i32
    return %c0_i32, %arg1 : i32, i32
  }
  func.func @transform_3(%arg0: i32, %arg1: i32) -> (i32, i32) {
    %c0_i32 = arith.constant 0 : i32
    %c0_i32_0 = arith.constant 0 : i32
    return %c0_i32, %arg1 : i32, i32
  }
  func.func @transform_4(%arg0: i32, %arg1: i32) -> (i32, i32) {
    %c0_i32 = arith.constant 0 : i32
    return %arg0, %arg1 : i32, i32
  }
}

module attributes {stable_mosaic.version = 11 : i64} {
  func.func @_conv1_ds_kernel(%arg0: i32, %arg1: memref<64x1792xbf16, #tpu.memory_space<vmem>>, %arg2: memref<64x64xbf16, #tpu.memory_space<vmem>>, %arg3: memref<1792x64xbf16, #tpu.memory_space<vmem>>, %arg4: memref<1x64xf32, #tpu.memory_space<vmem>>, %arg5: memref<1x64xf32, #tpu.memory_space<vmem>>, %arg6: memref<64x64xbf16, #tpu.memory_space<vmem>>, %arg7: memref<1x64xf32, #tpu.memory_space<vmem>>, %arg8: memref<1x64xf32, #tpu.memory_space<vmem>>, %arg9: memref<64x64xbf16, #tpu.memory_space<vmem>>, %arg10: memref<64x64xbf16, #tpu.memory_space<vmem>>) attributes {dimension_semantics = [#tpu.dimension_semantics<parallel>], iteration_bounds = array<i64: 2>, scalar_prefetch = 0 : i64, scratch_operands = 0 : i64, tpu.core_type = #tpu.core_type<tc>, window_params = [{transform_indices = @transform_0, window_bounds = array<i64: 64, 1792>}, {transform_indices = @transform_1, window_bounds = array<i64: 64, 64>}, {pipeline_mode = #tpu.pipeline_mode<synchronous>, transform_indices = @transform_2, window_bounds = array<i64: 1792, 64>}, {pipeline_mode = #tpu.pipeline_mode<synchronous>, transform_indices = @transform_3, window_bounds = array<i64: 1, 64>}, {pipeline_mode = #tpu.pipeline_mode<synchronous>, transform_indices = @transform_4, window_bounds = array<i64: 1, 64>}, {pipeline_mode = #tpu.pipeline_mode<synchronous>, transform_indices = @transform_5, window_bounds = array<i64: 64, 64>}, {pipeline_mode = #tpu.pipeline_mode<synchronous>, transform_indices = @transform_6, window_bounds = array<i64: 1, 64>}, {pipeline_mode = #tpu.pipeline_mode<synchronous>, transform_indices = @transform_7, window_bounds = array<i64: 1, 64>}, {transform_indices = @transform_8, window_bounds = array<i64: 64, 64>}, {transform_indices = @transform_9, window_bounds = array<i64: 64, 64>}]} {
    %c0 = arith.constant 0 : index
    %c0_0 = arith.constant 0 : index
    %0 = vector.load %arg1[%c0, %c0_0] : memref<64x1792xbf16, #tpu.memory_space<vmem>>, vector<64x1792xbf16>
    %c0_1 = arith.constant 0 : index
    %c0_2 = arith.constant 0 : index
    %1 = vector.load %arg3[%c0_1, %c0_2] : memref<1792x64xbf16, #tpu.memory_space<vmem>>, vector<1792x64xbf16>
    %cst = arith.constant dense<0.000000e+00> : vector<64x64xf32>
    %2 = tpu.matmul %0, %1, %cst {dimension_numbers = #tpu.dot_dimension_numbers<[1], [0], [0], [1], [0, 0, 1, 1], [], []>} : vector<64x1792xbf16>, vector<1792x64xbf16>, vector<64x64xf32> -> vector<64x64xf32>
    %c0_3 = arith.constant 0 : index
    %c0_4 = arith.constant 0 : index
    %3 = vector.load %arg4[%c0_3, %c0_4] : memref<1x64xf32, #tpu.memory_space<vmem>>, vector<1x64xf32>
    %4 = vector.broadcast %3 : vector<1x64xf32> to vector<64x64xf32>
    %5 = arith.mulf %2, %4 : vector<64x64xf32>
    %c0_5 = arith.constant 0 : index
    %c0_6 = arith.constant 0 : index
    %6 = vector.load %arg5[%c0_5, %c0_6] : memref<1x64xf32, #tpu.memory_space<vmem>>, vector<1x64xf32>
    %7 = vector.broadcast %6 : vector<1x64xf32> to vector<64x64xf32>
    %8 = arith.addf %5, %7 : vector<64x64xf32>
    %cst_7 = arith.constant 0.000000e+00 : f32
    %9 = vector.broadcast %cst_7 : f32 to vector<64x64xf32>
    %10 = arith.maximumf %8, %9 : vector<64x64xf32>
    %11 = arith.truncf %10 : vector<64x64xf32> to vector<64x64xbf16>
    %c0_8 = arith.constant 0 : index
    %c0_9 = arith.constant 0 : index
    %12 = vector.load %arg9[%c0_8, %c0_9] : memref<64x64xbf16, #tpu.memory_space<vmem>>, vector<64x64xbf16>
    tpu.vector_store %arg9[%c0_8, %c0_9], %11 {strides = array<i32>} : memref<64x64xbf16, #tpu.memory_space<vmem>>, vector<64x64xbf16>,
    %c0_10 = arith.constant 0 : index
    %c0_11 = arith.constant 0 : index
    %13 = vector.load %arg2[%c0_10, %c0_11] : memref<64x64xbf16, #tpu.memory_space<vmem>>, vector<64x64xbf16>
    %c0_12 = arith.constant 0 : index
    %c0_13 = arith.constant 0 : index
    %14 = vector.load %arg6[%c0_12, %c0_13] : memref<64x64xbf16, #tpu.memory_space<vmem>>, vector<64x64xbf16>
    %cst_14 = arith.constant dense<0.000000e+00> : vector<64x64xf32>
    %15 = tpu.matmul %13, %14, %cst_14 {dimension_numbers = #tpu.dot_dimension_numbers<[1], [0], [0], [1], [0, 0, 1, 1], [], []>} : vector<64x64xbf16>, vector<64x64xbf16>, vector<64x64xf32> -> vector<64x64xf32>
    %c0_15 = arith.constant 0 : index
    %c0_16 = arith.constant 0 : index
    %16 = vector.load %arg7[%c0_15, %c0_16] : memref<1x64xf32, #tpu.memory_space<vmem>>, vector<1x64xf32>
    %17 = vector.broadcast %16 : vector<1x64xf32> to vector<64x64xf32>
    %18 = arith.mulf %15, %17 : vector<64x64xf32>
    %c0_17 = arith.constant 0 : index
    %c0_18 = arith.constant 0 : index
    %19 = vector.load %arg8[%c0_17, %c0_18] : memref<1x64xf32, #tpu.memory_space<vmem>>, vector<1x64xf32>
    %20 = vector.broadcast %19 : vector<1x64xf32> to vector<64x64xf32>
    %21 = arith.addf %18, %20 : vector<64x64xf32>
    %22 = arith.truncf %21 : vector<64x64xf32> to vector<64x64xbf16>
    %c0_19 = arith.constant 0 : index
    %c0_20 = arith.constant 0 : index
    %23 = vector.load %arg10[%c0_19, %c0_20] : memref<64x64xbf16, #tpu.memory_space<vmem>>, vector<64x64xbf16>
    tpu.vector_store %arg10[%c0_19, %c0_20], %22 {strides = array<i32>} : memref<64x64xbf16, #tpu.memory_space<vmem>>, vector<64x64xbf16>,
    return
  }
  func.func @transform_0(%arg0: i32) -> (i32, i32) {
    %c0_i32 = arith.constant 0 : i32
    %c0_i32_0 = arith.constant 0 : i32
    return %arg0, %c0_i32 : i32, i32
  }
  func.func @transform_1(%arg0: i32) -> (i32, i32) {
    %c0_i32 = arith.constant 0 : i32
    %c0_i32_0 = arith.constant 0 : i32
    return %arg0, %c0_i32 : i32, i32
  }
  func.func @transform_2(%arg0: i32) -> (i32, i32) {
    %c0_i32 = arith.constant 0 : i32
    %c0_i32_0 = arith.constant 0 : i32
    %c0_i32_1 = arith.constant 0 : i32
    return %c0_i32, %c0_i32_0 : i32, i32
  }
  func.func @transform_3(%arg0: i32) -> (i32, i32) {
    %c0_i32 = arith.constant 0 : i32
    %c0_i32_0 = arith.constant 0 : i32
    %c0_i32_1 = arith.constant 0 : i32
    return %c0_i32, %c0_i32_0 : i32, i32
  }
  func.func @transform_4(%arg0: i32) -> (i32, i32) {
    %c0_i32 = arith.constant 0 : i32
    %c0_i32_0 = arith.constant 0 : i32
    %c0_i32_1 = arith.constant 0 : i32
    return %c0_i32, %c0_i32_0 : i32, i32
  }
  func.func @transform_5(%arg0: i32) -> (i32, i32) {
    %c0_i32 = arith.constant 0 : i32
    %c0_i32_0 = arith.constant 0 : i32
    %c0_i32_1 = arith.constant 0 : i32
    return %c0_i32, %c0_i32_0 : i32, i32
  }
  func.func @transform_6(%arg0: i32) -> (i32, i32) {
    %c0_i32 = arith.constant 0 : i32
    %c0_i32_0 = arith.constant 0 : i32
    %c0_i32_1 = arith.constant 0 : i32
    return %c0_i32, %c0_i32_0 : i32, i32
  }
  func.func @transform_7(%arg0: i32) -> (i32, i32) {
    %c0_i32 = arith.constant 0 : i32
    %c0_i32_0 = arith.constant 0 : i32
    %c0_i32_1 = arith.constant 0 : i32
    return %c0_i32, %c0_i32_0 : i32, i32
  }
  func.func @transform_8(%arg0: i32) -> (i32, i32) {
    %c0_i32 = arith.constant 0 : i32
    %c0_i32_0 = arith.constant 0 : i32
    return %arg0, %c0_i32 : i32, i32
  }
  func.func @transform_9(%arg0: i32) -> (i32, i32) {
    %c0_i32 = arith.constant 0 : i32
    %c0_i32_0 = arith.constant 0 : i32
    return %arg0, %c0_i32 : i32, i32
  }
}

module attributes {stable_mosaic.version = 11 : i64} {
  func.func @_gemm_kernel(%arg0: i32, %arg1: i32, %arg2: memref<64x1792xbf16, #tpu.memory_space<vmem>>, %arg3: memref<1792x64xbf16, #tpu.memory_space<vmem>>, %arg4: memref<1x64xf32, #tpu.memory_space<vmem>>, %arg5: memref<1x64xf32, #tpu.memory_space<vmem>>, %arg6: memref<64x64xbf16, #tpu.memory_space<vmem>>, %arg7: memref<64x64xbf16, #tpu.memory_space<vmem>>) attributes {dimension_semantics = [#tpu.dimension_semantics<parallel>, #tpu.dimension_semantics<parallel>], iteration_bounds = array<i64: 2, 1>, scalar_prefetch = 0 : i64, scratch_operands = 0 : i64, tpu.core_type = #tpu.core_type<tc>, window_params = [{transform_indices = @transform_0, window_bounds = array<i64: 64, 1792>}, {transform_indices = @transform_1, window_bounds = array<i64: 1792, 64>}, {transform_indices = @transform_2, window_bounds = array<i64: 1, 64>}, {transform_indices = @transform_3, window_bounds = array<i64: 1, 64>}, {transform_indices = @transform_4, window_bounds = array<i64: 64, 64>}, {transform_indices = @transform_5, window_bounds = array<i64: 64, 64>}]} {
    %c0 = arith.constant 0 : index
    %c0_0 = arith.constant 0 : index
    %0 = vector.load %arg2[%c0, %c0_0] : memref<64x1792xbf16, #tpu.memory_space<vmem>>, vector<64x1792xbf16>
    %c0_1 = arith.constant 0 : index
    %c0_2 = arith.constant 0 : index
    %1 = vector.load %arg3[%c0_1, %c0_2] : memref<1792x64xbf16, #tpu.memory_space<vmem>>, vector<1792x64xbf16>
    %cst = arith.constant dense<0.000000e+00> : vector<64x64xf32>
    %2 = tpu.matmul %0, %1, %cst {dimension_numbers = #tpu.dot_dimension_numbers<[1], [0], [0], [1], [0, 0, 1, 1], [], []>} : vector<64x1792xbf16>, vector<1792x64xbf16>, vector<64x64xf32> -> vector<64x64xf32>
    %c0_3 = arith.constant 0 : index
    %c0_4 = arith.constant 0 : index
    %3 = vector.load %arg4[%c0_3, %c0_4] : memref<1x64xf32, #tpu.memory_space<vmem>>, vector<1x64xf32>
    %4 = vector.broadcast %3 : vector<1x64xf32> to vector<64x64xf32>
    %5 = arith.mulf %2, %4 : vector<64x64xf32>
    %c0_5 = arith.constant 0 : index
    %c0_6 = arith.constant 0 : index
    %6 = vector.load %arg5[%c0_5, %c0_6] : memref<1x64xf32, #tpu.memory_space<vmem>>, vector<1x64xf32>
    %7 = vector.broadcast %6 : vector<1x64xf32> to vector<64x64xf32>
    %8 = arith.addf %5, %7 : vector<64x64xf32>
    %c0_7 = arith.constant 0 : index
    %c0_8 = arith.constant 0 : index
    %9 = vector.load %arg6[%c0_7, %c0_8] : memref<64x64xbf16, #tpu.memory_space<vmem>>, vector<64x64xbf16>
    %10 = arith.extf %9 : vector<64x64xbf16> to vector<64x64xf32>
    %11 = arith.addf %8, %10 : vector<64x64xf32>
    %cst_9 = arith.constant 0.000000e+00 : f32
    %12 = vector.broadcast %cst_9 : f32 to vector<64x64xf32>
    %13 = arith.maximumf %11, %12 : vector<64x64xf32>
    %14 = arith.truncf %13 : vector<64x64xf32> to vector<64x64xbf16>
    %c0_10 = arith.constant 0 : index
    %c0_11 = arith.constant 0 : index
    %15 = vector.load %arg7[%c0_10, %c0_11] : memref<64x64xbf16, #tpu.memory_space<vmem>>, vector<64x64xbf16>
    tpu.vector_store %arg7[%c0_10, %c0_11], %14 {strides = array<i32>} : memref<64x64xbf16, #tpu.memory_space<vmem>>, vector<64x64xbf16>,
    return
  }
  func.func @transform_0(%arg0: i32, %arg1: i32) -> (i32, i32) {
    %c0_i32 = arith.constant 0 : i32
    %c0_i32_0 = arith.constant 0 : i32
    return %arg0, %c0_i32 : i32, i32
  }
  func.func @transform_1(%arg0: i32, %arg1: i32) -> (i32, i32) {
    %c0_i32 = arith.constant 0 : i32
    %c0_i32_0 = arith.constant 0 : i32
    return %c0_i32, %arg1 : i32, i32
  }
  func.func @transform_2(%arg0: i32, %arg1: i32) -> (i32, i32) {
    %c0_i32 = arith.constant 0 : i32
    %c0_i32_0 = arith.constant 0 : i32
    return %c0_i32, %arg1 : i32, i32
  }
  func.func @transform_3(%arg0: i32, %arg1: i32) -> (i32, i32) {
    %c0_i32 = arith.constant 0 : i32
    %c0_i32_0 = arith.constant 0 : i32
    return %c0_i32, %arg1 : i32, i32
  }
  func.func @transform_4(%arg0: i32, %arg1: i32) -> (i32, i32) {
    %c0_i32 = arith.constant 0 : i32
    return %arg0, %arg1 : i32, i32
  }
  func.func @transform_5(%arg0: i32, %arg1: i32) -> (i32, i32) {
    %c0_i32 = arith.constant 0 : i32
    return %arg0, %arg1 : i32, i32
  }
}

module attributes {stable_mosaic.version = 11 : i64} {
  func.func @_conv1_ds_kernel(%arg0: i32, %arg1: memref<16x1792xbf16, #tpu.memory_space<vmem>>, %arg2: memref<16x64xbf16, #tpu.memory_space<vmem>>, %arg3: memref<1792x128xbf16, #tpu.memory_space<vmem>>, %arg4: memref<1x128xf32, #tpu.memory_space<vmem>>, %arg5: memref<1x128xf32, #tpu.memory_space<vmem>>, %arg6: memref<64x128xbf16, #tpu.memory_space<vmem>>, %arg7: memref<1x128xf32, #tpu.memory_space<vmem>>, %arg8: memref<1x128xf32, #tpu.memory_space<vmem>>, %arg9: memref<16x128xbf16, #tpu.memory_space<vmem>>, %arg10: memref<16x128xbf16, #tpu.memory_space<vmem>>) attributes {dimension_semantics = [#tpu.dimension_semantics<parallel>], iteration_bounds = array<i64: 1>, scalar_prefetch = 0 : i64, scratch_operands = 0 : i64, tpu.core_type = #tpu.core_type<tc>, window_params = [{transform_indices = @transform_0, window_bounds = array<i64: 16, 1792>}, {transform_indices = @transform_1, window_bounds = array<i64: 16, 64>}, {pipeline_mode = #tpu.pipeline_mode<synchronous>, transform_indices = @transform_2, window_bounds = array<i64: 1792, 128>}, {pipeline_mode = #tpu.pipeline_mode<synchronous>, transform_indices = @transform_3, window_bounds = array<i64: 1, 128>}, {pipeline_mode = #tpu.pipeline_mode<synchronous>, transform_indices = @transform_4, window_bounds = array<i64: 1, 128>}, {pipeline_mode = #tpu.pipeline_mode<synchronous>, transform_indices = @transform_5, window_bounds = array<i64: 64, 128>}, {pipeline_mode = #tpu.pipeline_mode<synchronous>, transform_indices = @transform_6, window_bounds = array<i64: 1, 128>}, {pipeline_mode = #tpu.pipeline_mode<synchronous>, transform_indices = @transform_7, window_bounds = array<i64: 1, 128>}, {transform_indices = @transform_8, window_bounds = array<i64: 16, 128>}, {transform_indices = @transform_9, window_bounds = array<i64: 16, 128>}]} {
    %c0 = arith.constant 0 : index
    %c0_0 = arith.constant 0 : index
    %0 = vector.load %arg1[%c0, %c0_0] : memref<16x1792xbf16, #tpu.memory_space<vmem>>, vector<16x1792xbf16>
    %c0_1 = arith.constant 0 : index
    %c0_2 = arith.constant 0 : index
    %1 = vector.load %arg3[%c0_1, %c0_2] : memref<1792x128xbf16, #tpu.memory_space<vmem>>, vector<1792x128xbf16>
    %cst = arith.constant dense<0.000000e+00> : vector<16x128xf32>
    %2 = tpu.matmul %0, %1, %cst {dimension_numbers = #tpu.dot_dimension_numbers<[1], [0], [0], [1], [0, 0, 1, 1], [], []>} : vector<16x1792xbf16>, vector<1792x128xbf16>, vector<16x128xf32> -> vector<16x128xf32>
    %c0_3 = arith.constant 0 : index
    %c0_4 = arith.constant 0 : index
    %3 = vector.load %arg4[%c0_3, %c0_4] : memref<1x128xf32, #tpu.memory_space<vmem>>, vector<1x128xf32>
    %4 = vector.broadcast %3 : vector<1x128xf32> to vector<16x128xf32>
    %5 = arith.mulf %2, %4 : vector<16x128xf32>
    %c0_5 = arith.constant 0 : index
    %c0_6 = arith.constant 0 : index
    %6 = vector.load %arg5[%c0_5, %c0_6] : memref<1x128xf32, #tpu.memory_space<vmem>>, vector<1x128xf32>
    %7 = vector.broadcast %6 : vector<1x128xf32> to vector<16x128xf32>
    %8 = arith.addf %5, %7 : vector<16x128xf32>
    %cst_7 = arith.constant 0.000000e+00 : f32
    %9 = vector.broadcast %cst_7 : f32 to vector<16x128xf32>
    %10 = arith.maximumf %8, %9 : vector<16x128xf32>
    %11 = arith.truncf %10 : vector<16x128xf32> to vector<16x128xbf16>
    %c0_8 = arith.constant 0 : index
    %c0_9 = arith.constant 0 : index
    %12 = vector.load %arg9[%c0_8, %c0_9] : memref<16x128xbf16, #tpu.memory_space<vmem>>, vector<16x128xbf16>
    tpu.vector_store %arg9[%c0_8, %c0_9], %11 {strides = array<i32>} : memref<16x128xbf16, #tpu.memory_space<vmem>>, vector<16x128xbf16>,
    %c0_10 = arith.constant 0 : index
    %c0_11 = arith.constant 0 : index
    %13 = vector.load %arg2[%c0_10, %c0_11] : memref<16x64xbf16, #tpu.memory_space<vmem>>, vector<16x64xbf16>
    %c0_12 = arith.constant 0 : index
    %c0_13 = arith.constant 0 : index
    %14 = vector.load %arg6[%c0_12, %c0_13] : memref<64x128xbf16, #tpu.memory_space<vmem>>, vector<64x128xbf16>
    %cst_14 = arith.constant dense<0.000000e+00> : vector<16x128xf32>
    %15 = tpu.matmul %13, %14, %cst_14 {dimension_numbers = #tpu.dot_dimension_numbers<[1], [0], [0], [1], [0, 0, 1, 1], [], []>} : vector<16x64xbf16>, vector<64x128xbf16>, vector<16x128xf32> -> vector<16x128xf32>
    %c0_15 = arith.constant 0 : index
    %c0_16 = arith.constant 0 : index
    %16 = vector.load %arg7[%c0_15, %c0_16] : memref<1x128xf32, #tpu.memory_space<vmem>>, vector<1x128xf32>
    %17 = vector.broadcast %16 : vector<1x128xf32> to vector<16x128xf32>
    %18 = arith.mulf %15, %17 : vector<16x128xf32>
    %c0_17 = arith.constant 0 : index
    %c0_18 = arith.constant 0 : index
    %19 = vector.load %arg8[%c0_17, %c0_18] : memref<1x128xf32, #tpu.memory_space<vmem>>, vector<1x128xf32>
    %20 = vector.broadcast %19 : vector<1x128xf32> to vector<16x128xf32>
    %21 = arith.addf %18, %20 : vector<16x128xf32>
    %22 = arith.truncf %21 : vector<16x128xf32> to vector<16x128xbf16>
    %c0_19 = arith.constant 0 : index
    %c0_20 = arith.constant 0 : index
    %23 = vector.load %arg10[%c0_19, %c0_20] : memref<16x128xbf16, #tpu.memory_space<vmem>>, vector<16x128xbf16>
    tpu.vector_store %arg10[%c0_19, %c0_20], %22 {strides = array<i32>} : memref<16x128xbf16, #tpu.memory_space<vmem>>, vector<16x128xbf16>,
    return
  }
  func.func @transform_0(%arg0: i32) -> (i32, i32) {
    %c0_i32 = arith.constant 0 : i32
    %c0_i32_0 = arith.constant 0 : i32
    return %arg0, %c0_i32 : i32, i32
  }
  func.func @transform_1(%arg0: i32) -> (i32, i32) {
    %c0_i32 = arith.constant 0 : i32
    %c0_i32_0 = arith.constant 0 : i32
    return %arg0, %c0_i32 : i32, i32
  }
  func.func @transform_2(%arg0: i32) -> (i32, i32) {
    %c0_i32 = arith.constant 0 : i32
    %c0_i32_0 = arith.constant 0 : i32
    %c0_i32_1 = arith.constant 0 : i32
    return %c0_i32, %c0_i32_0 : i32, i32
  }
  func.func @transform_3(%arg0: i32) -> (i32, i32) {
    %c0_i32 = arith.constant 0 : i32
    %c0_i32_0 = arith.constant 0 : i32
    %c0_i32_1 = arith.constant 0 : i32
    return %c0_i32, %c0_i32_0 : i32, i32
  }
  func.func @transform_4(%arg0: i32) -> (i32, i32) {
    %c0_i32 = arith.constant 0 : i32
    %c0_i32_0 = arith.constant 0 : i32
    %c0_i32_1 = arith.constant 0 : i32
    return %c0_i32, %c0_i32_0 : i32, i32
  }
  func.func @transform_5(%arg0: i32) -> (i32, i32) {
    %c0_i32 = arith.constant 0 : i32
    %c0_i32_0 = arith.constant 0 : i32
    %c0_i32_1 = arith.constant 0 : i32
    return %c0_i32, %c0_i32_0 : i32, i32
  }
  func.func @transform_6(%arg0: i32) -> (i32, i32) {
    %c0_i32 = arith.constant 0 : i32
    %c0_i32_0 = arith.constant 0 : i32
    %c0_i32_1 = arith.constant 0 : i32
    return %c0_i32, %c0_i32_0 : i32, i32
  }
  func.func @transform_7(%arg0: i32) -> (i32, i32) {
    %c0_i32 = arith.constant 0 : i32
    %c0_i32_0 = arith.constant 0 : i32
    %c0_i32_1 = arith.constant 0 : i32
    return %c0_i32, %c0_i32_0 : i32, i32
  }
  func.func @transform_8(%arg0: i32) -> (i32, i32) {
    %c0_i32 = arith.constant 0 : i32
    %c0_i32_0 = arith.constant 0 : i32
    return %arg0, %c0_i32 : i32, i32
  }
  func.func @transform_9(%arg0: i32) -> (i32, i32) {
    %c0_i32 = arith.constant 0 : i32
    %c0_i32_0 = arith.constant 0 : i32
    return %arg0, %c0_i32 : i32, i32
  }
}

module attributes {stable_mosaic.version = 11 : i64} {
  func.func @_tail_kernel(%arg0: memref<2x1024xbf16, #tpu.memory_space<vmem>>, %arg1: memref<1024x256xbf16, #tpu.memory_space<vmem>>, %arg2: memref<1x256xf32, #tpu.memory_space<vmem>>, %arg3: memref<1x256xf32, #tpu.memory_space<vmem>>, %arg4: memref<128x256xbf16, #tpu.memory_space<vmem>>, %arg5: memref<1x256xf32, #tpu.memory_space<vmem>>, %arg6: memref<1x256xf32, #tpu.memory_space<vmem>>, %arg7: memref<256x256xbf16, #tpu.memory_space<vmem>>, %arg8: memref<1x256xf32, #tpu.memory_space<vmem>>, %arg9: memref<1x256xf32, #tpu.memory_space<vmem>>, %arg10: memref<256x512xbf16, #tpu.memory_space<vmem>>, %arg11: memref<1x512xf32, #tpu.memory_space<vmem>>, %arg12: memref<1x512xf32, #tpu.memory_space<vmem>>, %arg13: memref<256x512xbf16, #tpu.memory_space<vmem>>, %arg14: memref<1x512xf32, #tpu.memory_space<vmem>>, %arg15: memref<1x512xf32, #tpu.memory_space<vmem>>, %arg16: memref<512x512xbf16, #tpu.memory_space<vmem>>, %arg17: memref<1x512xf32, #tpu.memory_space<vmem>>, %arg18: memref<1x512xf32, #tpu.memory_space<vmem>>, %arg19: memref<512x1024xbf16, #tpu.memory_space<vmem>>, %arg20: memref<1x1024xf32, #tpu.memory_space<vmem>>, %arg21: memref<1x1024xf32, #tpu.memory_space<vmem>>, %arg22: memref<1x1xf32, #tpu.memory_space<vmem>>, %arg23: memref<2x1xf32, #tpu.memory_space<vmem>>) attributes {dimension_semantics = [], scalar_prefetch = 0 : i64, scratch_operands = 0 : i64, tpu.core_type = #tpu.core_type<tc>} {
    %c0 = arith.constant 0 : index
    %c0_0 = arith.constant 0 : index
    %0 = vector.load %arg0[%c0, %c0_0] : memref<2x1024xbf16, #tpu.memory_space<vmem>>, vector<2x1024xbf16>
    %c0_1 = arith.constant 0 : index
    %c0_2 = arith.constant 0 : index
    %1 = vector.load %arg1[%c0_1, %c0_2] : memref<1024x256xbf16, #tpu.memory_space<vmem>>, vector<1024x256xbf16>
    %cst = arith.constant dense<0.000000e+00> : vector<2x256xf32>
    %2 = tpu.matmul %0, %1, %cst {dimension_numbers = #tpu.dot_dimension_numbers<[1], [0], [0], [1], [0, 0, 1, 1], [], []>} : vector<2x1024xbf16>, vector<1024x256xbf16>, vector<2x256xf32> -> vector<2x256xf32>
    %c0_3 = arith.constant 0 : index
    %c0_4 = arith.constant 0 : index
    %3 = vector.load %arg2[%c0_3, %c0_4] : memref<1x256xf32, #tpu.memory_space<vmem>>, vector<1x256xf32>
    %4 = vector.broadcast %3 : vector<1x256xf32> to vector<2x256xf32>
    %5 = arith.mulf %2, %4 : vector<2x256xf32>
    %c0_5 = arith.constant 0 : index
    %c0_6 = arith.constant 0 : index
    %6 = vector.load %arg3[%c0_5, %c0_6] : memref<1x256xf32, #tpu.memory_space<vmem>>, vector<1x256xf32>
    %7 = vector.broadcast %6 : vector<1x256xf32> to vector<2x256xf32>
    %8 = arith.addf %5, %7 : vector<2x256xf32>
    %cst_7 = arith.constant 0.000000e+00 : f32
    %9 = vector.broadcast %cst_7 : f32 to vector<2x256xf32>
    %10 = arith.maximumf %8, %9 : vector<2x256xf32>
    %11 = vector.extract_strided_slice %0 {offsets = [0, 0], sizes = [2, 128], strides = [1, 1]} : vector<2x1024xbf16> to vector<2x128xbf16>
    %c0_8 = arith.constant 0 : index
    %c0_9 = arith.constant 0 : index
    %12 = vector.load %arg4[%c0_8, %c0_9] : memref<128x256xbf16, #tpu.memory_space<vmem>>, vector<128x256xbf16>
    %cst_10 = arith.constant dense<0.000000e+00> : vector<2x256xf32>
    %13 = tpu.matmul %11, %12, %cst_10 {dimension_numbers = #tpu.dot_dimension_numbers<[1], [0], [0], [1], [0, 0, 1, 1], [], []>} : vector<2x128xbf16>, vector<128x256xbf16>, vector<2x256xf32> -> vector<2x256xf32>
    %c0_11 = arith.constant 0 : index
    %c0_12 = arith.constant 0 : index
    %14 = vector.load %arg5[%c0_11, %c0_12] : memref<1x256xf32, #tpu.memory_space<vmem>>, vector<1x256xf32>
    %15 = vector.broadcast %14 : vector<1x256xf32> to vector<2x256xf32>
    %16 = arith.mulf %13, %15 : vector<2x256xf32>
    %c0_13 = arith.constant 0 : index
    %c0_14 = arith.constant 0 : index
    %17 = vector.load %arg6[%c0_13, %c0_14] : memref<1x256xf32, #tpu.memory_space<vmem>>, vector<1x256xf32>
    %18 = vector.broadcast %17 : vector<1x256xf32> to vector<2x256xf32>
    %19 = arith.addf %16, %18 : vector<2x256xf32>
    %20 = arith.truncf %10 : vector<2x256xf32> to vector<2x256xbf16>
    %c0_15 = arith.constant 0 : index
    %c0_16 = arith.constant 0 : index
    %21 = vector.load %arg7[%c0_15, %c0_16] : memref<256x256xbf16, #tpu.memory_space<vmem>>, vector<256x256xbf16>
    %cst_17 = arith.constant dense<0.000000e+00> : vector<2x256xf32>
    %22 = tpu.matmul %20, %21, %cst_17 {dimension_numbers = #tpu.dot_dimension_numbers<[1], [0], [0], [1], [0, 0, 1, 1], [], []>} : vector<2x256xbf16>, vector<256x256xbf16>, vector<2x256xf32> -> vector<2x256xf32>
    %c0_18 = arith.constant 0 : index
    %c0_19 = arith.constant 0 : index
    %23 = vector.load %arg8[%c0_18, %c0_19] : memref<1x256xf32, #tpu.memory_space<vmem>>, vector<1x256xf32>
    %24 = vector.broadcast %23 : vector<1x256xf32> to vector<2x256xf32>
    %25 = arith.mulf %22, %24 : vector<2x256xf32>
    %c0_20 = arith.constant 0 : index
    %c0_21 = arith.constant 0 : index
    %26 = vector.load %arg9[%c0_20, %c0_21] : memref<1x256xf32, #tpu.memory_space<vmem>>, vector<1x256xf32>
    %27 = vector.broadcast %26 : vector<1x256xf32> to vector<2x256xf32>
    %28 = arith.addf %25, %27 : vector<2x256xf32>
    %29 = arith.addf %28, %19 : vector<2x256xf32>
    %cst_22 = arith.constant 0.000000e+00 : f32
    %30 = vector.broadcast %cst_22 : f32 to vector<2x256xf32>
    %31 = arith.maximumf %29, %30 : vector<2x256xf32>
    %32 = arith.truncf %31 : vector<2x256xf32> to vector<2x256xbf16>
    %c0_23 = arith.constant 0 : index
    %c0_24 = arith.constant 0 : index
    %33 = vector.load %arg13[%c0_23, %c0_24] : memref<256x512xbf16, #tpu.memory_space<vmem>>, vector<256x512xbf16>
    %cst_25 = arith.constant dense<0.000000e+00> : vector<2x512xf32>
    %34 = tpu.matmul %32, %33, %cst_25 {dimension_numbers = #tpu.dot_dimension_numbers<[1], [0], [0], [1], [0, 0, 1, 1], [], []>} : vector<2x256xbf16>, vector<256x512xbf16>, vector<2x512xf32> -> vector<2x512xf32>
    %c0_26 = arith.constant 0 : index
    %c0_27 = arith.constant 0 : index
    %35 = vector.load %arg14[%c0_26, %c0_27] : memref<1x512xf32, #tpu.memory_space<vmem>>, vector<1x512xf32>
    %36 = vector.broadcast %35 : vector<1x512xf32> to vector<2x512xf32>
    %37 = arith.mulf %34, %36 : vector<2x512xf32>
    %c0_28 = arith.constant 0 : index
    %c0_29 = arith.constant 0 : index
    %38 = vector.load %arg15[%c0_28, %c0_29] : memref<1x512xf32, #tpu.memory_space<vmem>>, vector<1x512xf32>
    %39 = vector.broadcast %38 : vector<1x512xf32> to vector<2x512xf32>
    %40 = arith.addf %37, %39 : vector<2x512xf32>
    %c0_30 = arith.constant 0 : index
    %c0_31 = arith.constant 0 : index
    %41 = vector.load %arg10[%c0_30, %c0_31] : memref<256x512xbf16, #tpu.memory_space<vmem>>, vector<256x512xbf16>
    %cst_32 = arith.constant dense<0.000000e+00> : vector<2x512xf32>
    %42 = tpu.matmul %32, %41, %cst_32 {dimension_numbers = #tpu.dot_dimension_numbers<[1], [0], [0], [1], [0, 0, 1, 1], [], []>} : vector<2x256xbf16>, vector<256x512xbf16>, vector<2x512xf32> -> vector<2x512xf32>
    %c0_33 = arith.constant 0 : index
    %c0_34 = arith.constant 0 : index
    %43 = vector.load %arg11[%c0_33, %c0_34] : memref<1x512xf32, #tpu.memory_space<vmem>>, vector<1x512xf32>
    %44 = vector.broadcast %43 : vector<1x512xf32> to vector<2x512xf32>
    %45 = arith.mulf %42, %44 : vector<2x512xf32>
    %c0_35 = arith.constant 0 : index
    %c0_36 = arith.constant 0 : index
    %46 = vector.load %arg12[%c0_35, %c0_36] : memref<1x512xf32, #tpu.memory_space<vmem>>, vector<1x512xf32>
    %47 = vector.broadcast %46 : vector<1x512xf32> to vector<2x512xf32>
    %48 = arith.addf %45, %47 : vector<2x512xf32>
    %cst_37 = arith.constant 0.000000e+00 : f32
    %49 = vector.broadcast %cst_37 : f32 to vector<2x512xf32>
    %50 = arith.maximumf %48, %49 : vector<2x512xf32>
    %51 = arith.truncf %50 : vector<2x512xf32> to vector<2x512xbf16>
    %c0_38 = arith.constant 0 : index
    %c0_39 = arith.constant 0 : index
    %52 = vector.load %arg16[%c0_38, %c0_39] : memref<512x512xbf16, #tpu.memory_space<vmem>>, vector<512x512xbf16>
    %cst_40 = arith.constant dense<0.000000e+00> : vector<2x512xf32>
    %53 = tpu.matmul %51, %52, %cst_40 {dimension_numbers = #tpu.dot_dimension_numbers<[1], [0], [0], [1], [0, 0, 1, 1], [], []>} : vector<2x512xbf16>, vector<512x512xbf16>, vector<2x512xf32> -> vector<2x512xf32>
    %c0_41 = arith.constant 0 : index
    %c0_42 = arith.constant 0 : index
    %54 = vector.load %arg17[%c0_41, %c0_42] : memref<1x512xf32, #tpu.memory_space<vmem>>, vector<1x512xf32>
    %55 = vector.broadcast %54 : vector<1x512xf32> to vector<2x512xf32>
    %56 = arith.mulf %53, %55 : vector<2x512xf32>
    %c0_43 = arith.constant 0 : index
    %c0_44 = arith.constant 0 : index
    %57 = vector.load %arg18[%c0_43, %c0_44] : memref<1x512xf32, #tpu.memory_space<vmem>>, vector<1x512xf32>
    %58 = vector.broadcast %57 : vector<1x512xf32> to vector<2x512xf32>
    %59 = arith.addf %56, %58 : vector<2x512xf32>
    %60 = arith.addf %59, %40 : vector<2x512xf32>
    %cst_45 = arith.constant 0.000000e+00 : f32
    %61 = vector.broadcast %cst_45 : f32 to vector<2x512xf32>
    %62 = arith.maximumf %60, %61 : vector<2x512xf32>
    %63 = arith.truncf %62 : vector<2x512xf32> to vector<2x512xbf16>
    %c0_46 = arith.constant 0 : index
    %c0_47 = arith.constant 0 : index
    %64 = vector.load %arg19[%c0_46, %c0_47] : memref<512x1024xbf16, #tpu.memory_space<vmem>>, vector<512x1024xbf16>
    %cst_48 = arith.constant dense<0.000000e+00> : vector<2x1024xf32>
    %65 = tpu.matmul %63, %64, %cst_48 {dimension_numbers = #tpu.dot_dimension_numbers<[1], [0], [0], [1], [0, 0, 1, 1], [], []>} : vector<2x512xbf16>, vector<512x1024xbf16>, vector<2x1024xf32> -> vector<2x1024xf32>
    %c0_49 = arith.constant 0 : index
    %c0_50 = arith.constant 0 : index
    %66 = vector.load %arg20[%c0_49, %c0_50] : memref<1x1024xf32, #tpu.memory_space<vmem>>, vector<1x1024xf32>
    %67 = vector.broadcast %66 : vector<1x1024xf32> to vector<2x1024xf32>
    %68 = arith.addf %65, %67 : vector<2x1024xf32>
    %cst_51 = arith.constant 0.000000e+00 : f32
    %69 = vector.broadcast %cst_51 : f32 to vector<2x1024xf32>
    %70 = arith.maximumf %68, %69 : vector<2x1024xf32>
    %c0_52 = arith.constant 0 : index
    %c0_53 = arith.constant 0 : index
    %71 = vector.load %arg21[%c0_52, %c0_53] : memref<1x1024xf32, #tpu.memory_space<vmem>>, vector<1x1024xf32>
    %72 = vector.broadcast %71 : vector<1x1024xf32> to vector<2x1024xf32>
    %73 = arith.mulf %70, %72 : vector<2x1024xf32>
    %cst_54 = arith.constant dense<0.000000e+00> : vector<2xf32>
    %74 = vector.multi_reduction <add>, %73, %cst_54 [1] : vector<2x1024xf32> to vector<2xf32>
    %75 = vector.shape_cast %74 : vector<2xf32> to vector<2x1xf32>
    %c0_55 = arith.constant 0 : index
    %c0_56 = arith.constant 0 : index
    %76 = vector.load %arg22[%c0_55, %c0_56] : memref<1x1xf32, #tpu.memory_space<vmem>>, vector<1x1xf32>
    %77 = vector.broadcast %76 : vector<1x1xf32> to vector<2x1xf32>
    %78 = arith.addf %75, %77 : vector<2x1xf32>
    %c0_57 = arith.constant 0 : index
    %c0_58 = arith.constant 0 : index
    %79 = vector.load %arg23[%c0_57, %c0_58] : memref<2x1xf32, #tpu.memory_space<vmem>>, vector<2x1xf32>
    tpu.vector_store %arg23[%c0_57, %c0_58], %78 {strides = array<i32>} : memref<2x1xf32, #tpu.memory_space<vmem>>, vector<2x1xf32>,
    return
  }
}

module attributes {stable_mosaic.version = 11 : i64} {
  func.func @_gemm_kernel(%arg0: i32, %arg1: i32, %arg2: memref<16x3456xbf16, #tpu.memory_space<vmem>>, %arg3: memref<3456x128xbf16, #tpu.memory_space<vmem>>, %arg4: memref<1x128xf32, #tpu.memory_space<vmem>>, %arg5: memref<1x128xf32, #tpu.memory_space<vmem>>, %arg6: memref<16x128xbf16, #tpu.memory_space<vmem>>, %arg7: memref<16x128xbf16, #tpu.memory_space<vmem>>) attributes {dimension_semantics = [#tpu.dimension_semantics<parallel>, #tpu.dimension_semantics<parallel>], iteration_bounds = array<i64: 1, 1>, scalar_prefetch = 0 : i64, scratch_operands = 0 : i64, tpu.core_type = #tpu.core_type<tc>, window_params = [{transform_indices = @transform_0, window_bounds = array<i64: 16, 3456>}, {transform_indices = @transform_1, window_bounds = array<i64: 3456, 128>}, {transform_indices = @transform_2, window_bounds = array<i64: 1, 128>}, {transform_indices = @transform_3, window_bounds = array<i64: 1, 128>}, {transform_indices = @transform_4, window_bounds = array<i64: 16, 128>}, {transform_indices = @transform_5, window_bounds = array<i64: 16, 128>}]} {
    %c0 = arith.constant 0 : index
    %c0_0 = arith.constant 0 : index
    %0 = vector.load %arg2[%c0, %c0_0] : memref<16x3456xbf16, #tpu.memory_space<vmem>>, vector<16x3456xbf16>
    %c0_1 = arith.constant 0 : index
    %c0_2 = arith.constant 0 : index
    %1 = vector.load %arg3[%c0_1, %c0_2] : memref<3456x128xbf16, #tpu.memory_space<vmem>>, vector<3456x128xbf16>
    %cst = arith.constant dense<0.000000e+00> : vector<16x128xf32>
    %2 = tpu.matmul %0, %1, %cst {dimension_numbers = #tpu.dot_dimension_numbers<[1], [0], [0], [1], [0, 0, 1, 1], [], []>} : vector<16x3456xbf16>, vector<3456x128xbf16>, vector<16x128xf32> -> vector<16x128xf32>
    %c0_3 = arith.constant 0 : index
    %c0_4 = arith.constant 0 : index
    %3 = vector.load %arg4[%c0_3, %c0_4] : memref<1x128xf32, #tpu.memory_space<vmem>>, vector<1x128xf32>
    %4 = vector.broadcast %3 : vector<1x128xf32> to vector<16x128xf32>
    %5 = arith.mulf %2, %4 : vector<16x128xf32>
    %c0_5 = arith.constant 0 : index
    %c0_6 = arith.constant 0 : index
    %6 = vector.load %arg5[%c0_5, %c0_6] : memref<1x128xf32, #tpu.memory_space<vmem>>, vector<1x128xf32>
    %7 = vector.broadcast %6 : vector<1x128xf32> to vector<16x128xf32>
    %8 = arith.addf %5, %7 : vector<16x128xf32>
    %c0_7 = arith.constant 0 : index
    %c0_8 = arith.constant 0 : index
    %9 = vector.load %arg6[%c0_7, %c0_8] : memref<16x128xbf16, #tpu.memory_space<vmem>>, vector<16x128xbf16>
    %10 = arith.extf %9 : vector<16x128xbf16> to vector<16x128xf32>
    %11 = arith.addf %8, %10 : vector<16x128xf32>
    %cst_9 = arith.constant 0.000000e+00 : f32
    %12 = vector.broadcast %cst_9 : f32 to vector<16x128xf32>
    %13 = arith.maximumf %11, %12 : vector<16x128xf32>
    %14 = arith.truncf %13 : vector<16x128xf32> to vector<16x128xbf16>
    %c0_10 = arith.constant 0 : index
    %c0_11 = arith.constant 0 : index
    %15 = vector.load %arg7[%c0_10, %c0_11] : memref<16x128xbf16, #tpu.memory_space<vmem>>, vector<16x128xbf16>
    tpu.vector_store %arg7[%c0_10, %c0_11], %14 {strides = array<i32>} : memref<16x128xbf16, #tpu.memory_space<vmem>>, vector<16x128xbf16>,
    return
  }
  func.func @transform_0(%arg0: i32, %arg1: i32) -> (i32, i32) {
    %c0_i32 = arith.constant 0 : i32
    %c0_i32_0 = arith.constant 0 : i32
    return %arg0, %c0_i32 : i32, i32
  }
  func.func @transform_1(%arg0: i32, %arg1: i32) -> (i32, i32) {
    %c0_i32 = arith.constant 0 : i32
    %c0_i32_0 = arith.constant 0 : i32
    return %c0_i32, %arg1 : i32, i32
  }
  func.func @transform_2(%arg0: i32, %arg1: i32) -> (i32, i32) {
    %c0_i32 = arith.constant 0 : i32
    %c0_i32_0 = arith.constant 0 : i32
    return %c0_i32, %arg1 : i32, i32
  }
  func.func @transform_3(%arg0: i32, %arg1: i32) -> (i32, i32) {
    %c0_i32 = arith.constant 0 : i32
    %c0_i32_0 = arith.constant 0 : i32
    return %c0_i32, %arg1 : i32, i32
  }
  func.func @transform_4(%arg0: i32, %arg1: i32) -> (i32, i32) {
    %c0_i32 = arith.constant 0 : i32
    return %arg0, %arg1 : i32, i32
  }
  func.func @transform_5(%arg0: i32, %arg1: i32) -> (i32, i32) {
    %c0_i32 = arith.constant 0 : i32
    return %arg0, %arg1 : i32, i32
  }
}

</mosaic_0001>

<bundles_post_ra>
// kernel: rasternet_forward.6
= control target key start
LH: loop header
LB: loop body
LE: loop exit
PB: predicated region body
PF: predicated region fallthrough
CT: control target
= control target key end

     0   :  { %s1411_s15 = smov 0   ;;  %s1413_s16 = smov 0   ;;  %s1637_s0 = inlined_call_operand.vmem [shape: bf16[1024,384], index: 0, kind: input, shape index: {}]   ;;  %s1638_s1 = inlined_call_operand.vmem [shape: bf16[384,64], index: 1, kind: input, shape index: {}]   ;;  %s1639_s2 = inlined_call_operand.vmem [shape: f32[1,64], index: 2, kind: input, shape index: {}]   ;;  %s1640_s3 = inlined_call_operand.vmem [shape: f32[1,64], index: 3, kind: input, shape index: {}]   ;;  %s1641_s4 = inlined_call_operand.vmem [shape: bf16[1024,64], index: 4, kind: output, shape index: {}]  }
   0x1   :  { %s1415_s17 = smov 0  }
   0x2 LB: > { %s26_s18 = sadd.s32 1, %s1380_s16  ;;  %p1080_p0 = scmp.ge.s32.totalorder %s1384_s17, 1  ;;  %s1384_s17 = sphi %s1415_s17, %s14_s17   ;;  %s1380_s16 = sphi %s1413_s16, %s1643_s16   ;;  %s1376_s15 = sphi %s1411_s15, %s1642_s15  }
   0x3   : > { %p28_p1 = scmp.ge.s32.totalorder %s26_s18, 8  ;;  %p203_p2 = scmp.lt.s32.totalorder %s1384_s17, 9 }
   0x5   : > { %s1645_s18 = smov (%p28_p1, %s26_s18), 0  ;;  %p204_p3 = pnand %p1080_p0, %p203_p2 }
   0x6   : > { %v1306_v0 = vld [vmem:[%s1638_s1 + $0x40] sm:$0xff] (!%p204_p3)   ;;  %v1309_v3 = vld [vmem:[%s1638_s1 + $0x48] sm:$0xff] (!%p204_p3)   ;;  %v1312_v6 = vld [vmem:[%s1638_s1 + $0x50] sm:$0xff] (!%p204_p3)   ;;  %s1081_s9 = sshll.u32 (!%p204_p3), %s1376_s15, 4  ;;  %vm942_vm0 = vcmask (!%p204_p3), 519168  }
   0x7   : > { %207 = sbr.rel (%p204_p3) target bundleno = 323 (0x143), region = 36  ;;  %v1307_v1 = vld [vmem:[%s1638_s1] sm:$0xff] (!%p204_p3)   ;;  %1169 = vmatprep.subr.bf16.mxu0 (!%p204_p3), %v1306_v0  ;;  %v1310_v4 = vld [vmem:[%s1638_s1 + $0x8] sm:$0xff] (!%p204_p3)   ;;  %v1313_v7 = vld [vmem:[%s1638_s1 + $0x10] sm:$0xff] (!%p204_p3)   ;;  %p244_p4 = scmp.lt.s32.totalorder (!%p204_p3), %s1081_s9, 127 }
   0x8   : > { %v1308_v2 = vld [vmem:[%s1638_s1 + $0x80] sm:$0xff] (!%p204_p3)   ;;  %1170 = vmatpush3.bf16.msra.mxu0 (!%p204_p3), %v1307_v1  ;;  %v1311_v5 = vld [vmem:[%s1638_s1 + $0x88] sm:$0xff] (!%p204_p3)   ;;  %v1314_v8 = vld [vmem:[%s1638_s1 + $0x90] sm:$0xff] (!%p204_p3)  }
   0x9   : > { %1249 = vmatprep.subr.bf16.mxu1 (!%p204_p3), %v1308_v2  ;;  %1171 = vmatprep.subr.bf16.mxu0 (!%p204_p3), %v1309_v3  ;;  %v1315_v9 = vld [vmem:[%s1638_s1 + $0x58] sm:$0xff] (!%p204_p3)   ;;  %v1318_v12 = vld [vmem:[%s1638_s1 + $0x60] sm:$0xff] (!%p204_p3)   ;;  %v1321_v15 = vld [vmem:[%s1638_s1 + $0x68] sm:$0xff] (!%p204_p3)  }
   0xa   : > { %1250 = vmatpush3.bf16.msra.mxu1 (!%p204_p3), %v1308_v2  ;;  %v1316_v10 = vld [vmem:[%s1638_s1 + $0x18] sm:$0xff] (!%p204_p3)   ;;  %v1320_v13 = vld [vmem:[%s1638_s1 + $0xa0] sm:$0xff] (!%p204_p3)   ;;  %v1323_v16 = vld [vmem:[%s1638_s1 + $0xa8] sm:$0xff] (!%p204_p3)  }
   0xb   : > { %1251 = vmatprep.subr.bf16.mxu1 (!%p204_p3), %v1311_v5  ;;  %v1317_v11 = vld [vmem:[%s1638_s1 + $0x98] sm:$0xff] (!%p204_p3)   ;;  %v1319_v14 = vld [vmem:[%s1638_s1 + $0x20] sm:$0xff] (!%p204_p3)   ;;  %v1322_v17 = vld [vmem:[%s1638_s1 + $0x28] sm:$0xff] (!%p204_p3)  }
   0xc   : > { %1172 = vmatpush3.bf16.msra.mxu0 (!%p204_p3), %v1310_v4  ;;  %v1324_v18 = vld [vmem:[%s1638_s1 + $0x70] sm:$0xff] (!%p204_p3)   ;;  %v1327_v21 = vld [vmem:[%s1638_s1 + $0x78] sm:$0xff] (!%p204_p3)   ;;  %v1539_v55 = vld [vmem:[%s1639_s2] ss:$0 sm:$0xff] (!%p204_p3) }
   0xd   : > { %1173 = vmatprep.subr.bf16.mxu0 (!%p204_p3), %v1312_v6  ;;  %v1325_v19 = vld [vmem:[%s1638_s1 + $0x30] sm:$0xff] (!%p204_p3)   ;;  %v1329_v22 = vld [vmem:[%s1638_s1 + $0xb8] sm:$0xff] (!%p204_p3)   ;;  %v1544_v59 = vld [vmem:[%s1640_s3] ss:$0 sm:$0xff] (!%p204_p3) }
   0xe   : > { %1252 = vmatpush3.bf16.msra.mxu1 %v1311_v5  ;;  %s1647_s9 = smov (!%p244_p4, %s1081_s9), 127  ;;  %v1326_v20 = vld [vmem:[%s1638_s1 + $0xb0] sm:$0xff]   ;;  %v1328_v25 = vld [vmem:[%s1638_s1 + $0x38] sm:$0xff]  }
   0xf   : > { %1253 = vmatprep.subr.bf16.mxu1 %v1314_v8  ;;  %s1281_s5 = smul.u32 12, %s1647_s9 }
  0x10   : > { %1174 = vmatpush3.bf16.msra.mxu0 %v1313_v7 }
  0x11   : > { %1175 = vmatprep.subr.bf16.mxu0 %v1315_v9  ;;  %s1501_s21 = scalar_lea.vmem %s1637_s0, %s1281_s5  ;;  %s1084_s5 = sshll.u32 %s1647_s9, 2 }
  0x12   : > { %1254 = vmatpush3.bf16.msra.mxu1 %v1314_v8  ;;  %v1332_v23 = vld [vmem:[%s1501_s21 + $0x4] ss:$12 sps:$4 sm:$0xff]   ;;  %v1333_v24 = vld [vmem:[%s1501_s21 + $0x8] ss:$12 sps:$4 sm:$0xff]   ;;  %v1330_v26 = vld [vmem:[%s1501_s21] ss:$12 sps:$4 sm:$0xff]   ;;  %s1554_s8 = scalar_lea.vmem %s1641_s4, %s1084_s5 }
  0x13   : > { %1255 = vmatprep.subr.bf16.mxu1 %v1317_v11  ;;  %654 = vmatprep.mubr.bf16.mxu0 %v1332_v23  ;;  %v1335_v27 = vld [vmem:[%s1501_s21 + $0x1c] ss:$12 sps:$4 sm:$0xff]   ;;  %v1334_v28 = vld [vmem:[%s1501_s21 + $0x20] ss:$12 sps:$4 sm:$0xff]   ;;  %v1341_v29 = vld [vmem:[%s1501_s21 + $0x38] ss:$12 sps:$4 sm:$0xff]  }
  0x14   : > { %1176 = vmatpush3.bf16.msra.mxu0 %v1316_v10  ;;  %1265 = vmatprep.mubr.bf16.mxu1 %v1333_v24  ;;  %v1337_v30 = vld [vmem:[%s1501_s21 + $0x18] ss:$12 sps:$4 sm:$0xff]   ;;  %v1338_v31 = vld [vmem:[%s1501_s21 + $0x34] ss:$12 sps:$4 sm:$0xff]   ;;  %v1342_v32 = vld [vmem:[%s1501_s21 + $0x50] ss:$12 sps:$4 sm:$0xff]  }
  0x15   : > { %1177 = vmatprep.subr.bf16.mxu0 %v1318_v12  ;;  %v1349_v33 = vld [vmem:[%s1501_s21 + $0x68] ss:$12 sps:$4 sm:$0xff]   ;;  %v1340_v34 = vld [vmem:[%s1501_s21 + $0x30] ss:$12 sps:$4 sm:$0xff]   ;;  %v1343_v35 = vld [vmem:[%s1501_s21 + $0x4c] ss:$12 sps:$4 sm:$0xff]  }
  0x16   : > { %1256 = vmatpush3.bf16.msra.mxu1 %v1317_v11  ;;  %v1350_v36 = vld [vmem:[%s1501_s21 + $0x80] ss:$12 sps:$4 sm:$0xff]   ;;  %v1357_v37 = vld [vmem:[%s1501_s21 + $0x98] ss:$12 sps:$4 sm:$0xff]   ;;  %v1345_v38 = vld [vmem:[%s1501_s21 + $0x48] ss:$12 sps:$4 sm:$0xff]  }
  0x17   : > { %1257 = vmatprep.subr.bf16.mxu1 %v1320_v13  ;;  %v1346_v39 = vld [vmem:[%s1501_s21 + $0x64] ss:$12 sps:$4 sm:$0xff]   ;;  %v1348_v41 = vld [vmem:[%s1501_s21 + $0x60] ss:$12 sps:$4 sm:$0xff]   ;;  %v1351_v42 = vld [vmem:[%s1501_s21 + $0x7c] ss:$12 sps:$4 sm:$0xff]  }
  0x18   : > { %1178 = vmatpush3.bf16.msra.mxu0 %v1319_v14  ;;  %v1358_v40 = vld [vmem:[%s1501_s21 + $0xb0] ss:$12 sps:$4 sm:$0xff]   ;;  %v1353_v43 = vld [vmem:[%s1501_s21 + $0x78] ss:$12 sps:$4 sm:$0xff]   ;;  %v1354_v44 = vld [vmem:[%s1501_s21 + $0x94] ss:$12 sps:$4 sm:$0xff]  }
  0x19   : > { %1179 = vmatprep.subr.bf16.mxu0 %v1321_v15  ;;  %v1356_v45 = vld [vmem:[%s1501_s21 + $0x90] ss:$12 sps:$4 sm:$0xff]   ;;  %v1359_v46 = vld [vmem:[%s1501_s21 + $0xac] ss:$12 sps:$4 sm:$0xff]   ;;  %v1361_v47 = vld [vmem:[%s1501_s21 + $0xa8] ss:$12 sps:$4 sm:$0xff]  }
  0x1a   : > { %1258 = vmatpush3.bf16.msra.mxu1 %v1320_v13 }
  0x1b   : > { %1259 = vmatprep.subr.bf16.mxu1 %v1323_v16 }
  0x1c   : > { %1180 = vmatpush3.bf16.msra.mxu0 %v1322_v17 }
  0x1d   : > { %1181 = vmatprep.subr.bf16.mxu0 %v1324_v18 }
  0x1e   : > { %1260 = vmatpush3.bf16.msra.mxu1 %v1323_v16 }
  0x1f   : > { %1261 = vmatprep.subr.bf16.mxu1 %v1326_v20 }
  0x20   : > { %1182 = vmatpush3.bf16.msra.mxu0 %v1325_v19 }
  0x21   : > { %1183 = vmatprep.subr.bf16.mxu0 %v1327_v21 }
  0x22   : > { %1262 = vmatpush3.bf16.msra.mxu1 %v1326_v20 }
  0x23   : > { %1263 = vmatprep.subr.bf16.mxu1 %v1329_v22 }
  0x24   : > { %1184 = vmatpush3.bf16.msra.mxu0 %v1328_v25 }
  0x26   : > { %1264 = vmatpush3.bf16.msra.mxu1 %v1329_v22 }
  0x27   : > { %655 = vmatmul.mubr.bf16.vlgmr.msra.gmra.mrb[0].mxu0 %v1330_v26 }
  0x28   : > { %662 = vmatprep.mubr.bf16.mxu0 %v1335_v27 }
  0x29   : > { %1266 = vmatmul.mubr.bf16.vlgmr.msra.gmra.mrb[0].mxu1 %v1334_v28 }
  0x2a   : > { %1269 = vmatprep.mubr.bf16.mxu1 %v1341_v29 }
  0x2f   : > { %663 = vmatmul.mubr.bf16.gmra.mrb[4].mxu0 %v1337_v30 }
  0x30   : > { %670 = vmatprep.mubr.bf16.mxu0 %v1338_v31 }
  0x31   : > { %1270 = vmatmul.mubr.bf16.gmra.mrb[4].mxu1 %v1342_v32 }
  0x32   : > { %1273 = vmatprep.mubr.bf16.mxu1 %v1349_v33 }
  0x37   : > { %671 = vmatmul.mubr.bf16.gmra.mrb[8].mxu0 %v1340_v34 }
  0x38   : > { %678 = vmatprep.mubr.bf16.mxu0 %v1343_v35 }
  0x39   : > { %1274 = vmatmul.mubr.bf16.gmra.mrb[8].mxu1 %v1350_v36 }
  0x3a   : > { %1277 = vmatprep.mubr.bf16.mxu1 %v1357_v37 }
  0x3f   : > { %679 = vmatmul.mubr.bf16.gmra.mrb[12].mxu0 %v1345_v38 }
  0x40   : > { %686 = vmatprep.mubr.bf16.mxu0 %v1346_v39 }
  0x41   : > { %1278 = vmatmul.mubr.bf16.gmra.mrb[12].mxu1 %v1358_v40 }
  0x47   : > { %687 = vmatmul.mubr.bf16.gmra.mrb[16].mxu0 %v1348_v41 }
  0x48   : > { %694 = vmatprep.mubr.bf16.mxu0 %v1351_v42 }
  0x4f   : > { %695 = vmatmul.mubr.bf16.gmra.mrb[20].mxu0 %v1353_v43 }
  0x50   : > { %702 = vmatprep.mubr.bf16.mxu0 %v1354_v44 }
  0x57   : > { %703 = vmatmul.mubr.bf16.gmra.mrb[24].mxu0 %v1356_v45 }
  0x58   : > { %710 = vmatprep.mubr.bf16.mxu0 %v1359_v46 }
  0x5f   : > { %711 = vmatmul.mubr.bf16.gmra.mrb[28].mxu0 %v1361_v47 }
  0xfa   : > { %v1185_v48 = vpop.f32.mrb[0].mxu0 }
  0xfb   : > { %v1186_v49 = vpop.f32.mrb[1].mxu0 }
  0xfc   : > { %v1187_v50 = vadd.f32 %v1186_v49, %v1185_v48  ;;  %v1188_v51 = vpop.f32.mrb[2].mxu0  ;;  %v1267_v52 = vpop.f32.mrb[0].mxu1 }
  0xfd   : > { %v1189_v53 = vpop.f32.mrb[3].mxu0  ;;  %v753_v54 = vpop.f32.mrb[1].mxu1 }
  0xfe   : > { %v1190_v56 = vadd.f32 %v1189_v53, %v1188_v51  ;;  %v754_v57 = vadd.f32 %v1187_v50, %v753_v54  ;;  %v1268_v58 = vpop.f32.mrb[2].mxu1 }
  0xff   : > { %v756_v60 = vpop.f32.mrb[3].mxu1 }
 0x100   : > { %v823_v61 = vmul.f32 %v1539_v55, %v754_v57  ;;  %v757_v62 = vadd.f32 %v1190_v56, %v756_v60 }
 0x102   : > { %v846_v63 = vadd.f32 %v1544_v59, %v823_v61  ;;  %v824_v0 = vmul.f32 %v1539_v55, %v757_v62  ;;  %v1191_v1 = vpop.f32.mrb[4].mxu0 }
 0x103   : > { %v1192_v2 = vpop.f32.mrb[5].mxu0 }
 0x104   : > { %v862_v3 = vmax.f32 %v846_v63, 0.0  ;;  %v847_v4 = vadd.f32 %v1544_v59, %v824_v0  ;;  %v1193_v5 = vadd.f32 %v1192_v2, %v1191_v1  ;;  %v1194_v6 = vpop.f32.mrb[6].mxu0  ;;  %v1271_v7 = vpop.f32.mrb[4].mxu1 }
 0x105   : > { %v1195_v8 = vpop.f32.mrb[7].mxu0  ;;  %v769_v9 = vpop.f32.mrb[5].mxu1 }
 0x106   : > { %v1153_v10 = vpack.c.bf16 %v862_v3, %v862_v3  ;;  %v863_v11 = vmax.f32 %v847_v4, 0.0  ;;  %v762_v12 = vadd.f32 %v1267_v52, %v1193_v5  ;;  %v1196_v13 = vadd.f32 %v1195_v8, %v1194_v6  ;;  %v1272_v14 = vpop.f32.mrb[6].mxu1 }
 0x107   : > { %v772_v15 = vpop.f32.mrb[7].mxu1 }
 0x108   : > { %943 = vst.msk [vmem:[%s1554_s8] sm:$0xf] %vm942_vm0, %v1153_v10  ;;  %v1154_v16 = vpack.c.bf16 %v863_v11, %v863_v11  ;;  %v825_v17 = vmul.f32 %v1539_v55, %v762_v12  ;;  %v765_v18 = vadd.f32 %v1268_v58, %v1196_v13 }
 0x10a   : > { %944 = vst.msk [vmem:[%s1554_s8 + $0x4] sm:$0xf] %vm942_vm0, %v1154_v16  ;;  %v848_v19 = vadd.f32 %v1544_v59, %v825_v17  ;;  %v826_v20 = vmul.f32 %v1539_v55, %v765_v18  ;;  %v1197_v21 = vpop.f32.mrb[8].mxu0 }
 0x10b   : > { %v1198_v22 = vpop.f32.mrb[9].mxu0 }
 0x10c   : > { %v864_v23 = vmax.f32 %v848_v19, 0.0  ;;  %v849_v24 = vadd.f32 %v1544_v59, %v826_v20  ;;  %v1199_v25 = vadd.f32 %v1198_v22, %v1197_v21  ;;  %v1200_v26 = vpop.f32.mrb[10].mxu0  ;;  %v1564_v27 = vpop.f32.mrb[8].mxu1 }
 0x10d   : > { %v1201_v28 = vpop.f32.mrb[11].mxu0  ;;  %v785_v29 = vpop.f32.mrb[9].mxu1 }
 0x10e   : > { %v1155_v30 = vpack.c.bf16 %v864_v23, %v864_v23  ;;  %v865_v31 = vmax.f32 %v849_v24, 0.0  ;;  %v1202_v32 = vadd.f32 %v1201_v28, %v1200_v26  ;;  %v770_v33 = vadd.f32 %v1199_v25, %v769_v9  ;;  %v1566_v34 = vpop.f32.mrb[10].mxu1 }
 0x10f   : > { %v788_v35 = vpop.f32.mrb[11].mxu1 }
 0x110   : > { %945 = vst.msk [vmem:[%s1554_s8 + $0x8] sm:$0xf] %vm942_vm0, %v1155_v30  ;;  %v1156_v36 = vpack.c.bf16 %v865_v31, %v865_v31  ;;  %v827_v37 = vmul.f32 %v1539_v55, %v770_v33  ;;  %v773_v38 = vadd.f32 %v1202_v32, %v772_v15 }
 0x112   : > { %946 = vst.msk [vmem:[%s1554_s8 + $0xc] sm:$0xf] %vm942_vm0, %v1156_v36  ;;  %v850_v39 = vadd.f32 %v1544_v59, %v827_v37  ;;  %v828_v40 = vmul.f32 %v1539_v55, %v773_v38  ;;  %v1203_v41 = vpop.f32.mrb[12].mxu0 }
 0x113   : > { %v1204_v42 = vpop.f32.mrb[13].mxu0 }
 0x114   : > { %v866_v43 = vmax.f32 %v850_v39, 0.0  ;;  %v851_v44 = vadd.f32 %v1544_v59, %v828_v40  ;;  %v1205_v45 = vadd.f32 %v1204_v42, %v1203_v41  ;;  %v1206_v46 = vpop.f32.mrb[14].mxu0  ;;  %v1576_v47 = vpop.f32.mrb[12].mxu1 }
 0x115   : > { %v1207_v48 = vpop.f32.mrb[15].mxu0  ;;  %v801_v49 = vpop.f32.mrb[13].mxu1 }
 0x116   : > { %v1157_v50 = vpack.c.bf16 %v866_v43, %v866_v43  ;;  %v867_v51 = vmax.f32 %v851_v44, 0.0  ;;  %v778_v52 = vadd.f32 %v1271_v7, %v1205_v45  ;;  %v1208_v53 = vadd.f32 %v1207_v48, %v1206_v46  ;;  %v1578_v54 = vpop.f32.mrb[14].mxu1 }
 0x117   : > { %v804_v56 = vpop.f32.mrb[15].mxu1 }
 0x118   : > { %947 = vst.msk [vmem:[%s1554_s8 + $0x10] sm:$0xf] %vm942_vm0, %v1157_v50  ;;  %v1158_v57 = vpack.c.bf16 %v867_v51, %v867_v51  ;;  %v829_v58 = vmul.f32 %v1539_v55, %v778_v52  ;;  %v781_v60 = vadd.f32 %v1272_v14, %v1208_v53 }
 0x11a   : > { %948 = vst.msk [vmem:[%s1554_s8 + $0x14] sm:$0xf] %vm942_vm0, %v1158_v57  ;;  %v852_v61 = vadd.f32 %v1544_v59, %v829_v58  ;;  %v830_v62 = vmul.f32 %v1539_v55, %v781_v60  ;;  %v1209_v63 = vpop.f32.mrb[16].mxu0 }
 0x11b   : > { %v1210_v0 = vpop.f32.mrb[17].mxu0 }
 0x11c   : > { %v868_v1 = vmax.f32 %v852_v61, 0.0  ;;  %v853_v2 = vadd.f32 %v1544_v59, %v830_v62  ;;  %v1211_v3 = vadd.f32 %v1210_v0, %v1209_v63  ;;  %v1212_v4 = vpop.f32.mrb[18].mxu0 }
 0x11d   : > { %v1213_v5 = vpop.f32.mrb[19].mxu0 }
 0x11e   : > { %v1159_v6 = vpack.c.bf16 %v868_v1, %v868_v1  ;;  %v869_v7 = vmax.f32 %v853_v2, 0.0  ;;  %v1214_v8 = vadd.f32 %v1213_v5, %v1212_v4  ;;  %v786_v9 = vadd.f32 %v1211_v3, %v785_v29 }
 0x120   : > { %949 = vst.msk [vmem:[%s1554_s8 + $0x18] sm:$0xf] %vm942_vm0, %v1159_v6  ;;  %v1160_v10 = vpack.c.bf16 %v869_v7, %v869_v7  ;;  %v831_v11 = vmul.f32 %v1539_v55, %v786_v9  ;;  %v789_v12 = vadd.f32 %v1214_v8, %v788_v35 }
 0x122   : > { %950 = vst.msk [vmem:[%s1554_s8 + $0x1c] sm:$0xf] %vm942_vm0, %v1160_v10  ;;  %v854_v13 = vadd.f32 %v1544_v59, %v831_v11  ;;  %v832_v14 = vmul.f32 %v1539_v55, %v789_v12  ;;  %v1215_v15 = vpop.f32.mrb[20].mxu0 }
 0x123   : > { %v1216_v16 = vpop.f32.mrb[21].mxu0 }
 0x124   : > { %v870_v17 = vmax.f32 %v854_v13, 0.0  ;;  %v855_v18 = vadd.f32 %v1544_v59, %v832_v14  ;;  %v1217_v19 = vadd.f32 %v1216_v16, %v1215_v15  ;;  %v1218_v20 = vpop.f32.mrb[22].mxu0 }
 0x125   : > { %v1219_v21 = vpop.f32.mrb[23].mxu0 }
 0x126   : > { %v1161_v22 = vpack.c.bf16 %v870_v17, %v870_v17  ;;  %v871_v23 = vmax.f32 %v855_v18, 0.0  ;;  %v794_v24 = vadd.f32 %v1564_v27, %v1217_v19  ;;  %v1220_v25 = vadd.f32 %v1219_v21, %v1218_v20 }
 0x128   : > { %951 = vst.msk [vmem:[%s1554_s8 + $0x20] sm:$0xf] %vm942_vm0, %v1161_v22  ;;  %v1162_v26 = vpack.c.bf16 %v871_v23, %v871_v23  ;;  %v833_v28 = vmul.f32 %v1539_v55, %v794_v24  ;;  %v797_v29 = vadd.f32 %v1566_v34, %v1220_v25 }
 0x12a   : > { %952 = vst.msk [vmem:[%s1554_s8 + $0x24] sm:$0xf] %vm942_vm0, %v1162_v26  ;;  %v856_v30 = vadd.f32 %v1544_v59, %v833_v28  ;;  %v834_v31 = vmul.f32 %v1539_v55, %v797_v29  ;;  %v1221_v32 = vpop.f32.mrb[24].mxu0 }
 0x12b   : > { %v1222_v33 = vpop.f32.mrb[25].mxu0 }
 0x12c   : > { %v872_v35 = vmax.f32 %v856_v30, 0.0  ;;  %v857_v27 = vadd.f32 %v1544_v59, %v834_v31  ;;  %v1223_v36 = vadd.f32 %v1222_v33, %v1221_v32  ;;  %v1224_v37 = vpop.f32.mrb[26].mxu0 }
 0x12d   : > { %v1225_v38 = vpop.f32.mrb[27].mxu0 }
 0x12e   : > { %v1163_v39 = vpack.c.bf16 %v872_v35, %v872_v35  ;;  %v873_v40 = vmax.f32 %v857_v27, 0.0  ;;  %v1226_v41 = vadd.f32 %v1225_v38, %v1224_v37  ;;  %v802_v42 = vadd.f32 %v1223_v36, %v801_v49 }
 0x130   : > { %953 = vst.msk [vmem:[%s1554_s8 + $0x28] sm:$0xf] %vm942_vm0, %v1163_v39  ;;  %v1164_v34 = vpack.c.bf16 %v873_v40, %v873_v40  ;;  %v835_v43 = vmul.f32 %v1539_v55, %v802_v42  ;;  %v805_v44 = vadd.f32 %v1226_v41, %v804_v56 }
 0x132   : > { %954 = vst.msk [vmem:[%s1554_s8 + $0x2c] sm:$0xf] %vm942_vm0, %v1164_v34  ;;  %v858_v45 = vadd.f32 %v1544_v59, %v835_v43  ;;  %v836_v46 = vmul.f32 %v1539_v55, %v805_v44  ;;  %v1227_v48 = vpop.f32.mrb[28].mxu0 }
 0x133   : > { %v1228_v50 = vpop.f32.mrb[29].mxu0 }
 0x134   : > { %v874_v51 = vmax.f32 %v858_v45, 0.0  ;;  %v859_v52 = vadd.f32 %v1544_v59, %v836_v46  ;;  %v1229_v49 = vadd.f32 %v1228_v50, %v1227_v48  ;;  %v1230_v53 = vpop.f32.mrb[30].mxu0 }
 0x135   : > { %v1231_v57 = vpop.f32.mrb[31].mxu0 }
 0x136   : > { %v1165_v58 = vpack.c.bf16 %v874_v51, %v874_v51  ;;  %v875_v60 = vmax.f32 %v859_v52, 0.0  ;;  %v810_v56 = vadd.f32 %v1576_v47, %v1229_v49  ;;  %v1232_v61 = vadd.f32 %v1231_v57, %v1230_v53 }
 0x138   : > { %955 = vst.msk [vmem:[%s1554_s8 + $0x30] sm:$0xf] %vm942_vm0, %v1165_v58  ;;  %v1166_v62 = vpack.c.bf16 %v875_v60, %v875_v60  ;;  %v837_v63 = vmul.f32 %v1539_v55, %v810_v56  ;;  %v813_v0 = vadd.f32 %v1578_v54, %v1232_v61 }
 0x13a   : > { %956 = vst.msk [vmem:[%s1554_s8 + $0x34] sm:$0xf] %vm942_vm0, %v1166_v62  ;;  %v860_v1 = vadd.f32 %v1544_v59, %v837_v63  ;;  %v838_v2 = vmul.f32 %v1539_v55, %v813_v0 }
 0x13c   : > { %v876_v3 = vmax.f32 %v860_v1, 0.0  ;;  %v861_v4 = vadd.f32 %v1544_v59, %v838_v2 }
 0x13e   : > { %v1167_v5 = vpack.c.bf16 %v876_v3, %v876_v3  ;;  %v877_v6 = vmax.f32 %v861_v4, 0.0 }
 0x140   : > { %957 = vst.msk [vmem:[%s1554_s8 + $0x38] sm:$0xf] %vm942_vm0, %v1167_v5  ;;  %v1168_v47 = vpack.c.bf16 %v877_v6, %v877_v6 }
 0x142   : > { %958 = vst.msk [vmem:[%s1554_s8 + $0x3c] sm:$0xf] %vm942_vm0, %v1168_v47 }
 0x143 PF: > { %s14_s17 = sadd.s32 1, %s1384_s17   ;;  %s1642_s15 = smov %s1380_s16 }
 0x144   : > { %p11_p5 = scmp.ge.s32.totalorder %s14_s17, 10   ;;  %s1643_s16 = smov %s1645_s18 }
 0x146   :  { %13 = sbr.rel (!%p11_p5) target bundleno = 2 (0x2), region = 75 }

// kernel: rasternet_forward.7
= control target key start
LH: loop header
LB: loop body
LE: loop exit
PB: predicated region body
PF: predicated region fallthrough
CT: control target
= control target key end

     0   :  { %s3258_s30 = smov 0   ;;  %s3808_s0 = inlined_call_operand.vmem [shape: bf16[128,1792], index: 0, kind: input, shape index: {}]   ;;  %s3809_s1 = inlined_call_operand.vmem [shape: bf16[128,64], index: 1, kind: input, shape index: {}]   ;;  %s3810_s2 = inlined_call_operand.vmem [shape: bf16[1792,64], index: 2, kind: input, shape index: {}]   ;;  %s3811_s3 = inlined_call_operand.vmem [shape: f32[1,64], index: 3, kind: input, shape index: {}]   ;;  %s3812_s4 = inlined_call_operand.vmem [shape: f32[1,64], index: 4, kind: input, shape index: {}]   ;;  %s3813_s5 = inlined_call_operand.vmem [shape: bf16[64,64], index: 5, kind: input, shape index: {}]   ;;  %s3814_s6 = inlined_call_operand.vmem [shape: f32[1,64], index: 6, kind: input, shape index: {}]   ;;  %s3815_s7 = inlined_call_operand.vmem [shape: f32[1,64], index: 7, kind: input, shape index: {}]   ;;  %s3816_s8 = inlined_call_operand.vmem [shape: bf16[128,64], index: 8, kind: output, shape index: {0}]   ;;  %s3817_s9 = inlined_call_operand.vmem [shape: bf16[128,64], index: 9, kind: output, shape index: {1}]  }
   0x1 LB: > { %s2452_s10 = sadd.s32 4294967295, %s3206_s30   ;;  %p2456_p0 = scmp.ge.s32.totalorder %s3206_s30, 1  ;;  %s3206_s30 = sphi %s3258_s30, %s20_s30  }
   0x2   : > { %p303_p1 = scmp.lt.s32.totalorder %s3206_s30, 3 }
   0x4   : > { %p304_p2 = pnand %p2456_p0, %p303_p1 }
   0x5   : > { %v2996_v0 = vld [vmem:[%s3810_s2 + $0x40] sm:$0xff] (!%p304_p2)   ;;  %v3000_v4 = vld [vmem:[%s3810_s2 + $0x48] sm:$0xff] (!%p304_p2)   ;;  %v3004_v8 = vld [vmem:[%s3810_s2 + $0x50] sm:$0xff] (!%p304_p2)   ;;  %s2457_s22 = sshll.u32 (!%p304_p2), %s2452_s10, 3  ;;  %vm2202_vm0 = vcmask (!%p304_p2), 523264   ;;  %vm2133_vm1 = vcmask (!%p304_p2), 519168  }
   0x6   : > { %307 = sbr.rel (%p304_p2) target bundleno = 387 (0x183), region = 52  ;;  %v2997_v1 = vld [vmem:[%s3810_s2 + $0xc0] sm:$0xff] (!%p304_p2)   ;;  %2683 = vmatprep.subr.bf16.mxu0 (!%p304_p2), %v2996_v0  ;;  %v3001_v5 = vld [vmem:[%s3810_s2 + $0xc8] sm:$0xff] (!%p304_p2)   ;;  %v3005_v9 = vld [vmem:[%s3810_s2 + $0xd0] sm:$0xff] (!%p304_p2)   ;;  %p351_p3 = scmp.lt.s32.totalorder (!%p304_p2), %s2457_s22, 15 }
   0x7   : > { %v2998_v2 = vld [vmem:[%s3810_s2] sm:$0xff] (!%p304_p2)   ;;  %2723 = vmatprep.subr.bf16.mxu1 (!%p304_p2), %v2997_v1  ;;  %v3002_v6 = vld [vmem:[%s3810_s2 + $0x8] sm:$0xff] (!%p304_p2)   ;;  %v3006_v10 = vld [vmem:[%s3810_s2 + $0x10] sm:$0xff] (!%p304_p2)  }
   0x8   : > { %v2999_v3 = vld [vmem:[%s3810_s2 + $0x80] sm:$0xff] (!%p304_p2)   ;;  %2684 = vmatpush3.bf16.msra.mxu0 (!%p304_p2), %v2998_v2  ;;  %v3003_v7 = vld [vmem:[%s3810_s2 + $0x88] sm:$0xff] (!%p304_p2)   ;;  %v3007_v11 = vld [vmem:[%s3810_s2 + $0x90] sm:$0xff] (!%p304_p2)  }
   0x9   : > { %2724 = vmatpush3.bf16.msra.mxu1 (!%p304_p2), %v2999_v3  ;;  %2685 = vmatprep.subr.bf16.mxu0 (!%p304_p2), %v3000_v4  ;;  %v3008_v12 = vld [vmem:[%s3810_s2 + $0x58] sm:$0xff] (!%p304_p2)   ;;  %v3012_v16 = vld [vmem:[%s3810_s2 + $0x60] sm:$0xff] (!%p304_p2)   ;;  %v3016_v20 = vld [vmem:[%s3810_s2 + $0x68] sm:$0xff] (!%p304_p2)  }
   0xa   : > { %2725 = vmatprep.subr.bf16.mxu1 (!%p304_p2), %v3001_v5  ;;  %v3009_v13 = vld [vmem:[%s3810_s2 + $0xd8] sm:$0xff] (!%p304_p2)   ;;  %v3013_v17 = vld [vmem:[%s3810_s2 + $0xe0] sm:$0xff] (!%p304_p2)   ;;  %v3017_v21 = vld [vmem:[%s3810_s2 + $0xe8] sm:$0xff] (!%p304_p2)  }
   0xb   : > { %v3010_v14 = vld [vmem:[%s3810_s2 + $0x18] sm:$0xff] (!%p304_p2)   ;;  %v3014_v18 = vld [vmem:[%s3810_s2 + $0x20] sm:$0xff] (!%p304_p2)   ;;  %v3018_v22 = vld [vmem:[%s3810_s2 + $0x28] sm:$0xff] (!%p304_p2)  }
   0xc   : > { %2686 = vmatpush3.bf16.msra.mxu0 (!%p304_p2), %v3002_v6  ;;  %v3011_v15 = vld [vmem:[%s3810_s2 + $0x98] sm:$0xff] (!%p304_p2)   ;;  %v3015_v19 = vld [vmem:[%s3810_s2 + $0xa0] sm:$0xff] (!%p304_p2)   ;;  %v3019_v23 = vld [vmem:[%s3810_s2 + $0xa8] sm:$0xff] (!%p304_p2)  }
   0xd   : > { %2726 = vmatpush3.bf16.msra.mxu1 %v3003_v7  ;;  %2687 = vmatprep.subr.bf16.mxu0 %v3004_v8  ;;  %s3819_s22 = smov (!%p351_p3, %s2457_s22), 15  ;;  %v3020_v24 = vld [vmem:[%s3810_s2 + $0x70] sm:$0xff]   ;;  %v3024_v28 = vld [vmem:[%s3810_s2 + $0x78] sm:$0xff]   ;;  %v3034_v36 = vld [vmem:[%s3810_s2 + $0x140] sm:$0xff]  }
   0xe   : > { %2727 = vmatprep.subr.bf16.mxu1 %v3005_v9  ;;  %v3021_v25 = vld [vmem:[%s3810_s2 + $0xf0] sm:$0xff]   ;;  %s2987_s26 = smul.u32 56, %s3819_s22  ;;  %v3025_v29 = vld [vmem:[%s3810_s2 + $0xf8] sm:$0xff]   ;;  %v3035_v37 = vld [vmem:[%s3810_s2 + $0x100] sm:$0xff]   ;;  %s3667_s25 = sshll.u32 %s3819_s22, 2 }
   0xf   : > { %v3022_v26 = vld [vmem:[%s3810_s2 + $0x30] sm:$0xff]   ;;  %v3026_v30 = vld [vmem:[%s3810_s2 + $0x38] sm:$0xff]   ;;  %v3036_v38 = vld [vmem:[%s3810_s2 + $0x1c0] sm:$0xff]   ;;  %s361_s11 = scalar_lea.vmem %s3809_s1, %s3667_s25  ;;  %s3735_s23 = scalar_lea.vmem %s3817_s9, %s3667_s25 }
  0x10   : > { %2688 = vmatpush3.bf16.msra.mxu0 %v3006_v10  ;;  %v3023_v27 = vld [vmem:[%s3810_s2 + $0xb0] sm:$0xff]   ;;  %s3364_s17 = scalar_lea.vmem %s3808_s0, %s2987_s26  ;;  %v3027_v31 = vld [vmem:[%s3810_s2 + $0xb8] sm:$0xff]   ;;  %v3037_v39 = vld [vmem:[%s3810_s2 + $0x180] sm:$0xff]   ;;  %s3742_s27 = scalar_lea.vmem %s3816_s8, %s3667_s25 }
  0x11   : > { %2728 = vmatpush3.bf16.msra.mxu1 %v3007_v11  ;;  %2689 = vmatprep.subr.bf16.mxu0 %v3008_v12  ;;  %v3028_v32 = vld [vmem:[%s3364_s17] ss:$56 sps:$4 sm:$0xff]   ;;  %v3030_v33 = vld [vmem:[%s3364_s17 + $0x4] ss:$56 sps:$4 sm:$0xff]   ;;  %v3038_v40 = vld [vmem:[%s3810_s2 + $0x148] sm:$0xff]  }
  0x12   : > { %2729 = vmatprep.subr.bf16.mxu1 %v3009_v13  ;;  %v3031_v34 = vld [vmem:[%s3364_s17 + $0x8] ss:$56 sps:$4 sm:$0xff]   ;;  %v3033_v35 = vld [vmem:[%s3364_s17 + $0xc] ss:$56 sps:$4 sm:$0xff]   ;;  %1640 = vmatprep.mubr.bf16.mxu0 %v3030_v33  ;;  %v3043_v44 = vld [vmem:[%s3364_s17 + $0x7c] ss:$56 sps:$4 sm:$0xff]  }
  0x13   : > { %1705 = vmatprep.mubr.bf16.mxu1 %v3033_v35  ;;  %v3039_v41 = vld [vmem:[%s3810_s2 + $0x108] sm:$0xff]   ;;  %v3047_v47 = vld [vmem:[%s3364_s17 + $0x78] ss:$56 sps:$4 sm:$0xff]   ;;  %v3055_v55 = vld [vmem:[%s3364_s17 + $0xe4] ss:$56 sps:$4 sm:$0xff]  }
  0x14   : > { %2690 = vmatpush3.bf16.msra.mxu0 %v3010_v14  ;;  %v3040_v42 = vld [vmem:[%s3810_s2 + $0x1c8] sm:$0xff]   ;;  %v3048_v48 = vld [vmem:[%s3810_s2 + $0x150] sm:$0xff]   ;;  %v3052_v52 = vld [vmem:[%s3810_s2 + $0x158] sm:$0xff]  }
  0x15   : > { %2730 = vmatpush3.bf16.msra.mxu1 %v3011_v15  ;;  %2691 = vmatprep.subr.bf16.mxu0 %v3012_v16  ;;  %v3041_v43 = vld [vmem:[%s3364_s17 + $0x74] ss:$56 sps:$4 sm:$0xff]   ;;  %v3046_v46 = vld [vmem:[%s3364_s17 + $0x70] ss:$56 sps:$4 sm:$0xff]   ;;  %v3053_v53 = vld [vmem:[%s3810_s2 + $0x118] sm:$0xff]  }
  0x16   : > { %2731 = vmatprep.subr.bf16.mxu1 %v3013_v17  ;;  %v3045_v45 = vld [vmem:[%s3810_s2 + $0x188] sm:$0xff]   ;;  %v3049_v49 = vld [vmem:[%s3810_s2 + $0x110] sm:$0xff]   ;;  %v3054_v54 = vld [vmem:[%s3810_s2 + $0x1d8] sm:$0xff]  }
  0x17   : > { %v3050_v50 = vld [vmem:[%s3810_s2 + $0x1d0] sm:$0xff]   ;;  %v3057_v56 = vld [vmem:[%s3364_s17 + $0xec] ss:$56 sps:$4 sm:$0xff]   ;;  %v3059_v57 = vld [vmem:[%s3810_s2 + $0x198] sm:$0xff]  }
  0x18   : > { %2692 = vmatpush3.bf16.msra.mxu0 %v3014_v18  ;;  %v3051_v51 = vld [vmem:[%s3810_s2 + $0x190] sm:$0xff]   ;;  %v3060_v58 = vld [vmem:[%s3364_s17 + $0xe0] ss:$56 sps:$4 sm:$0xff]   ;;  %v3066_v0 = vld [vmem:[%s3810_s2 + $0x168] sm:$0xff]  }
  0x19   : > { %2732 = vmatpush3.bf16.msra.mxu1 %v3015_v19  ;;  %2693 = vmatprep.subr.bf16.mxu0 %v3016_v20  ;;  %v3061_v59 = vld [vmem:[%s3364_s17 + $0xe8] ss:$56 sps:$4 sm:$0xff]   ;;  %v3069_v3 = vld [vmem:[%s3364_s17 + $0x154] ss:$56 sps:$4 sm:$0xff]   ;;  %v3075_v7 = vld [vmem:[%s3364_s17 + $0x158] ss:$56 sps:$4 sm:$0xff]  }
  0x1a   : > { %2733 = vmatprep.subr.bf16.mxu1 %v3017_v21  ;;  %v3062_v60 = vld [vmem:[%s3810_s2 + $0x160] sm:$0xff]   ;;  %v3067_v1 = vld [vmem:[%s3810_s2 + $0x128] sm:$0xff]   ;;  %v3071_v4 = vld [vmem:[%s3364_s17 + $0x15c] ss:$56 sps:$4 sm:$0xff]  }
  0x1b   : > { %v3063_v61 = vld [vmem:[%s3810_s2 + $0x120] sm:$0xff]   ;;  %v3068_v2 = vld [vmem:[%s3810_s2 + $0x1e8] sm:$0xff]   ;;  %v3076_v8 = vld [vmem:[%s3810_s2 + $0x170] sm:$0xff]  }
  0x1c   : > { %2694 = vmatpush3.bf16.msra.mxu0 %v3018_v22  ;;  %v3064_v62 = vld [vmem:[%s3810_s2 + $0x1e0] sm:$0xff]   ;;  %v3073_v5 = vld [vmem:[%s3810_s2 + $0x1a8] sm:$0xff]   ;;  %v3077_v9 = vld [vmem:[%s3810_s2 + $0x130] sm:$0xff]  }
  0x1d   : > { %2734 = vmatpush3.bf16.msra.mxu1 %v3019_v23  ;;  %2695 = vmatprep.subr.bf16.mxu0 %v3020_v24  ;;  %v3065_v63 = vld [vmem:[%s3810_s2 + $0x1a0] sm:$0xff]   ;;  %v3074_v6 = vld [vmem:[%s3364_s17 + $0x150] ss:$56 sps:$4 sm:$0xff]   ;;  %v3080_v12 = vld [vmem:[%s3810_s2 + $0x178] sm:$0xff]  }
  0x1e   : > { %2735 = vmatprep.subr.bf16.mxu1 %v3021_v25  ;;  %v3078_v10 = vld [vmem:[%s3810_s2 + $0x1f0] sm:$0xff]   ;;  %v3081_v13 = vld [vmem:[%s3810_s2 + $0x138] sm:$0xff]   ;;  %v3087_v18 = vld [vmem:[%s3810_s2 + $0x240] sm:$0xff]  }
  0x1f   : > { %v3079_v11 = vld [vmem:[%s3810_s2 + $0x1b0] sm:$0xff]   ;;  %v3082_v14 = vld [vmem:[%s3810_s2 + $0x1f8] sm:$0xff]   ;;  %v3091_v21 = vld [vmem:[%s3810_s2 + $0x200] sm:$0xff]  }
  0x20   : > { %2696 = vmatpush3.bf16.msra.mxu0 %v3022_v26  ;;  %v3083_v15 = vld [vmem:[%s3364_s17 + $0x10] ss:$56 sps:$4 sm:$0xff]   ;;  %v3085_v16 = vld [vmem:[%s3364_s17 + $0x14] ss:$56 sps:$4 sm:$0xff]   ;;  %v3086_v17 = vld [vmem:[%s3810_s2 + $0x1b8] sm:$0xff]  }
  0x21   : > { %2736 = vmatpush3.bf16.msra.mxu1 %v3023_v27  ;;  %2697 = vmatprep.subr.bf16.mxu0 %v3024_v28  ;;  %v3088_v19 = vld [vmem:[%s3364_s17 + $0x18] ss:$56 sps:$4 sm:$0xff]   ;;  %v3090_v20 = vld [vmem:[%s3364_s17 + $0x1c] ss:$56 sps:$4 sm:$0xff]   ;;  %v3092_v22 = vld [vmem:[%s3810_s2 + $0x2c0] sm:$0xff]  }
  0x22   : > { %2737 = vmatprep.subr.bf16.mxu1 %v3025_v29  ;;  %v3093_v23 = vld [vmem:[%s3810_s2 + $0x280] sm:$0xff]   ;;  %v3094_v24 = vld [vmem:[%s3810_s2 + $0x248] sm:$0xff]   ;;  %v3107_v35 = vld [vmem:[%s3810_s2 + $0x290] sm:$0xff]  }
  0x23   : > { %v3095_v25 = vld [vmem:[%s3810_s2 + $0x208] sm:$0xff]   ;;  %v3097_v27 = vld [vmem:[%s3364_s17 + $0x84] ss:$56 sps:$4 sm:$0xff]   ;;  %v3100_v29 = vld [vmem:[%s3364_s17 + $0x80] ss:$56 sps:$4 sm:$0xff]  }
  0x24   : > { %2698 = vmatpush3.bf16.msra.mxu0 %v3026_v30  ;;  %v3096_v26 = vld [vmem:[%s3810_s2 + $0x2c8] sm:$0xff]   ;;  %v3101_v30 = vld [vmem:[%s3810_s2 + $0x250] sm:$0xff]  }
  0x25   : > { %2738 = vmatpush3.bf16.msra.mxu1 %v3027_v31  ;;  %2763 = vmatprep.subr.bf16.mxu0 %v3034_v36  ;;  %v3099_v28 = vld [vmem:[%s3810_s2 + $0x288] sm:$0xff]   ;;  %v3108_v36 = vld [vmem:[%s3810_s2 + $0x258] sm:$0xff]  }
  0x26   : > { %2803 = vmatprep.subr.bf16.mxu1 %v3036_v38  ;;  %v3102_v31 = vld [vmem:[%s3364_s17 + $0x8c] ss:$56 sps:$4 sm:$0xff]   ;;  %v3105_v33 = vld [vmem:[%s3364_s17 + $0x88] ss:$56 sps:$4 sm:$0xff]   ;;  %v3110_v38 = vld [vmem:[%s3810_s2 + $0x2d8] sm:$0xff]  }
  0x27   : > { %1641 = vmatmul.mubr.bf16.vlgmr.msra.gmra.mrb[0].mxu0 %v3028_v32  ;;  %v3104_v32 = vld [vmem:[%s3810_s2 + $0x210] sm:$0xff]  }
  0x28   : > { %1706 = vmatmul.mubr.bf16.vlgmr.msra.gmra.mrb[0].mxu1 %v3031_v34  ;;  %2764 = vmatpush3.bf16.msra.mxu0 %v3035_v37  ;;  %v3106_v34 = vld [vmem:[%s3810_s2 + $0x2d0] sm:$0xff]   ;;  %v3109_v37 = vld [vmem:[%s3810_s2 + $0x218] sm:$0xff]  }
  0x29   : > { %2804 = vmatpush3.bf16.msra.mxu1 %v3037_v39  ;;  %2765 = vmatprep.subr.bf16.mxu0 %v3038_v40  ;;  %v3111_v39 = vld [vmem:[%s3364_s17 + $0xf4] ss:$56 sps:$4 sm:$0xff]   ;;  %v3113_v40 = vld [vmem:[%s3810_s2 + $0x298] sm:$0xff]  }
  0x2a   : > { %2805 = vmatprep.subr.bf16.mxu1 %v3040_v42  ;;  %1648 = vmatprep.mubr.bf16.mxu0 %v3041_v43  ;;  %v3115_v42 = vld [vmem:[%s3810_s2 + $0x260] sm:$0xff]   ;;  %v3116_v43 = vld [vmem:[%s3364_s17 + $0xfc] ss:$56 sps:$4 sm:$0xff]  }
  0x2b   : > { %1713 = vmatprep.mubr.bf16.mxu1 %v3043_v44  ;;  %v3118_v44 = vld [vmem:[%s3810_s2 + $0x220] sm:$0xff]  }
  0x2c   : > { %2766 = vmatpush3.bf16.msra.mxu0 %v3039_v41  ;;  %v3114_v41 = vld [vmem:[%s3364_s17 + $0xf0] ss:$56 sps:$4 sm:$0xff]  }
  0x2d   : > { %2806 = vmatpush3.bf16.msra.mxu1 %v3045_v45  ;;  %2767 = vmatprep.subr.bf16.mxu0 %v3048_v48  ;;  %v3119_v45 = vld [vmem:[%s3364_s17 + $0xf8] ss:$56 sps:$4 sm:$0xff]   ;;  %v3122_v48 = vld [vmem:[%s3810_s2 + $0x268] sm:$0xff]  }
  0x2e   : > { %2807 = vmatprep.subr.bf16.mxu1 %v3050_v50  ;;  %v3124_v50 = vld [vmem:[%s3810_s2 + $0x2e8] sm:$0xff]  }
  0x2f   : > { %1649 = vmatmul.mubr.bf16.gmra.mrb[4].mxu0 %v3046_v46  ;;  %v3120_v46 = vld [vmem:[%s3810_s2 + $0x2e0] sm:$0xff]  }
  0x30   : > { %1714 = vmatmul.mubr.bf16.gmra.mrb[4].mxu1 %v3047_v47  ;;  %2768 = vmatpush3.bf16.msra.mxu0 %v3049_v49  ;;  %v3121_v47 = vld [vmem:[%s3810_s2 + $0x2a0] sm:$0xff]   ;;  %v3123_v49 = vld [vmem:[%s3810_s2 + $0x228] sm:$0xff]  }
  0x31   : > { %2808 = vmatpush3.bf16.msra.mxu1 %v3051_v51  ;;  %2769 = vmatprep.subr.bf16.mxu0 %v3052_v52  ;;  %v3125_v51 = vld [vmem:[%s3364_s17 + $0x164] ss:$56 sps:$4 sm:$0xff]   ;;  %v3127_v52 = vld [vmem:[%s3810_s2 + $0x2a8] sm:$0xff]  }
  0x32   : > { %2809 = vmatprep.subr.bf16.mxu1 %v3054_v54  ;;  %1656 = vmatprep.mubr.bf16.mxu0 %v3055_v55  ;;  %v3129_v54 = vld [vmem:[%s3810_s2 + $0x270] sm:$0xff]   ;;  %v3130_v55 = vld [vmem:[%s3364_s17 + $0x16c] ss:$56 sps:$4 sm:$0xff]  }
  0x33   : > { %1721 = vmatprep.mubr.bf16.mxu1 %v3057_v56  ;;  %v3132_v56 = vld [vmem:[%s3810_s2 + $0x230] sm:$0xff]  }
  0x34   : > { %2770 = vmatpush3.bf16.msra.mxu0 %v3053_v53  ;;  %v3128_v53 = vld [vmem:[%s3364_s17 + $0x160] ss:$56 sps:$4 sm:$0xff]  }
  0x35   : > { %2810 = vmatpush3.bf16.msra.mxu1 %v3059_v57  ;;  %2771 = vmatprep.subr.bf16.mxu0 %v3062_v60  ;;  %v3133_v57 = vld [vmem:[%s3364_s17 + $0x168] ss:$56 sps:$4 sm:$0xff]   ;;  %v3136_v60 = vld [vmem:[%s3810_s2 + $0x278] sm:$0xff]  }
  0x36   : > { %2811 = vmatprep.subr.bf16.mxu1 %v3064_v62  ;;  %v3138_v62 = vld [vmem:[%s3810_s2 + $0x2f8] sm:$0xff]  }
  0x37   : > { %1657 = vmatmul.mubr.bf16.gmra.mrb[8].mxu0 %v3060_v58  ;;  %v3134_v58 = vld [vmem:[%s3810_s2 + $0x2f0] sm:$0xff]  }
  0x38   : > { %1722 = vmatmul.mubr.bf16.gmra.mrb[8].mxu1 %v3061_v59  ;;  %2772 = vmatpush3.bf16.msra.mxu0 %v3063_v61  ;;  %v3135_v59 = vld [vmem:[%s3810_s2 + $0x2b0] sm:$0xff]   ;;  %v3137_v61 = vld [vmem:[%s3810_s2 + $0x238] sm:$0xff]  }
  0x39   : > { %2812 = vmatpush3.bf16.msra.mxu1 %v3065_v63  ;;  %2773 = vmatprep.subr.bf16.mxu0 %v3066_v0  ;;  %v3139_v63 = vld [vmem:[%s3364_s17 + $0x20] ss:$56 sps:$4 sm:$0xff]   ;;  %v3141_v0 = vld [vmem:[%s3364_s17 + $0x24] ss:$56 sps:$4 sm:$0xff]  }
  0x3a   : > { %2813 = vmatprep.subr.bf16.mxu1 %v3068_v2  ;;  %1664 = vmatprep.mubr.bf16.mxu0 %v3069_v3  ;;  %v3143_v2 = vld [vmem:[%s3810_s2 + $0x340] sm:$0xff]  }
  0x3b   : > { %1729 = vmatprep.mubr.bf16.mxu1 %v3071_v4  ;;  %v3144_v3 = vld [vmem:[%s3364_s17 + $0x28] ss:$56 sps:$4 sm:$0xff]   ;;  %v3146_v4 = vld [vmem:[%s3364_s17 + $0x2c] ss:$56 sps:$4 sm:$0xff]  }
  0x3c   : > { %2774 = vmatpush3.bf16.msra.mxu0 %v3067_v1  ;;  %v3142_v1 = vld [vmem:[%s3810_s2 + $0x2b8] sm:$0xff]  }
  0x3d   : > { %2814 = vmatpush3.bf16.msra.mxu1 %v3073_v5  ;;  %2775 = vmatprep.subr.bf16.mxu0 %v3076_v8  ;;  %v3147_v5 = vld [vmem:[%s3810_s2 + $0x300] sm:$0xff]   ;;  %v3150_v8 = vld [vmem:[%s3364_s17 + $0x94] ss:$56 sps:$4 sm:$0xff]  }
  0x3e   : > { %2815 = vmatprep.subr.bf16.mxu1 %v3078_v10  ;;  %v3153_v10 = vld [vmem:[%s3810_s2 + $0x350] sm:$0xff]  }
  0x3f   : > { %1665 = vmatmul.mubr.bf16.gmra.mrb[12].mxu0 %v3074_v6  ;;  %v3148_v6 = vld [vmem:[%s3810_s2 + $0x348] sm:$0xff]  }
  0x40   : > { %1730 = vmatmul.mubr.bf16.gmra.mrb[12].mxu1 %v3075_v7  ;;  %2776 = vmatpush3.bf16.msra.mxu0 %v3077_v9  ;;  %v3149_v7 = vld [vmem:[%s3810_s2 + $0x308] sm:$0xff]  }
  0x41   : > { %2816 = vmatpush3.bf16.msra.mxu1 %v3079_v11  ;;  %2777 = vmatprep.subr.bf16.mxu0 %v3080_v12  ;;  %v3152_v9 = vld [vmem:[%s3364_s17 + $0x90] ss:$56 sps:$4 sm:$0xff]   ;;  %v3154_v11 = vld [vmem:[%s3364_s17 + $0x9c] ss:$56 sps:$4 sm:$0xff]  }
  0x42   : > { %2817 = vmatprep.subr.bf16.mxu1 %v3082_v14  ;;  %1770 = vmatprep.mubr.bf16.mxu0 %v3085_v16  ;;  %v3156_v12 = vld [vmem:[%s3810_s2 + $0x310] sm:$0xff]   ;;  %v3158_v14 = vld [vmem:[%s3810_s2 + $0x358] sm:$0xff]  }
  0x43   : > { %1835 = vmatprep.mubr.bf16.mxu1 %v3090_v20  ;;  %v3160_v16 = vld [vmem:[%s3364_s17 + $0x104] ss:$56 sps:$4 sm:$0xff]  }
  0x44   : > { %2778 = vmatpush3.bf16.msra.mxu0 %v3081_v13  ;;  %v3157_v13 = vld [vmem:[%s3364_s17 + $0x98] ss:$56 sps:$4 sm:$0xff]   ;;  %v3166_v20 = vld [vmem:[%s3810_s2 + $0x320] sm:$0xff]  }
  0x45   : > { %2818 = vmatpush3.bf16.msra.mxu1 %v3086_v17  ;;  %2843 = vmatprep.subr.bf16.mxu0 %v3087_v18  ;;  %v3162_v17 = vld [vmem:[%s3364_s17 + $0x100] ss:$56 sps:$4 sm:$0xff]  }
  0x46   : > { %2883 = vmatprep.subr.bf16.mxu1 %v3092_v22  ;;  %v3163_v18 = vld [vmem:[%s3810_s2 + $0x360] sm:$0xff]   ;;  %v3168_v22 = vld [vmem:[%s3810_s2 + $0x368] sm:$0xff]  }
  0x47   : > { %1771 = vmatmul.mubr.bf16.vlgmr.msra.gmra.mrb[16].mxu0 %v3083_v15  ;;  %v3159_v15 = vld [vmem:[%s3810_s2 + $0x318] sm:$0xff]  }
  0x48   : > { %2844 = vmatpush3.bf16.msra.mxu0 %v3091_v21  ;;  %1836 = vmatmul.mubr.bf16.vlgmr.msra.gmra.mrb[16].mxu1 %v3088_v19  ;;  %v3164_v19 = vld [vmem:[%s3364_s17 + $0x10c] ss:$56 sps:$4 sm:$0xff]   ;;  %v3167_v21 = vld [vmem:[%s3364_s17 + $0x108] ss:$56 sps:$4 sm:$0xff]  }
  0x49   : > { %2884 = vmatpush3.bf16.msra.mxu1 %v3093_v23  ;;  %2845 = vmatprep.subr.bf16.mxu0 %v3094_v24  ;;  %v3169_v23 = vld [vmem:[%s3810_s2 + $0x328] sm:$0xff]   ;;  %v3170_v24 = vld [vmem:[%s3813_s5] sm:$0xff]  }
  0x4a   : > { %2885 = vmatprep.subr.bf16.mxu1 %v3096_v26  ;;  %1778 = vmatprep.mubr.bf16.mxu0 %v3097_v27  ;;  %v3173_v26 = vld [vmem:[%s3364_s17 + $0x170] ss:$56 sps:$4 sm:$0xff]  }
  0x4b   : > { %1843 = vmatprep.mubr.bf16.mxu1 %v3102_v31  ;;  %v3174_v27 = vld [vmem:[%s3810_s2 + $0x370] sm:$0xff]   ;;  %v3179_v31 = vld [vmem:[%s3810_s2 + $0x378] sm:$0xff]  }
  0x4c   : > { %2846 = vmatpush3.bf16.msra.mxu0 %v3095_v25  ;;  %v3171_v25 = vld [vmem:[%s3364_s17 + $0x174] ss:$56 sps:$4 sm:$0xff]  }
  0x4d   : > { %2886 = vmatpush3.bf16.msra.mxu1 %v3099_v28  ;;  %2847 = vmatprep.subr.bf16.mxu0 %v3101_v30  ;;  %v3175_v28 = vld [vmem:[%s3364_s17 + $0x17c] ss:$56 sps:$4 sm:$0xff]   ;;  %v3178_v30 = vld [vmem:[%s3364_s17 + $0x178] ss:$56 sps:$4 sm:$0xff]  }
  0x4e   : > { %2887 = vmatprep.subr.bf16.mxu1 %v3106_v34  ;;  %v3184_v34 = vld [vmem:[%s3364_s17 + $0x34] ss:$56 sps:$4 sm:$0xff]  }
  0x4f   : > { %1779 = vmatmul.mubr.bf16.gmra.mrb[20].mxu0 %v3100_v29  ;;  %v3177_v29 = vld [vmem:[%s3810_s2 + $0x330] sm:$0xff]  }
  0x50   : > { %2848 = vmatpush3.bf16.msra.mxu0 %v3104_v32  ;;  %1844 = vmatmul.mubr.bf16.gmra.mrb[20].mxu1 %v3105_v33  ;;  %v3181_v32 = vld [vmem:[%s3813_s5 + $0x8] sm:$0xff]   ;;  %v3180_v33 = vld [vmem:[%s3810_s2 + $0x338] sm:$0xff]  }
  0x51   : > { %2888 = vmatpush3.bf16.msra.mxu1 %v3107_v35  ;;  %2849 = vmatprep.subr.bf16.mxu0 %v3108_v36  ;;  %v3185_v35 = vld [vmem:[%s3813_s5 + $0x10] sm:$0xff]  }
  0x52   : > { %2889 = vmatprep.subr.bf16.mxu1 %v3110_v38  ;;  %1786 = vmatprep.mubr.bf16.mxu0 %v3111_v39  ;;  %v3182_v36 = vld [vmem:[%s3364_s17 + $0x30] ss:$56 sps:$4 sm:$0xff]   ;;  %v3186_v38 = vld [vmem:[%s3364_s17 + $0xa4] ss:$56 sps:$4 sm:$0xff]  }
  0x53   : > { %1851 = vmatprep.mubr.bf16.mxu1 %v3116_v43  ;;  %v3193_v39 = vld [vmem:[%s361_s11] sm:$0xff]   ;;  %v3190_v43 = vld [vmem:[%s3364_s17 + $0x114] ss:$56 sps:$4 sm:$0xff]  }
  0x54   : > { %2850 = vmatpush3.bf16.msra.mxu0 %v3109_v37  ;;  %v3189_v37 = vld [vmem:[%s3813_s5 + $0x18] sm:$0xff]  }
  0x55   : > { %2890 = vmatpush3.bf16.msra.mxu1 %v3113_v40  ;;  %2851 = vmatprep.subr.bf16.mxu0 %v3115_v42  ;;  %v3194_v40 = vld [vmem:[%s361_s11 + $0x8] sm:$0xff]   ;;  %v3188_v42 = vld [vmem:[%s3364_s17 + $0xa0] ss:$56 sps:$4 sm:$0xff]  }
  0x56   : > { %2891 = vmatprep.subr.bf16.mxu1 %v3120_v46  ;;  %v3195_v46 = vld [vmem:[%s3364_s17 + $0x184] ss:$56 sps:$4 sm:$0xff]  }
  0x57   : > { %1787 = vmatmul.mubr.bf16.gmra.mrb[24].mxu0 %v3114_v41  ;;  %v3198_v41 = vld [vmem:[%s361_s11 + $0x10] sm:$0xff]  }
  0x58   : > { %2852 = vmatpush3.bf16.msra.mxu0 %v3118_v44  ;;  %1852 = vmatmul.mubr.bf16.gmra.mrb[24].mxu1 %v3119_v45  ;;  %v3199_v44 = vld [vmem:[%s361_s11 + $0x18] sm:$0xff]   ;;  %v3192_v45 = vld [vmem:[%s3364_s17 + $0x110] ss:$56 sps:$4 sm:$0xff]  }
  0x59   : > { %2892 = vmatpush3.bf16.msra.mxu1 %v3121_v47  ;;  %2853 = vmatprep.subr.bf16.mxu0 %v3122_v48  ;;  %v3197_v47 = vld [vmem:[%s3364_s17 + $0x180] ss:$56 sps:$4 sm:$0xff]  }
  0x5a   : > { %2893 = vmatprep.subr.bf16.mxu1 %v3124_v50  ;;  %1794 = vmatprep.mubr.bf16.mxu0 %v3125_v51 }
  0x5b   : > { %1859 = vmatprep.mubr.bf16.mxu1 %v3130_v55 }
  0x5c   : > { %2854 = vmatpush3.bf16.msra.mxu0 %v3123_v49 }
  0x5d   : > { %2894 = vmatpush3.bf16.msra.mxu1 %v3127_v52  ;;  %2855 = vmatprep.subr.bf16.mxu0 %v3129_v54 }
  0x5e   : > { %2895 = vmatprep.subr.bf16.mxu1 %v3134_v58 }
  0x5f   : > { %1795 = vmatmul.mubr.bf16.gmra.mrb[28].mxu0 %v3128_v53 }
  0x60   : > { %2856 = vmatpush3.bf16.msra.mxu0 %v3132_v56  ;;  %1860 = vmatmul.mubr.bf16.gmra.mrb[28].mxu1 %v3133_v57 }
  0x61   : > { %2896 = vmatpush3.bf16.msra.mxu1 %v3135_v59  ;;  %2857 = vmatprep.subr.bf16.mxu0 %v3136_v60 }
  0x62   : > { %2897 = vmatprep.subr.bf16.mxu1 %v3138_v62  ;;  %1900 = vmatprep.mubr.bf16.mxu0 %v3141_v0 }
  0x63   : > { %1965 = vmatprep.mubr.bf16.mxu1 %v3146_v4 }
  0x64   : > { %2858 = vmatpush3.bf16.msra.mxu0 %v3137_v61 }
  0x65   : > { %2898 = vmatpush3.bf16.msra.mxu1 %v3142_v1  ;;  %2923 = vmatprep.subr.bf16.mxu0 %v3143_v2 }
  0x66   : > { %2971 = vmatprep.subr.bf16.mxu1 %v3170_v24 }
  0x67   : > { %1901 = vmatmul.mubr.bf16.vlgmr.msra.gmra.mrb[32].mxu0 %v3139_v63 }
  0x68   : > { %2924 = vmatpush3.bf16.msra.mxu0 %v3147_v5  ;;  %1966 = vmatmul.mubr.bf16.vlgmr.msra.gmra.mrb[32].mxu1 %v3144_v3 }
  0x69   : > { %2925 = vmatprep.subr.bf16.mxu0 %v3148_v6  ;;  %1908 = vmatprep.mubr.bf16.mxu0 %v3150_v8 }
  0x6a   : > { %1973 = vmatprep.mubr.bf16.mxu1 %v3154_v11  ;;  %2972 = vmatpush3.bf16.msra.mxu1 %v3170_v24 }
  0x6b   : > { %2973 = vmatprep.subr.bf16.mxu1 %v3181_v32 }
  0x6c   : > { %2926 = vmatpush3.bf16.msra.mxu0 %v3149_v7 }
  0x6d   : > { %2927 = vmatprep.subr.bf16.mxu0 %v3153_v10 }
  0x6e   : > { %2974 = vmatpush3.bf16.msra.mxu1 %v3181_v32 }
  0x6f   : > { %1909 = vmatmul.mubr.bf16.gmra.mrb[36].mxu0 %v3152_v9  ;;  %2975 = vmatprep.subr.bf16.mxu1 %v3185_v35 }
  0x70   : > { %2928 = vmatpush3.bf16.msra.mxu0 %v3156_v12  ;;  %1974 = vmatmul.mubr.bf16.gmra.mrb[36].mxu1 %v3157_v13 }
  0x71   : > { %2929 = vmatprep.subr.bf16.mxu0 %v3158_v14  ;;  %1916 = vmatprep.mubr.bf16.mxu0 %v3160_v16 }
  0x72   : > { %1981 = vmatprep.mubr.bf16.mxu1 %v3164_v19  ;;  %2976 = vmatpush3.bf16.msra.mxu1 %v3185_v35 }
  0x73   : > { %2977 = vmatprep.subr.bf16.mxu1 %v3189_v37 }
  0x74   : > { %2930 = vmatpush3.bf16.msra.mxu0 %v3159_v15 }
  0x75   : > { %2931 = vmatprep.subr.bf16.mxu0 %v3163_v18 }
  0x76   : > { %2978 = vmatpush3.bf16.msra.mxu1 %v3189_v37 }
  0x77   : > { %1917 = vmatmul.mubr.bf16.gmra.mrb[40].mxu0 %v3162_v17 }
  0x78   : > { %2932 = vmatpush3.bf16.msra.mxu0 %v3166_v20  ;;  %1982 = vmatmul.mubr.bf16.gmra.mrb[40].mxu1 %v3167_v21 }
  0x79   : > { %2933 = vmatprep.subr.bf16.mxu0 %v3168_v22  ;;  %1924 = vmatprep.mubr.bf16.mxu0 %v3171_v25 }
  0x7a   : > { %1989 = vmatprep.mubr.bf16.mxu1 %v3175_v28 }
  0x7c   : > { %2934 = vmatpush3.bf16.msra.mxu0 %v3169_v23 }
  0x7d   : > { %2935 = vmatprep.subr.bf16.mxu0 %v3174_v27 }
  0x7f   : > { %1925 = vmatmul.mubr.bf16.gmra.mrb[44].mxu0 %v3173_v26 }
  0x80   : > { %2936 = vmatpush3.bf16.msra.mxu0 %v3177_v29  ;;  %1990 = vmatmul.mubr.bf16.gmra.mrb[44].mxu1 %v3178_v30 }
  0x81   : > { %2937 = vmatprep.subr.bf16.mxu0 %v3179_v31  ;;  %2030 = vmatprep.mubr.bf16.mxu0 %v3184_v34 }
  0x82   : > { %2979 = vmatprep.mubr.msk.bf16.mxu1 %vm2202_vm0, %v3193_v39 }
  0x84   : > { %2938 = vmatpush3.bf16.msra.mxu0 %v3180_v33 }
  0x87   : > { %2031 = vmatmul.mubr.bf16.vlgmr.msra.gmra.mrb[48].mxu0 %v3182_v36 }
  0x88   : > { %2038 = vmatprep.mubr.bf16.mxu0 %v3186_v38  ;;  %2980 = vmatmul.mubr.msk.bf16.vlgmr.msra.gmra.mrb[48].mxu1 %vm2202_vm0, %v3194_v40 }
  0x89   : > { %2983 = vmatprep.mubr.msk.bf16.mxu1 %vm2202_vm0, %v3198_v41 }
  0x8f   : > { %2039 = vmatmul.mubr.bf16.gmra.mrb[52].mxu0 %v3188_v42 }
  0x90   : > { %2046 = vmatprep.mubr.bf16.mxu0 %v3190_v43  ;;  %2984 = vmatmul.mubr.msk.bf16.gmra.mrb[52].mxu1 %vm2202_vm0, %v3199_v44 }
  0x97   : > { %2047 = vmatmul.mubr.bf16.gmra.mrb[56].mxu0 %v3192_v45 }
  0x98   : > { %2054 = vmatprep.mubr.bf16.mxu0 %v3195_v46 }
  0x9f   : > { %2055 = vmatmul.mubr.bf16.gmra.mrb[60].mxu0 %v3197_v47 }
  0xfa   : > { %v2699_v48 = vpop.f32.mrb[0].mxu0 }
  0xfb   : > { %v2739_v49 = vpop.f32.mrb[0].mxu1  ;;  %v2700_v50 = vpop.f32.mrb[1].mxu0 }
  0xfc   : > { %v2701_v51 = vadd.f32 %v2700_v50, %v2699_v48  ;;  %v2740_v52 = vpop.f32.mrb[1].mxu1  ;;  %v2702_v53 = vpop.f32.mrb[2].mxu0 }
  0xfd   : > { %v2741_v54 = vadd.f32 %v2740_v52, %v2739_v49  ;;  %v2742_v55 = vpop.f32.mrb[2].mxu1  ;;  %v2703_v56 = vpop.f32.mrb[3].mxu0 }
  0xfe   : > { %v2704_v57 = vadd.f32 %v2703_v56, %v2702_v53  ;;  %v2743_v58 = vpop.f32.mrb[3].mxu1 }
  0xff   : > { %v1708_v59 = vadd.f32 %v2741_v54, %v2701_v51  ;;  %v2744_v60 = vadd.f32 %v2743_v58, %v2742_v55 }
 0x101   : > { %v1711_v61 = vadd.f32 %v2744_v60, %v2704_v57 }
 0x102   : > { %v2705_v62 = vpop.f32.mrb[4].mxu0 }
 0x103   : > { %v2745_v63 = vpop.f32.mrb[4].mxu1  ;;  %v2706_v0 = vpop.f32.mrb[5].mxu0 }
 0x104   : > { %v2707_v1 = vadd.f32 %v2706_v0, %v2705_v62  ;;  %v2746_v2 = vpop.f32.mrb[5].mxu1  ;;  %v2708_v3 = vpop.f32.mrb[6].mxu0 }
 0x105   : > { %v2747_v4 = vadd.f32 %v2746_v2, %v2745_v63  ;;  %v2748_v5 = vpop.f32.mrb[6].mxu1  ;;  %v2709_v6 = vpop.f32.mrb[7].mxu0 }
 0x106   : > { %v2710_v7 = vadd.f32 %v2709_v6, %v2708_v3  ;;  %v2749_v8 = vpop.f32.mrb[7].mxu1 }
 0x107   : > { %v1716_v9 = vadd.f32 %v2747_v4, %v2707_v1  ;;  %v2750_v10 = vadd.f32 %v2749_v8, %v2748_v5 }
 0x109   : > { %v1719_v11 = vadd.f32 %v2750_v10, %v2710_v7 }
 0x10a   : > { %v2711_v12 = vpop.f32.mrb[8].mxu0 }
 0x10b   : > { %v2751_v13 = vpop.f32.mrb[8].mxu1  ;;  %v2712_v14 = vpop.f32.mrb[9].mxu0 }
 0x10c   : > { %v2713_v15 = vadd.f32 %v2712_v14, %v2711_v12  ;;  %v2752_v16 = vpop.f32.mrb[9].mxu1  ;;  %v2714_v17 = vpop.f32.mrb[10].mxu0 }
 0x10d   : > { %v2753_v18 = vadd.f32 %v2752_v16, %v2751_v13  ;;  %v2754_v19 = vpop.f32.mrb[10].mxu1  ;;  %v2715_v20 = vpop.f32.mrb[11].mxu0 }
 0x10e   : > { %v2716_v21 = vadd.f32 %v2715_v20, %v2714_v17  ;;  %v2755_v22 = vpop.f32.mrb[11].mxu1 }
 0x10f   : > { %v1724_v23 = vadd.f32 %v2753_v18, %v2713_v15  ;;  %v2756_v24 = vadd.f32 %v2755_v22, %v2754_v19 }
 0x111   : > { %v1727_v25 = vadd.f32 %v2756_v24, %v2716_v21 }
 0x112   : > { %v2717_v26 = vpop.f32.mrb[12].mxu0 }
 0x113   : > { %v2757_v27 = vpop.f32.mrb[12].mxu1  ;;  %v2718_v28 = vpop.f32.mrb[13].mxu0 }
 0x114   : > { %v2758_v29 = vpop.f32.mrb[13].mxu1  ;;  %v2719_v30 = vadd.f32 %v2718_v28, %v2717_v26  ;;  %v2720_v32 = vpop.f32.mrb[14].mxu0 }
 0x115   : > { %v2759_v31 = vadd.f32 %v2758_v29, %v2757_v27  ;;  %v2760_v33 = vpop.f32.mrb[14].mxu1  ;;  %v2721_v34 = vpop.f32.mrb[15].mxu0 }
 0x116   : > { %v2761_v35 = vpop.f32.mrb[15].mxu1  ;;  %v2722_v37 = vadd.f32 %v2721_v34, %v2720_v32 }
 0x117   : > { %v1732_v36 = vadd.f32 %v2759_v31, %v2719_v30  ;;  %v2762_v38 = vadd.f32 %v2761_v35, %v2760_v33 }
 0x119   : > { %v1735_v39 = vadd.f32 %v2762_v38, %v2722_v37 }
 0x11a   : > { %v2779_v40 = vpop.f32.mrb[16].mxu0 }
 0x11b   : > { %v2780_v41 = vpop.f32.mrb[17].mxu0  ;;  %v2819_v46 = vpop.f32.mrb[16].mxu1 }
 0x11c   : > { %v2781_v42 = vadd.f32 %v2780_v41, %v2779_v40  ;;  %v2782_v43 = vpop.f32.mrb[18].mxu0  ;;  %v2820_v48 = vpop.f32.mrb[17].mxu1 }
 0x11d   : > { %v2783_v44 = vpop.f32.mrb[19].mxu0  ;;  %v2821_v50 = vadd.f32 %v2820_v48, %v2819_v46  ;;  %v2822_v51 = vpop.f32.mrb[18].mxu1 }
 0x11e   : > { %v1773_v45 = vadd.f32 %v2781_v42, %v1708_v59  ;;  %v2784_v47 = vadd.f32 %v2783_v44, %v2782_v43  ;;  %v2823_v52 = vpop.f32.mrb[19].mxu1 }
 0x11f   : > { %v2824_v54 = vadd.f32 %v2823_v52, %v2822_v51 }
 0x120   : > { %v1776_v49 = vadd.f32 %v2784_v47, %v1711_v61  ;;  %v1838_v53 = vadd.f32 %v2821_v50, %v1773_v45 }
 0x122   : > { %v1841_v55 = vadd.f32 %v2824_v54, %v1776_v49  ;;  %v2785_v56 = vpop.f32.mrb[20].mxu0 }
 0x123   : > { %v2786_v57 = vpop.f32.mrb[21].mxu0  ;;  %v2825_v62 = vpop.f32.mrb[20].mxu1 }
 0x124   : > { %v2787_v58 = vadd.f32 %v2786_v57, %v2785_v56  ;;  %v2788_v60 = vpop.f32.mrb[22].mxu0  ;;  %v2826_v2 = vpop.f32.mrb[21].mxu1 }
 0x125   : > { %v2789_v63 = vpop.f32.mrb[23].mxu0  ;;  %v2827_v59 = vadd.f32 %v2826_v2, %v2825_v62  ;;  %v2828_v3 = vpop.f32.mrb[22].mxu1 }
 0x126   : > { %v1781_v0 = vadd.f32 %v2787_v58, %v1716_v9  ;;  %v2790_v1 = vadd.f32 %v2789_v63, %v2788_v60  ;;  %v2829_v5 = vpop.f32.mrb[23].mxu1 }
 0x127   : > { %v2830_v6 = vadd.f32 %v2829_v5, %v2828_v3 }
 0x128   : > { %v1784_v4 = vadd.f32 %v2790_v1, %v1719_v11  ;;  %v1846_v61 = vadd.f32 %v2827_v59, %v1781_v0 }
 0x12a   : > { %v1849_v7 = vadd.f32 %v2830_v6, %v1784_v4  ;;  %v2791_v8 = vpop.f32.mrb[24].mxu0 }
 0x12b   : > { %v2792_v10 = vpop.f32.mrb[25].mxu0  ;;  %v2831_v14 = vpop.f32.mrb[24].mxu1 }
 0x12c   : > { %v2793_v12 = vadd.f32 %v2792_v10, %v2791_v8  ;;  %v2794_v13 = vpop.f32.mrb[26].mxu0  ;;  %v2832_v18 = vpop.f32.mrb[25].mxu1 }
 0x12d   : > { %v2795_v15 = vpop.f32.mrb[27].mxu0  ;;  %v2833_v19 = vadd.f32 %v2832_v18, %v2831_v14  ;;  %v2834_v9 = vpop.f32.mrb[26].mxu1 }
 0x12e   : > { %v1789_v16 = vadd.f32 %v2793_v12, %v1724_v23  ;;  %v2796_v17 = vadd.f32 %v2795_v15, %v2794_v13  ;;  %v2835_v21 = vpop.f32.mrb[27].mxu1 }
 0x12f   : > { %v2836_v24 = vadd.f32 %v2835_v21, %v2834_v9 }
 0x130   : > { %v1792_v20 = vadd.f32 %v2796_v17, %v1727_v25  ;;  %v1854_v22 = vadd.f32 %v2833_v19, %v1789_v16 }
 0x132   : > { %v1857_v11 = vadd.f32 %v2836_v24, %v1792_v20  ;;  %v2797_v26 = vpop.f32.mrb[28].mxu0 }
 0x133   : > { %v2798_v27 = vpop.f32.mrb[29].mxu0  ;;  %v2837_v32 = vpop.f32.mrb[28].mxu1 }
 0x134   : > { %v2799_v28 = vadd.f32 %v2798_v27, %v2797_v26  ;;  %v2800_v29 = vpop.f32.mrb[30].mxu0  ;;  %v2838_v34 = vpop.f32.mrb[29].mxu1 }
 0x135   : > { %v2801_v30 = vpop.f32.mrb[31].mxu0  ;;  %v2839_v23 = vadd.f32 %v2838_v34, %v2837_v32  ;;  %v2840_v37 = vpop.f32.mrb[30].mxu1 }
 0x136   : > { %v1797_v31 = vadd.f32 %v2799_v28, %v1732_v36  ;;  %v2802_v33 = vadd.f32 %v2801_v30, %v2800_v29  ;;  %v2841_v38 = vpop.f32.mrb[31].mxu1 }
 0x137   : > { %v2842_v41 = vadd.f32 %v2841_v38, %v2840_v37 }
 0x138   : > { %v1800_v35 = vadd.f32 %v2802_v33, %v1735_v39  ;;  %v1862_v40 = vadd.f32 %v2839_v23, %v1797_v31 }
 0x13a   : > { %v1865_v25 = vadd.f32 %v2842_v41, %v1800_v35  ;;  %v2859_v42 = vpop.f32.mrb[32].mxu0 }
 0x13b   : > { %v2860_v43 = vpop.f32.mrb[33].mxu0  ;;  %v2899_v46 = vpop.f32.mrb[32].mxu1 }
 0x13c   : > { %v2861_v44 = vadd.f32 %v2860_v43, %v2859_v42  ;;  %v2862_v45 = vpop.f32.mrb[34].mxu0  ;;  %v2900_v50 = vpop.f32.mrb[33].mxu1 }
 0x13d   : > { %v2863_v47 = vpop.f32.mrb[35].mxu0  ;;  %v2901_v36 = vadd.f32 %v2900_v50, %v2899_v46  ;;  %v2902_v51 = vpop.f32.mrb[34].mxu1 }
 0x13e   : > { %v1903_v48 = vadd.f32 %v2861_v44, %v1838_v53  ;;  %v2864_v49 = vadd.f32 %v2863_v47, %v2862_v45  ;;  %v2903_v54 = vpop.f32.mrb[35].mxu1 }
 0x13f   : > { %v2904_v56 = vadd.f32 %v2903_v54, %v2902_v51 }
 0x140   : > { %v1906_v52 = vadd.f32 %v2864_v49, %v1841_v55  ;;  %v1968_v39 = vadd.f32 %v2901_v36, %v1903_v48  ;;  %v3706_v48 = vld [vmem:[%s3811_s3] ss:$0 sm:$0xff] }
 0x141   : > { %v3716_v36 = vld [vmem:[%s3812_s4] ss:$0 sm:$0xff] }
 0x142   : > { %v2865_v57 = vpop.f32.mrb[36].mxu0  ;;  %v1971_v58 = vadd.f32 %v2904_v56, %v1906_v52  ;;  %v3722_v56 = vld [vmem:[%s3815_s7] ss:$0 sm:$0xff] }
 0x143   : > { %v2866_v60 = vpop.f32.mrb[37].mxu0  ;;  %v2905_v0 = vpop.f32.mrb[36].mxu1 }
 0x144   : > { %v2867_v62 = vadd.f32 %v2866_v60, %v2865_v57  ;;  %v2868_v63 = vpop.f32.mrb[38].mxu0  ;;  %v2906_v3 = vpop.f32.mrb[37].mxu1 }
 0x145   : > { %v2869_v1 = vpop.f32.mrb[39].mxu0  ;;  %v2907_v4 = vadd.f32 %v2906_v3, %v2905_v0  ;;  %v2908_v53 = vpop.f32.mrb[38].mxu1 }
 0x146   : > { %v1911_v2 = vadd.f32 %v2867_v62, %v1846_v61  ;;  %v2870_v59 = vadd.f32 %v2869_v1, %v2868_v63  ;;  %v2909_v6 = vpop.f32.mrb[39].mxu1 }
 0x147   : > { %v2910_v55 = vadd.f32 %v2909_v6, %v2908_v53 }
 0x148   : > { %v1914_v5 = vadd.f32 %v2870_v59, %v1849_v7  ;;  %v3691_v8 = vadd.f32 %v2907_v4, %v1911_v2 }
 0x14a   : > { %v2871_v10 = vpop.f32.mrb[40].mxu0  ;;  %v3693_v12 = vadd.f32 %v2910_v55, %v1914_v5 }
 0x14b   : > { %v2872_v13 = vpop.f32.mrb[41].mxu0  ;;  %v2911_v16 = vpop.f32.mrb[40].mxu1 }
 0x14c   : > { %v2873_v14 = vadd.f32 %v2872_v13, %v2871_v10  ;;  %v2874_v15 = vpop.f32.mrb[42].mxu0  ;;  %v2912_v61 = vpop.f32.mrb[41].mxu1 }
 0x14d   : > { %v2875_v17 = vpop.f32.mrb[43].mxu0  ;;  %v2913_v9 = vadd.f32 %v2912_v61, %v2911_v16  ;;  %v2914_v20 = vpop.f32.mrb[42].mxu1 }
 0x14e   : > { %v1919_v18 = vadd.f32 %v2873_v14, %v1854_v22  ;;  %v2876_v19 = vadd.f32 %v2875_v17, %v2874_v15  ;;  %v2915_v24 = vpop.f32.mrb[43].mxu1 }
 0x14f   : > { %v2916_v26 = vadd.f32 %v2915_v24, %v2914_v20 }
 0x150   : > { %v1922_v21 = vadd.f32 %v2876_v19, %v1857_v11  ;;  %v3695_v7 = vadd.f32 %v2913_v9, %v1919_v18 }
 0x152   : > { %v2877_v27 = vpop.f32.mrb[44].mxu0  ;;  %v3697_v28 = vadd.f32 %v2916_v26, %v1922_v21 }
 0x153   : > { %v2878_v29 = vpop.f32.mrb[45].mxu0  ;;  %v2917_v32 = vpop.f32.mrb[44].mxu1 }
 0x154   : > { %v2879_v30 = vadd.f32 %v2878_v29, %v2877_v27  ;;  %v2880_v31 = vpop.f32.mrb[46].mxu0  ;;  %v2918_v22 = vpop.f32.mrb[45].mxu1 }
 0x155   : > { %v2881_v33 = vpop.f32.mrb[47].mxu0  ;;  %v2919_v23 = vadd.f32 %v2918_v22, %v2917_v32  ;;  %v2920_v37 = vpop.f32.mrb[46].mxu1 }
 0x156   : > { %v1927_v34 = vadd.f32 %v2879_v30, %v1862_v40  ;;  %v2882_v35 = vadd.f32 %v2881_v33, %v2880_v31  ;;  %v2921_v41 = vpop.f32.mrb[47].mxu1 }
 0x157   : > { %v2922_v42 = vadd.f32 %v2921_v41, %v2920_v37 }
 0x158   : > { %v1930_v38 = vadd.f32 %v2882_v35, %v1865_v25  ;;  %v3699_v11 = vadd.f32 %v2919_v23, %v1927_v34  ;;  %v3711_v25 = vld [vmem:[%s3814_s6] ss:$0 sm:$0xff] }
 0x15a   : > { %v3701_v43 = vadd.f32 %v2922_v42, %v1930_v38  ;;  %v2939_v44 = vpop.f32.mrb[48].mxu0 }
 0x15b   : > { %v2940_v45 = vpop.f32.mrb[49].mxu0  ;;  %v2981_v54 = vpop.f32.mrb[48].mxu1 }
 0x15c   : > { %v2941_v46 = vadd.f32 %v2940_v45, %v2939_v44  ;;  %v2942_v47 = vpop.f32.mrb[50].mxu0  ;;  %v2249_v57 = vpop.f32.mrb[49].mxu1 }
 0x15d   : > { %v2943_v40 = vpop.f32.mrb[51].mxu0  ;;  %v2287_v0 = vmul.f32 %v3711_v25, %v2249_v57  ;;  %v2982_v1 = vpop.f32.mrb[50].mxu1 }
 0x15e   : > { %v2033_v49 = vadd.f32 %v2941_v46, %v1968_v39  ;;  %v2944_v50 = vadd.f32 %v2943_v40, %v2942_v47  ;;  %v2289_v39 = vmul.f32 %v2981_v54, %v3711_v25  ;;  %v2290_v59 = vmul.f32 %v2982_v1, %v3711_v25  ;;  %v2252_v3 = vpop.f32.mrb[51].mxu1 }
 0x15f   : > { %v2302_v55 = vadd.f32 %v3722_v56, %v2287_v0  ;;  %v2288_v15 = vmul.f32 %v3711_v25, %v2252_v3 }
 0x160   : > { %v2070_v51 = vmul.f32 %v3706_v48, %v2033_v49  ;;  %v2036_v52 = vadd.f32 %v2944_v50, %v1971_v58  ;;  %v2304_v2 = vadd.f32 %v3722_v56, %v2289_v39  ;;  %v2305_v14 = vadd.f32 %v3722_v56, %v2290_v59 }
 0x161   : > { %v2675_v61 = vpack.c.bf16 %v2302_v55, %v2302_v55  ;;  %v2303_v20 = vadd.f32 %v3722_v56, %v2288_v15 }
 0x162   : > { %v2085_v60 = vadd.f32 %v3716_v36, %v2070_v51  ;;  %v2071_v62 = vmul.f32 %v3706_v48, %v2036_v52  ;;  %v2945_v63 = vpop.f32.mrb[52].mxu0  ;;  %v2677_v13 = vpack.c.bf16 %v2304_v2, %v2304_v2  ;;  %v2678_v9 = vpack.c.bf16 %v2305_v14, %v2305_v14 }
 0x163   : > { %v2946_v58 = vpop.f32.mrb[53].mxu0  ;;  %v2985_v27 = vpop.f32.mrb[52].mxu1  ;;  %2342 = vst.msk [vmem:[%s3735_s23] sm:$0xf] %vm2133_vm1, %v2675_v61 }
 0x164   : > { %v2093_v4 = vmax.f32 %v2085_v60, 0.0  ;;  %v2086_v53 = vadd.f32 %v3716_v36, %v2071_v62  ;;  %v2947_v5 = vadd.f32 %v2946_v58, %v2945_v63  ;;  %v2948_v6 = vpop.f32.mrb[54].mxu0  ;;  %2344 = vst.msk [vmem:[%s3735_s23 + $0x8] sm:$0xf] %vm2133_vm1, %v2677_v13  ;;  %2345 = vst.msk [vmem:[%s3735_s23 + $0xc] sm:$0xf] %vm2133_vm1, %v2678_v9  ;;  %v2293_v29 = vmul.f32 %v2985_v27, %v3711_v25 }
 0x165   : > { %v2949_v10 = vpop.f32.mrb[55].mxu0  ;;  %v2265_v30 = vpop.f32.mrb[53].mxu1 }
 0x166   : > { %v2667_v16 = vpack.c.bf16 %v2093_v4, %v2093_v4  ;;  %v2094_v17 = vmax.f32 %v2086_v53, 0.0  ;;  %v2041_v18 = vadd.f32 %v2947_v5, %v3691_v8  ;;  %v2950_v19 = vadd.f32 %v2949_v10, %v2948_v6  ;;  %v2986_v35 = vpop.f32.mrb[54].mxu1 }
 0x167   : > { %v2676_v8 = vpack.c.bf16 %v2303_v20, %v2303_v20  ;;  %v2291_v34 = vmul.f32 %v3711_v25, %v2265_v30  ;;  %v2308_v22 = vadd.f32 %v3722_v56, %v2293_v29  ;;  %v2294_v23 = vmul.f32 %v2986_v35, %v3711_v25  ;;  %v2268_v37 = vpop.f32.mrb[55].mxu1 }
 0x168   : > { %2134 = vst.msk [vmem:[%s3742_s27] sm:$0xf] %vm2133_vm1, %v2667_v16  ;;  %v2668_v21 = vpack.c.bf16 %v2094_v17, %v2094_v17  ;;  %v2072_v24 = vmul.f32 %v3706_v48, %v2041_v18  ;;  %v2044_v26 = vadd.f32 %v2950_v19, %v3693_v12  ;;  %v2292_v49 = vmul.f32 %v3711_v25, %v2268_v37 }
 0x169   : > { %2343 = vst.msk [vmem:[%s3735_s23 + $0x4] sm:$0xf] %vm2133_vm1, %v2676_v8  ;;  %v2306_v45 = vadd.f32 %v3722_v56, %v2291_v34  ;;  %v2681_v47 = vpack.c.bf16 %v2308_v22, %v2308_v22  ;;  %v2309_v40 = vadd.f32 %v3722_v56, %v2294_v23 }
 0x16a   : > { %2135 = vst.msk [vmem:[%s3742_s27 + $0x4] sm:$0xf] %vm2133_vm1, %v2668_v21  ;;  %v2087_v31 = vadd.f32 %v3716_v36, %v2072_v24  ;;  %v2073_v32 = vmul.f32 %v3706_v48, %v2044_v26  ;;  %v2951_v33 = vpop.f32.mrb[56].mxu0  ;;  %v2307_v60 = vadd.f32 %v3722_v56, %v2292_v49 }
 0x16b   : > { %v2952_v12 = vpop.f32.mrb[57].mxu0  ;;  %2348 = vst.msk [vmem:[%s3735_s23 + $0x18] sm:$0xf] %vm2133_vm1, %v2681_v47  ;;  %v2679_v39 = vpack.c.bf16 %v2306_v45, %v2306_v45  ;;  %v2682_v57 = vpack.c.bf16 %v2309_v40, %v2309_v40 }
 0x16c   : > { %v2095_v38 = vmax.f32 %v2087_v31, 0.0  ;;  %v2088_v41 = vadd.f32 %v3716_v36, %v2073_v32  ;;  %v2953_v42 = vadd.f32 %v2952_v12, %v2951_v33  ;;  %v2954_v44 = vpop.f32.mrb[58].mxu0 }
 0x16d   : > { %v2955_v46 = vpop.f32.mrb[59].mxu0  ;;  %2346 = vst.msk [vmem:[%s3735_s23 + $0x10] sm:$0xf] %vm2133_vm1, %v2679_v39  ;;  %2349 = vst.msk [vmem:[%s3735_s23 + $0x1c] sm:$0xf] %vm2133_vm1, %v2682_v57 }
 0x16e   : > { %v2669_v50 = vpack.c.bf16 %v2095_v38, %v2095_v38  ;;  %v2096_v51 = vmax.f32 %v2088_v41, 0.0  ;;  %v2049_v52 = vadd.f32 %v2953_v42, %v3695_v7  ;;  %v2956_v54 = vadd.f32 %v2955_v46, %v2954_v44 }
 0x16f   : > { %v2680_v7 = vpack.c.bf16 %v2307_v60, %v2307_v60 }
 0x170   : > { %2136 = vst.msk [vmem:[%s3742_s27 + $0x8] sm:$0xf] %vm2133_vm1, %v2669_v50  ;;  %v2670_v62 = vpack.c.bf16 %v2096_v51, %v2096_v51  ;;  %v2074_v63 = vmul.f32 %v3706_v48, %v2049_v52  ;;  %v2052_v25 = vadd.f32 %v2956_v54, %v3697_v28 }
 0x171   : > { %2347 = vst.msk [vmem:[%s3735_s23 + $0x14] sm:$0xf] %vm2133_vm1, %v2680_v7 }
 0x172   : > { %2137 = vst.msk [vmem:[%s3742_s27 + $0xc] sm:$0xf] %vm2133_vm1, %v2670_v62  ;;  %v2089_v0 = vadd.f32 %v3716_v36, %v2074_v63  ;;  %v2075_v1 = vmul.f32 %v3706_v48, %v2052_v25  ;;  %v2957_v56 = vpop.f32.mrb[60].mxu0 }
 0x173   : > { %v2958_v58 = vpop.f32.mrb[61].mxu0 }
 0x174   : > { %v2097_v2 = vmax.f32 %v2089_v0, 0.0  ;;  %v2090_v28 = vadd.f32 %v3716_v36, %v2075_v1  ;;  %v2959_v59 = vadd.f32 %v2958_v58, %v2957_v56  ;;  %v2960_v3 = vpop.f32.mrb[62].mxu0 }
 0x175   : > { %v2961_v4 = vpop.f32.mrb[63].mxu0 }
 0x176   : > { %v2671_v53 = vpack.c.bf16 %v2097_v2, %v2097_v2  ;;  %v2098_v5 = vmax.f32 %v2090_v28, 0.0  ;;  %v2057_v6 = vadd.f32 %v2959_v59, %v3699_v11  ;;  %v2962_v55 = vadd.f32 %v2961_v4, %v2960_v3 }
 0x178   : > { %2138 = vst.msk [vmem:[%s3742_s27 + $0x10] sm:$0xf] %vm2133_vm1, %v2671_v53  ;;  %v2672_v10 = vpack.c.bf16 %v2098_v5, %v2098_v5  ;;  %v2076_v13 = vmul.f32 %v3706_v48, %v2057_v6  ;;  %v2060_v14 = vadd.f32 %v2962_v55, %v3701_v43 }
 0x17a   : > { %2139 = vst.msk [vmem:[%s3742_s27 + $0x14] sm:$0xf] %vm2133_vm1, %v2672_v10  ;;  %v2091_v15 = vadd.f32 %v3716_v36, %v2076_v13  ;;  %v2077_v16 = vmul.f32 %v3706_v48, %v2060_v14 }
 0x17c   : > { %v2099_v17 = vmax.f32 %v2091_v15, 0.0  ;;  %v2092_v18 = vadd.f32 %v3716_v36, %v2077_v16 }
 0x17e   : > { %v2673_v19 = vpack.c.bf16 %v2099_v17, %v2099_v17  ;;  %v2100_v61 = vmax.f32 %v2092_v18, 0.0 }
 0x180   : > { %2140 = vst.msk [vmem:[%s3742_s27 + $0x18] sm:$0xf] %vm2133_vm1, %v2673_v19  ;;  %v2674_v11 = vpack.c.bf16 %v2100_v61, %v2100_v61 }
 0x182   : > { %2141 = vst.msk [vmem:[%s3742_s27 + $0x1c] sm:$0xf] %vm2133_vm1, %v2674_v11 }
 0x183 PF: > { %s20_s30 = sadd.s32 1, %s3206_s30  }
 0x184   : > { %p17_p4 = scmp.ge.s32.totalorder %s20_s30, 4  }
 0x186   :  { %19 = sbr.rel (!%p17_p4) target bundleno = 1 (0x1), region = 97 }

// kernel: rasternet_forward.8
= control target key start
LH: loop header
LB: loop body
LE: loop exit
PB: predicated region body
PF: predicated region fallthrough
CT: control target
= control target key end

     0   :  { %s3041_s18 = smov 0   ;;  %s3043_s19 = smov 0   ;;  %s3556_s0 = inlined_call_operand.vmem [shape: bf16[128,1792], index: 0, kind: input, shape index: {}]   ;;  %s3557_s1 = inlined_call_operand.vmem [shape: bf16[1792,64], index: 1, kind: input, shape index: {}]   ;;  %s3558_s2 = inlined_call_operand.vmem [shape: f32[1,64], index: 2, kind: input, shape index: {}]   ;;  %s3559_s3 = inlined_call_operand.vmem [shape: f32[1,64], index: 3, kind: input, shape index: {}]   ;;  %s3560_s4 = inlined_call_operand.vmem [shape: bf16[128,64], index: 4, kind: input, shape index: {}]   ;;  %s3561_s5 = inlined_call_operand.vmem [shape: bf16[128,64], index: 5, kind: output, shape index: {}]  }
   0x1   :  { %s3045_s20 = smov 0  }
   0x2 LB: > { %s27_s21 = sadd.s32 1, %s3005_s19  ;;  %p2256_p0 = scmp.ge.s32.totalorder %s3009_s20, 1  ;;  %s3009_s20 = sphi %s3045_s20, %s15_s20   ;;  %s3005_s19 = sphi %s3043_s19, %s3563_s19   ;;  %s3001_s18 = sphi %s3041_s18, %s3562_s18  }
   0x3   : > { %p29_p1 = scmp.ge.s32.totalorder %s27_s21, 2  ;;  %p244_p2 = scmp.lt.s32.totalorder %s3009_s20, 3 }
   0x5   : > { %s3565_s21 = smov (%p29_p1, %s27_s21), 0  ;;  %p245_p3 = pnand %p2256_p0, %p244_p2 }
   0x6   : > { %v2791_v0 = vld [vmem:[%s3557_s1 + $0x40] sm:$0xff] (!%p245_p3)   ;;  %v2795_v4 = vld [vmem:[%s3557_s1 + $0x48] sm:$0xff] (!%p245_p3)   ;;  %v2799_v8 = vld [vmem:[%s3557_s1 + $0x50] sm:$0xff] (!%p245_p3)   ;;  %s2257_s6 = sshll.u32 (!%p245_p3), %s3001_s18, 3  ;;  %vm2111_vm0 = vcmask (!%p245_p3), 519168  }
   0x7   : > { %248 = sbr.rel (%p245_p3) target bundleno = 375 (0x177), region = 40  ;;  %v2792_v1 = vld [vmem:[%s3557_s1 + $0xc0] sm:$0xff] (!%p245_p3)   ;;  %2470 = vmatprep.subr.bf16.mxu0 (!%p245_p3), %v2791_v0  ;;  %v2796_v5 = vld [vmem:[%s3557_s1 + $0xc8] sm:$0xff] (!%p245_p3)   ;;  %v2800_v9 = vld [vmem:[%s3557_s1 + $0xd0] sm:$0xff] (!%p245_p3)   ;;  %p295_p4 = scmp.lt.s32.totalorder (!%p245_p3), %s2257_s6, 15 }
   0x8   : > { %v2793_v2 = vld [vmem:[%s3557_s1] sm:$0xff] (!%p245_p3)   ;;  %2510 = vmatprep.subr.bf16.mxu1 (!%p245_p3), %v2792_v1  ;;  %v2797_v6 = vld [vmem:[%s3557_s1 + $0x8] sm:$0xff] (!%p245_p3)   ;;  %v2801_v10 = vld [vmem:[%s3557_s1 + $0x10] sm:$0xff] (!%p245_p3)  }
   0x9   : > { %v2794_v3 = vld [vmem:[%s3557_s1 + $0x80] sm:$0xff] (!%p245_p3)   ;;  %2471 = vmatpush3.bf16.msra.mxu0 (!%p245_p3), %v2793_v2  ;;  %v2798_v7 = vld [vmem:[%s3557_s1 + $0x88] sm:$0xff] (!%p245_p3)   ;;  %v2802_v11 = vld [vmem:[%s3557_s1 + $0x90] sm:$0xff] (!%p245_p3)  }
   0xa   : > { %2511 = vmatpush3.bf16.msra.mxu1 (!%p245_p3), %v2794_v3  ;;  %2472 = vmatprep.subr.bf16.mxu0 (!%p245_p3), %v2795_v4  ;;  %v2803_v12 = vld [vmem:[%s3557_s1 + $0x58] sm:$0xff] (!%p245_p3)   ;;  %v2807_v16 = vld [vmem:[%s3557_s1 + $0x60] sm:$0xff] (!%p245_p3)   ;;  %v2811_v20 = vld [vmem:[%s3557_s1 + $0x68] sm:$0xff] (!%p245_p3)  }
   0xb   : > { %2512 = vmatprep.subr.bf16.mxu1 (!%p245_p3), %v2796_v5  ;;  %v2804_v13 = vld [vmem:[%s3557_s1 + $0xd8] sm:$0xff] (!%p245_p3)   ;;  %v2808_v17 = vld [vmem:[%s3557_s1 + $0xe0] sm:$0xff] (!%p245_p3)   ;;  %v2812_v21 = vld [vmem:[%s3557_s1 + $0xe8] sm:$0xff] (!%p245_p3)  }
   0xc   : > { %v2805_v14 = vld [vmem:[%s3557_s1 + $0x18] sm:$0xff] (!%p245_p3)   ;;  %v2809_v18 = vld [vmem:[%s3557_s1 + $0x20] sm:$0xff] (!%p245_p3)   ;;  %v2813_v22 = vld [vmem:[%s3557_s1 + $0x28] sm:$0xff] (!%p245_p3)  }
   0xd   : > { %2473 = vmatpush3.bf16.msra.mxu0 (!%p245_p3), %v2797_v6  ;;  %v2806_v15 = vld [vmem:[%s3557_s1 + $0x98] sm:$0xff] (!%p245_p3)   ;;  %v2810_v19 = vld [vmem:[%s3557_s1 + $0xa0] sm:$0xff] (!%p245_p3)   ;;  %v2814_v23 = vld [vmem:[%s3557_s1 + $0xa8] sm:$0xff] (!%p245_p3)  }
   0xe   : > { %2513 = vmatpush3.bf16.msra.mxu1 %v2798_v7  ;;  %2474 = vmatprep.subr.bf16.mxu0 %v2799_v8  ;;  %s3567_s6 = smov (!%p295_p4, %s2257_s6), 15  ;;  %v2815_v24 = vld [vmem:[%s3557_s1 + $0x70] sm:$0xff]   ;;  %v2819_v28 = vld [vmem:[%s3557_s1 + $0x78] sm:$0xff]   ;;  %v2829_v36 = vld [vmem:[%s3557_s1 + $0x140] sm:$0xff]  }
   0xf   : > { %2514 = vmatprep.subr.bf16.mxu1 %v2800_v9  ;;  %v2816_v25 = vld [vmem:[%s3557_s1 + $0xf0] sm:$0xff]   ;;  %s2766_s8 = smul.u32 56, %s3567_s6  ;;  %v2820_v29 = vld [vmem:[%s3557_s1 + $0xf8] sm:$0xff]   ;;  %v2830_v37 = vld [vmem:[%s3557_s1 + $0x1c0] sm:$0xff]  }
  0x10   : > { %v2817_v26 = vld [vmem:[%s3557_s1 + $0x30] sm:$0xff]   ;;  %v2821_v30 = vld [vmem:[%s3557_s1 + $0x38] sm:$0xff]   ;;  %v2831_v38 = vld [vmem:[%s3557_s1 + $0x100] sm:$0xff]  }
  0x11   : > { %2475 = vmatpush3.bf16.msra.mxu0 %v2801_v10  ;;  %v2818_v27 = vld [vmem:[%s3557_s1 + $0xb0] sm:$0xff]   ;;  %s3158_s22 = scalar_lea.vmem %s3556_s0, %s2766_s8  ;;  %v2822_v31 = vld [vmem:[%s3557_s1 + $0xb8] sm:$0xff]   ;;  %v2832_v39 = vld [vmem:[%s3557_s1 + $0x180] sm:$0xff]  }
  0x12   : > { %2515 = vmatpush3.bf16.msra.mxu1 %v2802_v11  ;;  %2476 = vmatprep.subr.bf16.mxu0 %v2803_v12  ;;  %v2823_v32 = vld [vmem:[%s3158_s22] ss:$56 sps:$4 sm:$0xff]   ;;  %v2825_v33 = vld [vmem:[%s3158_s22 + $0x4] ss:$56 sps:$4 sm:$0xff]   ;;  %v2833_v40 = vld [vmem:[%s3557_s1 + $0x148] sm:$0xff]  }
  0x13   : > { %2516 = vmatprep.subr.bf16.mxu1 %v2804_v13  ;;  %v2826_v34 = vld [vmem:[%s3158_s22 + $0x8] ss:$56 sps:$4 sm:$0xff]   ;;  %v2828_v35 = vld [vmem:[%s3158_s22 + $0xc] ss:$56 sps:$4 sm:$0xff]   ;;  %1594 = vmatprep.mubr.bf16.mxu0 %v2825_v33  ;;  %v2839_v45 = vld [vmem:[%s3158_s22 + $0x7c] ss:$56 sps:$4 sm:$0xff]  }
  0x14   : > { %1659 = vmatprep.mubr.bf16.mxu1 %v2828_v35  ;;  %v2834_v41 = vld [vmem:[%s3557_s1 + $0x1c8] sm:$0xff]   ;;  %v2842_v47 = vld [vmem:[%s3158_s22 + $0x78] ss:$56 sps:$4 sm:$0xff]   ;;  %v2851_v56 = vld [vmem:[%s3158_s22 + $0xe4] ss:$56 sps:$4 sm:$0xff]  }
  0x15   : > { %2477 = vmatpush3.bf16.msra.mxu0 %v2805_v14  ;;  %v2835_v42 = vld [vmem:[%s3557_s1 + $0x108] sm:$0xff]   ;;  %v2843_v48 = vld [vmem:[%s3557_s1 + $0x150] sm:$0xff]   ;;  %v2847_v52 = vld [vmem:[%s3557_s1 + $0x158] sm:$0xff]  }
  0x16   : > { %2517 = vmatpush3.bf16.msra.mxu1 %v2806_v15  ;;  %2478 = vmatprep.subr.bf16.mxu0 %v2807_v16  ;;  %v2836_v43 = vld [vmem:[%s3557_s1 + $0x188] sm:$0xff]   ;;  %v2844_v49 = vld [vmem:[%s3557_s1 + $0x1d0] sm:$0xff]   ;;  %v2848_v53 = vld [vmem:[%s3557_s1 + $0x1d8] sm:$0xff]  }
  0x17   : > { %2518 = vmatprep.subr.bf16.mxu1 %v2808_v17  ;;  %v2837_v44 = vld [vmem:[%s3158_s22 + $0x74] ss:$56 sps:$4 sm:$0xff]   ;;  %v2841_v46 = vld [vmem:[%s3158_s22 + $0x70] ss:$56 sps:$4 sm:$0xff]   ;;  %v2849_v54 = vld [vmem:[%s3557_s1 + $0x118] sm:$0xff]  }
  0x18   : > { %v2845_v50 = vld [vmem:[%s3557_s1 + $0x110] sm:$0xff]   ;;  %v2850_v55 = vld [vmem:[%s3557_s1 + $0x198] sm:$0xff]   ;;  %v2853_v57 = vld [vmem:[%s3158_s22 + $0xec] ss:$56 sps:$4 sm:$0xff]  }
  0x19   : > { %2479 = vmatpush3.bf16.msra.mxu0 %v2809_v18  ;;  %v2846_v51 = vld [vmem:[%s3557_s1 + $0x190] sm:$0xff]   ;;  %v2855_v58 = vld [vmem:[%s3158_s22 + $0xe0] ss:$56 sps:$4 sm:$0xff]   ;;  %v2861_v0 = vld [vmem:[%s3557_s1 + $0x168] sm:$0xff]  }
  0x1a   : > { %2519 = vmatpush3.bf16.msra.mxu1 %v2810_v19  ;;  %2480 = vmatprep.subr.bf16.mxu0 %v2811_v20  ;;  %v2856_v59 = vld [vmem:[%s3158_s22 + $0xe8] ss:$56 sps:$4 sm:$0xff]   ;;  %v2865_v4 = vld [vmem:[%s3158_s22 + $0x154] ss:$56 sps:$4 sm:$0xff]   ;;  %v2870_v7 = vld [vmem:[%s3158_s22 + $0x158] ss:$56 sps:$4 sm:$0xff]  }
  0x1b   : > { %2520 = vmatprep.subr.bf16.mxu1 %v2812_v21  ;;  %v2857_v60 = vld [vmem:[%s3557_s1 + $0x160] sm:$0xff]   ;;  %v2862_v1 = vld [vmem:[%s3557_s1 + $0x1e8] sm:$0xff]   ;;  %v2867_v5 = vld [vmem:[%s3158_s22 + $0x15c] ss:$56 sps:$4 sm:$0xff]  }
  0x1c   : > { %v2858_v61 = vld [vmem:[%s3557_s1 + $0x1e0] sm:$0xff]   ;;  %v2863_v2 = vld [vmem:[%s3557_s1 + $0x128] sm:$0xff]   ;;  %v2871_v8 = vld [vmem:[%s3557_s1 + $0x170] sm:$0xff]  }
  0x1d   : > { %2481 = vmatpush3.bf16.msra.mxu0 %v2813_v22  ;;  %v2859_v62 = vld [vmem:[%s3557_s1 + $0x120] sm:$0xff]   ;;  %v2864_v3 = vld [vmem:[%s3557_s1 + $0x1a8] sm:$0xff]   ;;  %v2872_v9 = vld [vmem:[%s3557_s1 + $0x1f0] sm:$0xff]  }
  0x1e   : > { %2521 = vmatpush3.bf16.msra.mxu1 %v2814_v23  ;;  %2482 = vmatprep.subr.bf16.mxu0 %v2815_v24  ;;  %v2860_v63 = vld [vmem:[%s3557_s1 + $0x1a0] sm:$0xff]   ;;  %v2869_v6 = vld [vmem:[%s3158_s22 + $0x150] ss:$56 sps:$4 sm:$0xff]   ;;  %v2875_v12 = vld [vmem:[%s3557_s1 + $0x178] sm:$0xff]  }
  0x1f   : > { %2522 = vmatprep.subr.bf16.mxu1 %v2816_v25  ;;  %v2873_v10 = vld [vmem:[%s3557_s1 + $0x130] sm:$0xff]   ;;  %v2876_v13 = vld [vmem:[%s3557_s1 + $0x1f8] sm:$0xff]   ;;  %v2885_v20 = vld [vmem:[%s3557_s1 + $0x240] sm:$0xff]  }
  0x20   : > { %v2874_v11 = vld [vmem:[%s3557_s1 + $0x1b0] sm:$0xff]   ;;  %v2877_v14 = vld [vmem:[%s3557_s1 + $0x138] sm:$0xff]   ;;  %v2886_v21 = vld [vmem:[%s3557_s1 + $0x2c0] sm:$0xff]  }
  0x21   : > { %2483 = vmatpush3.bf16.msra.mxu0 %v2817_v26  ;;  %v2878_v15 = vld [vmem:[%s3557_s1 + $0x1b8] sm:$0xff]   ;;  %v2879_v16 = vld [vmem:[%s3158_s22 + $0x10] ss:$56 sps:$4 sm:$0xff]   ;;  %v2881_v17 = vld [vmem:[%s3158_s22 + $0x14] ss:$56 sps:$4 sm:$0xff]  }
  0x22   : > { %2523 = vmatpush3.bf16.msra.mxu1 %v2818_v27  ;;  %2484 = vmatprep.subr.bf16.mxu0 %v2819_v28  ;;  %v2882_v18 = vld [vmem:[%s3158_s22 + $0x18] ss:$56 sps:$4 sm:$0xff]   ;;  %v2884_v19 = vld [vmem:[%s3158_s22 + $0x1c] ss:$56 sps:$4 sm:$0xff]   ;;  %v2887_v22 = vld [vmem:[%s3557_s1 + $0x200] sm:$0xff]  }
  0x23   : > { %2524 = vmatprep.subr.bf16.mxu1 %v2820_v29  ;;  %v2888_v23 = vld [vmem:[%s3557_s1 + $0x280] sm:$0xff]   ;;  %v2889_v24 = vld [vmem:[%s3557_s1 + $0x248] sm:$0xff]   ;;  %v2900_v33 = vld [vmem:[%s3557_s1 + $0x2d0] sm:$0xff]  }
  0x24   : > { %v2890_v25 = vld [vmem:[%s3557_s1 + $0x2c8] sm:$0xff]   ;;  %v2893_v28 = vld [vmem:[%s3158_s22 + $0x84] ss:$56 sps:$4 sm:$0xff]   ;;  %v2902_v35 = vld [vmem:[%s3557_s1 + $0x290] sm:$0xff]  }
  0x25   : > { %2485 = vmatpush3.bf16.msra.mxu0 %v2821_v30  ;;  %v2891_v26 = vld [vmem:[%s3557_s1 + $0x208] sm:$0xff]   ;;  %v2897_v30 = vld [vmem:[%s3158_s22 + $0x80] ss:$56 sps:$4 sm:$0xff]  }
  0x26   : > { %2525 = vmatpush3.bf16.msra.mxu1 %v2822_v31  ;;  %2550 = vmatprep.subr.bf16.mxu0 %v2829_v36  ;;  %v2892_v27 = vld [vmem:[%s3557_s1 + $0x288] sm:$0xff]   ;;  %v2903_v36 = vld [vmem:[%s3557_s1 + $0x258] sm:$0xff]  }
  0x27   : > { %2590 = vmatprep.subr.bf16.mxu1 %v2830_v37  ;;  %v2895_v29 = vld [vmem:[%s3158_s22 + $0x8c] ss:$56 sps:$4 sm:$0xff]   ;;  %v2898_v31 = vld [vmem:[%s3158_s22 + $0x88] ss:$56 sps:$4 sm:$0xff]   ;;  %v2904_v37 = vld [vmem:[%s3557_s1 + $0x2d8] sm:$0xff]  }
  0x28   : > { %1595 = vmatmul.mubr.bf16.vlgmr.msra.gmra.mrb[0].mxu0 %v2823_v32  ;;  %v2899_v32 = vld [vmem:[%s3557_s1 + $0x250] sm:$0xff]  }
  0x29   : > { %1660 = vmatmul.mubr.bf16.vlgmr.msra.gmra.mrb[0].mxu1 %v2826_v34  ;;  %2551 = vmatpush3.bf16.msra.mxu0 %v2831_v38  ;;  %v2901_v34 = vld [vmem:[%s3557_s1 + $0x210] sm:$0xff]   ;;  %v2905_v38 = vld [vmem:[%s3557_s1 + $0x218] sm:$0xff]  }
  0x2a   : > { %2591 = vmatpush3.bf16.msra.mxu1 %v2832_v39  ;;  %2552 = vmatprep.subr.bf16.mxu0 %v2833_v40  ;;  %v2906_v39 = vld [vmem:[%s3557_s1 + $0x298] sm:$0xff]   ;;  %v2907_v40 = vld [vmem:[%s3158_s22 + $0xf4] ss:$56 sps:$4 sm:$0xff]  }
  0x2b   : > { %2592 = vmatprep.subr.bf16.mxu1 %v2834_v41  ;;  %1602 = vmatprep.mubr.bf16.mxu0 %v2837_v44  ;;  %v2909_v41 = vld [vmem:[%s3158_s22 + $0xfc] ss:$56 sps:$4 sm:$0xff]   ;;  %v2913_v44 = vld [vmem:[%s3557_s1 + $0x260] sm:$0xff]  }
  0x2c   : > { %1667 = vmatprep.mubr.bf16.mxu1 %v2839_v45  ;;  %v2914_v45 = vld [vmem:[%s3557_s1 + $0x2e0] sm:$0xff]  }
  0x2d   : > { %2553 = vmatpush3.bf16.msra.mxu0 %v2835_v42  ;;  %v2911_v42 = vld [vmem:[%s3158_s22 + $0xf0] ss:$56 sps:$4 sm:$0xff]  }
  0x2e   : > { %2593 = vmatpush3.bf16.msra.mxu1 %v2836_v43  ;;  %2554 = vmatprep.subr.bf16.mxu0 %v2843_v48  ;;  %v2912_v43 = vld [vmem:[%s3158_s22 + $0xf8] ss:$56 sps:$4 sm:$0xff]   ;;  %v2917_v48 = vld [vmem:[%s3557_s1 + $0x268] sm:$0xff]  }
  0x2f   : > { %2594 = vmatprep.subr.bf16.mxu1 %v2844_v49  ;;  %v2918_v49 = vld [vmem:[%s3557_s1 + $0x2e8] sm:$0xff]  }
  0x30   : > { %1603 = vmatmul.mubr.bf16.gmra.mrb[4].mxu0 %v2841_v46  ;;  %v2915_v46 = vld [vmem:[%s3557_s1 + $0x220] sm:$0xff]  }
  0x31   : > { %1668 = vmatmul.mubr.bf16.gmra.mrb[4].mxu1 %v2842_v47  ;;  %2555 = vmatpush3.bf16.msra.mxu0 %v2845_v50  ;;  %v2916_v47 = vld [vmem:[%s3557_s1 + $0x2a0] sm:$0xff]   ;;  %v2919_v50 = vld [vmem:[%s3557_s1 + $0x228] sm:$0xff]  }
  0x32   : > { %2595 = vmatpush3.bf16.msra.mxu1 %v2846_v51  ;;  %2556 = vmatprep.subr.bf16.mxu0 %v2847_v52  ;;  %v2920_v51 = vld [vmem:[%s3557_s1 + $0x2a8] sm:$0xff]   ;;  %v2921_v52 = vld [vmem:[%s3158_s22 + $0x164] ss:$56 sps:$4 sm:$0xff]  }
  0x33   : > { %2596 = vmatprep.subr.bf16.mxu1 %v2848_v53  ;;  %1610 = vmatprep.mubr.bf16.mxu0 %v2851_v56  ;;  %v2923_v53 = vld [vmem:[%s3158_s22 + $0x16c] ss:$56 sps:$4 sm:$0xff]   ;;  %v2927_v56 = vld [vmem:[%s3557_s1 + $0x270] sm:$0xff]  }
  0x34   : > { %1675 = vmatprep.mubr.bf16.mxu1 %v2853_v57  ;;  %v2928_v57 = vld [vmem:[%s3557_s1 + $0x2f0] sm:$0xff]  }
  0x35   : > { %2557 = vmatpush3.bf16.msra.mxu0 %v2849_v54  ;;  %v2925_v54 = vld [vmem:[%s3158_s22 + $0x160] ss:$56 sps:$4 sm:$0xff]  }
  0x36   : > { %2597 = vmatpush3.bf16.msra.mxu1 %v2850_v55  ;;  %2558 = vmatprep.subr.bf16.mxu0 %v2857_v60  ;;  %v2926_v55 = vld [vmem:[%s3158_s22 + $0x168] ss:$56 sps:$4 sm:$0xff]   ;;  %v2931_v60 = vld [vmem:[%s3557_s1 + $0x278] sm:$0xff]  }
  0x37   : > { %2598 = vmatprep.subr.bf16.mxu1 %v2858_v61  ;;  %v2932_v61 = vld [vmem:[%s3557_s1 + $0x2f8] sm:$0xff]  }
  0x38   : > { %1611 = vmatmul.mubr.bf16.gmra.mrb[8].mxu0 %v2855_v58  ;;  %v2929_v58 = vld [vmem:[%s3557_s1 + $0x230] sm:$0xff]  }
  0x39   : > { %1676 = vmatmul.mubr.bf16.gmra.mrb[8].mxu1 %v2856_v59  ;;  %2559 = vmatpush3.bf16.msra.mxu0 %v2859_v62  ;;  %v2930_v59 = vld [vmem:[%s3557_s1 + $0x2b0] sm:$0xff]   ;;  %v2933_v62 = vld [vmem:[%s3557_s1 + $0x238] sm:$0xff]  }
  0x3a   : > { %2599 = vmatpush3.bf16.msra.mxu1 %v2860_v63  ;;  %2560 = vmatprep.subr.bf16.mxu0 %v2861_v0  ;;  %v2934_v63 = vld [vmem:[%s3557_s1 + $0x2b8] sm:$0xff]  }
  0x3b   : > { %2600 = vmatprep.subr.bf16.mxu1 %v2862_v1  ;;  %1618 = vmatprep.mubr.bf16.mxu0 %v2865_v4  ;;  %v2935_v0 = vld [vmem:[%s3158_s22 + $0x20] ss:$56 sps:$4 sm:$0xff]   ;;  %v2937_v1 = vld [vmem:[%s3158_s22 + $0x24] ss:$56 sps:$4 sm:$0xff]  }
  0x3c   : > { %1683 = vmatprep.mubr.bf16.mxu1 %v2867_v5  ;;  %v2941_v4 = vld [vmem:[%s3557_s1 + $0x340] sm:$0xff]  }
  0x3d   : > { %2561 = vmatpush3.bf16.msra.mxu0 %v2863_v2  ;;  %v2938_v2 = vld [vmem:[%s3158_s22 + $0x28] ss:$56 sps:$4 sm:$0xff]  }
  0x3e   : > { %2601 = vmatpush3.bf16.msra.mxu1 %v2864_v3  ;;  %2562 = vmatprep.subr.bf16.mxu0 %v2871_v8  ;;  %v2940_v3 = vld [vmem:[%s3158_s22 + $0x2c] ss:$56 sps:$4 sm:$0xff]  }
  0x3f   : > { %2602 = vmatprep.subr.bf16.mxu1 %v2872_v9  ;;  %v2942_v5 = vld [vmem:[%s3557_s1 + $0x300] sm:$0xff]   ;;  %v2945_v8 = vld [vmem:[%s3158_s22 + $0x94] ss:$56 sps:$4 sm:$0xff]  }
  0x40   : > { %1619 = vmatmul.mubr.bf16.gmra.mrb[12].mxu0 %v2869_v6  ;;  %v2943_v6 = vld [vmem:[%s3557_s1 + $0x348] sm:$0xff]   ;;  %v2947_v9 = vld [vmem:[%s3158_s22 + $0x9c] ss:$56 sps:$4 sm:$0xff]  }
  0x41   : > { %1684 = vmatmul.mubr.bf16.gmra.mrb[12].mxu1 %v2870_v7  ;;  %2563 = vmatpush3.bf16.msra.mxu0 %v2873_v10  ;;  %v2944_v7 = vld [vmem:[%s3557_s1 + $0x308] sm:$0xff]  }
  0x42   : > { %2603 = vmatpush3.bf16.msra.mxu1 %v2874_v11  ;;  %2564 = vmatprep.subr.bf16.mxu0 %v2875_v12  ;;  %v2949_v10 = vld [vmem:[%s3158_s22 + $0x90] ss:$56 sps:$4 sm:$0xff]  }
  0x43   : > { %2604 = vmatprep.subr.bf16.mxu1 %v2876_v13  ;;  %1724 = vmatprep.mubr.bf16.mxu0 %v2881_v17  ;;  %v2950_v11 = vld [vmem:[%s3158_s22 + $0x98] ss:$56 sps:$4 sm:$0xff]   ;;  %v2957_v17 = vld [vmem:[%s3158_s22 + $0x10c] ss:$56 sps:$4 sm:$0xff]  }
  0x44   : > { %1789 = vmatprep.mubr.bf16.mxu1 %v2884_v19  ;;  %v2951_v12 = vld [vmem:[%s3557_s1 + $0x350] sm:$0xff]   ;;  %v2960_v19 = vld [vmem:[%s3158_s22 + $0x108] ss:$56 sps:$4 sm:$0xff]  }
  0x45   : > { %2565 = vmatpush3.bf16.msra.mxu0 %v2877_v14  ;;  %v2952_v13 = vld [vmem:[%s3557_s1 + $0x310] sm:$0xff]   ;;  %v2953_v14 = vld [vmem:[%s3557_s1 + $0x358] sm:$0xff]  }
  0x46   : > { %2605 = vmatpush3.bf16.msra.mxu1 %v2878_v15  ;;  %2630 = vmatprep.subr.bf16.mxu0 %v2885_v20  ;;  %v2954_v15 = vld [vmem:[%s3557_s1 + $0x318] sm:$0xff]   ;;  %v2961_v20 = vld [vmem:[%s3557_s1 + $0x360] sm:$0xff]  }
  0x47   : > { %2670 = vmatprep.subr.bf16.mxu1 %v2886_v21  ;;  %v2962_v21 = vld [vmem:[%s3557_s1 + $0x320] sm:$0xff]  }
  0x48   : > { %1725 = vmatmul.mubr.bf16.vlgmr.msra.gmra.mrb[16].mxu0 %v2879_v16  ;;  %v2955_v16 = vld [vmem:[%s3158_s22 + $0x104] ss:$56 sps:$4 sm:$0xff]  }
  0x49   : > { %1790 = vmatmul.mubr.bf16.vlgmr.msra.gmra.mrb[16].mxu1 %v2882_v18  ;;  %2631 = vmatpush3.bf16.msra.mxu0 %v2887_v22  ;;  %v2959_v18 = vld [vmem:[%s3158_s22 + $0x100] ss:$56 sps:$4 sm:$0xff]   ;;  %v2963_v22 = vld [vmem:[%s3557_s1 + $0x368] sm:$0xff]  }
  0x4a   : > { %2671 = vmatpush3.bf16.msra.mxu1 %v2888_v23  ;;  %2632 = vmatprep.subr.bf16.mxu0 %v2889_v24  ;;  %v2965_v23 = vld [vmem:[%s3158_s22 + $0x174] ss:$56 sps:$4 sm:$0xff]  }
  0x4b   : > { %2672 = vmatprep.subr.bf16.mxu1 %v2890_v25  ;;  %1732 = vmatprep.mubr.bf16.mxu0 %v2893_v28  ;;  %v2964_v24 = vld [vmem:[%s3557_s1 + $0x328] sm:$0xff]   ;;  %v2967_v25 = vld [vmem:[%s3158_s22 + $0x17c] ss:$56 sps:$4 sm:$0xff]   ;;  %v2970_v28 = vld [vmem:[%s3158_s22 + $0x178] ss:$56 sps:$4 sm:$0xff]  }
  0x4c   : > { %1797 = vmatprep.mubr.bf16.mxu1 %v2895_v29  ;;  %v2972_v29 = vld [vmem:[%s3557_s1 + $0x330] sm:$0xff]  }
  0x4d   : > { %2633 = vmatpush3.bf16.msra.mxu0 %v2891_v26  ;;  %v2971_v26 = vld [vmem:[%s3557_s1 + $0x370] sm:$0xff]  }
  0x4e   : > { %2673 = vmatpush3.bf16.msra.mxu1 %v2892_v27  ;;  %2634 = vmatprep.subr.bf16.mxu0 %v2899_v32  ;;  %v2969_v27 = vld [vmem:[%s3158_s22 + $0x170] ss:$56 sps:$4 sm:$0xff]   ;;  %v2980_v32 = vld [vmem:[%s3158_s22 + $0x114] ss:$56 sps:$4 sm:$0xff]  }
  0x4f   : > { %2674 = vmatprep.subr.bf16.mxu1 %v2900_v33  ;;  %v2974_v33 = vld [vmem:[%s3557_s1 + $0x338] sm:$0xff]  }
  0x50   : > { %1733 = vmatmul.mubr.bf16.gmra.mrb[20].mxu0 %v2897_v30  ;;  %v2973_v30 = vld [vmem:[%s3557_s1 + $0x378] sm:$0xff]  }
  0x51   : > { %1798 = vmatmul.mubr.bf16.gmra.mrb[20].mxu1 %v2898_v31  ;;  %2635 = vmatpush3.bf16.msra.mxu0 %v2901_v34  ;;  %v2977_v31 = vld [vmem:[%s3158_s22 + $0x34] ss:$56 sps:$4 sm:$0xff]   ;;  %v2975_v34 = vld [vmem:[%s3158_s22 + $0x30] ss:$56 sps:$4 sm:$0xff]  }
  0x52   : > { %2675 = vmatpush3.bf16.msra.mxu1 %v2902_v35  ;;  %2636 = vmatprep.subr.bf16.mxu0 %v2903_v36  ;;  %v2978_v35 = vld [vmem:[%s3158_s22 + $0x110] ss:$56 sps:$4 sm:$0xff]   ;;  %v2981_v36 = vld [vmem:[%s3158_s22 + $0xa4] ss:$56 sps:$4 sm:$0xff]  }
  0x53   : > { %2676 = vmatprep.subr.bf16.mxu1 %v2904_v37  ;;  %1740 = vmatprep.mubr.bf16.mxu0 %v2907_v40  ;;  %v2983_v37 = vld [vmem:[%s3158_s22 + $0x184] ss:$56 sps:$4 sm:$0xff]  }
  0x54   : > { %1805 = vmatprep.mubr.bf16.mxu1 %v2909_v41 }
  0x55   : > { %2637 = vmatpush3.bf16.msra.mxu0 %v2905_v38  ;;  %v2985_v38 = vld [vmem:[%s3158_s22 + $0xa0] ss:$56 sps:$4 sm:$0xff]  }
  0x56   : > { %2677 = vmatpush3.bf16.msra.mxu1 %v2906_v39  ;;  %2638 = vmatprep.subr.bf16.mxu0 %v2913_v44  ;;  %v2986_v39 = vld [vmem:[%s3158_s22 + $0x180] ss:$56 sps:$4 sm:$0xff]   ;;  %s2260_s22 = sshll.u32 %s3567_s6, 2 }
  0x57   : > { %2678 = vmatprep.subr.bf16.mxu1 %v2914_v45  ;;  %s318_s29 = scalar_lea.vmem %s3560_s4, %s2260_s22  ;;  %s3519_s12 = scalar_lea.vmem %s3561_s5, %s2260_s22 }
  0x58   : > { %1741 = vmatmul.mubr.bf16.gmra.mrb[24].mxu0 %v2911_v42 }
  0x59   : > { %1806 = vmatmul.mubr.bf16.gmra.mrb[24].mxu1 %v2912_v43  ;;  %2639 = vmatpush3.bf16.msra.mxu0 %v2915_v46 }
  0x5a   : > { %2679 = vmatpush3.bf16.msra.mxu1 %v2916_v47  ;;  %2640 = vmatprep.subr.bf16.mxu0 %v2917_v48 }
  0x5b   : > { %2680 = vmatprep.subr.bf16.mxu1 %v2918_v49  ;;  %1748 = vmatprep.mubr.bf16.mxu0 %v2921_v52 }
  0x5c   : > { %1813 = vmatprep.mubr.bf16.mxu1 %v2923_v53 }
  0x5d   : > { %2641 = vmatpush3.bf16.msra.mxu0 %v2919_v50 }
  0x5e   : > { %2681 = vmatpush3.bf16.msra.mxu1 %v2920_v51  ;;  %2642 = vmatprep.subr.bf16.mxu0 %v2927_v56 }
  0x5f   : > { %2682 = vmatprep.subr.bf16.mxu1 %v2928_v57 }
  0x60   : > { %1749 = vmatmul.mubr.bf16.gmra.mrb[28].mxu0 %v2925_v54 }
  0x61   : > { %1814 = vmatmul.mubr.bf16.gmra.mrb[28].mxu1 %v2926_v55  ;;  %2643 = vmatpush3.bf16.msra.mxu0 %v2929_v58 }
  0x62   : > { %2683 = vmatpush3.bf16.msra.mxu1 %v2930_v59  ;;  %2644 = vmatprep.subr.bf16.mxu0 %v2931_v60 }
  0x63   : > { %2684 = vmatprep.subr.bf16.mxu1 %v2932_v61  ;;  %1854 = vmatprep.mubr.bf16.mxu0 %v2937_v1 }
  0x64   : > { %1919 = vmatprep.mubr.bf16.mxu1 %v2940_v3 }
  0x65   : > { %2645 = vmatpush3.bf16.msra.mxu0 %v2933_v62 }
  0x66   : > { %2685 = vmatpush3.bf16.msra.mxu1 %v2934_v63  ;;  %2710 = vmatprep.subr.bf16.mxu0 %v2941_v4 }
  0x67   : > { %2750 = vmatprep.subr.bf16.mxu1 %v2941_v4 }
  0x68   : > { %1855 = vmatmul.mubr.bf16.vlgmr.msra.gmra.mrb[32].mxu0 %v2935_v0 }
  0x69   : > { %1920 = vmatmul.mubr.bf16.vlgmr.msra.gmra.mrb[32].mxu1 %v2938_v2  ;;  %2711 = vmatpush3.bf16.msra.mxu0 %v2942_v5 }
  0x6a   : > { %2758 = vmatpush3.bf16.msra.mxu1 %v2942_v5  ;;  %2712 = vmatprep.subr.bf16.mxu0 %v2943_v6 }
  0x6b   : > { %2751 = vmatprep.subr.bf16.mxu1 %v2943_v6  ;;  %1862 = vmatprep.mubr.bf16.mxu0 %v2945_v8 }
  0x6c   : > { %1927 = vmatprep.mubr.bf16.mxu1 %v2947_v9 }
  0x6d   : > { %2713 = vmatpush3.bf16.msra.mxu0 %v2944_v7 }
  0x6e   : > { %2759 = vmatpush3.bf16.msra.mxu1 %v2944_v7  ;;  %2714 = vmatprep.subr.bf16.mxu0 %v2951_v12 }
  0x6f   : > { %2752 = vmatprep.subr.bf16.mxu1 %v2951_v12 }
  0x70   : > { %1863 = vmatmul.mubr.bf16.gmra.mrb[36].mxu0 %v2949_v10 }
  0x71   : > { %1928 = vmatmul.mubr.bf16.gmra.mrb[36].mxu1 %v2950_v11  ;;  %2715 = vmatpush3.bf16.msra.mxu0 %v2952_v13 }
  0x72   : > { %2760 = vmatpush3.bf16.msra.mxu1 %v2952_v13  ;;  %2716 = vmatprep.subr.bf16.mxu0 %v2953_v14 }
  0x73   : > { %2753 = vmatprep.subr.bf16.mxu1 %v2953_v14  ;;  %1870 = vmatprep.mubr.bf16.mxu0 %v2955_v16 }
  0x74   : > { %1935 = vmatprep.mubr.bf16.mxu1 %v2957_v17 }
  0x75   : > { %2717 = vmatpush3.bf16.msra.mxu0 %v2954_v15 }
  0x76   : > { %2761 = vmatpush3.bf16.msra.mxu1 %v2954_v15  ;;  %2718 = vmatprep.subr.bf16.mxu0 %v2961_v20 }
  0x77   : > { %2754 = vmatprep.subr.bf16.mxu1 %v2961_v20 }
  0x78   : > { %1871 = vmatmul.mubr.bf16.gmra.mrb[40].mxu0 %v2959_v18 }
  0x79   : > { %1936 = vmatmul.mubr.bf16.gmra.mrb[40].mxu1 %v2960_v19  ;;  %2719 = vmatpush3.bf16.msra.mxu0 %v2962_v21 }
  0x7a   : > { %2762 = vmatpush3.bf16.msra.mxu1 %v2962_v21  ;;  %2720 = vmatprep.subr.bf16.mxu0 %v2963_v22 }
  0x7b   : > { %2755 = vmatprep.subr.bf16.mxu1 %v2963_v22  ;;  %1878 = vmatprep.mubr.bf16.mxu0 %v2965_v23 }
  0x7c   : > { %1943 = vmatprep.mubr.bf16.mxu1 %v2967_v25 }
  0x7d   : > { %2721 = vmatpush3.bf16.msra.mxu0 %v2964_v24 }
  0x7e   : > { %2763 = vmatpush3.bf16.msra.mxu1 %v2964_v24  ;;  %2722 = vmatprep.subr.bf16.mxu0 %v2971_v26 }
  0x7f   : > { %2756 = vmatprep.subr.bf16.mxu1 %v2971_v26 }
  0x80   : > { %1879 = vmatmul.mubr.bf16.gmra.mrb[44].mxu0 %v2969_v27 }
  0x81   : > { %1944 = vmatmul.mubr.bf16.gmra.mrb[44].mxu1 %v2970_v28  ;;  %2723 = vmatpush3.bf16.msra.mxu0 %v2972_v29 }
  0x82   : > { %1984 = vmatprep.mubr.bf16.mxu0 %v2977_v31  ;;  %2764 = vmatpush3.bf16.msra.mxu1 %v2972_v29 }
  0x83   : > { %2724 = vmatprep.subr.bf16.mxu0 %v2973_v30  ;;  %2757 = vmatprep.subr.bf16.mxu1 %v2973_v30 }
  0x84   : > { %2000 = vmatprep.mubr.bf16.mxu1 %v2980_v32 }
  0x85   : > { %2725 = vmatpush3.bf16.msra.mxu0 %v2974_v33 }
  0x86   : > { %2765 = vmatpush3.bf16.msra.mxu1 %v2974_v33 }
  0x88   : > { %1985 = vmatmul.mubr.bf16.vlgmr.msra.gmra.mrb[48].mxu0 %v2975_v34 }
  0x89   : > { %2001 = vmatmul.mubr.bf16.vlgmr.msra.gmra.mrb[48].mxu1 %v2978_v35  ;;  %1992 = vmatprep.mubr.bf16.mxu0 %v2981_v36 }
  0x8a   : > { %2008 = vmatprep.mubr.bf16.mxu1 %v2983_v37 }
  0x90   : > { %1993 = vmatmul.mubr.bf16.gmra.mrb[52].mxu0 %v2985_v38 }
  0x91   : > { %2009 = vmatmul.mubr.bf16.gmra.mrb[52].mxu1 %v2986_v39 }
  0xfb   : > { %v2486_v40 = vpop.f32.mrb[0].mxu0 }
  0xfc   : > { %v2526_v41 = vpop.f32.mrb[0].mxu1  ;;  %v2487_v42 = vpop.f32.mrb[1].mxu0 }
  0xfd   : > { %v2488_v43 = vadd.f32 %v2487_v42, %v2486_v40  ;;  %v2527_v44 = vpop.f32.mrb[1].mxu1  ;;  %v2489_v45 = vpop.f32.mrb[2].mxu0 }
  0xfe   : > { %v2528_v46 = vadd.f32 %v2527_v44, %v2526_v41  ;;  %v2529_v47 = vpop.f32.mrb[2].mxu1  ;;  %v2490_v48 = vpop.f32.mrb[3].mxu0 }
  0xff   : > { %v2491_v49 = vadd.f32 %v2490_v48, %v2489_v45  ;;  %v2530_v50 = vpop.f32.mrb[3].mxu1 }
 0x100   : > { %v1662_v51 = vadd.f32 %v2528_v46, %v2488_v43  ;;  %v2531_v52 = vadd.f32 %v2530_v50, %v2529_v47 }
 0x102   : > { %v1665_v53 = vadd.f32 %v2531_v52, %v2491_v49 }
 0x103   : > { %v2492_v54 = vpop.f32.mrb[4].mxu0 }
 0x104   : > { %v2532_v55 = vpop.f32.mrb[4].mxu1  ;;  %v2493_v56 = vpop.f32.mrb[5].mxu0 }
 0x105   : > { %v2494_v57 = vadd.f32 %v2493_v56, %v2492_v54  ;;  %v2533_v58 = vpop.f32.mrb[5].mxu1  ;;  %v2495_v59 = vpop.f32.mrb[6].mxu0 }
 0x106   : > { %v2534_v60 = vadd.f32 %v2533_v58, %v2532_v55  ;;  %v2535_v61 = vpop.f32.mrb[6].mxu1  ;;  %v2496_v62 = vpop.f32.mrb[7].mxu0 }
 0x107   : > { %v2497_v63 = vadd.f32 %v2496_v62, %v2495_v59  ;;  %v2536_v0 = vpop.f32.mrb[7].mxu1 }
 0x108   : > { %v1670_v1 = vadd.f32 %v2534_v60, %v2494_v57  ;;  %v2537_v2 = vadd.f32 %v2536_v0, %v2535_v61 }
 0x10a   : > { %v1673_v3 = vadd.f32 %v2537_v2, %v2497_v63 }
 0x10b   : > { %v2498_v4 = vpop.f32.mrb[8].mxu0 }
 0x10c   : > { %v2538_v5 = vpop.f32.mrb[8].mxu1  ;;  %v2499_v6 = vpop.f32.mrb[9].mxu0 }
 0x10d   : > { %v2500_v7 = vadd.f32 %v2499_v6, %v2498_v4  ;;  %v2539_v8 = vpop.f32.mrb[9].mxu1  ;;  %v2501_v9 = vpop.f32.mrb[10].mxu0 }
 0x10e   : > { %v2540_v10 = vadd.f32 %v2539_v8, %v2538_v5  ;;  %v2541_v11 = vpop.f32.mrb[10].mxu1  ;;  %v2502_v12 = vpop.f32.mrb[11].mxu0 }
 0x10f   : > { %v2503_v13 = vadd.f32 %v2502_v12, %v2501_v9  ;;  %v2542_v14 = vpop.f32.mrb[11].mxu1 }
 0x110   : > { %v1678_v15 = vadd.f32 %v2540_v10, %v2500_v7  ;;  %v2543_v16 = vadd.f32 %v2542_v14, %v2541_v11 }
 0x112   : > { %v1681_v17 = vadd.f32 %v2543_v16, %v2503_v13 }
 0x113   : > { %v2504_v18 = vpop.f32.mrb[12].mxu0 }
 0x114   : > { %v2544_v19 = vpop.f32.mrb[12].mxu1  ;;  %v2505_v20 = vpop.f32.mrb[13].mxu0 }
 0x115   : > { %v2545_v21 = vpop.f32.mrb[13].mxu1  ;;  %v2506_v22 = vadd.f32 %v2505_v20, %v2504_v18  ;;  %v2507_v24 = vpop.f32.mrb[14].mxu0 }
 0x116   : > { %v2546_v23 = vadd.f32 %v2545_v21, %v2544_v19  ;;  %v2547_v25 = vpop.f32.mrb[14].mxu1  ;;  %v2508_v26 = vpop.f32.mrb[15].mxu0 }
 0x117   : > { %v2548_v27 = vpop.f32.mrb[15].mxu1  ;;  %v2509_v29 = vadd.f32 %v2508_v26, %v2507_v24 }
 0x118   : > { %v1686_v28 = vadd.f32 %v2546_v23, %v2506_v22  ;;  %v2549_v30 = vadd.f32 %v2548_v27, %v2547_v25 }
 0x11a   : > { %v3462_v31 = vadd.f32 %v2549_v30, %v2509_v29 }
 0x11b   : > { %v2566_v32 = vpop.f32.mrb[16].mxu0 }
 0x11c   : > { %v2567_v33 = vpop.f32.mrb[17].mxu0  ;;  %v2606_v34 = vpop.f32.mrb[16].mxu1 }
 0x11d   : > { %v2568_v35 = vadd.f32 %v2567_v33, %v2566_v32  ;;  %v2569_v36 = vpop.f32.mrb[18].mxu0  ;;  %v2607_v37 = vpop.f32.mrb[17].mxu1 }
 0x11e   : > { %v2570_v38 = vpop.f32.mrb[19].mxu0  ;;  %v2608_v40 = vadd.f32 %v2607_v37, %v2606_v34  ;;  %v2609_v41 = vpop.f32.mrb[18].mxu1 }
 0x11f   : > { %v1727_v39 = vadd.f32 %v2568_v35, %v1662_v51  ;;  %v2571_v42 = vadd.f32 %v2570_v38, %v2569_v36  ;;  %v2610_v43 = vpop.f32.mrb[19].mxu1 }
 0x120   : > { %v2611_v46 = vadd.f32 %v2610_v43, %v2609_v41 }
 0x121   : > { %v1792_v44 = vadd.f32 %v2608_v40, %v1727_v39  ;;  %v1730_v45 = vadd.f32 %v2571_v42, %v1665_v53 }
 0x123   : > { %v3464_v47 = vadd.f32 %v2611_v46, %v1730_v45  ;;  %v2572_v48 = vpop.f32.mrb[20].mxu0 }
 0x124   : > { %v2612_v49 = vpop.f32.mrb[20].mxu1  ;;  %v2573_v50 = vpop.f32.mrb[21].mxu0 }
 0x125   : > { %v2574_v52 = vadd.f32 %v2573_v50, %v2572_v48  ;;  %v2613_v54 = vpop.f32.mrb[21].mxu1  ;;  %v2575_v55 = vpop.f32.mrb[22].mxu0 }
 0x126   : > { %v2614_v56 = vadd.f32 %v2613_v54, %v2612_v49  ;;  %v2615_v57 = vpop.f32.mrb[22].mxu1  ;;  %v2576_v58 = vpop.f32.mrb[23].mxu0 }
 0x127   : > { %v1735_v59 = vadd.f32 %v2574_v52, %v1670_v1  ;;  %v2577_v51 = vadd.f32 %v2576_v58, %v2575_v55  ;;  %v2616_v60 = vpop.f32.mrb[23].mxu1 }
 0x128   : > { %v2617_v61 = vadd.f32 %v2616_v60, %v2615_v57 }
 0x129   : > { %v1800_v62 = vadd.f32 %v2614_v56, %v1735_v59  ;;  %v1738_v63 = vadd.f32 %v2577_v51, %v1673_v3 }
 0x12b   : > { %v3466_v0 = vadd.f32 %v2617_v61, %v1738_v63  ;;  %v2578_v53 = vpop.f32.mrb[24].mxu0 }
 0x12c   : > { %v2618_v2 = vpop.f32.mrb[24].mxu1  ;;  %v2579_v4 = vpop.f32.mrb[25].mxu0 }
 0x12d   : > { %v2619_v5 = vpop.f32.mrb[25].mxu1  ;;  %v2580_v6 = vadd.f32 %v2579_v4, %v2578_v53  ;;  %v2581_v8 = vpop.f32.mrb[26].mxu0 }
 0x12e   : > { %v2620_v7 = vadd.f32 %v2619_v5, %v2618_v2  ;;  %v2621_v9 = vpop.f32.mrb[26].mxu1  ;;  %v2582_v10 = vpop.f32.mrb[27].mxu0 }
 0x12f   : > { %v2622_v11 = vpop.f32.mrb[27].mxu1  ;;  %v1743_v12 = vadd.f32 %v2580_v6, %v1678_v15  ;;  %v2583_v13 = vadd.f32 %v2582_v10, %v2581_v8 }
 0x130   : > { %v2623_v1 = vadd.f32 %v2622_v11, %v2621_v9 }
 0x131   : > { %v1808_v14 = vadd.f32 %v2620_v7, %v1743_v12  ;;  %v1746_v16 = vadd.f32 %v2583_v13, %v1681_v17 }
 0x133   : > { %v3468_v18 = vadd.f32 %v2623_v1, %v1746_v16  ;;  %v2584_v3 = vpop.f32.mrb[28].mxu0 }
 0x134   : > { %v2624_v19 = vpop.f32.mrb[28].mxu1  ;;  %v2585_v20 = vpop.f32.mrb[29].mxu0 }
 0x135   : > { %v2586_v21 = vadd.f32 %v2585_v20, %v2584_v3  ;;  %v2625_v22 = vpop.f32.mrb[29].mxu1  ;;  %v2587_v23 = vpop.f32.mrb[30].mxu0 }
 0x136   : > { %v2626_v24 = vadd.f32 %v2625_v22, %v2624_v19  ;;  %v2627_v25 = vpop.f32.mrb[30].mxu1  ;;  %v2588_v26 = vpop.f32.mrb[31].mxu0 }
 0x137   : > { %v1751_v27 = vadd.f32 %v2586_v21, %v1686_v28  ;;  %v2589_v29 = vadd.f32 %v2588_v26, %v2587_v23  ;;  %v2628_v30 = vpop.f32.mrb[31].mxu1 }
 0x138   : > { %v2629_v32 = vadd.f32 %v2628_v30, %v2627_v25 }
 0x139   : > { %v1816_v15 = vadd.f32 %v2626_v24, %v1751_v27  ;;  %v1754_v33 = vadd.f32 %v2589_v29, %v3462_v31 }
 0x13b   : > { %v3471_v34 = vadd.f32 %v2629_v32, %v1754_v33  ;;  %v2646_v17 = vpop.f32.mrb[32].mxu0 }
 0x13c   : > { %v2686_v35 = vpop.f32.mrb[32].mxu1  ;;  %v2647_v36 = vpop.f32.mrb[33].mxu0 }
 0x13d   : > { %v2648_v37 = vadd.f32 %v2647_v36, %v2646_v17  ;;  %v2687_v38 = vpop.f32.mrb[33].mxu1  ;;  %v2649_v39 = vpop.f32.mrb[34].mxu0 }
 0x13e   : > { %v2688_v40 = vadd.f32 %v2687_v38, %v2686_v35  ;;  %v2689_v41 = vpop.f32.mrb[34].mxu1  ;;  %v2650_v42 = vpop.f32.mrb[35].mxu0 }
 0x13f   : > { %v1857_v43 = vadd.f32 %v2648_v37, %v1792_v44  ;;  %v2651_v45 = vadd.f32 %v2650_v42, %v2649_v39  ;;  %v2690_v28 = vpop.f32.mrb[35].mxu1 }
 0x140   : > { %v2691_v46 = vadd.f32 %v2690_v28, %v2689_v41  ;;  %v3496_v41 = vld [vmem:[%s3558_s2] ss:$0 sm:$0xff] }
 0x141   : > { %v3473_v48 = vadd.f32 %v2688_v40, %v1857_v43  ;;  %v1860_v49 = vadd.f32 %v2651_v45, %v3464_v47 }
 0x143   : > { %v3476_v31 = vadd.f32 %v2691_v46, %v1860_v49  ;;  %v2652_v50 = vpop.f32.mrb[36].mxu0  ;;  %v2468_v46 = vld [vmem:[%s318_s29 + $0x10] sm:$0xff]  }
 0x144   : > { %v2692_v52 = vpop.f32.mrb[36].mxu1  ;;  %v2653_v54 = vpop.f32.mrb[37].mxu0 }
 0x145   : > { %v2654_v55 = vadd.f32 %v2653_v54, %v2652_v50  ;;  %v2693_v56 = vpop.f32.mrb[37].mxu1  ;;  %v2655_v57 = vpop.f32.mrb[38].mxu0 }
 0x146   : > { %v2694_v58 = vadd.f32 %v2693_v56, %v2692_v52  ;;  %v2695_v59 = vpop.f32.mrb[38].mxu1  ;;  %v2656_v51 = vpop.f32.mrb[39].mxu0  ;;  %v3502_v52 = vld [vmem:[%s3559_s3] ss:$0 sm:$0xff] }
 0x147   : > { %v1865_v60 = vadd.f32 %v2654_v55, %v1800_v62  ;;  %v2657_v44 = vadd.f32 %v2656_v51, %v2655_v57  ;;  %v2696_v61 = vpop.f32.mrb[39].mxu1  ;;  %v2461_v51 = vunpack.c.l.bf16 %v2468_v46 }
 0x148   : > { %v2697_v63 = vadd.f32 %v2696_v61, %v2695_v59 }
 0x149   : > { %v3478_v53 = vadd.f32 %v2694_v58, %v1865_v60  ;;  %v1868_v2 = vadd.f32 %v2657_v44, %v3466_v0 }
 0x14b   : > { %v3481_v47 = vadd.f32 %v2697_v63, %v1868_v2  ;;  %v2658_v4 = vpop.f32.mrb[40].mxu0 }
 0x14c   : > { %v2698_v5 = vpop.f32.mrb[40].mxu1  ;;  %v2659_v6 = vpop.f32.mrb[41].mxu0 }
 0x14d   : > { %v2660_v7 = vadd.f32 %v2659_v6, %v2658_v4  ;;  %v2699_v8 = vpop.f32.mrb[41].mxu1  ;;  %v2661_v9 = vpop.f32.mrb[42].mxu0  ;;  %v2469_v4 = vld [vmem:[%s318_s29 + $0x18] sm:$0xff]  }
 0x14e   : > { %v2700_v10 = vadd.f32 %v2699_v8, %v2698_v5  ;;  %v2701_v11 = vpop.f32.mrb[42].mxu1  ;;  %v2662_v12 = vpop.f32.mrb[43].mxu0 }
 0x14f   : > { %v1873_v13 = vadd.f32 %v2660_v7, %v1808_v14  ;;  %v2663_v62 = vadd.f32 %v2662_v12, %v2661_v9  ;;  %v2702_v1 = vpop.f32.mrb[43].mxu1  ;;  %v2462_v7 = vunpack.c.h.bf16 %v2468_v46 }
 0x150   : > { %v2703_v16 = vadd.f32 %v2702_v1, %v2701_v11 }
 0x151   : > { %v1938_v3 = vadd.f32 %v2700_v10, %v1873_v13  ;;  %v1876_v19 = vadd.f32 %v2663_v62, %v3468_v18 }
 0x153   : > { %v1941_v20 = vadd.f32 %v2703_v16, %v1876_v19  ;;  %v2664_v0 = vpop.f32.mrb[44].mxu0  ;;  %v2465_v19 = vunpack.c.l.bf16 %v2469_v4 }
 0x154   : > { %v2704_v21 = vpop.f32.mrb[44].mxu1  ;;  %v2665_v22 = vpop.f32.mrb[45].mxu0 }
 0x155   : > { %v2666_v23 = vadd.f32 %v2665_v22, %v2664_v0  ;;  %v2705_v24 = vpop.f32.mrb[45].mxu1  ;;  %v2667_v25 = vpop.f32.mrb[46].mxu0 }
 0x156   : > { %v2706_v26 = vadd.f32 %v2705_v24, %v2704_v21  ;;  %v2707_v27 = vpop.f32.mrb[46].mxu1  ;;  %v2668_v29 = vpop.f32.mrb[47].mxu0 }
 0x157   : > { %v1881_v30 = vadd.f32 %v2666_v23, %v1816_v15  ;;  %v2669_v14 = vadd.f32 %v2668_v29, %v2667_v25  ;;  %v2708_v32 = vpop.f32.mrb[47].mxu1 }
 0x158   : > { %v2709_v33 = vadd.f32 %v2708_v32, %v2707_v27 }
 0x159   : > { %v1946_v17 = vadd.f32 %v2706_v26, %v1881_v30  ;;  %v1884_v35 = vadd.f32 %v2669_v14, %v3471_v34  ;;  %v2452_v34 = vld [vmem:[%s318_s29] sm:$0xff]  }
 0x15a   : > { %v2453_v57 = vunpack.c.l.bf16 %v2452_v34  ;;  %v2454_v63 = vunpack.c.h.bf16 %v2452_v34 }
 0x15b   : > { %v3486_v18 = vadd.f32 %v2709_v33, %v1884_v35  ;;  %v2726_v36 = vpop.f32.mrb[48].mxu0 }
 0x15c   : > { %v2738_v37 = vpop.f32.mrb[48].mxu1  ;;  %v2727_v38 = vpop.f32.mrb[49].mxu0 }
 0x15d   : > { %v2728_v39 = vadd.f32 %v2727_v38, %v2726_v36  ;;  %v2739_v40 = vpop.f32.mrb[49].mxu1  ;;  %v2729_v15 = vpop.f32.mrb[50].mxu0 }
 0x15e   : > { %v2740_v42 = vadd.f32 %v2739_v40, %v2738_v37  ;;  %v2741_v43 = vpop.f32.mrb[50].mxu1  ;;  %v2730_v45 = vpop.f32.mrb[51].mxu0 }
 0x15f   : > { %v1987_v28 = vadd.f32 %v2728_v39, %v3473_v48  ;;  %v2731_v49 = vadd.f32 %v2730_v45, %v2729_v15  ;;  %v2742_v50 = vpop.f32.mrb[51].mxu1  ;;  %v2467_v48 = vld [vmem:[%s318_s29 + $0x8] sm:$0xff]  }
 0x160   : > { %v2003_v54 = vadd.f32 %v2740_v42, %v1938_v3  ;;  %v2743_v55 = vadd.f32 %v2742_v50, %v2741_v43  ;;  %v2457_v12 = vunpack.c.l.bf16 %v2467_v48  ;;  %v2458_v15 = vunpack.c.h.bf16 %v2467_v48 }
 0x161   : > { %v2024_v56 = vmul.f32 %v3496_v41, %v1987_v28  ;;  %v1990_v58 = vadd.f32 %v2731_v49, %v3476_v31  ;;  %v2466_v43 = vunpack.c.h.bf16 %v2469_v4 }
 0x162   : > { %v2028_v59 = vmul.f32 %v3496_v41, %v2003_v54  ;;  %v2006_v60 = vadd.f32 %v2743_v55, %v1941_v20 }
 0x163   : > { %v2039_v44 = vadd.f32 %v3502_v52, %v2024_v56  ;;  %v2025_v61 = vmul.f32 %v3496_v41, %v1990_v58  ;;  %v2732_v2 = vpop.f32.mrb[52].mxu0 }
 0x164   : > { %v2043_v5 = vadd.f32 %v3502_v52, %v2028_v59  ;;  %v2029_v6 = vmul.f32 %v3496_v41, %v2006_v60  ;;  %v2744_v8 = vpop.f32.mrb[52].mxu1  ;;  %v2733_v31 = vpop.f32.mrb[53].mxu0 }
 0x165   : > { %v2063_v9 = vadd.f32 %v2453_v57, %v2039_v44  ;;  %v2040_v10 = vadd.f32 %v3502_v52, %v2025_v61  ;;  %v2734_v11 = vadd.f32 %v2733_v31, %v2732_v2  ;;  %v2745_v13 = vpop.f32.mrb[53].mxu1  ;;  %v2735_v62 = vpop.f32.mrb[54].mxu0 }
 0x166   : > { %v2067_v1 = vadd.f32 %v2461_v51, %v2043_v5  ;;  %v2044_v16 = vadd.f32 %v3502_v52, %v2029_v6  ;;  %v2746_v3 = vadd.f32 %v2745_v13, %v2744_v8  ;;  %v2747_v20 = vpop.f32.mrb[54].mxu1  ;;  %v2736_v0 = vpop.f32.mrb[55].mxu0 }
 0x167   : > { %v2071_v21 = vmax.f32 %v2063_v9, 0.0  ;;  %v2064_v22 = vadd.f32 %v2454_v63, %v2040_v10  ;;  %v1995_v23 = vadd.f32 %v2734_v11, %v3478_v53  ;;  %v2737_v24 = vadd.f32 %v2736_v0, %v2735_v62  ;;  %v2748_v25 = vpop.f32.mrb[55].mxu1 }
 0x168   : > { %v2075_v26 = vmax.f32 %v2067_v1, 0.0  ;;  %v2068_v27 = vadd.f32 %v2462_v7, %v2044_v16  ;;  %v2011_v29 = vadd.f32 %v2746_v3, %v1946_v17  ;;  %v2749_v30 = vadd.f32 %v2748_v25, %v2747_v20 }
 0x169   : > { %v2443_v14 = vpack.c.bf16 %v2071_v21, %v2071_v21  ;;  %v2072_v32 = vmax.f32 %v2064_v22, 0.0  ;;  %v2026_v33 = vmul.f32 %v3496_v41, %v1995_v23  ;;  %v1998_v53 = vadd.f32 %v2737_v24, %v3481_v47 }
 0x16a   : > { %v2447_v35 = vpack.c.bf16 %v2075_v26, %v2075_v26  ;;  %v2076_v36 = vmax.f32 %v2068_v27, 0.0  ;;  %v2030_v37 = vmul.f32 %v3496_v41, %v2011_v29  ;;  %v2014_v38 = vadd.f32 %v2749_v30, %v3486_v18 }
 0x16b   : > { %2112 = vst.msk [vmem:[%s3519_s12] sm:$0xf] %vm2111_vm0, %v2443_v14  ;;  %v2444_v39 = vpack.c.bf16 %v2072_v32, %v2072_v32  ;;  %v2041_v17 = vadd.f32 %v3502_v52, %v2026_v33  ;;  %v2027_v40 = vmul.f32 %v3496_v41, %v1998_v53 }
 0x16c   : > { %2116 = vst.msk [vmem:[%s3519_s12 + $0x10] sm:$0xf] %vm2111_vm0, %v2447_v35  ;;  %v2448_v34 = vpack.c.bf16 %v2076_v36, %v2076_v36  ;;  %v2045_v47 = vadd.f32 %v3502_v52, %v2030_v37  ;;  %v2031_v42 = vmul.f32 %v3496_v41, %v2014_v38 }
 0x16d   : > { %2113 = vst.msk [vmem:[%s3519_s12 + $0x4] sm:$0xf] %vm2111_vm0, %v2444_v39  ;;  %v2065_v18 = vadd.f32 %v2457_v12, %v2041_v17  ;;  %v2042_v45 = vadd.f32 %v3502_v52, %v2027_v40 }
 0x16e   : > { %2117 = vst.msk [vmem:[%s3519_s12 + $0x14] sm:$0xf] %vm2111_vm0, %v2448_v34  ;;  %v2069_v28 = vadd.f32 %v2465_v19, %v2045_v47  ;;  %v2046_v46 = vadd.f32 %v3502_v52, %v2031_v42 }
 0x16f   : > { %v2073_v49 = vmax.f32 %v2065_v18, 0.0  ;;  %v2066_v50 = vadd.f32 %v2458_v15, %v2042_v45 }
 0x170   : > { %v2077_v54 = vmax.f32 %v2069_v28, 0.0  ;;  %v2070_v55 = vadd.f32 %v2466_v43, %v2046_v46 }
 0x171   : > { %v2445_v41 = vpack.c.bf16 %v2073_v49, %v2073_v49  ;;  %v2074_v56 = vmax.f32 %v2066_v50, 0.0 }
 0x172   : > { %v2449_v57 = vpack.c.bf16 %v2077_v54, %v2077_v54  ;;  %v2078_v58 = vmax.f32 %v2070_v55, 0.0 }
 0x173   : > { %2114 = vst.msk [vmem:[%s3519_s12 + $0x8] sm:$0xf] %vm2111_vm0, %v2445_v41  ;;  %v2446_v59 = vpack.c.bf16 %v2074_v56, %v2074_v56 }
 0x174   : > { %2118 = vst.msk [vmem:[%s3519_s12 + $0x18] sm:$0xf] %vm2111_vm0, %v2449_v57  ;;  %v2450_v51 = vpack.c.bf16 %v2078_v58, %v2078_v58 }
 0x175   : > { %2115 = vst.msk [vmem:[%s3519_s12 + $0xc] sm:$0xf] %vm2111_vm0, %v2446_v59 }
 0x176   : > { %2119 = vst.msk [vmem:[%s3519_s12 + $0x1c] sm:$0xf] %vm2111_vm0, %v2450_v51 }
 0x177 PF: > { %s15_s20 = sadd.s32 1, %s3009_s20   ;;  %s3562_s18 = smov %s3005_s19 }
 0x178   : > { %p12_p5 = scmp.ge.s32.totalorder %s15_s20, 4   ;;  %s3563_s19 = smov %s3565_s21 }
 0x17a   :  { %14 = sbr.rel (!%p12_p5) target bundleno = 2 (0x2), region = 82 }

// kernel: rasternet_forward.9
= control target key start
LH: loop header
LB: loop body
LE: loop exit
PB: predicated region body
PF: predicated region fallthrough
CT: control target
= control target key end

     0   :  { %vm1915_vm0 = vmmov 0   ;;  %vm1368_vm1 = vcmask 523264   ;;  %s2377_s2 = inlined_call_operand.vmem [shape: bf16[1792,128], index: 2, kind: input, shape index: {}]   ;;  %s2378_s0 = inlined_call_operand.vmem [shape: bf16[16,1792], index: 0, kind: input, shape index: {}]   ;;  %s2379_s5 = inlined_call_operand.vmem [shape: bf16[64,128], index: 5, kind: input, shape index: {}]   ;;  %s2380_s1 = inlined_call_operand.vmem [shape: bf16[16,64], index: 1, kind: input, shape index: {}]   ;;  %s2381_s6 = inlined_call_operand.vmem [shape: f32[1,128], index: 6, kind: input, shape index: {}]   ;;  %s2382_s7 = inlined_call_operand.vmem [shape: f32[1,128], index: 7, kind: input, shape index: {}]   ;;  %s2383_s3 = inlined_call_operand.vmem [shape: f32[1,128], index: 3, kind: input, shape index: {}]   ;;  %s2384_s9 = inlined_call_operand.vmem [shape: bf16[16,128], index: 9, kind: output, shape index: {1}]   ;;  %s2385_s4 = inlined_call_operand.vmem [shape: f32[1,128], index: 4, kind: input, shape index: {}]   ;;  %s2386_s8 = inlined_call_operand.vmem [shape: bf16[16,128], index: 8, kind: output, shape index: {0}]  }
   0x1   :  { %v1776_v0 = vld [vmem:[%s2377_s2 + $0x40] sm:$0xff]   ;;  %v1780_v4 = vld [vmem:[%s2377_s2 + $0x48] sm:$0xff]   ;;  %v1784_v8 = vld [vmem:[%s2377_s2 + $0x50] sm:$0xff]  }
   0x2   :  { %v1777_v1 = vld [vmem:[%s2377_s2 + $0xc0] sm:$0xff]   ;;  %1603 = vmatprep.subr.bf16.mxu0 %v1776_v0  ;;  %v1781_v5 = vld [vmem:[%s2377_s2 + $0xc8] sm:$0xff]   ;;  %v1785_v9 = vld [vmem:[%s2377_s2 + $0xd0] sm:$0xff]  }
   0x3   :  { %v1778_v2 = vld [vmem:[%s2377_s2] sm:$0xff]   ;;  %1625 = vmatprep.subr.bf16.mxu1 %v1777_v1  ;;  %v1782_v6 = vld [vmem:[%s2377_s2 + $0x8] sm:$0xff]   ;;  %v1786_v10 = vld [vmem:[%s2377_s2 + $0x10] sm:$0xff]  }
   0x4   :  { %v1779_v3 = vld [vmem:[%s2377_s2 + $0x80] sm:$0xff]   ;;  %1604 = vmatpush3.bf16.msra.mxu0 %v1778_v2  ;;  %v1783_v7 = vld [vmem:[%s2377_s2 + $0x88] sm:$0xff]   ;;  %v1787_v11 = vld [vmem:[%s2377_s2 + $0x90] sm:$0xff]  }
   0x5   :  { %1626 = vmatpush3.bf16.msra.mxu1 %v1779_v3  ;;  %1605 = vmatprep.subr.bf16.mxu0 %v1780_v4  ;;  %v1788_v12 = vld [vmem:[%s2377_s2 + $0x58] sm:$0xff]   ;;  %v1792_v16 = vld [vmem:[%s2377_s2 + $0x60] sm:$0xff]   ;;  %v1796_v20 = vld [vmem:[%s2377_s2 + $0x68] sm:$0xff]  }
   0x6   :  { %1627 = vmatprep.subr.bf16.mxu1 %v1781_v5  ;;  %v1789_v13 = vld [vmem:[%s2377_s2 + $0xd8] sm:$0xff]   ;;  %v1793_v17 = vld [vmem:[%s2377_s2 + $0xe0] sm:$0xff]   ;;  %v1797_v21 = vld [vmem:[%s2377_s2 + $0xe8] sm:$0xff]  }
   0x7   :  { %v1790_v14 = vld [vmem:[%s2377_s2 + $0x18] sm:$0xff]   ;;  %v1794_v18 = vld [vmem:[%s2377_s2 + $0x20] sm:$0xff]   ;;  %v1798_v22 = vld [vmem:[%s2377_s2 + $0x28] sm:$0xff]  }
   0x8   :  { %1606 = vmatpush3.bf16.msra.mxu0 %v1782_v6  ;;  %v1791_v15 = vld [vmem:[%s2377_s2 + $0x98] sm:$0xff]   ;;  %v1795_v19 = vld [vmem:[%s2377_s2 + $0xa0] sm:$0xff]   ;;  %v1799_v23 = vld [vmem:[%s2377_s2 + $0xa8] sm:$0xff]  }
   0x9   :  { %1628 = vmatpush3.bf16.msra.mxu1 %v1783_v7  ;;  %1607 = vmatprep.subr.bf16.mxu0 %v1784_v8  ;;  %v1800_v24 = vld [vmem:[%s2377_s2 + $0x70] sm:$0xff]   ;;  %v1804_v28 = vld [vmem:[%s2377_s2 + $0x78] sm:$0xff]   ;;  %v1811_v34 = vld [vmem:[%s2378_s0 + $0x8] ss:$56 sps:$4 sm:$0xff]  }
   0xa   :  { %1629 = vmatprep.subr.bf16.mxu1 %v1785_v9  ;;  %v1801_v25 = vld [vmem:[%s2377_s2 + $0xf0] sm:$0xff]   ;;  %v1805_v29 = vld [vmem:[%s2377_s2 + $0xf8] sm:$0xff]   ;;  %v1813_v35 = vld [vmem:[%s2378_s0 + $0xc] ss:$56 sps:$4 sm:$0xff]  }
   0xb   :  { %v1802_v26 = vld [vmem:[%s2377_s2 + $0x30] sm:$0xff]   ;;  %v1806_v30 = vld [vmem:[%s2377_s2 + $0x38] sm:$0xff]   ;;  %v1814_v36 = vld [vmem:[%s2377_s2 + $0x140] sm:$0xff]   ;;  %1085 = vmatprep.mubr.bf16.mxu1 %v1813_v35 }
   0xc   :  { %1608 = vmatpush3.bf16.msra.mxu0 %v1786_v10  ;;  %v1803_v27 = vld [vmem:[%s2377_s2 + $0xb0] sm:$0xff]   ;;  %v1807_v31 = vld [vmem:[%s2377_s2 + $0xb8] sm:$0xff]   ;;  %v1815_v37 = vld [vmem:[%s2377_s2 + $0x100] sm:$0xff]  }
   0xd   :  { %1630 = vmatpush3.bf16.msra.mxu1 %v1787_v11  ;;  %1609 = vmatprep.subr.bf16.mxu0 %v1788_v12  ;;  %v1808_v32 = vld [vmem:[%s2378_s0] ss:$56 sps:$4 sm:$0xff]   ;;  %v1810_v33 = vld [vmem:[%s2378_s0 + $0x4] ss:$56 sps:$4 sm:$0xff]   ;;  %v1818_v40 = vld [vmem:[%s2377_s2 + $0x148] sm:$0xff]  }
   0xe   :  { %1631 = vmatprep.subr.bf16.mxu1 %v1789_v13  ;;  %1044 = vmatprep.mubr.bf16.mxu0 %v1810_v33  ;;  %v1816_v38 = vld [vmem:[%s2377_s2 + $0x1c0] sm:$0xff]   ;;  %v1819_v41 = vld [vmem:[%s2377_s2 + $0x108] sm:$0xff]   ;;  %v1822_v44 = vld [vmem:[%s2377_s2 + $0x150] sm:$0xff]  }
   0xf   :  { %v1817_v39 = vld [vmem:[%s2377_s2 + $0x180] sm:$0xff]   ;;  %v1820_v42 = vld [vmem:[%s2377_s2 + $0x1c8] sm:$0xff]   ;;  %v1823_v45 = vld [vmem:[%s2377_s2 + $0x110] sm:$0xff]  }
  0x10   :  { %1610 = vmatpush3.bf16.msra.mxu0 %v1790_v14  ;;  %v1821_v43 = vld [vmem:[%s2377_s2 + $0x188] sm:$0xff]   ;;  %v1824_v46 = vld [vmem:[%s2377_s2 + $0x1d0] sm:$0xff]   ;;  %v1826_v48 = vld [vmem:[%s2377_s2 + $0x158] sm:$0xff]  }
  0x11   :  { %1632 = vmatpush3.bf16.msra.mxu1 %v1791_v15  ;;  %1611 = vmatprep.subr.bf16.mxu0 %v1792_v16  ;;  %v1825_v47 = vld [vmem:[%s2377_s2 + $0x190] sm:$0xff]   ;;  %v1827_v49 = vld [vmem:[%s2377_s2 + $0x118] sm:$0xff]   ;;  %v1830_v52 = vld [vmem:[%s2377_s2 + $0x160] sm:$0xff]  }
  0x12   :  { %1633 = vmatprep.subr.bf16.mxu1 %v1793_v17  ;;  %v1828_v50 = vld [vmem:[%s2377_s2 + $0x1d8] sm:$0xff]   ;;  %v1831_v53 = vld [vmem:[%s2377_s2 + $0x120] sm:$0xff]   ;;  %v1834_v56 = vld [vmem:[%s2377_s2 + $0x168] sm:$0xff]  }
  0x13   :  { %v1829_v51 = vld [vmem:[%s2377_s2 + $0x198] sm:$0xff]   ;;  %v1832_v54 = vld [vmem:[%s2377_s2 + $0x1e0] sm:$0xff]   ;;  %v1835_v57 = vld [vmem:[%s2377_s2 + $0x128] sm:$0xff]  }
  0x14   :  { %1612 = vmatpush3.bf16.msra.mxu0 %v1794_v18  ;;  %v1833_v55 = vld [vmem:[%s2377_s2 + $0x1a0] sm:$0xff]   ;;  %v1836_v58 = vld [vmem:[%s2377_s2 + $0x1e8] sm:$0xff]   ;;  %v1838_v60 = vld [vmem:[%s2377_s2 + $0x170] sm:$0xff]  }
  0x15   :  { %1634 = vmatpush3.bf16.msra.mxu1 %v1795_v19  ;;  %1613 = vmatprep.subr.bf16.mxu0 %v1796_v20  ;;  %v1837_v59 = vld [vmem:[%s2377_s2 + $0x1a8] sm:$0xff]   ;;  %v1839_v61 = vld [vmem:[%s2377_s2 + $0x130] sm:$0xff]   ;;  %v1842_v0 = vld [vmem:[%s2377_s2 + $0x178] sm:$0xff]  }
  0x16   :  { %1635 = vmatprep.subr.bf16.mxu1 %v1797_v21  ;;  %v1840_v62 = vld [vmem:[%s2377_s2 + $0x1f0] sm:$0xff]   ;;  %v1843_v1 = vld [vmem:[%s2377_s2 + $0x138] sm:$0xff]   ;;  %v1849_v6 = vld [vmem:[%s2377_s2 + $0x240] sm:$0xff]  }
  0x17   :  { %v1841_v63 = vld [vmem:[%s2377_s2 + $0x1b0] sm:$0xff]   ;;  %v1844_v2 = vld [vmem:[%s2377_s2 + $0x1f8] sm:$0xff]   ;;  %v1853_v9 = vld [vmem:[%s2377_s2 + $0x200] sm:$0xff]  }
  0x18   :  { %1614 = vmatpush3.bf16.msra.mxu0 %v1798_v22  ;;  %v1845_v3 = vld [vmem:[%s2378_s0 + $0x10] ss:$56 sps:$4 sm:$0xff]   ;;  %v1847_v4 = vld [vmem:[%s2378_s0 + $0x14] ss:$56 sps:$4 sm:$0xff]   ;;  %v1848_v5 = vld [vmem:[%s2377_s2 + $0x1b8] sm:$0xff]  }
  0x19   :  { %1636 = vmatpush3.bf16.msra.mxu1 %v1799_v23  ;;  %1615 = vmatprep.subr.bf16.mxu0 %v1800_v24  ;;  %v1850_v7 = vld [vmem:[%s2378_s0 + $0x18] ss:$56 sps:$4 sm:$0xff]   ;;  %v1852_v8 = vld [vmem:[%s2378_s0 + $0x1c] ss:$56 sps:$4 sm:$0xff]   ;;  %v1854_v10 = vld [vmem:[%s2377_s2 + $0x2c0] sm:$0xff]  }
  0x1a   :  { %1637 = vmatprep.subr.bf16.mxu1 %v1801_v25  ;;  %v1855_v11 = vld [vmem:[%s2377_s2 + $0x280] sm:$0xff]   ;;  %v1856_v12 = vld [vmem:[%s2377_s2 + $0x248] sm:$0xff]   ;;  %v1860_v16 = vld [vmem:[%s2377_s2 + $0x250] sm:$0xff]  }
  0x1b   :  { %v1857_v13 = vld [vmem:[%s2377_s2 + $0x208] sm:$0xff]   ;;  %v1861_v17 = vld [vmem:[%s2377_s2 + $0x210] sm:$0xff]   ;;  %v1864_v20 = vld [vmem:[%s2377_s2 + $0x258] sm:$0xff]  }
  0x1c   :  { %1616 = vmatpush3.bf16.msra.mxu0 %v1802_v26  ;;  %v1858_v14 = vld [vmem:[%s2377_s2 + $0x2c8] sm:$0xff]   ;;  %v1862_v18 = vld [vmem:[%s2377_s2 + $0x2d0] sm:$0xff]   ;;  %v1865_v21 = vld [vmem:[%s2377_s2 + $0x218] sm:$0xff]  }
  0x1d   :  { %1638 = vmatpush3.bf16.msra.mxu1 %v1803_v27  ;;  %1617 = vmatprep.subr.bf16.mxu0 %v1804_v28  ;;  %v1859_v15 = vld [vmem:[%s2377_s2 + $0x288] sm:$0xff]   ;;  %v1863_v19 = vld [vmem:[%s2377_s2 + $0x290] sm:$0xff]   ;;  %v1866_v22 = vld [vmem:[%s2377_s2 + $0x2d8] sm:$0xff]  }
  0x1e   :  { %1639 = vmatprep.subr.bf16.mxu1 %v1805_v29  ;;  %v1867_v23 = vld [vmem:[%s2377_s2 + $0x298] sm:$0xff]   ;;  %v1868_v24 = vld [vmem:[%s2377_s2 + $0x260] sm:$0xff]   ;;  %v1872_v28 = vld [vmem:[%s2377_s2 + $0x268] sm:$0xff]  }
  0x1f   :  { %v1869_v25 = vld [vmem:[%s2377_s2 + $0x220] sm:$0xff]   ;;  %v1873_v29 = vld [vmem:[%s2377_s2 + $0x228] sm:$0xff]   ;;  %v1877_v33 = vld [vmem:[%s2377_s2 + $0x230] sm:$0xff]  }
  0x20   :  { %1618 = vmatpush3.bf16.msra.mxu0 %v1806_v30  ;;  %v1870_v26 = vld [vmem:[%s2377_s2 + $0x2e0] sm:$0xff]   ;;  %v1874_v30 = vld [vmem:[%s2377_s2 + $0x2e8] sm:$0xff]   ;;  %v1879_v35 = vld [vmem:[%s2377_s2 + $0x2b0] sm:$0xff]  }
  0x21   :  { %1640 = vmatpush3.bf16.msra.mxu1 %v1807_v31  ;;  %1647 = vmatprep.subr.bf16.mxu0 %v1814_v36  ;;  %v1871_v27 = vld [vmem:[%s2377_s2 + $0x2a0] sm:$0xff]   ;;  %v1875_v31 = vld [vmem:[%s2377_s2 + $0x2a8] sm:$0xff]   ;;  %v1880_v36 = vld [vmem:[%s2377_s2 + $0x278] sm:$0xff]  }
  0x22   :  { %1669 = vmatprep.subr.bf16.mxu1 %v1816_v38  ;;  %v1882_v38 = vld [vmem:[%s2377_s2 + $0x2f8] sm:$0xff]  }
  0x23   :  { %1045 = vmatmul.mubr.bf16.vlgmr.msra.gmra.mrb[0].mxu0 %v1808_v32  ;;  %v1876_v32 = vld [vmem:[%s2377_s2 + $0x270] sm:$0xff]  }
  0x24   :  { %1086 = vmatmul.mubr.bf16.vlgmr.msra.gmra.mrb[0].mxu1 %v1811_v34  ;;  %1648 = vmatpush3.bf16.msra.mxu0 %v1815_v37  ;;  %v1878_v34 = vld [vmem:[%s2377_s2 + $0x2f0] sm:$0xff]   ;;  %v1881_v37 = vld [vmem:[%s2377_s2 + $0x238] sm:$0xff]  }
  0x25   :  { %1670 = vmatpush3.bf16.msra.mxu1 %v1817_v39  ;;  %1649 = vmatprep.subr.bf16.mxu0 %v1818_v40  ;;  %v1883_v39 = vld [vmem:[%s2378_s0 + $0x20] ss:$56 sps:$4 sm:$0xff]   ;;  %v1885_v40 = vld [vmem:[%s2378_s0 + $0x24] ss:$56 sps:$4 sm:$0xff]  }
  0x26   :  { %1671 = vmatprep.subr.bf16.mxu1 %v1820_v42  ;;  %1126 = vmatprep.mubr.bf16.mxu0 %v1847_v4  ;;  %v1887_v42 = vld [vmem:[%s2377_s2 + $0x340] sm:$0xff]  }
  0x27   :  { %1167 = vmatprep.mubr.bf16.mxu1 %v1852_v8 }
  0x28   :  { %1650 = vmatpush3.bf16.msra.mxu0 %v1819_v41  ;;  %v1886_v41 = vld [vmem:[%s2377_s2 + $0x2b8] sm:$0xff]  }
  0x29   :  { %1672 = vmatpush3.bf16.msra.mxu1 %v1821_v43  ;;  %1651 = vmatprep.subr.bf16.mxu0 %v1822_v44  ;;  %v1888_v43 = vld [vmem:[%s2378_s0 + $0x28] ss:$56 sps:$4 sm:$0xff]   ;;  %v1890_v44 = vld [vmem:[%s2378_s0 + $0x2c] ss:$56 sps:$4 sm:$0xff]  }
  0x2a   :  { %1673 = vmatprep.subr.bf16.mxu1 %v1824_v46  ;;  %v1914_v46 = vmov 0.0  }
  0x2c   :  { %1652 = vmatpush3.bf16.msra.mxu0 %v1823_v45  ;;  %v1891_v45 = vld [vmem:[%s2377_s2 + $0x300] sm:$0xff]  }
  0x2d   :  { %1674 = vmatpush3.bf16.msra.mxu1 %v1825_v47  ;;  %1653 = vmatprep.subr.bf16.mxu0 %v1826_v48  ;;  %v1892_v47 = vld [vmem:[%s2377_s2 + $0x348] sm:$0xff]  }
  0x2e   :  { %1675 = vmatprep.subr.bf16.mxu1 %v1828_v50  ;;  %v1893_v48 = vld [vmem:[%s2377_s2 + $0x308] sm:$0xff]   ;;  %v1895_v50 = vld [vmem:[%s2377_s2 + $0x310] sm:$0xff]  }
  0x30   :  { %1654 = vmatpush3.bf16.msra.mxu0 %v1827_v49  ;;  %v1894_v49 = vld [vmem:[%s2377_s2 + $0x350] sm:$0xff]  }
  0x31   :  { %1676 = vmatpush3.bf16.msra.mxu1 %v1829_v51  ;;  %1655 = vmatprep.subr.bf16.mxu0 %v1830_v52  ;;  %v1896_v51 = vld [vmem:[%s2377_s2 + $0x358] sm:$0xff]  }
  0x32   :  { %1677 = vmatprep.subr.bf16.mxu1 %v1832_v54  ;;  %v1897_v52 = vld [vmem:[%s2377_s2 + $0x318] sm:$0xff]   ;;  %v1902_v54 = vld [vmem:[%s2379_s5] sm:$0xff]  }
  0x34   :  { %1656 = vmatpush3.bf16.msra.mxu0 %v1831_v53  ;;  %v1898_v53 = vld [vmem:[%s2377_s2 + $0x360] sm:$0xff]  }
  0x35   :  { %1678 = vmatpush3.bf16.msra.mxu1 %v1833_v55  ;;  %1657 = vmatprep.subr.bf16.mxu0 %v1834_v56  ;;  %v1899_v55 = vld [vmem:[%s2377_s2 + $0x320] sm:$0xff]   ;;  %v1905_v56 = vld [vmem:[%s2379_s5 + $0x8] sm:$0xff]  }
  0x36   :  { %1679 = vmatprep.subr.bf16.mxu1 %v1836_v58  ;;  %v1901_v58 = vld [vmem:[%s2377_s2 + $0x328] sm:$0xff]  }
  0x38   :  { %1658 = vmatpush3.bf16.msra.mxu0 %v1835_v57  ;;  %v1900_v57 = vld [vmem:[%s2377_s2 + $0x368] sm:$0xff]  }
  0x39   :  { %1680 = vmatpush3.bf16.msra.mxu1 %v1837_v59  ;;  %1659 = vmatprep.subr.bf16.mxu0 %v1838_v60  ;;  %v1908_v59 = vld [vmem:[%s2379_s5 + $0x10] sm:$0xff]  }
  0x3a   :  { %1681 = vmatprep.subr.bf16.mxu1 %v1840_v62  ;;  %v1903_v60 = vld [vmem:[%s2377_s2 + $0x370] sm:$0xff]   ;;  %v1912_v62 = vld [vmem:[%s2379_s5 + $0x18] sm:$0xff]  }
  0x3c   :  { %1660 = vmatpush3.bf16.msra.mxu0 %v1839_v61  ;;  %v1911_v61 = vld [vmem:[%s2378_s0 + $0x34] ss:$56 sps:$4 sm:$0xff]  }
  0x3d   :  { %1682 = vmatpush3.bf16.msra.mxu1 %v1841_v63  ;;  %1661 = vmatprep.subr.bf16.mxu0 %v1842_v0  ;;  %v1904_v63 = vld [vmem:[%s2377_s2 + $0x330] sm:$0xff]   ;;  %v1906_v0 = vld [vmem:[%s2377_s2 + $0x378] sm:$0xff]  }
  0x3e   :  { %1683 = vmatprep.subr.bf16.mxu1 %v1844_v2  ;;  %v1907_v2 = vld [vmem:[%s2377_s2 + $0x338] sm:$0xff]  }
  0x40   :  { %1662 = vmatpush3.bf16.msra.mxu0 %v1843_v1  ;;  %v1913_v1 = vld [vmem:[%s2380_s1] sm:$0xff]  }
  0x41   :  { %1684 = vmatpush3.bf16.msra.mxu1 %v1848_v5  ;;  %1691 = vmatprep.subr.bf16.mxu0 %v1849_v6 }
  0x42   :  { %1713 = vmatprep.subr.bf16.mxu1 %v1854_v10 }
  0x43   :  { %1127 = vmatmul.mubr.bf16.vlgmr.msra.gmra.mrb[4].mxu0 %v1845_v3  ;;  %v1909_v3 = vld [vmem:[%s2378_s0 + $0x30] ss:$56 sps:$4 sm:$0xff]  }
  0x44   :  { %1692 = vmatpush3.bf16.msra.mxu0 %v1853_v9  ;;  %1168 = vmatmul.mubr.bf16.vlgmr.msra.gmra.mrb[4].mxu1 %v1850_v7 }
  0x45   :  { %1714 = vmatpush3.bf16.msra.mxu1 %v1855_v11  ;;  %1693 = vmatprep.subr.bf16.mxu0 %v1856_v12 }
  0x46   :  { %1715 = vmatprep.subr.bf16.mxu1 %v1858_v14  ;;  %1208 = vmatprep.mubr.bf16.mxu0 %v1885_v40 }
  0x47   :  { %1249 = vmatprep.mubr.bf16.mxu1 %v1890_v44 }
  0x48   :  { %1694 = vmatpush3.bf16.msra.mxu0 %v1857_v13 }
  0x49   :  { %1716 = vmatpush3.bf16.msra.mxu1 %v1859_v15  ;;  %1695 = vmatprep.subr.bf16.mxu0 %v1860_v16 }
  0x4a   :  { %1717 = vmatprep.subr.bf16.mxu1 %v1862_v18 }
  0x4c   :  { %1696 = vmatpush3.bf16.msra.mxu0 %v1861_v17 }
  0x4d   :  { %1718 = vmatpush3.bf16.msra.mxu1 %v1863_v19  ;;  %1697 = vmatprep.subr.bf16.mxu0 %v1864_v20 }
  0x4e   :  { %1719 = vmatprep.subr.bf16.mxu1 %v1866_v22 }
  0x50   :  { %1698 = vmatpush3.bf16.msra.mxu0 %v1865_v21 }
  0x51   :  { %1720 = vmatpush3.bf16.msra.mxu1 %v1867_v23  ;;  %1699 = vmatprep.subr.bf16.mxu0 %v1868_v24 }
  0x52   :  { %1721 = vmatprep.subr.bf16.mxu1 %v1870_v26 }
  0x54   :  { %1700 = vmatpush3.bf16.msra.mxu0 %v1869_v25 }
  0x55   :  { %1722 = vmatpush3.bf16.msra.mxu1 %v1871_v27  ;;  %1701 = vmatprep.subr.bf16.mxu0 %v1872_v28 }
  0x56   :  { %1723 = vmatprep.subr.bf16.mxu1 %v1874_v30 }
  0x58   :  { %1702 = vmatpush3.bf16.msra.mxu0 %v1873_v29 }
  0x59   :  { %1724 = vmatpush3.bf16.msra.mxu1 %v1875_v31  ;;  %1703 = vmatprep.subr.bf16.mxu0 %v1876_v32 }
  0x5a   :  { %1725 = vmatprep.subr.bf16.mxu1 %v1878_v34 }
  0x5c   :  { %1704 = vmatpush3.bf16.msra.mxu0 %v1877_v33 }
  0x5d   :  { %1726 = vmatpush3.bf16.msra.mxu1 %v1879_v35  ;;  %1705 = vmatprep.subr.bf16.mxu0 %v1880_v36 }
  0x5e   :  { %1727 = vmatprep.subr.bf16.mxu1 %v1882_v38 }
  0x60   :  { %1706 = vmatpush3.bf16.msra.mxu0 %v1881_v37 }
  0x61   :  { %1728 = vmatpush3.bf16.msra.mxu1 %v1886_v41  ;;  %1735 = vmatprep.subr.bf16.mxu0 %v1887_v42 }
  0x62   :  { %1762 = vmatprep.subr.bf16.mxu1 %v1914_v46 }
  0x63   :  { %1209 = vmatmul.mubr.bf16.vlgmr.msra.gmra.mrb[8].mxu0 %v1883_v39 }
  0x64   :  { %1736 = vmatpush3.bf16.msra.mxu0 %v1891_v45  ;;  %1250 = vmatmul.mubr.bf16.vlgmr.msra.gmra.mrb[8].mxu1 %v1888_v43 }
  0x65   :  { %1737 = vmatprep.subr.bf16.mxu0 %v1892_v47  ;;  %1770 = vmatprep.mubr.msk.bf16.mxu1 %vm1915_vm0, %v1914_v46 }
  0x66   :  { %1763 = vmatpush3.bf16.msra.mxu1 %v1902_v54  ;;  %1290 = vmatprep.mubr.bf16.mxu0 %v1911_v61 }
  0x67   :  { %1764 = vmatprep.subr.bf16.mxu1 %v1914_v46 }
  0x68   :  { %1738 = vmatpush3.bf16.msra.mxu0 %v1893_v48 }
  0x69   :  { %1739 = vmatprep.subr.bf16.mxu0 %v1894_v49 }
  0x6a   :  { %1765 = vmatpush3.bf16.msra.mxu1 %v1905_v56 }
  0x6b   :  { %1766 = vmatprep.subr.bf16.mxu1 %v1914_v46 }
  0x6c   :  { %1740 = vmatpush3.bf16.msra.mxu0 %v1895_v50  ;;  %v1585_v50 = vld [vmem:[%s2381_s6] ss:$0 sm:$0xff] }
  0x6d   :  { %1741 = vmatprep.subr.bf16.mxu0 %v1896_v51 }
  0x6e   :  { %1767 = vmatpush3.bf16.msra.mxu1 %v1908_v59 }
  0x6f   :  { %1768 = vmatprep.subr.bf16.mxu1 %v1914_v46 }
  0x70   :  { %1742 = vmatpush3.bf16.msra.mxu0 %v1897_v52  ;;  %v1586_v52 = vld [vmem:[%s2382_s7] ss:$0 sm:$0xff] }
  0x71   :  { %1743 = vmatprep.subr.bf16.mxu0 %v1898_v53 }
  0x72   :  { %1769 = vmatpush3.bf16.msra.mxu1 %v1912_v62 }
  0x74   :  { %1744 = vmatpush3.bf16.msra.mxu0 %v1899_v55 }
  0x75   :  { %1745 = vmatprep.subr.bf16.mxu0 %v1900_v57  ;;  %1771 = vmatmul.mubr.msk.bf16.vlgmr.msra.gmra.mrb[12].mxu1 %vm1368_vm1, %v1913_v1  ;;  %v1575_v1 = vld [vmem:[%s2383_s3] ss:$0 sm:$0xff] }
  0x78   :  { %1746 = vmatpush3.bf16.msra.mxu0 %v1901_v58 }
  0x79   :  { %1747 = vmatprep.subr.bf16.mxu0 %v1903_v60 }
  0x7c   :  { %1748 = vmatpush3.bf16.msra.mxu0 %v1904_v63 }
  0x7d   :  { %1749 = vmatprep.subr.bf16.mxu0 %v1906_v0 }
  0x80   :  { %1750 = vmatpush3.bf16.msra.mxu0 %v1907_v2 }
  0x83   :  { %1291 = vmatmul.mubr.bf16.vlgmr.msra.gmra.mrb[12].mxu0 %v1909_v3 }
  0xf6   :  { %v1619_v4 = vpop.f32.mrb[0].mxu0 }
  0xf7   :  { %v1641_v5 = vpop.f32.mrb[0].mxu1  ;;  %v1620_v6 = vpop.f32.mrb[1].mxu0 }
  0xf8   :  { %v1621_v7 = vadd.f32 %v1620_v6, %v1619_v4  ;;  %v1642_v8 = vpop.f32.mrb[1].mxu1  ;;  %v1622_v9 = vpop.f32.mrb[2].mxu0 }
  0xf9   :  { %v1643_v10 = vadd.f32 %v1642_v8, %v1641_v5  ;;  %v1644_v11 = vpop.f32.mrb[2].mxu1  ;;  %v1623_v12 = vpop.f32.mrb[3].mxu0  ;;  %v1576_v5 = vld [vmem:[%s2385_s4] ss:$0 sm:$0xff] }
  0xfa   :  { %v1624_v13 = vadd.f32 %v1623_v12, %v1622_v9  ;;  %v1645_v14 = vpop.f32.mrb[3].mxu1 }
  0xfb   :  { %v1088_v15 = vadd.f32 %v1643_v10, %v1621_v7  ;;  %v1646_v16 = vadd.f32 %v1645_v14, %v1644_v11 }
  0xfd   :  { %v1091_v17 = vadd.f32 %v1646_v16, %v1624_v13 }
 0x116   :  { %v1663_v18 = vpop.f32.mrb[4].mxu0 }
 0x117   :  { %v1664_v19 = vpop.f32.mrb[5].mxu0  ;;  %v1685_v24 = vpop.f32.mrb[4].mxu1 }
 0x118   :  { %v1665_v20 = vadd.f32 %v1664_v19, %v1663_v18  ;;  %v1666_v21 = vpop.f32.mrb[6].mxu0  ;;  %v1686_v26 = vpop.f32.mrb[5].mxu1 }
 0x119   :  { %v1667_v22 = vpop.f32.mrb[7].mxu0  ;;  %v1687_v28 = vadd.f32 %v1686_v26, %v1685_v24  ;;  %v1688_v29 = vpop.f32.mrb[6].mxu1 }
 0x11a   :  { %v1129_v23 = vadd.f32 %v1665_v20, %v1088_v15  ;;  %v1668_v25 = vadd.f32 %v1667_v22, %v1666_v21  ;;  %v1689_v30 = vpop.f32.mrb[7].mxu1 }
 0x11b   :  { %v1690_v32 = vadd.f32 %v1689_v30, %v1688_v29 }
 0x11c   :  { %v1132_v27 = vadd.f32 %v1668_v25, %v1091_v17  ;;  %v1170_v31 = vadd.f32 %v1687_v28, %v1129_v23 }
 0x11e   :  { %v1173_v33 = vadd.f32 %v1690_v32, %v1132_v27 }
 0x136   :  { %v1707_v34 = vpop.f32.mrb[8].mxu0 }
 0x137   :  { %v1708_v35 = vpop.f32.mrb[9].mxu0  ;;  %v1729_v38 = vpop.f32.mrb[8].mxu1 }
 0x138   :  { %v1709_v36 = vadd.f32 %v1708_v35, %v1707_v34  ;;  %v1710_v37 = vpop.f32.mrb[10].mxu0  ;;  %v1730_v42 = vpop.f32.mrb[9].mxu1 }
 0x139   :  { %v1711_v39 = vpop.f32.mrb[11].mxu0  ;;  %v1731_v43 = vadd.f32 %v1730_v42, %v1729_v38  ;;  %v1732_v44 = vpop.f32.mrb[10].mxu1 }
 0x13a   :  { %v1211_v40 = vadd.f32 %v1709_v36, %v1170_v31  ;;  %v1712_v41 = vadd.f32 %v1711_v39, %v1710_v37  ;;  %v1733_v46 = vpop.f32.mrb[11].mxu1 }
 0x13b   :  { %v1734_v48 = vadd.f32 %v1733_v46, %v1732_v44 }
 0x13c   :  { %v1214_v45 = vadd.f32 %v1712_v41, %v1173_v33  ;;  %v1252_v47 = vadd.f32 %v1731_v43, %v1211_v40 }
 0x13e   :  { %v1255_v49 = vadd.f32 %v1734_v48, %v1214_v45 }
 0x148   :  { %v1406_v51 = vpop.f32.mrb[12].mxu1 }
 0x149   :  { %v1420_v53 = vmul.f32 %v1585_v50, %v1406_v51  ;;  %v1772_v54 = vpop.f32.mrb[13].mxu1 }
 0x14a   :  { %v1409_v55 = vpop.f32.mrb[14].mxu1 }
 0x14b   :  { %v1429_v56 = vadd.f32 %v1586_v52, %v1420_v53  ;;  %v1421_v57 = vmul.f32 %v1585_v50, %v1409_v55  ;;  %v1773_v58 = vpop.f32.mrb[15].mxu1 }
 0x14d   :  { %v1430_v60 = vadd.f32 %v1586_v52, %v1421_v57 }
 0x14f   :  { %v1601_v0 = vpack.c.bf16 %v1430_v60, %v1429_v56 }
 0x151   :  { %1602 = vst [vmem:[%s2384_s9] sm:$0xff] %v1601_v0  }
 0x156   :  { %v1751_v59 = vpop.f32.mrb[12].mxu0 }
 0x157   :  { %v1752_v61 = vpop.f32.mrb[13].mxu0 }
 0x158   :  { %v1753_v62 = vadd.f32 %v1752_v61, %v1751_v59  ;;  %v1754_v63 = vpop.f32.mrb[14].mxu0 }
 0x159   :  { %v1755_v2 = vpop.f32.mrb[15].mxu0 }
 0x15a   :  { %v1293_v3 = vadd.f32 %v1753_v62, %v1252_v47  ;;  %v1756_v4 = vadd.f32 %v1755_v2, %v1754_v63 }
 0x15c   :  { %v1306_v6 = vmul.f32 %v1575_v1, %v1293_v3  ;;  %v1296_v7 = vadd.f32 %v1756_v4, %v1255_v49 }
 0x15e   :  { %v1315_v8 = vadd.f32 %v1576_v5, %v1306_v6  ;;  %v1307_v9 = vmul.f32 %v1575_v1, %v1296_v7 }
 0x160   :  { %v1316_v10 = vadd.f32 %v1576_v5, %v1307_v9  ;;  %v1317_v11 = vmax.f32 %v1315_v8, 0.0 }
 0x162   :  { %v1318_v12 = vmax.f32 %v1316_v10, 0.0 }
 0x164   :  { %v1596_v13 = vpack.c.bf16 %v1318_v12, %v1317_v11 }
 0x166   :  { %1597 = vst [vmem:[%s2386_s8] sm:$0xff] %v1596_v13  }

// kernel: rasternet_forward.10
= control target key start
LH: loop header
LB: loop body
LE: loop exit
PB: predicated region body
PF: predicated region fallthrough
CT: control target
= control target key end

     0   :  { %vm3359_vm0 = vmmov 0   ;;  %s4131_s1 = inlined_call_operand.vmem [shape: bf16[3456,128], index: 1, kind: input, shape index: {}]   ;;  %s4132_s0 = inlined_call_operand.vmem [shape: bf16[16,3456], index: 0, kind: input, shape index: {}]   ;;  %s4133_s2 = inlined_call_operand.vmem [shape: f32[1,128], index: 2, kind: input, shape index: {}]   ;;  %s4134_s4 = inlined_call_operand.vmem [shape: bf16[16,128], index: 4, kind: input, shape index: {}]   ;;  %s4135_s3 = inlined_call_operand.vmem [shape: f32[1,128], index: 3, kind: input, shape index: {}]   ;;  %s4136_s5 = inlined_call_operand.vmem [shape: bf16[16,128], index: 5, kind: output, shape index: {}]  }
   0x1   :  { %v3102_v0 = vld [vmem:[%s4131_s1 + $0x40] sm:$0xff]   ;;  %v3106_v4 = vld [vmem:[%s4131_s1 + $0x48] sm:$0xff]   ;;  %v3110_v8 = vld [vmem:[%s4131_s1 + $0x50] sm:$0xff]  }
   0x2   :  { %v3103_v1 = vld [vmem:[%s4131_s1 + $0xc0] sm:$0xff]   ;;  %2785 = vmatprep.subr.bf16.mxu0 %v3102_v0  ;;  %v3107_v5 = vld [vmem:[%s4131_s1 + $0xc8] sm:$0xff]   ;;  %v3111_v9 = vld [vmem:[%s4131_s1 + $0xd0] sm:$0xff]  }
   0x3   :  { %v3104_v2 = vld [vmem:[%s4131_s1] sm:$0xff]   ;;  %2807 = vmatprep.subr.bf16.mxu1 %v3103_v1  ;;  %v3108_v6 = vld [vmem:[%s4131_s1 + $0x8] sm:$0xff]   ;;  %v3112_v10 = vld [vmem:[%s4131_s1 + $0x10] sm:$0xff]  }
   0x4   :  { %v3105_v3 = vld [vmem:[%s4131_s1 + $0x80] sm:$0xff]   ;;  %2786 = vmatpush3.bf16.msra.mxu0 %v3104_v2  ;;  %v3109_v7 = vld [vmem:[%s4131_s1 + $0x88] sm:$0xff]   ;;  %v3113_v11 = vld [vmem:[%s4131_s1 + $0x90] sm:$0xff]  }
   0x5   :  { %2808 = vmatpush3.bf16.msra.mxu1 %v3105_v3  ;;  %2787 = vmatprep.subr.bf16.mxu0 %v3106_v4  ;;  %v3114_v12 = vld [vmem:[%s4131_s1 + $0x58] sm:$0xff]   ;;  %v3118_v16 = vld [vmem:[%s4131_s1 + $0x60] sm:$0xff]   ;;  %v3122_v20 = vld [vmem:[%s4131_s1 + $0x68] sm:$0xff]  }
   0x6   :  { %2809 = vmatprep.subr.bf16.mxu1 %v3107_v5  ;;  %v3115_v13 = vld [vmem:[%s4131_s1 + $0xd8] sm:$0xff]   ;;  %v3119_v17 = vld [vmem:[%s4131_s1 + $0xe0] sm:$0xff]   ;;  %v3123_v21 = vld [vmem:[%s4131_s1 + $0xe8] sm:$0xff]  }
   0x7   :  { %v3116_v14 = vld [vmem:[%s4131_s1 + $0x18] sm:$0xff]   ;;  %v3120_v18 = vld [vmem:[%s4131_s1 + $0x20] sm:$0xff]   ;;  %v3124_v22 = vld [vmem:[%s4131_s1 + $0x28] sm:$0xff]  }
   0x8   :  { %2788 = vmatpush3.bf16.msra.mxu0 %v3108_v6  ;;  %v3117_v15 = vld [vmem:[%s4131_s1 + $0x98] sm:$0xff]   ;;  %v3121_v19 = vld [vmem:[%s4131_s1 + $0xa0] sm:$0xff]   ;;  %v3125_v23 = vld [vmem:[%s4131_s1 + $0xa8] sm:$0xff]  }
   0x9   :  { %2810 = vmatpush3.bf16.msra.mxu1 %v3109_v7  ;;  %2789 = vmatprep.subr.bf16.mxu0 %v3110_v8  ;;  %v3126_v24 = vld [vmem:[%s4131_s1 + $0x70] sm:$0xff]   ;;  %v3130_v28 = vld [vmem:[%s4131_s1 + $0x78] sm:$0xff]   ;;  %v3134_v32 = vld [vmem:[%s4132_s0] ss:$108 sps:$4 sm:$0xff]  }
   0xa   :  { %2811 = vmatprep.subr.bf16.mxu1 %v3111_v9  ;;  %v3127_v25 = vld [vmem:[%s4131_s1 + $0xf0] sm:$0xff]   ;;  %v3131_v29 = vld [vmem:[%s4131_s1 + $0xf8] sm:$0xff]   ;;  %v3140_v36 = vld [vmem:[%s4131_s1 + $0x140] sm:$0xff]  }
   0xb   :  { %v3128_v26 = vld [vmem:[%s4131_s1 + $0x30] sm:$0xff]   ;;  %v3132_v30 = vld [vmem:[%s4131_s1 + $0x38] sm:$0xff]   ;;  %v3141_v37 = vld [vmem:[%s4131_s1 + $0x100] sm:$0xff]  }
   0xc   :  { %2790 = vmatpush3.bf16.msra.mxu0 %v3112_v10  ;;  %v3129_v27 = vld [vmem:[%s4131_s1 + $0xb0] sm:$0xff]   ;;  %v3133_v31 = vld [vmem:[%s4131_s1 + $0xb8] sm:$0xff]   ;;  %v3142_v38 = vld [vmem:[%s4131_s1 + $0x1c0] sm:$0xff]  }
   0xd   :  { %2812 = vmatpush3.bf16.msra.mxu1 %v3113_v11  ;;  %2791 = vmatprep.subr.bf16.mxu0 %v3114_v12  ;;  %v3136_v33 = vld [vmem:[%s4132_s0 + $0x4] ss:$108 sps:$4 sm:$0xff]   ;;  %v3137_v34 = vld [vmem:[%s4132_s0 + $0x8] ss:$108 sps:$4 sm:$0xff]   ;;  %v3139_v35 = vld [vmem:[%s4132_s0 + $0xc] ss:$108 sps:$4 sm:$0xff]  }
   0xe   :  { %2813 = vmatprep.subr.bf16.mxu1 %v3115_v13  ;;  %1945 = vmatprep.mubr.bf16.mxu0 %v3136_v33  ;;  %v3143_v39 = vld [vmem:[%s4131_s1 + $0x180] sm:$0xff]   ;;  %v3144_v40 = vld [vmem:[%s4131_s1 + $0x148] sm:$0xff]   ;;  %v3148_v44 = vld [vmem:[%s4131_s1 + $0x150] sm:$0xff]  }
   0xf   :  { %1986 = vmatprep.mubr.bf16.mxu1 %v3139_v35  ;;  %v3145_v41 = vld [vmem:[%s4131_s1 + $0x108] sm:$0xff]   ;;  %v3149_v45 = vld [vmem:[%s4131_s1 + $0x110] sm:$0xff]   ;;  %v3152_v48 = vld [vmem:[%s4131_s1 + $0x158] sm:$0xff]  }
  0x10   :  { %2792 = vmatpush3.bf16.msra.mxu0 %v3116_v14  ;;  %v3146_v42 = vld [vmem:[%s4131_s1 + $0x1c8] sm:$0xff]   ;;  %v3150_v46 = vld [vmem:[%s4131_s1 + $0x1d0] sm:$0xff]   ;;  %v3153_v49 = vld [vmem:[%s4131_s1 + $0x118] sm:$0xff]  }
  0x11   :  { %2814 = vmatpush3.bf16.msra.mxu1 %v3117_v15  ;;  %2793 = vmatprep.subr.bf16.mxu0 %v3118_v16  ;;  %v3147_v43 = vld [vmem:[%s4131_s1 + $0x188] sm:$0xff]   ;;  %v3151_v47 = vld [vmem:[%s4131_s1 + $0x190] sm:$0xff]   ;;  %v3154_v50 = vld [vmem:[%s4131_s1 + $0x1d8] sm:$0xff]  }
  0x12   :  { %2815 = vmatprep.subr.bf16.mxu1 %v3119_v17  ;;  %v3155_v51 = vld [vmem:[%s4131_s1 + $0x198] sm:$0xff]   ;;  %v3156_v52 = vld [vmem:[%s4131_s1 + $0x160] sm:$0xff]   ;;  %v3160_v56 = vld [vmem:[%s4131_s1 + $0x168] sm:$0xff]  }
  0x13   :  { %v3157_v53 = vld [vmem:[%s4131_s1 + $0x120] sm:$0xff]   ;;  %v3161_v57 = vld [vmem:[%s4131_s1 + $0x128] sm:$0xff]   ;;  %v3164_v60 = vld [vmem:[%s4131_s1 + $0x170] sm:$0xff]  }
  0x14   :  { %2794 = vmatpush3.bf16.msra.mxu0 %v3120_v18  ;;  %v3158_v54 = vld [vmem:[%s4131_s1 + $0x1e0] sm:$0xff]   ;;  %v3162_v58 = vld [vmem:[%s4131_s1 + $0x1e8] sm:$0xff]   ;;  %v3165_v61 = vld [vmem:[%s4131_s1 + $0x130] sm:$0xff]  }
  0x15   :  { %2816 = vmatpush3.bf16.msra.mxu1 %v3121_v19  ;;  %2795 = vmatprep.subr.bf16.mxu0 %v3122_v20  ;;  %v3159_v55 = vld [vmem:[%s4131_s1 + $0x1a0] sm:$0xff]   ;;  %v3163_v59 = vld [vmem:[%s4131_s1 + $0x1a8] sm:$0xff]   ;;  %v3166_v62 = vld [vmem:[%s4131_s1 + $0x1f0] sm:$0xff]  }
  0x16   :  { %2817 = vmatprep.subr.bf16.mxu1 %v3123_v21  ;;  %v3167_v63 = vld [vmem:[%s4131_s1 + $0x1b0] sm:$0xff]   ;;  %v3168_v0 = vld [vmem:[%s4131_s1 + $0x178] sm:$0xff]   ;;  %v3175_v6 = vld [vmem:[%s4131_s1 + $0x240] sm:$0xff]  }
  0x17   :  { %v3169_v1 = vld [vmem:[%s4131_s1 + $0x138] sm:$0xff]   ;;  %v3173_v4 = vld [vmem:[%s4132_s0 + $0x14] ss:$108 sps:$4 sm:$0xff]   ;;  %v3182_v12 = vld [vmem:[%s4131_s1 + $0x248] sm:$0xff]  }
  0x18   :  { %2796 = vmatpush3.bf16.msra.mxu0 %v3124_v22  ;;  %v3170_v2 = vld [vmem:[%s4131_s1 + $0x1f8] sm:$0xff]   ;;  %v3179_v9 = vld [vmem:[%s4131_s1 + $0x200] sm:$0xff]   ;;  %v3183_v13 = vld [vmem:[%s4131_s1 + $0x208] sm:$0xff]  }
  0x19   :  { %2818 = vmatpush3.bf16.msra.mxu1 %v3125_v23  ;;  %2797 = vmatprep.subr.bf16.mxu0 %v3126_v24  ;;  %v3171_v3 = vld [vmem:[%s4132_s0 + $0x10] ss:$108 sps:$4 sm:$0xff]   ;;  %v3176_v7 = vld [vmem:[%s4132_s0 + $0x18] ss:$108 sps:$4 sm:$0xff]   ;;  %v3184_v14 = vld [vmem:[%s4131_s1 + $0x2c8] sm:$0xff]  }
  0x1a   :  { %2819 = vmatprep.subr.bf16.mxu1 %v3127_v25  ;;  %v3174_v5 = vld [vmem:[%s4131_s1 + $0x1b8] sm:$0xff]   ;;  %v3180_v10 = vld [vmem:[%s4131_s1 + $0x2c0] sm:$0xff]   ;;  %v3185_v15 = vld [vmem:[%s4131_s1 + $0x288] sm:$0xff]  }
  0x1b   :  { %v3178_v8 = vld [vmem:[%s4132_s0 + $0x1c] ss:$108 sps:$4 sm:$0xff]   ;;  %v3181_v11 = vld [vmem:[%s4131_s1 + $0x280] sm:$0xff]   ;;  %v3186_v16 = vld [vmem:[%s4131_s1 + $0x250] sm:$0xff]  }
  0x1c   :  { %2798 = vmatpush3.bf16.msra.mxu0 %v3128_v26  ;;  %v3187_v17 = vld [vmem:[%s4131_s1 + $0x210] sm:$0xff]   ;;  %v3190_v20 = vld [vmem:[%s4131_s1 + $0x258] sm:$0xff]   ;;  %v3194_v24 = vld [vmem:[%s4131_s1 + $0x260] sm:$0xff]  }
  0x1d   :  { %2820 = vmatpush3.bf16.msra.mxu1 %v3129_v27  ;;  %2799 = vmatprep.subr.bf16.mxu0 %v3130_v28  ;;  %v3188_v18 = vld [vmem:[%s4131_s1 + $0x2d0] sm:$0xff]   ;;  %v3191_v21 = vld [vmem:[%s4131_s1 + $0x218] sm:$0xff]   ;;  %v3195_v25 = vld [vmem:[%s4131_s1 + $0x220] sm:$0xff]  }
  0x1e   :  { %2821 = vmatprep.subr.bf16.mxu1 %v3131_v29  ;;  %v3189_v19 = vld [vmem:[%s4131_s1 + $0x290] sm:$0xff]   ;;  %v3192_v22 = vld [vmem:[%s4131_s1 + $0x2d8] sm:$0xff]   ;;  %v3196_v26 = vld [vmem:[%s4131_s1 + $0x2e0] sm:$0xff]  }
  0x1f   :  { %v3193_v23 = vld [vmem:[%s4131_s1 + $0x298] sm:$0xff]   ;;  %v3197_v27 = vld [vmem:[%s4131_s1 + $0x2a0] sm:$0xff]   ;;  %v3198_v28 = vld [vmem:[%s4131_s1 + $0x268] sm:$0xff]  }
  0x20   :  { %2800 = vmatpush3.bf16.msra.mxu0 %v3132_v30  ;;  %v3199_v29 = vld [vmem:[%s4131_s1 + $0x228] sm:$0xff]   ;;  %v3203_v33 = vld [vmem:[%s4131_s1 + $0x230] sm:$0xff]  }
  0x21   :  { %2822 = vmatpush3.bf16.msra.mxu1 %v3133_v31  ;;  %2829 = vmatprep.subr.bf16.mxu0 %v3140_v36  ;;  %v3200_v30 = vld [vmem:[%s4131_s1 + $0x2e8] sm:$0xff]   ;;  %v3205_v35 = vld [vmem:[%s4131_s1 + $0x2b0] sm:$0xff]   ;;  %v3206_v36 = vld [vmem:[%s4131_s1 + $0x278] sm:$0xff]  }
  0x22   :  { %2851 = vmatprep.subr.bf16.mxu1 %v3142_v38  ;;  %v3201_v31 = vld [vmem:[%s4131_s1 + $0x2a8] sm:$0xff]   ;;  %v3208_v38 = vld [vmem:[%s4131_s1 + $0x2f8] sm:$0xff]  }
  0x23   :  { %1946 = vmatmul.mubr.bf16.vlgmr.msra.gmra.mrb[0].mxu0 %v3134_v32  ;;  %v3202_v32 = vld [vmem:[%s4131_s1 + $0x270] sm:$0xff]  }
  0x24   :  { %1987 = vmatmul.mubr.bf16.vlgmr.msra.gmra.mrb[0].mxu1 %v3137_v34  ;;  %2830 = vmatpush3.bf16.msra.mxu0 %v3141_v37  ;;  %v3204_v34 = vld [vmem:[%s4131_s1 + $0x2f0] sm:$0xff]   ;;  %v3207_v37 = vld [vmem:[%s4131_s1 + $0x238] sm:$0xff]  }
  0x25   :  { %2852 = vmatpush3.bf16.msra.mxu1 %v3143_v39  ;;  %2831 = vmatprep.subr.bf16.mxu0 %v3144_v40  ;;  %v3209_v39 = vld [vmem:[%s4132_s0 + $0x20] ss:$108 sps:$4 sm:$0xff]   ;;  %v3211_v40 = vld [vmem:[%s4132_s0 + $0x24] ss:$108 sps:$4 sm:$0xff]  }
  0x26   :  { %2853 = vmatprep.subr.bf16.mxu1 %v3146_v42  ;;  %2027 = vmatprep.mubr.bf16.mxu0 %v3173_v4  ;;  %v3213_v42 = vld [vmem:[%s4131_s1 + $0x340] sm:$0xff]   ;;  %v3240_v4 = vld [vmem:[%s4131_s1 + $0x370] sm:$0xff]  }
  0x27   :  { %2068 = vmatprep.mubr.bf16.mxu1 %v3178_v8  ;;  %v3244_v8 = vld [vmem:[%s4131_s1 + $0x378] sm:$0xff]  }
  0x28   :  { %2832 = vmatpush3.bf16.msra.mxu0 %v3145_v41  ;;  %v3212_v41 = vld [vmem:[%s4131_s1 + $0x2b8] sm:$0xff]  }
  0x29   :  { %2854 = vmatpush3.bf16.msra.mxu1 %v3147_v43  ;;  %2833 = vmatprep.subr.bf16.mxu0 %v3148_v44  ;;  %v3214_v43 = vld [vmem:[%s4132_s0 + $0x28] ss:$108 sps:$4 sm:$0xff]   ;;  %v3216_v44 = vld [vmem:[%s4132_s0 + $0x2c] ss:$108 sps:$4 sm:$0xff]  }
  0x2a   :  { %2855 = vmatprep.subr.bf16.mxu1 %v3150_v46  ;;  %v3218_v46 = vld [vmem:[%s4131_s1 + $0x3c0] sm:$0xff]  }
  0x2c   :  { %2834 = vmatpush3.bf16.msra.mxu0 %v3149_v45  ;;  %v3217_v45 = vld [vmem:[%s4131_s1 + $0x300] sm:$0xff]  }
  0x2d   :  { %2856 = vmatpush3.bf16.msra.mxu1 %v3151_v47  ;;  %2835 = vmatprep.subr.bf16.mxu0 %v3152_v48  ;;  %v3219_v47 = vld [vmem:[%s4131_s1 + $0x380] sm:$0xff]   ;;  %v3220_v48 = vld [vmem:[%s4131_s1 + $0x348] sm:$0xff]  }
  0x2e   :  { %2857 = vmatprep.subr.bf16.mxu1 %v3154_v50  ;;  %v3222_v50 = vld [vmem:[%s4131_s1 + $0x3c8] sm:$0xff]  }
  0x30   :  { %2836 = vmatpush3.bf16.msra.mxu0 %v3153_v49  ;;  %v3221_v49 = vld [vmem:[%s4131_s1 + $0x308] sm:$0xff]  }
  0x31   :  { %2858 = vmatpush3.bf16.msra.mxu1 %v3155_v51  ;;  %2837 = vmatprep.subr.bf16.mxu0 %v3156_v52  ;;  %v3223_v51 = vld [vmem:[%s4131_s1 + $0x388] sm:$0xff]   ;;  %v3224_v52 = vld [vmem:[%s4131_s1 + $0x350] sm:$0xff]  }
  0x32   :  { %2859 = vmatprep.subr.bf16.mxu1 %v3158_v54  ;;  %v3226_v54 = vld [vmem:[%s4131_s1 + $0x3d0] sm:$0xff]  }
  0x34   :  { %2838 = vmatpush3.bf16.msra.mxu0 %v3157_v53  ;;  %v3225_v53 = vld [vmem:[%s4131_s1 + $0x310] sm:$0xff]  }
  0x35   :  { %2860 = vmatpush3.bf16.msra.mxu1 %v3159_v55  ;;  %2839 = vmatprep.subr.bf16.mxu0 %v3160_v56  ;;  %v3227_v55 = vld [vmem:[%s4131_s1 + $0x390] sm:$0xff]   ;;  %v3228_v56 = vld [vmem:[%s4131_s1 + $0x358] sm:$0xff]  }
  0x36   :  { %2861 = vmatprep.subr.bf16.mxu1 %v3162_v58  ;;  %v3230_v58 = vld [vmem:[%s4131_s1 + $0x3d8] sm:$0xff]  }
  0x38   :  { %2840 = vmatpush3.bf16.msra.mxu0 %v3161_v57  ;;  %v3229_v57 = vld [vmem:[%s4131_s1 + $0x318] sm:$0xff]  }
  0x39   :  { %2862 = vmatpush3.bf16.msra.mxu1 %v3163_v59  ;;  %2841 = vmatprep.subr.bf16.mxu0 %v3164_v60  ;;  %v3231_v59 = vld [vmem:[%s4131_s1 + $0x398] sm:$0xff]   ;;  %v3232_v60 = vld [vmem:[%s4131_s1 + $0x360] sm:$0xff]  }
  0x3a   :  { %2863 = vmatprep.subr.bf16.mxu1 %v3166_v62  ;;  %v3234_v62 = vld [vmem:[%s4131_s1 + $0x3e0] sm:$0xff]  }
  0x3c   :  { %2842 = vmatpush3.bf16.msra.mxu0 %v3165_v61  ;;  %v3233_v61 = vld [vmem:[%s4131_s1 + $0x320] sm:$0xff]  }
  0x3d   :  { %2864 = vmatpush3.bf16.msra.mxu1 %v3167_v63  ;;  %2843 = vmatprep.subr.bf16.mxu0 %v3168_v0  ;;  %v3235_v63 = vld [vmem:[%s4131_s1 + $0x3a0] sm:$0xff]   ;;  %v3236_v0 = vld [vmem:[%s4131_s1 + $0x368] sm:$0xff]  }
  0x3e   :  { %2865 = vmatprep.subr.bf16.mxu1 %v3170_v2  ;;  %v3238_v2 = vld [vmem:[%s4131_s1 + $0x3e8] sm:$0xff]  }
  0x40   :  { %2844 = vmatpush3.bf16.msra.mxu0 %v3169_v1  ;;  %v3237_v1 = vld [vmem:[%s4131_s1 + $0x328] sm:$0xff]  }
  0x41   :  { %2866 = vmatpush3.bf16.msra.mxu1 %v3174_v5  ;;  %2873 = vmatprep.subr.bf16.mxu0 %v3175_v6  ;;  %v3241_v5 = vld [vmem:[%s4131_s1 + $0x330] sm:$0xff]  }
  0x42   :  { %2895 = vmatprep.subr.bf16.mxu1 %v3180_v10  ;;  %v3242_v6 = vld [vmem:[%s4131_s1 + $0x3f0] sm:$0xff]   ;;  %v3246_v10 = vld [vmem:[%s4131_s1 + $0x3f8] sm:$0xff]  }
  0x43   :  { %2028 = vmatmul.mubr.bf16.vlgmr.msra.gmra.mrb[4].mxu0 %v3171_v3  ;;  %v3239_v3 = vld [vmem:[%s4131_s1 + $0x3a8] sm:$0xff]  }
  0x44   :  { %2874 = vmatpush3.bf16.msra.mxu0 %v3179_v9  ;;  %2069 = vmatmul.mubr.bf16.vlgmr.msra.gmra.mrb[4].mxu1 %v3176_v7  ;;  %v3243_v7 = vld [vmem:[%s4131_s1 + $0x3b0] sm:$0xff]   ;;  %v3245_v9 = vld [vmem:[%s4131_s1 + $0x338] sm:$0xff]  }
  0x45   :  { %2896 = vmatpush3.bf16.msra.mxu1 %v3181_v11  ;;  %2875 = vmatprep.subr.bf16.mxu0 %v3182_v12  ;;  %v3247_v11 = vld [vmem:[%s4132_s0 + $0x30] ss:$108 sps:$4 sm:$0xff]   ;;  %v3249_v12 = vld [vmem:[%s4132_s0 + $0x34] ss:$108 sps:$4 sm:$0xff]  }
  0x46   :  { %2897 = vmatprep.subr.bf16.mxu1 %v3184_v14  ;;  %2109 = vmatprep.mubr.bf16.mxu0 %v3211_v40  ;;  %v3251_v14 = vld [vmem:[%s4131_s1 + $0x440] sm:$0xff]   ;;  %v3278_v40 = vld [vmem:[%s4131_s1 + $0x470] sm:$0xff]  }
  0x47   :  { %2150 = vmatprep.mubr.bf16.mxu1 %v3216_v44  ;;  %v3282_v44 = vld [vmem:[%s4131_s1 + $0x478] sm:$0xff]  }
  0x48   :  { %2876 = vmatpush3.bf16.msra.mxu0 %v3183_v13  ;;  %v3250_v13 = vld [vmem:[%s4131_s1 + $0x3b8] sm:$0xff]  }
  0x49   :  { %2898 = vmatpush3.bf16.msra.mxu1 %v3185_v15  ;;  %2877 = vmatprep.subr.bf16.mxu0 %v3186_v16  ;;  %v3252_v15 = vld [vmem:[%s4132_s0 + $0x38] ss:$108 sps:$4 sm:$0xff]   ;;  %v3254_v16 = vld [vmem:[%s4132_s0 + $0x3c] ss:$108 sps:$4 sm:$0xff]  }
  0x4a   :  { %2899 = vmatprep.subr.bf16.mxu1 %v3188_v18  ;;  %v3256_v18 = vld [vmem:[%s4131_s1 + $0x4c0] sm:$0xff]  }
  0x4c   :  { %2878 = vmatpush3.bf16.msra.mxu0 %v3187_v17  ;;  %v3255_v17 = vld [vmem:[%s4131_s1 + $0x400] sm:$0xff]  }
  0x4d   :  { %2900 = vmatpush3.bf16.msra.mxu1 %v3189_v19  ;;  %2879 = vmatprep.subr.bf16.mxu0 %v3190_v20  ;;  %v3257_v19 = vld [vmem:[%s4131_s1 + $0x480] sm:$0xff]   ;;  %v3258_v20 = vld [vmem:[%s4131_s1 + $0x448] sm:$0xff]  }
  0x4e   :  { %2901 = vmatprep.subr.bf16.mxu1 %v3192_v22  ;;  %v3260_v22 = vld [vmem:[%s4131_s1 + $0x4c8] sm:$0xff]  }
  0x50   :  { %2880 = vmatpush3.bf16.msra.mxu0 %v3191_v21  ;;  %v3259_v21 = vld [vmem:[%s4131_s1 + $0x408] sm:$0xff]  }
  0x51   :  { %2902 = vmatpush3.bf16.msra.mxu1 %v3193_v23  ;;  %2881 = vmatprep.subr.bf16.mxu0 %v3194_v24  ;;  %v3261_v23 = vld [vmem:[%s4131_s1 + $0x488] sm:$0xff]   ;;  %v3262_v24 = vld [vmem:[%s4131_s1 + $0x450] sm:$0xff]  }
  0x52   :  { %2903 = vmatprep.subr.bf16.mxu1 %v3196_v26  ;;  %v3264_v26 = vld [vmem:[%s4131_s1 + $0x4d0] sm:$0xff]  }
  0x54   :  { %2882 = vmatpush3.bf16.msra.mxu0 %v3195_v25  ;;  %v3263_v25 = vld [vmem:[%s4131_s1 + $0x410] sm:$0xff]  }
  0x55   :  { %2904 = vmatpush3.bf16.msra.mxu1 %v3197_v27  ;;  %2883 = vmatprep.subr.bf16.mxu0 %v3198_v28  ;;  %v3265_v27 = vld [vmem:[%s4131_s1 + $0x490] sm:$0xff]   ;;  %v3266_v28 = vld [vmem:[%s4131_s1 + $0x458] sm:$0xff]  }
  0x56   :  { %2905 = vmatprep.subr.bf16.mxu1 %v3200_v30  ;;  %v3268_v30 = vld [vmem:[%s4131_s1 + $0x4d8] sm:$0xff]  }
  0x58   :  { %2884 = vmatpush3.bf16.msra.mxu0 %v3199_v29  ;;  %v3267_v29 = vld [vmem:[%s4131_s1 + $0x418] sm:$0xff]  }
  0x59   :  { %2906 = vmatpush3.bf16.msra.mxu1 %v3201_v31  ;;  %2885 = vmatprep.subr.bf16.mxu0 %v3202_v32  ;;  %v3269_v31 = vld [vmem:[%s4131_s1 + $0x498] sm:$0xff]   ;;  %v3270_v32 = vld [vmem:[%s4131_s1 + $0x460] sm:$0xff]  }
  0x5a   :  { %2907 = vmatprep.subr.bf16.mxu1 %v3204_v34  ;;  %v3272_v34 = vld [vmem:[%s4131_s1 + $0x4e0] sm:$0xff]  }
  0x5c   :  { %2886 = vmatpush3.bf16.msra.mxu0 %v3203_v33  ;;  %v3271_v33 = vld [vmem:[%s4131_s1 + $0x420] sm:$0xff]  }
  0x5d   :  { %2908 = vmatpush3.bf16.msra.mxu1 %v3205_v35  ;;  %2887 = vmatprep.subr.bf16.mxu0 %v3206_v36  ;;  %v3273_v35 = vld [vmem:[%s4131_s1 + $0x4a0] sm:$0xff]   ;;  %v3274_v36 = vld [vmem:[%s4131_s1 + $0x468] sm:$0xff]  }
  0x5e   :  { %2909 = vmatprep.subr.bf16.mxu1 %v3208_v38  ;;  %v3276_v38 = vld [vmem:[%s4131_s1 + $0x4e8] sm:$0xff]  }
  0x60   :  { %2888 = vmatpush3.bf16.msra.mxu0 %v3207_v37  ;;  %v3275_v37 = vld [vmem:[%s4131_s1 + $0x428] sm:$0xff]  }
  0x61   :  { %2910 = vmatpush3.bf16.msra.mxu1 %v3212_v41  ;;  %2917 = vmatprep.subr.bf16.mxu0 %v3213_v42  ;;  %v3279_v41 = vld [vmem:[%s4131_s1 + $0x430] sm:$0xff]  }
  0x62   :  { %2939 = vmatprep.subr.bf16.mxu1 %v3218_v46  ;;  %v3280_v42 = vld [vmem:[%s4131_s1 + $0x4f0] sm:$0xff]   ;;  %v3284_v46 = vld [vmem:[%s4131_s1 + $0x4f8] sm:$0xff]  }
  0x63   :  { %2110 = vmatmul.mubr.bf16.vlgmr.msra.gmra.mrb[8].mxu0 %v3209_v39  ;;  %v3277_v39 = vld [vmem:[%s4131_s1 + $0x4a8] sm:$0xff]  }
  0x64   :  { %2918 = vmatpush3.bf16.msra.mxu0 %v3217_v45  ;;  %2151 = vmatmul.mubr.bf16.vlgmr.msra.gmra.mrb[8].mxu1 %v3214_v43  ;;  %v3281_v43 = vld [vmem:[%s4131_s1 + $0x4b0] sm:$0xff]   ;;  %v3283_v45 = vld [vmem:[%s4131_s1 + $0x438] sm:$0xff]  }
  0x65   :  { %2940 = vmatpush3.bf16.msra.mxu1 %v3219_v47  ;;  %2919 = vmatprep.subr.bf16.mxu0 %v3220_v48  ;;  %v3285_v47 = vld [vmem:[%s4132_s0 + $0x40] ss:$108 sps:$4 sm:$0xff]   ;;  %v3287_v48 = vld [vmem:[%s4132_s0 + $0x44] ss:$108 sps:$4 sm:$0xff]  }
  0x66   :  { %2941 = vmatprep.subr.bf16.mxu1 %v3222_v50  ;;  %2191 = vmatprep.mubr.bf16.mxu0 %v3249_v12  ;;  %v3289_v50 = vld [vmem:[%s4131_s1 + $0x540] sm:$0xff]   ;;  %v3316_v12 = vld [vmem:[%s4131_s1 + $0x570] sm:$0xff]  }
  0x67   :  { %2232 = vmatprep.mubr.bf16.mxu1 %v3254_v16  ;;  %v3320_v16 = vld [vmem:[%s4131_s1 + $0x578] sm:$0xff]  }
  0x68   :  { %2920 = vmatpush3.bf16.msra.mxu0 %v3221_v49  ;;  %v3288_v49 = vld [vmem:[%s4131_s1 + $0x4b8] sm:$0xff]  }
  0x69   :  { %2942 = vmatpush3.bf16.msra.mxu1 %v3223_v51  ;;  %2921 = vmatprep.subr.bf16.mxu0 %v3224_v52  ;;  %v3290_v51 = vld [vmem:[%s4132_s0 + $0x48] ss:$108 sps:$4 sm:$0xff]   ;;  %v3292_v52 = vld [vmem:[%s4132_s0 + $0x4c] ss:$108 sps:$4 sm:$0xff]  }
  0x6a   :  { %2943 = vmatprep.subr.bf16.mxu1 %v3226_v54  ;;  %v3294_v54 = vld [vmem:[%s4131_s1 + $0x5c0] sm:$0xff]  }
  0x6c   :  { %2922 = vmatpush3.bf16.msra.mxu0 %v3225_v53  ;;  %v3293_v53 = vld [vmem:[%s4131_s1 + $0x500] sm:$0xff]  }
  0x6d   :  { %2944 = vmatpush3.bf16.msra.mxu1 %v3227_v55  ;;  %2923 = vmatprep.subr.bf16.mxu0 %v3228_v56  ;;  %v3295_v55 = vld [vmem:[%s4131_s1 + $0x580] sm:$0xff]   ;;  %v3296_v56 = vld [vmem:[%s4131_s1 + $0x548] sm:$0xff]  }
  0x6e   :  { %2945 = vmatprep.subr.bf16.mxu1 %v3230_v58  ;;  %v3298_v58 = vld [vmem:[%s4131_s1 + $0x5c8] sm:$0xff]  }
  0x70   :  { %2924 = vmatpush3.bf16.msra.mxu0 %v3229_v57  ;;  %v3297_v57 = vld [vmem:[%s4131_s1 + $0x508] sm:$0xff]  }
  0x71   :  { %2946 = vmatpush3.bf16.msra.mxu1 %v3231_v59  ;;  %2925 = vmatprep.subr.bf16.mxu0 %v3232_v60  ;;  %v3299_v59 = vld [vmem:[%s4131_s1 + $0x588] sm:$0xff]   ;;  %v3300_v60 = vld [vmem:[%s4131_s1 + $0x550] sm:$0xff]  }
  0x72   :  { %2947 = vmatprep.subr.bf16.mxu1 %v3234_v62  ;;  %v3302_v62 = vld [vmem:[%s4131_s1 + $0x5d0] sm:$0xff]  }
  0x74   :  { %2926 = vmatpush3.bf16.msra.mxu0 %v3233_v61  ;;  %v3301_v61 = vld [vmem:[%s4131_s1 + $0x510] sm:$0xff]  }
  0x75   :  { %2948 = vmatpush3.bf16.msra.mxu1 %v3235_v63  ;;  %2927 = vmatprep.subr.bf16.mxu0 %v3236_v0  ;;  %v3303_v63 = vld [vmem:[%s4131_s1 + $0x590] sm:$0xff]   ;;  %v3304_v0 = vld [vmem:[%s4131_s1 + $0x558] sm:$0xff]  }
  0x76   :  { %2949 = vmatprep.subr.bf16.mxu1 %v3238_v2  ;;  %v3306_v2 = vld [vmem:[%s4131_s1 + $0x5d8] sm:$0xff]  }
  0x78   :  { %2928 = vmatpush3.bf16.msra.mxu0 %v3237_v1  ;;  %v3305_v1 = vld [vmem:[%s4131_s1 + $0x518] sm:$0xff]  }
  0x79   :  { %2950 = vmatpush3.bf16.msra.mxu1 %v3239_v3  ;;  %2929 = vmatprep.subr.bf16.mxu0 %v3240_v4  ;;  %v3307_v3 = vld [vmem:[%s4131_s1 + $0x598] sm:$0xff]   ;;  %v3308_v4 = vld [vmem:[%s4131_s1 + $0x560] sm:$0xff]  }
  0x7a   :  { %2951 = vmatprep.subr.bf16.mxu1 %v3242_v6  ;;  %v3310_v6 = vld [vmem:[%s4131_s1 + $0x5e0] sm:$0xff]  }
  0x7c   :  { %2930 = vmatpush3.bf16.msra.mxu0 %v3241_v5  ;;  %v3309_v5 = vld [vmem:[%s4131_s1 + $0x520] sm:$0xff]  }
  0x7d   :  { %2952 = vmatpush3.bf16.msra.mxu1 %v3243_v7  ;;  %2931 = vmatprep.subr.bf16.mxu0 %v3244_v8  ;;  %v3311_v7 = vld [vmem:[%s4131_s1 + $0x5a0] sm:$0xff]   ;;  %v3312_v8 = vld [vmem:[%s4131_s1 + $0x568] sm:$0xff]  }
  0x7e   :  { %2953 = vmatprep.subr.bf16.mxu1 %v3246_v10  ;;  %v3314_v10 = vld [vmem:[%s4131_s1 + $0x5e8] sm:$0xff]  }
  0x80   :  { %2932 = vmatpush3.bf16.msra.mxu0 %v3245_v9  ;;  %v3313_v9 = vld [vmem:[%s4131_s1 + $0x528] sm:$0xff]  }
  0x81   :  { %2954 = vmatpush3.bf16.msra.mxu1 %v3250_v13  ;;  %2961 = vmatprep.subr.bf16.mxu0 %v3251_v14  ;;  %v3317_v13 = vld [vmem:[%s4131_s1 + $0x530] sm:$0xff]  }
  0x82   :  { %2983 = vmatprep.subr.bf16.mxu1 %v3256_v18  ;;  %v3318_v14 = vld [vmem:[%s4131_s1 + $0x5f0] sm:$0xff]   ;;  %v3322_v18 = vld [vmem:[%s4131_s1 + $0x5f8] sm:$0xff]  }
  0x83   :  { %2192 = vmatmul.mubr.bf16.vlgmr.msra.gmra.mrb[12].mxu0 %v3247_v11  ;;  %v3315_v11 = vld [vmem:[%s4131_s1 + $0x5a8] sm:$0xff]  }
  0x84   :  { %2962 = vmatpush3.bf16.msra.mxu0 %v3255_v17  ;;  %2233 = vmatmul.mubr.bf16.vlgmr.msra.gmra.mrb[12].mxu1 %v3252_v15  ;;  %v3319_v15 = vld [vmem:[%s4131_s1 + $0x5b0] sm:$0xff]   ;;  %v3321_v17 = vld [vmem:[%s4131_s1 + $0x538] sm:$0xff]  }
  0x85   :  { %2984 = vmatpush3.bf16.msra.mxu1 %v3257_v19  ;;  %2963 = vmatprep.subr.bf16.mxu0 %v3258_v20  ;;  %v3323_v19 = vld [vmem:[%s4132_s0 + $0x50] ss:$108 sps:$4 sm:$0xff]   ;;  %v3325_v20 = vld [vmem:[%s4132_s0 + $0x54] ss:$108 sps:$4 sm:$0xff]  }
  0x86   :  { %2985 = vmatprep.subr.bf16.mxu1 %v3260_v22  ;;  %2273 = vmatprep.mubr.bf16.mxu0 %v3287_v48  ;;  %v3327_v22 = vld [vmem:[%s4131_s1 + $0x640] sm:$0xff]   ;;  %v3352_v48 = vld [vmem:[%s4131_s1 + $0x638] sm:$0xff]  }
  0x87   :  { %2314 = vmatprep.mubr.bf16.mxu1 %v3292_v52 }
  0x88   :  { %2964 = vmatpush3.bf16.msra.mxu0 %v3259_v21  ;;  %v3326_v21 = vld [vmem:[%s4131_s1 + $0x5b8] sm:$0xff]  }
  0x89   :  { %2986 = vmatpush3.bf16.msra.mxu1 %v3261_v23  ;;  %2965 = vmatprep.subr.bf16.mxu0 %v3262_v24  ;;  %v3328_v23 = vld [vmem:[%s4132_s0 + $0x58] ss:$108 sps:$4 sm:$0xff]   ;;  %v3330_v24 = vld [vmem:[%s4132_s0 + $0x5c] ss:$108 sps:$4 sm:$0xff]  }
  0x8a   :  { %2987 = vmatprep.subr.bf16.mxu1 %v3264_v26  ;;  %v3358_v26 = vmov 0.0  }
  0x8c   :  { %2966 = vmatpush3.bf16.msra.mxu0 %v3263_v25  ;;  %v3331_v25 = vld [vmem:[%s4131_s1 + $0x600] sm:$0xff]  }
  0x8d   :  { %2988 = vmatpush3.bf16.msra.mxu1 %v3265_v27  ;;  %2967 = vmatprep.subr.bf16.mxu0 %v3266_v28  ;;  %v3332_v27 = vld [vmem:[%s4131_s1 + $0x680] sm:$0xff]   ;;  %v3333_v28 = vld [vmem:[%s4131_s1 + $0x648] sm:$0xff]  }
  0x8e   :  { %2989 = vmatprep.subr.bf16.mxu1 %v3268_v30  ;;  %v3335_v30 = vld [vmem:[%s4131_s1 + $0x688] sm:$0xff]  }
  0x90   :  { %2968 = vmatpush3.bf16.msra.mxu0 %v3267_v29  ;;  %v3334_v29 = vld [vmem:[%s4131_s1 + $0x608] sm:$0xff]  }
  0x91   :  { %2990 = vmatpush3.bf16.msra.mxu1 %v3269_v31  ;;  %2969 = vmatprep.subr.bf16.mxu0 %v3270_v32  ;;  %v3336_v31 = vld [vmem:[%s4131_s1 + $0x650] sm:$0xff]  }
  0x92   :  { %2991 = vmatprep.subr.bf16.mxu1 %v3272_v34  ;;  %v3337_v32 = vld [vmem:[%s4131_s1 + $0x610] sm:$0xff]   ;;  %v3339_v34 = vld [vmem:[%s4131_s1 + $0x658] sm:$0xff]  }
  0x94   :  { %2970 = vmatpush3.bf16.msra.mxu0 %v3271_v33  ;;  %v3338_v33 = vld [vmem:[%s4131_s1 + $0x690] sm:$0xff]  }
  0x95   :  { %2992 = vmatpush3.bf16.msra.mxu1 %v3273_v35  ;;  %2971 = vmatprep.subr.bf16.mxu0 %v3274_v36  ;;  %v3340_v35 = vld [vmem:[%s4131_s1 + $0x618] sm:$0xff]  }
  0x96   :  { %2993 = vmatprep.subr.bf16.mxu1 %v3276_v38  ;;  %v3341_v36 = vld [vmem:[%s4131_s1 + $0x698] sm:$0xff]   ;;  %v3343_v38 = vld [vmem:[%s4131_s1 + $0x620] sm:$0xff]  }
  0x98   :  { %2972 = vmatpush3.bf16.msra.mxu0 %v3275_v37  ;;  %v3342_v37 = vld [vmem:[%s4131_s1 + $0x660] sm:$0xff]  }
  0x99   :  { %2994 = vmatpush3.bf16.msra.mxu1 %v3277_v39  ;;  %2973 = vmatprep.subr.bf16.mxu0 %v3278_v40  ;;  %v3344_v39 = vld [vmem:[%s4131_s1 + $0x6a0] sm:$0xff]   ;;  %v3345_v40 = vld [vmem:[%s4131_s1 + $0x668] sm:$0xff]  }
  0x9a   :  { %2995 = vmatprep.subr.bf16.mxu1 %v3280_v42  ;;  %v3347_v42 = vld [vmem:[%s4131_s1 + $0x6a8] sm:$0xff]  }
  0x9c   :  { %2974 = vmatpush3.bf16.msra.mxu0 %v3279_v41  ;;  %v3346_v41 = vld [vmem:[%s4131_s1 + $0x628] sm:$0xff]  }
  0x9d   :  { %2996 = vmatpush3.bf16.msra.mxu1 %v3281_v43  ;;  %2975 = vmatprep.subr.bf16.mxu0 %v3282_v44  ;;  %v3348_v43 = vld [vmem:[%s4131_s1 + $0x670] sm:$0xff]  }
  0x9e   :  { %2997 = vmatprep.subr.bf16.mxu1 %v3284_v46  ;;  %v3349_v44 = vld [vmem:[%s4131_s1 + $0x630] sm:$0xff]   ;;  %v3351_v46 = vld [vmem:[%s4131_s1 + $0x678] sm:$0xff]  }
  0xa0   :  { %2976 = vmatpush3.bf16.msra.mxu0 %v3283_v45  ;;  %v3350_v45 = vld [vmem:[%s4131_s1 + $0x6b0] sm:$0xff]  }
  0xa1   :  { %2998 = vmatpush3.bf16.msra.mxu1 %v3288_v49  ;;  %3005 = vmatprep.subr.bf16.mxu0 %v3289_v50  ;;  %v3356_v49 = vld [vmem:[%s4131_s1 + $0x6b8] sm:$0xff]   ;;  %v3353_v50 = vld [vmem:[%s4132_s0 + $0x60] ss:$108 sps:$4 sm:$0xff]  }
  0xa2   :  { %3027 = vmatprep.subr.bf16.mxu1 %v3294_v54 }
  0xa3   :  { %2274 = vmatmul.mubr.bf16.vlgmr.msra.gmra.mrb[16].mxu0 %v3285_v47  ;;  %v3355_v47 = vld [vmem:[%s4132_s0 + $0x64] ss:$108 sps:$4 sm:$0xff]  }
  0xa4   :  { %3006 = vmatpush3.bf16.msra.mxu0 %v3293_v53  ;;  %2315 = vmatmul.mubr.bf16.vlgmr.msra.gmra.mrb[16].mxu1 %v3290_v51  ;;  %v3357_v51 = vld [vmem:[%s4132_s0 + $0x68] ss:$108 sps:$4 sm:$0xff]  }
  0xa5   :  { %3028 = vmatpush3.bf16.msra.mxu1 %v3295_v55  ;;  %3007 = vmatprep.subr.bf16.mxu0 %v3296_v56 }
  0xa6   :  { %3029 = vmatprep.subr.bf16.mxu1 %v3298_v58  ;;  %2355 = vmatprep.mubr.bf16.mxu0 %v3325_v20 }
  0xa7   :  { %2396 = vmatprep.mubr.bf16.mxu1 %v3330_v24 }
  0xa8   :  { %3008 = vmatpush3.bf16.msra.mxu0 %v3297_v57 }
  0xa9   :  { %3030 = vmatpush3.bf16.msra.mxu1 %v3299_v59  ;;  %3009 = vmatprep.subr.bf16.mxu0 %v3300_v60 }
  0xaa   :  { %3031 = vmatprep.subr.bf16.mxu1 %v3302_v62 }
  0xac   :  { %3010 = vmatpush3.bf16.msra.mxu0 %v3301_v61 }
  0xad   :  { %3032 = vmatpush3.bf16.msra.mxu1 %v3303_v63  ;;  %3011 = vmatprep.subr.bf16.mxu0 %v3304_v0 }
  0xae   :  { %3033 = vmatprep.subr.bf16.mxu1 %v3306_v2 }
  0xb0   :  { %3012 = vmatpush3.bf16.msra.mxu0 %v3305_v1 }
  0xb1   :  { %3034 = vmatpush3.bf16.msra.mxu1 %v3307_v3  ;;  %3013 = vmatprep.subr.bf16.mxu0 %v3308_v4 }
  0xb2   :  { %3035 = vmatprep.subr.bf16.mxu1 %v3310_v6 }
  0xb4   :  { %3014 = vmatpush3.bf16.msra.mxu0 %v3309_v5 }
  0xb5   :  { %3036 = vmatpush3.bf16.msra.mxu1 %v3311_v7  ;;  %3015 = vmatprep.subr.bf16.mxu0 %v3312_v8 }
  0xb6   :  { %3037 = vmatprep.subr.bf16.mxu1 %v3314_v10 }
  0xb8   :  { %3016 = vmatpush3.bf16.msra.mxu0 %v3313_v9 }
  0xb9   :  { %3038 = vmatpush3.bf16.msra.mxu1 %v3315_v11  ;;  %3017 = vmatprep.subr.bf16.mxu0 %v3316_v12 }
  0xba   :  { %3039 = vmatprep.subr.bf16.mxu1 %v3318_v14 }
  0xbc   :  { %3018 = vmatpush3.bf16.msra.mxu0 %v3317_v13 }
  0xbd   :  { %3040 = vmatpush3.bf16.msra.mxu1 %v3319_v15  ;;  %3019 = vmatprep.subr.bf16.mxu0 %v3320_v16 }
  0xbe   :  { %3041 = vmatprep.subr.bf16.mxu1 %v3322_v18 }
  0xc0   :  { %3020 = vmatpush3.bf16.msra.mxu0 %v3321_v17 }
  0xc1   :  { %3042 = vmatpush3.bf16.msra.mxu1 %v3326_v21  ;;  %3049 = vmatprep.subr.bf16.mxu0 %v3327_v22 }
  0xc2   :  { %3080 = vmatprep.subr.bf16.mxu1 %v3358_v26 }
  0xc3   :  { %2356 = vmatmul.mubr.bf16.vlgmr.msra.gmra.mrb[20].mxu0 %v3323_v19 }
  0xc4   :  { %3050 = vmatpush3.bf16.msra.mxu0 %v3331_v25  ;;  %2397 = vmatmul.mubr.bf16.vlgmr.msra.gmra.mrb[20].mxu1 %v3328_v23 }
  0xc5   :  { %3081 = vmatpush3.bf16.msra.mxu1 %v3332_v27  ;;  %3096 = vmatprep.mubr.msk.bf16.mxu1 %vm3359_vm0, %v3358_v26 }
  0xc6   :  { %3051 = vmatprep.subr.bf16.mxu0 %v3333_v28  ;;  %3082 = vmatprep.subr.bf16.mxu1 %v3358_v26 }
  0xc7   :  { %2437 = vmatprep.mubr.bf16.mxu0 %v3355_v47 }
  0xc8   :  { %3052 = vmatpush3.bf16.msra.mxu0 %v3334_v29 }
  0xc9   :  { %3083 = vmatpush3.bf16.msra.mxu1 %v3335_v30  ;;  %3053 = vmatprep.subr.bf16.mxu0 %v3336_v31 }
  0xca   :  { %3084 = vmatprep.subr.bf16.mxu1 %v3358_v26 }
  0xcc   :  { %3054 = vmatpush3.bf16.msra.mxu0 %v3337_v32 }
  0xcd   :  { %3085 = vmatpush3.bf16.msra.mxu1 %v3338_v33  ;;  %3055 = vmatprep.subr.bf16.mxu0 %v3339_v34 }
  0xce   :  { %3086 = vmatprep.subr.bf16.mxu1 %v3358_v26 }
  0xd0   :  { %3056 = vmatpush3.bf16.msra.mxu0 %v3340_v35 }
  0xd1   :  { %3087 = vmatpush3.bf16.msra.mxu1 %v3341_v36  ;;  %3057 = vmatprep.subr.bf16.mxu0 %v3342_v37 }
  0xd2   :  { %3088 = vmatprep.subr.bf16.mxu1 %v3358_v26 }
  0xd4   :  { %3058 = vmatpush3.bf16.msra.mxu0 %v3343_v38 }
  0xd5   :  { %3089 = vmatpush3.bf16.msra.mxu1 %v3344_v39  ;;  %3059 = vmatprep.subr.bf16.mxu0 %v3345_v40 }
  0xd6   :  { %3090 = vmatprep.subr.bf16.mxu1 %v3358_v26 }
  0xd8   :  { %3060 = vmatpush3.bf16.msra.mxu0 %v3346_v41 }
  0xd9   :  { %3091 = vmatpush3.bf16.msra.mxu1 %v3347_v42  ;;  %3061 = vmatprep.subr.bf16.mxu0 %v3348_v43 }
  0xda   :  { %3092 = vmatprep.subr.bf16.mxu1 %v3358_v26 }
  0xdc   :  { %3062 = vmatpush3.bf16.msra.mxu0 %v3349_v44 }
  0xdd   :  { %3093 = vmatpush3.bf16.msra.mxu1 %v3350_v45  ;;  %3063 = vmatprep.subr.bf16.mxu0 %v3351_v46 }
  0xde   :  { %3094 = vmatprep.subr.bf16.mxu1 %v3358_v26 }
  0xe0   :  { %3064 = vmatpush3.bf16.msra.mxu0 %v3352_v48 }
  0xe1   :  { %3095 = vmatpush3.bf16.msra.mxu1 %v3356_v49 }
  0xe3   :  { %2438 = vmatmul.mubr.bf16.vlgmr.msra.gmra.mrb[24].mxu0 %v3353_v50 }
  0xe4   :  { %3097 = vmatmul.mubr.bf16.vlgmr.msra.gmra.mrb[24].mxu1 %v3357_v51 }
  0xf6   :  { %v2801_v52 = vpop.f32.mrb[0].mxu0 }
  0xf7   :  { %v2823_v53 = vpop.f32.mrb[0].mxu1  ;;  %v2802_v54 = vpop.f32.mrb[1].mxu0 }
  0xf8   :  { %v2803_v55 = vadd.f32 %v2802_v54, %v2801_v52  ;;  %v2824_v56 = vpop.f32.mrb[1].mxu1  ;;  %v2804_v57 = vpop.f32.mrb[2].mxu0 }
  0xf9   :  { %v2825_v58 = vadd.f32 %v2824_v56, %v2823_v53  ;;  %v2826_v59 = vpop.f32.mrb[2].mxu1  ;;  %v2805_v60 = vpop.f32.mrb[3].mxu0 }
  0xfa   :  { %v2806_v61 = vadd.f32 %v2805_v60, %v2804_v57  ;;  %v2827_v62 = vpop.f32.mrb[3].mxu1 }
  0xfb   :  { %v1989_v63 = vadd.f32 %v2825_v58, %v2803_v55  ;;  %v2828_v0 = vadd.f32 %v2827_v62, %v2826_v59 }
  0xfd   :  { %v1992_v1 = vadd.f32 %v2828_v0, %v2806_v61 }
 0x116   :  { %v2845_v2 = vpop.f32.mrb[4].mxu0 }
 0x117   :  { %v2846_v3 = vpop.f32.mrb[5].mxu0  ;;  %v2867_v8 = vpop.f32.mrb[4].mxu1 }
 0x118   :  { %v2847_v4 = vadd.f32 %v2846_v3, %v2845_v2  ;;  %v2848_v5 = vpop.f32.mrb[6].mxu0  ;;  %v2868_v10 = vpop.f32.mrb[5].mxu1 }
 0x119   :  { %v2849_v6 = vpop.f32.mrb[7].mxu0  ;;  %v2869_v12 = vadd.f32 %v2868_v10, %v2867_v8  ;;  %v2870_v13 = vpop.f32.mrb[6].mxu1 }
 0x11a   :  { %v2030_v7 = vadd.f32 %v2847_v4, %v1989_v63  ;;  %v2850_v9 = vadd.f32 %v2849_v6, %v2848_v5  ;;  %v2871_v14 = vpop.f32.mrb[7].mxu1 }
 0x11b   :  { %v2872_v16 = vadd.f32 %v2871_v14, %v2870_v13 }
 0x11c   :  { %v2033_v11 = vadd.f32 %v2850_v9, %v1992_v1  ;;  %v2071_v15 = vadd.f32 %v2869_v12, %v2030_v7 }
 0x11e   :  { %v2074_v17 = vadd.f32 %v2872_v16, %v2033_v11 }
 0x136   :  { %v2889_v18 = vpop.f32.mrb[8].mxu0 }
 0x137   :  { %v2890_v19 = vpop.f32.mrb[9].mxu0  ;;  %v2911_v22 = vpop.f32.mrb[8].mxu1 }
 0x138   :  { %v2891_v20 = vadd.f32 %v2890_v19, %v2889_v18  ;;  %v2892_v21 = vpop.f32.mrb[10].mxu0  ;;  %v2912_v26 = vpop.f32.mrb[9].mxu1 }
 0x139   :  { %v2893_v23 = vpop.f32.mrb[11].mxu0  ;;  %v2913_v27 = vadd.f32 %v2912_v26, %v2911_v22  ;;  %v2914_v28 = vpop.f32.mrb[10].mxu1 }
 0x13a   :  { %v2112_v24 = vadd.f32 %v2891_v20, %v2071_v15  ;;  %v2894_v25 = vadd.f32 %v2893_v23, %v2892_v21  ;;  %v2915_v30 = vpop.f32.mrb[11].mxu1 }
 0x13b   :  { %v2916_v32 = vadd.f32 %v2915_v30, %v2914_v28  ;;  %v2777_v30 = vld [vmem:[%s4134_s4] sm:$0xff]  }
 0x13c   :  { %v2115_v29 = vadd.f32 %v2894_v25, %v2074_v17  ;;  %v2153_v31 = vadd.f32 %v2913_v27, %v2112_v24 }
 0x13e   :  { %v2156_v33 = vadd.f32 %v2916_v32, %v2115_v29  ;;  %v2770_v29 = vld [vmem:[%s4133_s2] ss:$0 sm:$0xff] }
 0x156   :  { %v2933_v34 = vpop.f32.mrb[12].mxu0 }
 0x157   :  { %v2934_v35 = vpop.f32.mrb[13].mxu0  ;;  %v2955_v38 = vpop.f32.mrb[12].mxu1 }
 0x158   :  { %v2935_v36 = vadd.f32 %v2934_v35, %v2933_v34  ;;  %v2936_v37 = vpop.f32.mrb[14].mxu0  ;;  %v2956_v42 = vpop.f32.mrb[13].mxu1  ;;  %v2778_v35 = vunpack.c.l.bf16 %v2777_v30 }
 0x159   :  { %v2937_v39 = vpop.f32.mrb[15].mxu0  ;;  %v2957_v43 = vadd.f32 %v2956_v42, %v2955_v38  ;;  %v2958_v44 = vpop.f32.mrb[14].mxu1 }
 0x15a   :  { %v2194_v40 = vadd.f32 %v2935_v36, %v2153_v31  ;;  %v2938_v41 = vadd.f32 %v2937_v39, %v2936_v37  ;;  %v2959_v46 = vpop.f32.mrb[15].mxu1  ;;  %v2779_v39 = vunpack.c.h.bf16 %v2777_v30 }
 0x15b   :  { %v2960_v48 = vadd.f32 %v2959_v46, %v2958_v44 }
 0x15c   :  { %v2197_v45 = vadd.f32 %v2938_v41, %v2156_v33  ;;  %v2235_v47 = vadd.f32 %v2957_v43, %v2194_v40  ;;  %v2771_v33 = vld [vmem:[%s4135_s3] ss:$0 sm:$0xff] }
 0x15e   :  { %v2238_v49 = vadd.f32 %v2960_v48, %v2197_v45 }
 0x176   :  { %v2977_v50 = vpop.f32.mrb[16].mxu0 }
 0x177   :  { %v2978_v51 = vpop.f32.mrb[17].mxu0  ;;  %v2999_v56 = vpop.f32.mrb[16].mxu1 }
 0x178   :  { %v2979_v52 = vadd.f32 %v2978_v51, %v2977_v50  ;;  %v2980_v53 = vpop.f32.mrb[18].mxu0  ;;  %v3000_v58 = vpop.f32.mrb[17].mxu1 }
 0x179   :  { %v2981_v54 = vpop.f32.mrb[19].mxu0  ;;  %v3001_v60 = vadd.f32 %v3000_v58, %v2999_v56  ;;  %v3002_v61 = vpop.f32.mrb[18].mxu1 }
 0x17a   :  { %v2276_v55 = vadd.f32 %v2979_v52, %v2235_v47  ;;  %v2982_v57 = vadd.f32 %v2981_v54, %v2980_v53  ;;  %v3003_v62 = vpop.f32.mrb[19].mxu1 }
 0x17b   :  { %v3004_v0 = vadd.f32 %v3003_v62, %v3002_v61 }
 0x17c   :  { %v2279_v59 = vadd.f32 %v2982_v57, %v2238_v49  ;;  %v2317_v63 = vadd.f32 %v3001_v60, %v2276_v55 }
 0x17e   :  { %v2320_v1 = vadd.f32 %v3004_v0, %v2279_v59 }
 0x196   :  { %v3021_v2 = vpop.f32.mrb[20].mxu0 }
 0x197   :  { %v3022_v3 = vpop.f32.mrb[21].mxu0  ;;  %v3043_v6 = vpop.f32.mrb[20].mxu1 }
 0x198   :  { %v3023_v4 = vadd.f32 %v3022_v3, %v3021_v2  ;;  %v3024_v5 = vpop.f32.mrb[22].mxu0  ;;  %v3044_v10 = vpop.f32.mrb[21].mxu1 }
 0x199   :  { %v3025_v7 = vpop.f32.mrb[23].mxu0  ;;  %v3045_v11 = vadd.f32 %v3044_v10, %v3043_v6  ;;  %v3046_v12 = vpop.f32.mrb[22].mxu1 }
 0x19a   :  { %v2358_v8 = vadd.f32 %v3023_v4, %v2317_v63  ;;  %v3026_v9 = vadd.f32 %v3025_v7, %v3024_v5  ;;  %v3047_v14 = vpop.f32.mrb[23].mxu1 }
 0x19b   :  { %v3048_v16 = vadd.f32 %v3047_v14, %v3046_v12 }
 0x19c   :  { %v2361_v13 = vadd.f32 %v3026_v9, %v2320_v1  ;;  %v2399_v15 = vadd.f32 %v3045_v11, %v2358_v8 }
 0x19e   :  { %v2402_v17 = vadd.f32 %v3048_v16, %v2361_v13 }
 0x1b6   :  { %v3065_v18 = vpop.f32.mrb[24].mxu0 }
 0x1b7   :  { %v3066_v19 = vpop.f32.mrb[25].mxu0  ;;  %v2480_v20 = vpop.f32.mrb[24].mxu1 }
 0x1b8   :  { %v3067_v21 = vadd.f32 %v3066_v19, %v3065_v18  ;;  %v3068_v22 = vpop.f32.mrb[26].mxu0  ;;  %v3098_v23 = vpop.f32.mrb[25].mxu1 }
 0x1b9   :  { %v3069_v24 = vpop.f32.mrb[27].mxu0  ;;  %v2483_v25 = vpop.f32.mrb[26].mxu1 }
 0x1ba   :  { %v2440_v26 = vadd.f32 %v3067_v21, %v2399_v15  ;;  %v3070_v27 = vadd.f32 %v3069_v24, %v3068_v22  ;;  %v3099_v28 = vpop.f32.mrb[27].mxu1 }
 0x1bc   :  { %v2481_v31 = vadd.f32 %v2480_v20, %v2440_v26  ;;  %v2443_v32 = vadd.f32 %v3070_v27, %v2402_v17 }
 0x1be   :  { %v2494_v34 = vmul.f32 %v2770_v29, %v2481_v31  ;;  %v2484_v36 = vadd.f32 %v2483_v25, %v2443_v32 }
 0x1c0   :  { %v2503_v37 = vadd.f32 %v2771_v33, %v2494_v34  ;;  %v2495_v38 = vmul.f32 %v2770_v29, %v2484_v36 }
 0x1c2   :  { %v2509_v40 = vadd.f32 %v2778_v35, %v2503_v37  ;;  %v2504_v41 = vadd.f32 %v2771_v33, %v2495_v38 }
 0x1c4   :  { %v2510_v42 = vadd.f32 %v2779_v39, %v2504_v41  ;;  %v2511_v43 = vmax.f32 %v2509_v40, 0.0 }
 0x1c6   :  { %v2512_v44 = vmax.f32 %v2510_v42, 0.0 }
 0x1c8   :  { %v2783_v45 = vpack.c.bf16 %v2512_v44, %v2511_v43 }
 0x1ca   :  { %2784 = vst [vmem:[%s4136_s5] sm:$0xff] %v2783_v45  }

// kernel: rasternet_forward.11
= control target key start
LH: loop header
LB: loop body
LE: loop exit
PB: predicated region body
PF: predicated region fallthrough
CT: control target
= control target key end

     0   :  { %v6952_v7 = vmov 1966171168   ;;  %v211_v9 = vlaneseq  ;;  %vm5536_vm0 = vcmask 1041408   ;;  %vm5562_vm1 = vcmask 1024   ;;  %s9410_s1 = inlined_call_operand.vmem [shape: bf16[1024,256], index: 1, kind: input, shape index: {}]   ;;  %s9411_s0 = inlined_call_operand.vmem [shape: bf16[2,1024], index: 0, kind: input, shape index: {}]   ;;  %s9412_s4 = inlined_call_operand.vmem [shape: bf16[128,256], index: 4, kind: input, shape index: {}]   ;;  %s9413_s7 = inlined_call_operand.vmem [shape: bf16[256,256], index: 7, kind: input, shape index: {}]   ;;  %s9414_s13 = inlined_call_operand.vmem [shape: bf16[256,512], index: 13, kind: input, shape index: {}]   ;;  %s9415_s10 = inlined_call_operand.vmem [shape: bf16[256,512], index: 10, kind: input, shape index: {}]   ;;  %s9416_s2 = inlined_call_operand.vmem [shape: f32[1,256], index: 2, kind: input, shape index: {}]   ;;  %s9417_s3 = inlined_call_operand.vmem [shape: f32[1,256], index: 3, kind: input, shape index: {}]   ;;  %s9418_s5 = inlined_call_operand.vmem [shape: f32[1,256], index: 5, kind: input, shape index: {}]   ;;  %s9419_s8 = inlined_call_operand.vmem [shape: f32[1,256], index: 8, kind: input, shape index: {}]   ;;  %s9420_s6 = inlined_call_operand.vmem [shape: f32[1,256], index: 6, kind: input, shape index: {}]   ;;  %s9421_s9 = inlined_call_operand.vmem [shape: f32[1,256], index: 9, kind: input, shape index: {}]   ;;  %s9422_s16 = inlined_call_operand.vmem [shape: bf16[512,512], index: 16, kind: input, shape index: {}]   ;;  %s9423_s14 = inlined_call_operand.vmem [shape: f32[1,512], index: 14, kind: input, shape index: {}]   ;;  %s9424_s15 = inlined_call_operand.vmem [shape: f32[1,512], index: 15, kind: input, shape index: {}]   ;;  %s9425_s11 = inlined_call_operand.vmem [shape: f32[1,512], index: 11, kind: input, shape index: {}]   ;;  %s9426_s12 = inlined_call_operand.vmem [shape: f32[1,512], index: 12, kind: input, shape index: {}]   ;;  %s9427_s19 = inlined_call_operand.vmem [shape: bf16[512,1024], index: 19, kind: input, shape index: {}]   ;;  %s9428_s17 = inlined_call_operand.vmem [shape: f32[1,512], index: 17, kind: input, shape index: {}]   ;;  %s9429_s18 = inlined_call_operand.vmem [shape: f32[1,512], index: 18, kind: input, shape index: {}]   ;;  %s9430_s20 = inlined_call_operand.vmem [shape: f32[1,1024], index: 20, kind: input, shape index: {}]   ;;  %s9431_s21 = inlined_call_operand.vmem [shape: f32[1,1024], index: 21, kind: input, shape index: {}]   ;;  %s9432_s22 = inlined_call_operand.<no memory space> [shape: f32[1,1], index: 22, kind: input, shape index: {}]   ;;  %s9433_s23 = inlined_call_operand.vmem [shape: f32[2,1], index: 23, kind: output, shape index: {}]  }
   0x1   :  { %9439 = sst [smem:[#allocation3_spill]] %s9410_s1  ;;  %v209_v8 = vunpack.c.l.s4 %v6952_v7 }
   0x2   :  { %9440 = sst [smem:[#allocation4_spill]] %s9411_s0  ;;  %s9447_s24 = sld [smem:[#allocation3_spill]]  ;;  %v7101_v13 = vshrl.u32 %v211_v9, 7 }
   0x3   :  { %9441 = sst [smem:[#allocation5_spill]] %s9412_s4  ;;  %v210_v12 = vunpack.c.0.s8 %v209_v8 }
   0x4   :  { %9442 = sst [smem:[#allocation6_spill]] %s9413_s7 }
   0x5   :  { %9443 = sst [smem:[#allocation7_spill]] %s9414_s13  ;;  %v7110_v16 = vsub.s32 %v210_v12, %v7101_v13  ;;  %s9448_s13 = sld [smem:[#allocation4_spill]] }
   0x6   :  { %9444 = sst [smem:[#allocation8_spill]] %s9415_s10  ;;  %s9449_s10 = sld [smem:[#allocation5_spill]] }
   0x7   :  { %9445 = sst [smem:[#allocation9_spill]] %s9416_s2  ;;  %s9450_s28 = sld [smem:[#allocation6_spill]] }
   0x8   :  { %9446 = sst [smem:[#allocation10_spill]] %s9417_s3  ;;  %v6303_v0 = vld [vmem:[%s9447_s24 + $0x4] ss:$8 sps:$4 sm:$0xff]   ;;  %v6305_v1 = vld [vmem:[%s9447_s24] ss:$8 sps:$4 sm:$0xff]   ;;  %s9451_s3 = sld [smem:[#allocation7_spill]] }
   0x9   :  { %904 = vmatprep.subr.bf16.mxu0 %v6303_v0  ;;  %v6306_v2 = vld [vmem:[%s9447_s24 + $0x14] ss:$8 sps:$4 sm:$0xff]   ;;  %v6308_v3 = vld [vmem:[%s9447_s24 + $0x10] ss:$8 sps:$4 sm:$0xff]   ;;  %v6309_v4 = vld [vmem:[%s9447_s24 + $0x24] ss:$8 sps:$4 sm:$0xff]  }
   0xa   :  { %905 = vmatpush1.bf16.msra.mxu0 %v6305_v1  ;;  %v6311_v5 = vld [vmem:[%s9447_s24 + $0x20] ss:$8 sps:$4 sm:$0xff]   ;;  %v6312_v6 = vld [vmem:[%s9447_s24 + $0x34] ss:$8 sps:$4 sm:$0xff]   ;;  %v6314_v10 = vld [vmem:[%s9447_s24 + $0x30] ss:$8 sps:$4 sm:$0xff]  }
   0xb   :  { %906 = vmatprep.subr.bf16.mxu0 %v6306_v2  ;;  %v6315_v11 = vld [vmem:[%s9447_s24 + $0x44] ss:$8 sps:$4 sm:$0xff]   ;;  %v6317_v14 = vld [vmem:[%s9447_s24 + $0x40] ss:$8 sps:$4 sm:$0xff]   ;;  %v6318_v15 = vld [vmem:[%s9447_s24 + $0x54] ss:$8 sps:$4 sm:$0xff]  }
   0xc   :  { %v6320_v17 = vld [vmem:[%s9447_s24 + $0x50] ss:$8 sps:$4 sm:$0xff]   ;;  %v6321_v18 = vld [vmem:[%s9447_s24 + $0x64] ss:$8 sps:$4 sm:$0xff]   ;;  %v6323_v21 = vld [vmem:[%s9447_s24 + $0x60] ss:$8 sps:$4 sm:$0xff]  }
   0xd   :  { %v7121_v19 = vld [vmem:[%s9448_s13] sm:$0xff]  ;;  %v6324_v22 = vld [vmem:[%s9447_s24 + $0x74] ss:$8 sps:$4 sm:$0xff]   ;;  %v6326_v25 = vld [vmem:[%s9447_s24 + $0x70] ss:$8 sps:$4 sm:$0xff]   ;;  %s9452_s1 = sld [smem:[#allocation8_spill]] }
   0xe   :  { %907 = vmatpush1.bf16.msra.mxu0 %v6308_v3  ;;  %v214_v20 = vrot.slane %v7121_v19, %v7110_v16  ;;  %v6327_v26 = vld [vmem:[%s9447_s24 + $0x84] ss:$8 sps:$4 sm:$0xff]   ;;  %v6329_v27 = vld [vmem:[%s9447_s24 + $0x80] ss:$8 sps:$4 sm:$0xff]   ;;  %v6330_v28 = vld [vmem:[%s9447_s24 + $0x94] ss:$8 sps:$4 sm:$0xff]   ;;  %v207_v41 = vcombine.high %v7121_v19, %v7121_v19 }
   0xf   :  { %908 = vmatprep.subr.bf16.mxu0 %v6309_v4  ;;  %v6332_v29 = vld [vmem:[%s9447_s24 + $0x90] ss:$8 sps:$4 sm:$0xff]   ;;  %v6333_v30 = vld [vmem:[%s9447_s24 + $0xa4] ss:$8 sps:$4 sm:$0xff]   ;;  %v6335_v31 = vld [vmem:[%s9447_s24 + $0xa0] ss:$8 sps:$4 sm:$0xff]  }
  0x10   :  { %v222_v23 = vcombine.high %v214_v20, %v214_v20  ;;  %v6336_v32 = vld [vmem:[%s9447_s24 + $0xb4] ss:$8 sps:$4 sm:$0xff]   ;;  %v6338_v33 = vld [vmem:[%s9447_s24 + $0xb0] ss:$8 sps:$4 sm:$0xff]   ;;  %v6339_v34 = vld [vmem:[%s9447_s24 + $0xc4] ss:$8 sps:$4 sm:$0xff]   ;;  %v7189_v44 = vrot.slane %v214_v20, %v7110_v16  ;;  %v7192_v45 = vrot.slane %v207_v41, %v7110_v16 }
  0x11   :  { %v6341_v35 = vld [vmem:[%s9447_s24 + $0xc0] ss:$8 sps:$4 sm:$0xff]   ;;  %v6342_v36 = vld [vmem:[%s9447_s24 + $0xd4] ss:$8 sps:$4 sm:$0xff]   ;;  %v6344_v37 = vld [vmem:[%s9447_s24 + $0xd0] ss:$8 sps:$4 sm:$0xff]  }
  0x12   :  { %909 = vmatpush1.bf16.msra.mxu0 %v6311_v5  ;;  %v244_v24 = vrot.slane %v222_v23, %v7110_v16  ;;  %v6345_v38 = vld [vmem:[%s9447_s24 + $0xe4] ss:$8 sps:$4 sm:$0xff]   ;;  %v6347_v39 = vld [vmem:[%s9447_s24 + $0xe0] ss:$8 sps:$4 sm:$0xff]   ;;  %v6348_v40 = vld [vmem:[%s9447_s24 + $0xf4] ss:$8 sps:$4 sm:$0xff]   ;;  %v7202_v49 = vrot.slane %v7192_v45, %v7110_v16  ;;  %v252_v20 = vcombine.high %v7189_v44, %v7189_v44 }
  0x13   :  { %910 = vmatprep.subr.bf16.mxu0 %v6312_v6  ;;  %v6350_v42 = vld [vmem:[%s9447_s24 + $0xf0] ss:$8 sps:$4 sm:$0xff]   ;;  %v6353_v43 = vld [vmem:[%s9447_s24 + $0x104] ss:$8 sps:$4 sm:$0xff]   ;;  %v6351_v47 = vld [vmem:[%s9447_s24 + $0x100] ss:$8 sps:$4 sm:$0xff]  }
  0x14   :  { %936 = vmatprep.mubr.bf16.mxu0 %v244_v24  ;;  %v254_v46 = vcombine.high %v244_v24, %v244_v24  ;;  %v6356_v48 = vld [vmem:[%s9447_s24 + $0x114] ss:$8 sps:$4 sm:$0xff]   ;;  %v6354_v50 = vld [vmem:[%s9447_s24 + $0x110] ss:$8 sps:$4 sm:$0xff]   ;;  %v6359_v51 = vld [vmem:[%s9447_s24 + $0x124] ss:$8 sps:$4 sm:$0xff]  }
  0x15   :  { %v6357_v52 = vld [vmem:[%s9447_s24 + $0x120] ss:$8 sps:$4 sm:$0xff]   ;;  %v6362_v53 = vld [vmem:[%s9447_s24 + $0x134] ss:$8 sps:$4 sm:$0xff]   ;;  %v6360_v54 = vld [vmem:[%s9447_s24 + $0x130] ss:$8 sps:$4 sm:$0xff]  }
  0x16   :  { %911 = vmatpush1.bf16.msra.mxu0 %v6314_v10  ;;  %v6365_v55 = vld [vmem:[%s9447_s24 + $0x144] ss:$8 sps:$4 sm:$0xff]   ;;  %v6363_v56 = vld [vmem:[%s9447_s24 + $0x140] ss:$8 sps:$4 sm:$0xff]   ;;  %v6368_v57 = vld [vmem:[%s9447_s24 + $0x154] ss:$8 sps:$4 sm:$0xff]  }
  0x17   :  { %912 = vmatprep.subr.bf16.mxu0 %v6315_v11  ;;  %v6366_v58 = vld [vmem:[%s9447_s24 + $0x150] ss:$8 sps:$4 sm:$0xff]   ;;  %v6371_v59 = vld [vmem:[%s9447_s24 + $0x164] ss:$8 sps:$4 sm:$0xff]   ;;  %v6369_v60 = vld [vmem:[%s9447_s24 + $0x160] ss:$8 sps:$4 sm:$0xff]  }
  0x18   :  { %v6374_v61 = vld [vmem:[%s9447_s24 + $0x174] ss:$8 sps:$4 sm:$0xff]   ;;  %v6372_v62 = vld [vmem:[%s9447_s24 + $0x170] ss:$8 sps:$4 sm:$0xff]   ;;  %v6377_v63 = vld [vmem:[%s9447_s24 + $0x184] ss:$8 sps:$4 sm:$0xff]  }
  0x19   :  { %v6375_v0 = vld [vmem:[%s9447_s24 + $0x180] ss:$8 sps:$4 sm:$0xff]   ;;  %v6380_v1 = vld [vmem:[%s9447_s24 + $0x194] ss:$8 sps:$4 sm:$0xff]   ;;  %v6378_v2 = vld [vmem:[%s9447_s24 + $0x190] ss:$8 sps:$4 sm:$0xff]  }
  0x1a   :  { %913 = vmatpush1.bf16.msra.mxu0 %v6317_v14  ;;  %v6383_v3 = vld [vmem:[%s9447_s24 + $0x1a4] ss:$8 sps:$4 sm:$0xff]   ;;  %v6381_v4 = vld [vmem:[%s9447_s24 + $0x1a0] ss:$8 sps:$4 sm:$0xff]   ;;  %v6386_v5 = vld [vmem:[%s9447_s24 + $0x1b4] ss:$8 sps:$4 sm:$0xff]  }
  0x1b   :  { %914 = vmatprep.subr.bf16.mxu0 %v6318_v15  ;;  %v6384_v6 = vld [vmem:[%s9447_s24 + $0x1b0] ss:$8 sps:$4 sm:$0xff]   ;;  %v6389_v7 = vld [vmem:[%s9447_s24 + $0x1c4] ss:$8 sps:$4 sm:$0xff]   ;;  %v6387_v8 = vld [vmem:[%s9447_s24 + $0x1c0] ss:$8 sps:$4 sm:$0xff]  }
  0x1c   :  { %v6392_v9 = vld [vmem:[%s9447_s24 + $0x1d4] ss:$8 sps:$4 sm:$0xff]   ;;  %v6390_v10 = vld [vmem:[%s9447_s24 + $0x1d0] ss:$8 sps:$4 sm:$0xff]   ;;  %v6395_v11 = vld [vmem:[%s9447_s24 + $0x1e4] ss:$8 sps:$4 sm:$0xff]  }
  0x1d   :  { %v6393_v12 = vld [vmem:[%s9447_s24 + $0x1e0] ss:$8 sps:$4 sm:$0xff]   ;;  %v6398_v14 = vld [vmem:[%s9447_s24 + $0x1f4] ss:$8 sps:$4 sm:$0xff]   ;;  %v6396_v15 = vld [vmem:[%s9447_s24 + $0x1f0] ss:$8 sps:$4 sm:$0xff]  }
  0x1e   :  { %915 = vmatpush1.bf16.msra.mxu0 %v6320_v17  ;;  %v223_v17 = vcombine.high %v7192_v45, %v7192_v45  ;;  %v6404_v23 = vld [vmem:[%s9447_s24 + $0x214] ss:$8 sps:$4 sm:$0xff]   ;;  %v6402_v24 = vld [vmem:[%s9447_s24 + $0x210] ss:$8 sps:$4 sm:$0xff]   ;;  %v6417_v45 = vld [vmem:[%s9447_s24 + $0x260] ss:$8 sps:$4 sm:$0xff]  }
  0x1f   :  { %916 = vmatprep.subr.bf16.mxu0 %v6321_v18  ;;  %v6401_v18 = vld [vmem:[%s9447_s24 + $0x204] ss:$8 sps:$4 sm:$0xff]   ;;  %v6414_v41 = vld [vmem:[%s9447_s24 + $0x250] ss:$8 sps:$4 sm:$0xff]   ;;  %s9453_s13 = sld [smem:[#allocation9_spill]] }
  0x22   :  { %917 = vmatpush1.bf16.msra.mxu0 %v6323_v21  ;;  %v6399_v21 = vld [vmem:[%s9447_s24 + $0x200] ss:$8 sps:$4 sm:$0xff]  }
  0x23   :  { %918 = vmatprep.subr.bf16.mxu0 %v6324_v22  ;;  %v7303_v22 = vrot.slane %v223_v17, %v7110_v16  ;;  %v6496_v16 = vld [vmem:[%s9449_s10 + $0x4] ss:$8 sps:$4 sm:$0xff]  }
  0x24   :  { %1194 = vmatprep.subr.bf16.mxu1 %v6496_v16  ;;  %v6540_v17 = vld [vmem:[%s9450_s28 + $0x64] ss:$8 sps:$4 sm:$0xff]   ;;  %v6448_v16 = vld [vmem:[%s9447_s24 + $0x300] ss:$8 sps:$4 sm:$0xff]  }
  0x26   :  { %919 = vmatpush1.bf16.msra.mxu0 %v6326_v25  ;;  %v6407_v25 = vld [vmem:[%s9447_s24 + $0x224] ss:$8 sps:$4 sm:$0xff]  }
  0x27   :  { %920 = vmatprep.subr.bf16.mxu0 %v6327_v26  ;;  %v6498_v26 = vld [vmem:[%s9449_s10] ss:$8 sps:$4 sm:$0xff]  }
  0x28   :  { %1195 = vmatpush1.bf16.msra.mxu1 %v6498_v26  ;;  %v255_v26 = vcombine.high %v7303_v22, %v7303_v22 }
  0x2a   :  { %921 = vmatpush1.bf16.msra.mxu0 %v6329_v27  ;;  %v6953_v27 = vmov 0  }
  0x2b   :  { %922 = vmatprep.subr.bf16.mxu0 %v6330_v28  ;;  %1226 = vmatprep.mubr.bf16.mxu1 %v6953_v27  ;;  %v6499_v28 = vld [vmem:[%s9449_s10 + $0x14] ss:$8 sps:$4 sm:$0xff]  }
  0x2c   :  { %1196 = vmatprep.subr.bf16.mxu1 %v6499_v28  ;;  %v6453_v27 = vld [vmem:[%s9447_s24 + $0x314] ss:$8 sps:$4 sm:$0xff]   ;;  %v6546_v28 = vld [vmem:[%s9450_s28 + $0x84] ss:$8 sps:$4 sm:$0xff]  }
  0x2e   :  { %923 = vmatpush1.bf16.msra.mxu0 %v6332_v29  ;;  %v6405_v29 = vld [vmem:[%s9447_s24 + $0x220] ss:$8 sps:$4 sm:$0xff]  }
  0x2f   :  { %924 = vmatprep.subr.bf16.mxu0 %v6333_v30  ;;  %v6501_v30 = vld [vmem:[%s9449_s10 + $0x10] ss:$8 sps:$4 sm:$0xff]  }
  0x30   :  { %1197 = vmatpush1.bf16.msra.mxu1 %v6501_v30  ;;  %v6549_v30 = vld [vmem:[%s9450_s28 + $0x94] ss:$8 sps:$4 sm:$0xff]  }
  0x32   :  { %925 = vmatpush1.bf16.msra.mxu0 %v6335_v31  ;;  %v6502_v31 = vld [vmem:[%s9449_s10 + $0x24] ss:$8 sps:$4 sm:$0xff]  }
  0x33   :  { %926 = vmatprep.subr.bf16.mxu0 %v6336_v32  ;;  %v6410_v32 = vld [vmem:[%s9447_s24 + $0x234] ss:$8 sps:$4 sm:$0xff]   ;;  %1198 = vmatprep.subr.bf16.mxu1 %v6502_v31  ;;  %v6456_v31 = vld [vmem:[%s9447_s24 + $0x324] ss:$8 sps:$4 sm:$0xff]  }
  0x36   :  { %927 = vmatpush1.bf16.msra.mxu0 %v6338_v33  ;;  %v6408_v33 = vld [vmem:[%s9447_s24 + $0x230] ss:$8 sps:$4 sm:$0xff]  }
  0x37   :  { %928 = vmatprep.subr.bf16.mxu0 %v6339_v34  ;;  %v6504_v34 = vld [vmem:[%s9449_s10 + $0x20] ss:$8 sps:$4 sm:$0xff]  }
  0x38   :  { %1199 = vmatpush1.bf16.msra.mxu1 %v6504_v34  ;;  %v6552_v34 = vld [vmem:[%s9450_s28 + $0xa4] ss:$8 sps:$4 sm:$0xff]  }
  0x3a   :  { %929 = vmatpush1.bf16.msra.mxu0 %v6341_v35  ;;  %v6505_v35 = vld [vmem:[%s9449_s10 + $0x34] ss:$8 sps:$4 sm:$0xff]  }
  0x3b   :  { %930 = vmatprep.subr.bf16.mxu0 %v6342_v36  ;;  %v6413_v36 = vld [vmem:[%s9447_s24 + $0x244] ss:$8 sps:$4 sm:$0xff]   ;;  %1200 = vmatprep.subr.bf16.mxu1 %v6505_v35  ;;  %v6459_v35 = vld [vmem:[%s9447_s24 + $0x334] ss:$8 sps:$4 sm:$0xff]  }
  0x3e   :  { %931 = vmatpush1.bf16.msra.mxu0 %v6344_v37  ;;  %v6411_v37 = vld [vmem:[%s9447_s24 + $0x240] ss:$8 sps:$4 sm:$0xff]  }
  0x3f   :  { %932 = vmatprep.subr.bf16.mxu0 %v6345_v38  ;;  %v6507_v38 = vld [vmem:[%s9449_s10 + $0x30] ss:$8 sps:$4 sm:$0xff]  }
  0x40   :  { %1201 = vmatpush1.bf16.msra.mxu1 %v6507_v38  ;;  %v6555_v38 = vld [vmem:[%s9450_s28 + $0xb4] ss:$8 sps:$4 sm:$0xff]  }
  0x42   :  { %933 = vmatpush1.bf16.msra.mxu0 %v6347_v39  ;;  %v6508_v39 = vld [vmem:[%s9449_s10 + $0x44] ss:$8 sps:$4 sm:$0xff]  }
  0x43   :  { %934 = vmatprep.subr.bf16.mxu0 %v6348_v40  ;;  %v6416_v40 = vld [vmem:[%s9447_s24 + $0x254] ss:$8 sps:$4 sm:$0xff]   ;;  %1202 = vmatprep.subr.bf16.mxu1 %v6508_v39  ;;  %v6462_v39 = vld [vmem:[%s9447_s24 + $0x344] ss:$8 sps:$4 sm:$0xff]  }
  0x46   :  { %935 = vmatpush1.bf16.msra.mxu0 %v6350_v42  ;;  %v6510_v42 = vld [vmem:[%s9449_s10 + $0x40] ss:$8 sps:$4 sm:$0xff]  }
  0x47   :  { %945 = vmatprep.subr.bf16.mxu0 %v6353_v43  ;;  %v6511_v43 = vld [vmem:[%s9449_s10 + $0x54] ss:$8 sps:$4 sm:$0xff]   ;;  %1203 = vmatpush1.bf16.msra.mxu1 %v6510_v42  ;;  %v6558_v42 = vld [vmem:[%s9450_s28 + $0xc4] ss:$8 sps:$4 sm:$0xff]  }
  0x48   :  { %1204 = vmatprep.subr.bf16.mxu1 %v6511_v43  ;;  %v6465_v43 = vld [vmem:[%s9447_s24 + $0x354] ss:$8 sps:$4 sm:$0xff]  }
  0x49   :  { %937 = vmatmul.mubr.bf16.vlgmr.msra.gmra.mrb[0].mxu0 %v7189_v44  ;;  %v6419_v44 = vld [vmem:[%s9447_s24 + $0x264] ss:$8 sps:$4 sm:$0xff]  }
  0x4a   :  { %946 = vmatpush1.bf16.msra.mxu0 %v6351_v47  ;;  %977 = vmatprep.mubr.bf16.mxu0 %v254_v46  ;;  %v6513_v46 = vld [vmem:[%s9449_s10 + $0x50] ss:$8 sps:$4 sm:$0xff]   ;;  %v6514_v47 = vld [vmem:[%s9449_s10 + $0x64] ss:$8 sps:$4 sm:$0xff]  }
  0x4b   :  { %947 = vmatprep.subr.bf16.mxu0 %v6356_v48  ;;  %v6422_v48 = vld [vmem:[%s9447_s24 + $0x274] ss:$8 sps:$4 sm:$0xff]   ;;  %1205 = vmatpush1.bf16.msra.mxu1 %v6513_v46 }
  0x4c   :  { %1206 = vmatprep.subr.bf16.mxu1 %v6514_v47  ;;  %v6561_v46 = vld [vmem:[%s9450_s28 + $0xd4] ss:$8 sps:$4 sm:$0xff]   ;;  %v6468_v47 = vld [vmem:[%s9447_s24 + $0x364] ss:$8 sps:$4 sm:$0xff]  }
  0x4e   :  { %948 = vmatpush1.bf16.msra.mxu0 %v6354_v50  ;;  %v6420_v50 = vld [vmem:[%s9447_s24 + $0x270] ss:$8 sps:$4 sm:$0xff]  }
  0x4f   :  { %949 = vmatprep.subr.bf16.mxu0 %v6359_v51  ;;  %v6516_v51 = vld [vmem:[%s9449_s10 + $0x60] ss:$8 sps:$4 sm:$0xff]  }
  0x50   :  { %1207 = vmatpush1.bf16.msra.mxu1 %v6516_v51  ;;  %v6471_v51 = vld [vmem:[%s9447_s24 + $0x374] ss:$8 sps:$4 sm:$0xff]  }
  0x52   :  { %950 = vmatpush1.bf16.msra.mxu0 %v6357_v52  ;;  %v6517_v52 = vld [vmem:[%s9449_s10 + $0x74] ss:$8 sps:$4 sm:$0xff]  }
  0x53   :  { %951 = vmatprep.subr.bf16.mxu0 %v6362_v53  ;;  %v6425_v53 = vld [vmem:[%s9447_s24 + $0x284] ss:$8 sps:$4 sm:$0xff]   ;;  %1208 = vmatprep.subr.bf16.mxu1 %v6517_v52  ;;  %v6469_v52 = vld [vmem:[%s9447_s24 + $0x370] ss:$8 sps:$4 sm:$0xff]  }
  0x56   :  { %952 = vmatpush1.bf16.msra.mxu0 %v6360_v54  ;;  %v6423_v54 = vld [vmem:[%s9447_s24 + $0x280] ss:$8 sps:$4 sm:$0xff]  }
  0x57   :  { %953 = vmatprep.subr.bf16.mxu0 %v6365_v55  ;;  %v6519_v55 = vld [vmem:[%s9449_s10 + $0x70] ss:$8 sps:$4 sm:$0xff]   ;;  %s9454_s10 = sld [smem:[#allocation10_spill]] }
  0x58   :  { %1209 = vmatpush1.bf16.msra.mxu1 %v6519_v55  ;;  %v6477_v55 = vld [vmem:[%s9447_s24 + $0x394] ss:$8 sps:$4 sm:$0xff]  }
  0x5a   :  { %954 = vmatpush1.bf16.msra.mxu0 %v6363_v56  ;;  %v6522_v56 = vld [vmem:[%s9450_s28 + $0x4] ss:$8 sps:$4 sm:$0xff]  }
  0x5b   :  { %955 = vmatprep.subr.bf16.mxu0 %v6368_v57  ;;  %v6428_v57 = vld [vmem:[%s9447_s24 + $0x294] ss:$8 sps:$4 sm:$0xff]   ;;  %1457 = vmatprep.subr.bf16.mxu1 %v6522_v56  ;;  %v6475_v56 = vld [vmem:[%s9447_s24 + $0x390] ss:$8 sps:$4 sm:$0xff]  }
  0x5c   :  { %1227 = vmatmul.mubr.bf16.vlgmr.msra.gmra.mrb[0].mxu1 %v7121_v19  ;;  %v6434_v19 = vld [vmem:[%s9447_s24 + $0x2b4] ss:$8 sps:$4 sm:$0xff]  }
  0x5e   :  { %956 = vmatpush1.bf16.msra.mxu0 %v6366_v58  ;;  %v6520_v58 = vld [vmem:[%s9450_s28] ss:$8 sps:$4 sm:$0xff]  }
  0x5f   :  { %957 = vmatprep.subr.bf16.mxu0 %v6371_v59  ;;  %v6426_v59 = vld [vmem:[%s9447_s24 + $0x290] ss:$8 sps:$4 sm:$0xff]   ;;  %1458 = vmatpush1.bf16.msra.mxu1 %v6520_v58  ;;  %v6478_v58 = vld [vmem:[%s9447_s24 + $0x3a0] ss:$8 sps:$4 sm:$0xff]  }
  0x62   :  { %958 = vmatpush1.bf16.msra.mxu0 %v6369_v60  ;;  %v6525_v60 = vld [vmem:[%s9450_s28 + $0x14] ss:$8 sps:$4 sm:$0xff]  }
  0x63   :  { %959 = vmatprep.subr.bf16.mxu0 %v6374_v61  ;;  %v6431_v61 = vld [vmem:[%s9447_s24 + $0x2a4] ss:$8 sps:$4 sm:$0xff]   ;;  %1459 = vmatprep.subr.bf16.mxu1 %v6525_v60  ;;  %v6481_v60 = vld [vmem:[%s9447_s24 + $0x3b0] ss:$8 sps:$4 sm:$0xff]  }
  0x66   :  { %960 = vmatpush1.bf16.msra.mxu0 %v6372_v62  ;;  %v6523_v62 = vld [vmem:[%s9450_s28 + $0x10] ss:$8 sps:$4 sm:$0xff]  }
  0x67   :  { %961 = vmatprep.subr.bf16.mxu0 %v6377_v63  ;;  %v6429_v63 = vld [vmem:[%s9447_s24 + $0x2a0] ss:$8 sps:$4 sm:$0xff]   ;;  %1460 = vmatpush1.bf16.msra.mxu1 %v6523_v62 }
  0x68   :  { %v6484_v62 = vld [vmem:[%s9447_s24 + $0x3c0] ss:$8 sps:$4 sm:$0xff]  }
  0x6a   :  { %962 = vmatpush1.bf16.msra.mxu0 %v6375_v0  ;;  %v6528_v0 = vld [vmem:[%s9450_s28 + $0x24] ss:$8 sps:$4 sm:$0xff]  }
  0x6b   :  { %963 = vmatprep.subr.bf16.mxu0 %v6380_v1  ;;  %v6526_v1 = vld [vmem:[%s9450_s28 + $0x20] ss:$8 sps:$4 sm:$0xff]   ;;  %1461 = vmatprep.subr.bf16.mxu1 %v6528_v0  ;;  %v6487_v0 = vld [vmem:[%s9447_s24 + $0x3d0] ss:$8 sps:$4 sm:$0xff]  }
  0x6c   :  { %1462 = vmatpush1.bf16.msra.mxu1 %v6526_v1  ;;  %v6490_v1 = vld [vmem:[%s9447_s24 + $0x3e0] ss:$8 sps:$4 sm:$0xff]  }
  0x6e   :  { %964 = vmatpush1.bf16.msra.mxu0 %v6378_v2  ;;  %v6432_v2 = vld [vmem:[%s9447_s24 + $0x2b0] ss:$8 sps:$4 sm:$0xff]  }
  0x6f   :  { %965 = vmatprep.subr.bf16.mxu0 %v6383_v3  ;;  %v6531_v3 = vld [vmem:[%s9450_s28 + $0x34] ss:$8 sps:$4 sm:$0xff]  }
  0x70   :  { %1463 = vmatprep.subr.bf16.mxu1 %v6531_v3  ;;  %v6493_v3 = vld [vmem:[%s9447_s24 + $0x3f0] ss:$8 sps:$4 sm:$0xff]  }
  0x72   :  { %966 = vmatpush1.bf16.msra.mxu0 %v6381_v4  ;;  %v6437_v4 = vld [vmem:[%s9447_s24 + $0x2c4] ss:$8 sps:$4 sm:$0xff]  }
  0x73   :  { %967 = vmatprep.subr.bf16.mxu0 %v6386_v5  ;;  %v6529_v5 = vld [vmem:[%s9450_s28 + $0x30] ss:$8 sps:$4 sm:$0xff]  }
  0x74   :  { %1464 = vmatpush1.bf16.msra.mxu1 %v6529_v5  ;;  %v6564_v5 = vld [vmem:[%s9450_s28 + $0xe4] ss:$8 sps:$4 sm:$0xff]  }
  0x76   :  { %968 = vmatpush1.bf16.msra.mxu0 %v6384_v6  ;;  %v6435_v6 = vld [vmem:[%s9447_s24 + $0x2c0] ss:$8 sps:$4 sm:$0xff]  }
  0x77   :  { %969 = vmatprep.subr.bf16.mxu0 %v6389_v7  ;;  %v6534_v7 = vld [vmem:[%s9450_s28 + $0x44] ss:$8 sps:$4 sm:$0xff]  }
  0x78   :  { %1465 = vmatprep.subr.bf16.mxu1 %v6534_v7  ;;  %v6567_v7 = vld [vmem:[%s9450_s28 + $0xf4] ss:$8 sps:$4 sm:$0xff]  }
  0x7a   :  { %970 = vmatpush1.bf16.msra.mxu0 %v6387_v8  ;;  %v6440_v8 = vld [vmem:[%s9447_s24 + $0x2d4] ss:$8 sps:$4 sm:$0xff]  }
  0x7b   :  { %971 = vmatprep.subr.bf16.mxu0 %v6392_v9  ;;  %v6532_v9 = vld [vmem:[%s9450_s28 + $0x40] ss:$8 sps:$4 sm:$0xff]  }
  0x7c   :  { %1466 = vmatpush1.bf16.msra.mxu1 %v6532_v9  ;;  %v6571_v9 = vld [vmem:[%s9452_s1 + $0x8] ss:$16 sps:$4 sm:$0xff]  }
  0x7e   :  { %972 = vmatpush1.bf16.msra.mxu0 %v6390_v10  ;;  %v6438_v10 = vld [vmem:[%s9447_s24 + $0x2d0] ss:$8 sps:$4 sm:$0xff]  }
  0x7f   :  { %973 = vmatprep.subr.bf16.mxu0 %v6395_v11  ;;  %v6537_v11 = vld [vmem:[%s9450_s28 + $0x54] ss:$8 sps:$4 sm:$0xff]  }
  0x80   :  { %1467 = vmatprep.subr.bf16.mxu1 %v6537_v11  ;;  %v6579_v11 = vld [vmem:[%s9452_s1 + $0x2c] ss:$16 sps:$4 sm:$0xff]  }
  0x82   :  { %974 = vmatpush1.bf16.msra.mxu0 %v6393_v12  ;;  %v6443_v12 = vld [vmem:[%s9447_s24 + $0x2e4] ss:$8 sps:$4 sm:$0xff]  }
  0x83   :  { %975 = vmatprep.subr.bf16.mxu0 %v6398_v14  ;;  %v6535_v14 = vld [vmem:[%s9450_s28 + $0x50] ss:$8 sps:$4 sm:$0xff]  }
  0x84   :  { %1468 = vmatpush1.bf16.msra.mxu1 %v6535_v14  ;;  %v6585_v14 = vld [vmem:[%s9452_s1 + $0x4c] ss:$16 sps:$4 sm:$0xff]  }
  0x85   :  { %1469 = vmatprep.subr.bf16.mxu1 %v6540_v17  ;;  %v6591_v17 = vld [vmem:[%s9452_s1 + $0x6c] ss:$16 sps:$4 sm:$0xff]  }
  0x86   :  { %976 = vmatpush1.bf16.msra.mxu0 %v6396_v15  ;;  %v6441_v15 = vld [vmem:[%s9447_s24 + $0x2e0] ss:$8 sps:$4 sm:$0xff]  }
  0x87   :  { %986 = vmatprep.subr.bf16.mxu0 %v6401_v18  ;;  %v6446_v18 = vld [vmem:[%s9447_s24 + $0x2f4] ss:$8 sps:$4 sm:$0xff]  }
  0x89   :  { %978 = vmatmul.mubr.bf16.vlgmr.msra.gmra.mrb[0].mxu0 %v252_v20  ;;  %v6538_v20 = vld [vmem:[%s9450_s28 + $0x60] ss:$8 sps:$4 sm:$0xff]  }
  0x8a   :  { %987 = vmatpush1.bf16.msra.mxu0 %v6399_v21  ;;  %1018 = vmatprep.mubr.bf16.mxu0 %v7303_v22  ;;  %v6444_v21 = vld [vmem:[%s9447_s24 + $0x2f0] ss:$8 sps:$4 sm:$0xff]  }
  0x8b   :  { %988 = vmatprep.subr.bf16.mxu0 %v6404_v23  ;;  %v6543_v23 = vld [vmem:[%s9450_s28 + $0x74] ss:$8 sps:$4 sm:$0xff]   ;;  %1470 = vmatpush1.bf16.msra.mxu1 %v6538_v20  ;;  %v6451_v22 = vld [vmem:[%s9447_s24 + $0x310] ss:$8 sps:$4 sm:$0xff]  }
  0x8c   :  { %1471 = vmatprep.subr.bf16.mxu1 %v6543_v23  ;;  %v6597_v20 = vld [vmem:[%s9452_s1 + $0x8c] ss:$16 sps:$4 sm:$0xff]  }
  0x8d   :  { %v6603_v23 = vld [vmem:[%s9452_s1 + $0xac] ss:$16 sps:$4 sm:$0xff]  }
  0x8e   :  { %989 = vmatpush1.bf16.msra.mxu0 %v6402_v24  ;;  %v6450_v24 = vld [vmem:[%s9447_s24 + $0x304] ss:$8 sps:$4 sm:$0xff]  }
  0x8f   :  { %990 = vmatprep.subr.bf16.mxu0 %v6407_v25  ;;  %v6541_v25 = vld [vmem:[%s9450_s28 + $0x70] ss:$8 sps:$4 sm:$0xff]  }
  0x90   :  { %1472 = vmatpush1.bf16.msra.mxu1 %v6541_v25 }
  0x91   :  { %1473 = vmatprep.subr.bf16.mxu1 %v6546_v28  ;;  %v6607_v28 = vld [vmem:[%s9452_s1 + $0xc8] ss:$16 sps:$4 sm:$0xff]  }
  0x92   :  { %991 = vmatpush1.bf16.msra.mxu0 %v6405_v29  ;;  %v6544_v29 = vld [vmem:[%s9450_s28 + $0x80] ss:$8 sps:$4 sm:$0xff]  }
  0x93   :  { %992 = vmatprep.subr.bf16.mxu0 %v6410_v32  ;;  %v6547_v32 = vld [vmem:[%s9450_s28 + $0x90] ss:$8 sps:$4 sm:$0xff]  }
  0x94   :  { %1474 = vmatpush1.bf16.msra.mxu1 %v6544_v29 }
  0x95   :  { %1475 = vmatprep.subr.bf16.mxu1 %v6549_v30  ;;  %v6613_v30 = vld [vmem:[%s9452_s1 + $0xe8] ss:$16 sps:$4 sm:$0xff]  }
  0x96   :  { %993 = vmatpush1.bf16.msra.mxu0 %v6408_v33  ;;  %v6454_v33 = vld [vmem:[%s9447_s24 + $0x320] ss:$8 sps:$4 sm:$0xff]  }
  0x97   :  { %994 = vmatprep.subr.bf16.mxu0 %v6413_v36  ;;  %v6550_v36 = vld [vmem:[%s9450_s28 + $0xa0] ss:$8 sps:$4 sm:$0xff]  }
  0x98   :  { %1476 = vmatpush1.bf16.msra.mxu1 %v6547_v32  ;;  %v6619_v32 = vld [vmem:[%s9452_s1 + $0x108] ss:$16 sps:$4 sm:$0xff]  }
  0x99   :  { %1477 = vmatprep.subr.bf16.mxu1 %v6552_v34  ;;  %v6625_v34 = vld [vmem:[%s9452_s1 + $0x128] ss:$16 sps:$4 sm:$0xff]  }
  0x9a   :  { %995 = vmatpush1.bf16.msra.mxu0 %v6411_v37  ;;  %v6457_v37 = vld [vmem:[%s9447_s24 + $0x330] ss:$8 sps:$4 sm:$0xff]  }
  0x9b   :  { %996 = vmatprep.subr.bf16.mxu0 %v6416_v40  ;;  %v6553_v40 = vld [vmem:[%s9450_s28 + $0xb0] ss:$8 sps:$4 sm:$0xff]  }
  0x9c   :  { %1478 = vmatpush1.bf16.msra.mxu1 %v6550_v36  ;;  %v6631_v36 = vld [vmem:[%s9452_s1 + $0x148] ss:$16 sps:$4 sm:$0xff]  }
  0x9d   :  { %1479 = vmatprep.subr.bf16.mxu1 %v6555_v38  ;;  %v6637_v38 = vld [vmem:[%s9452_s1 + $0x168] ss:$16 sps:$4 sm:$0xff]  }
  0x9e   :  { %997 = vmatpush1.bf16.msra.mxu0 %v6414_v41  ;;  %v6460_v41 = vld [vmem:[%s9447_s24 + $0x340] ss:$8 sps:$4 sm:$0xff]  }
  0x9f   :  { %998 = vmatprep.subr.bf16.mxu0 %v6419_v44  ;;  %v6556_v44 = vld [vmem:[%s9450_s28 + $0xc0] ss:$8 sps:$4 sm:$0xff]  }
  0xa0   :  { %1480 = vmatpush1.bf16.msra.mxu1 %v6553_v40  ;;  %v6645_v40 = vld [vmem:[%s9452_s1 + $0x18c] ss:$16 sps:$4 sm:$0xff]  }
  0xa1   :  { %1481 = vmatprep.subr.bf16.mxu1 %v6558_v42  ;;  %v1068_v42 = vld [vmem:[%s9453_s13] sm:$0x3] }
  0xa2   :  { %999 = vmatpush1.bf16.msra.mxu0 %v6417_v45  ;;  %v6463_v45 = vld [vmem:[%s9447_s24 + $0x350] ss:$8 sps:$4 sm:$0xff]  }
  0xa3   :  { %1000 = vmatprep.subr.bf16.mxu0 %v6422_v48  ;;  %v6559_v48 = vld [vmem:[%s9450_s28 + $0xd0] ss:$8 sps:$4 sm:$0xff]  }
  0xa4   :  { %1482 = vmatpush1.bf16.msra.mxu1 %v6556_v44  ;;  %v1082_v44 = vld [vmem:[%s9454_s10] sm:$0x3] }
  0xa5   :  { %1483 = vmatprep.subr.bf16.mxu1 %v6561_v46 }
  0xa6   :  { %1001 = vmatpush1.bf16.msra.mxu0 %v6420_v50  ;;  %v6466_v50 = vld [vmem:[%s9447_s24 + $0x360] ss:$8 sps:$4 sm:$0xff]  }
  0xa7   :  { %1002 = vmatprep.subr.bf16.mxu0 %v6425_v53  ;;  %v6474_v53 = vld [vmem:[%s9447_s24 + $0x384] ss:$8 sps:$4 sm:$0xff]  }
  0xa8   :  { %1484 = vmatpush1.bf16.msra.mxu1 %v6559_v48 }
  0xa9   :  { %1485 = vmatprep.subr.bf16.mxu1 %v6564_v5  ;;  %v6592_v5 = vld [vmem:[%s9451_s3 + $0x80] ss:$16 sps:$4 sm:$0xff]  }
  0xaa   :  { %1003 = vmatpush1.bf16.msra.mxu0 %v6423_v54  ;;  %v6472_v54 = vld [vmem:[%s9447_s24 + $0x380] ss:$8 sps:$4 sm:$0xff]  }
  0xab   :  { %1004 = vmatprep.subr.bf16.mxu0 %v6428_v57  ;;  %v6480_v57 = vld [vmem:[%s9447_s24 + $0x3a4] ss:$8 sps:$4 sm:$0xff]  }
  0xae   :  { %1005 = vmatpush1.bf16.msra.mxu0 %v6426_v59  ;;  %v6483_v59 = vld [vmem:[%s9447_s24 + $0x3b4] ss:$8 sps:$4 sm:$0xff]  }
  0xaf   :  { %1006 = vmatprep.subr.bf16.mxu0 %v6431_v61  ;;  %v6486_v61 = vld [vmem:[%s9447_s24 + $0x3c4] ss:$8 sps:$4 sm:$0xff]  }
  0xb2   :  { %1007 = vmatpush1.bf16.msra.mxu0 %v6429_v63  ;;  %v6489_v63 = vld [vmem:[%s9447_s24 + $0x3d4] ss:$8 sps:$4 sm:$0xff]  }
  0xb3   :  { %1008 = vmatprep.subr.bf16.mxu0 %v6434_v19  ;;  %v6492_v19 = vld [vmem:[%s9447_s24 + $0x3e4] ss:$8 sps:$4 sm:$0xff]  }
  0xb6   :  { %1009 = vmatpush1.bf16.msra.mxu0 %v6432_v2  ;;  %v6495_v2 = vld [vmem:[%s9447_s24 + $0x3f4] ss:$8 sps:$4 sm:$0xff]  }
  0xb7   :  { %1010 = vmatprep.subr.bf16.mxu0 %v6437_v4  ;;  %v253_v4 = vcombine.high %v7202_v49, %v7202_v49 }
  0xba   :  { %1011 = vmatpush1.bf16.msra.mxu0 %v6435_v6  ;;  %v6562_v6 = vld [vmem:[%s9450_s28 + $0xe0] ss:$8 sps:$4 sm:$0xff]  }
  0xbb   :  { %1012 = vmatprep.subr.bf16.mxu0 %v6440_v8  ;;  %1486 = vmatpush1.bf16.msra.mxu1 %v6562_v6  ;;  %v6570_v8 = vld [vmem:[%s9451_s3 + $0x4] ss:$16 sps:$4 sm:$0xff]  }
  0xbc   :  { %1487 = vmatprep.subr.bf16.mxu1 %v6567_v7  ;;  %v6600_v6 = vld [vmem:[%s9451_s3 + $0xa4] ss:$16 sps:$4 sm:$0xff]   ;;  %v6598_v7 = vld [vmem:[%s9451_s3 + $0xa0] ss:$16 sps:$4 sm:$0xff]  }
  0xbe   :  { %1013 = vmatpush1.bf16.msra.mxu0 %v6438_v10  ;;  %v6573_v10 = vld [vmem:[%s9452_s1 + $0xc] ss:$16 sps:$4 sm:$0xff]  }
  0xbf   :  { %1014 = vmatprep.subr.bf16.mxu0 %v6443_v12  ;;  %v6577_v12 = vld [vmem:[%s9452_s1 + $0x28] ss:$16 sps:$4 sm:$0xff]  }
  0xc2   :  { %1015 = vmatpush1.bf16.msra.mxu0 %v6441_v15  ;;  %v6583_v15 = vld [vmem:[%s9452_s1 + $0x48] ss:$16 sps:$4 sm:$0xff]  }
  0xc3   :  { %1016 = vmatprep.subr.bf16.mxu0 %v6446_v18  ;;  %v6589_v18 = vld [vmem:[%s9452_s1 + $0x68] ss:$16 sps:$4 sm:$0xff]  }
  0xc6   :  { %1017 = vmatpush1.bf16.msra.mxu0 %v6444_v21  ;;  %v6595_v21 = vld [vmem:[%s9452_s1 + $0x88] ss:$16 sps:$4 sm:$0xff]  }
  0xc7   :  { %1027 = vmatprep.subr.bf16.mxu0 %v6450_v24  ;;  %v6601_v24 = vld [vmem:[%s9452_s1 + $0xa8] ss:$16 sps:$4 sm:$0xff]  }
  0xc9   :  { %1019 = vmatmul.mubr.bf16.vlgmr.msra.gmra.mrb[0].mxu0 %v7202_v49  ;;  %v6565_v49 = vld [vmem:[%s9450_s28 + $0xf0] ss:$8 sps:$4 sm:$0xff]  }
  0xca   :  { %1028 = vmatpush1.bf16.msra.mxu0 %v6448_v16  ;;  %1059 = vmatprep.mubr.bf16.mxu0 %v255_v26  ;;  %v6609_v26 = vld [vmem:[%s9452_s1 + $0xcc] ss:$16 sps:$4 sm:$0xff]  }
  0xcb   :  { %1029 = vmatprep.subr.bf16.mxu0 %v6453_v27  ;;  %1488 = vmatpush1.bf16.msra.mxu1 %v6565_v49  ;;  %v6606_v49 = vld [vmem:[%s9451_s3 + $0xc4] ss:$16 sps:$4 sm:$0xff]  }
  0xcc   :  { %1916 = vmatprep.subr.bf16.mxu1 %v6570_v8  ;;  %v6604_v8 = vld [vmem:[%s9451_s3 + $0xc0] ss:$16 sps:$4 sm:$0xff]  }
  0xce   :  { %1030 = vmatpush1.bf16.msra.mxu0 %v6451_v22  ;;  %v6615_v22 = vld [vmem:[%s9452_s1 + $0xec] ss:$16 sps:$4 sm:$0xff]  }
  0xcf   :  { %1031 = vmatprep.subr.bf16.mxu0 %v6456_v31  ;;  %v6621_v31 = vld [vmem:[%s9452_s1 + $0x10c] ss:$16 sps:$4 sm:$0xff]  }
  0xd2   :  { %1032 = vmatpush1.bf16.msra.mxu0 %v6454_v33  ;;  %v6627_v33 = vld [vmem:[%s9452_s1 + $0x12c] ss:$16 sps:$4 sm:$0xff]  }
  0xd3   :  { %1033 = vmatprep.subr.bf16.mxu0 %v6459_v35  ;;  %v6633_v35 = vld [vmem:[%s9452_s1 + $0x14c] ss:$16 sps:$4 sm:$0xff]  }
  0xd6   :  { %1034 = vmatpush1.bf16.msra.mxu0 %v6457_v37  ;;  %v6639_v37 = vld [vmem:[%s9452_s1 + $0x16c] ss:$16 sps:$4 sm:$0xff]  }
  0xd7   :  { %1035 = vmatprep.subr.bf16.mxu0 %v6462_v39  ;;  %v6643_v39 = vld [vmem:[%s9452_s1 + $0x188] ss:$16 sps:$4 sm:$0xff]  }
  0xda   :  { %1036 = vmatpush1.bf16.msra.mxu0 %v6460_v41  ;;  %v7728_v41 = vsub.s32 0, %v7101_v13 }
  0xdb   :  { %1037 = vmatprep.subr.bf16.mxu0 %v6465_v43  ;;  %v7734_v43 = vsub.s32 1, %v7101_v13 }
  0xdd   :  { %v1077_v46 = vrot.slane %v1068_v42, %v7734_v43 }
  0xde   :  { %1038 = vmatpush1.bf16.msra.mxu0 %v6463_v45  ;;  %v1073_v45 = vrot.slane %v1068_v42, %v7728_v41  ;;  %v1249_v42 = vld [vmem:[%s9420_s6] sm:$0x3] }
  0xdf   :  { %1039 = vmatprep.subr.bf16.mxu0 %v6468_v47  ;;  %v1087_v47 = vrot.slane %v1082_v44, %v7728_v41 }
  0xe2   :  { %1040 = vmatpush1.bf16.msra.mxu0 %v6466_v50  ;;  %v1091_v50 = vrot.slane %v1082_v44, %v7734_v43 }
  0xe3   :  { %1041 = vmatprep.subr.bf16.mxu0 %v6471_v51 }
  0xe6   :  { %1042 = vmatpush1.bf16.msra.mxu0 %v6469_v52 }
  0xe7   :  { %1043 = vmatprep.subr.bf16.mxu0 %v6474_v53 }
  0xea   :  { %1044 = vmatpush1.bf16.msra.mxu0 %v6472_v54 }
  0xeb   :  { %1045 = vmatprep.subr.bf16.mxu0 %v6477_v55 }
  0xee   :  { %1046 = vmatpush1.bf16.msra.mxu0 %v6475_v56 }
  0xef   :  { %1047 = vmatprep.subr.bf16.mxu0 %v6480_v57 }
  0xf2   :  { %1048 = vmatpush1.bf16.msra.mxu0 %v6478_v58 }
  0xf3   :  { %1049 = vmatprep.subr.bf16.mxu0 %v6483_v59 }
  0xf6   :  { %1050 = vmatpush1.bf16.msra.mxu0 %v6481_v60 }
  0xf7   :  { %1051 = vmatprep.subr.bf16.mxu0 %v6486_v61  ;;  %v6568_v61 = vld [vmem:[%s9451_s3] ss:$16 sps:$4 sm:$0xff]  }
  0xfa   :  { %1052 = vmatpush1.bf16.msra.mxu0 %v6484_v62 }
  0xfb   :  { %1053 = vmatprep.subr.bf16.mxu0 %v6489_v63  ;;  %v6576_v63 = vld [vmem:[%s9451_s3 + $0x24] ss:$16 sps:$4 sm:$0xff]  }
  0xfe   :  { %1054 = vmatpush1.bf16.msra.mxu0 %v6487_v0  ;;  %v6574_v0 = vld [vmem:[%s9451_s3 + $0x20] ss:$16 sps:$4 sm:$0xff]  }
  0xff   :  { %1055 = vmatprep.subr.bf16.mxu0 %v6492_v19  ;;  %v6582_v19 = vld [vmem:[%s9451_s3 + $0x44] ss:$16 sps:$4 sm:$0xff]  }
 0x102   :  { %1056 = vmatpush1.bf16.msra.mxu0 %v6490_v1  ;;  %v6580_v1 = vld [vmem:[%s9451_s3 + $0x40] ss:$16 sps:$4 sm:$0xff]  }
 0x103   :  { %1057 = vmatprep.subr.bf16.mxu0 %v6495_v2  ;;  %v6588_v2 = vld [vmem:[%s9451_s3 + $0x64] ss:$16 sps:$4 sm:$0xff]  }
 0x106   :  { %1058 = vmatpush1.bf16.msra.mxu0 %v6493_v3  ;;  %v6586_v3 = vld [vmem:[%s9451_s3 + $0x60] ss:$16 sps:$4 sm:$0xff]  }
 0x107   :  { %2475 = vmatprep.subr.bf16.mxu0 %v6573_v10  ;;  %v6610_v10 = vld [vmem:[%s9451_s3 + $0xe0] ss:$16 sps:$4 sm:$0xff]  }
 0x109   :  { %1060 = vmatmul.mubr.bf16.vlgmr.msra.gmra.mrb[0].mxu0 %v253_v4  ;;  %v6594_v4 = vld [vmem:[%s9451_s3 + $0x84] ss:$16 sps:$4 sm:$0xff]  }
 0x10a   :  { %2476 = vmatpush1.bf16.msra.mxu0 %v6571_v9  ;;  %v6612_v9 = vld [vmem:[%s9451_s3 + $0xe4] ss:$16 sps:$4 sm:$0xff]  }
 0x10b   :  { %2477 = vmatprep.subr.bf16.mxu0 %v6579_v11  ;;  %v6618_v11 = vld [vmem:[%s9451_s3 + $0x104] ss:$16 sps:$4 sm:$0xff]  }
 0x10e   :  { %2478 = vmatpush1.bf16.msra.mxu0 %v6577_v12  ;;  %v6616_v12 = vld [vmem:[%s9451_s3 + $0x100] ss:$16 sps:$4 sm:$0xff]  }
 0x10f   :  { %2479 = vmatprep.subr.bf16.mxu0 %v6585_v14  ;;  %v6624_v14 = vld [vmem:[%s9451_s3 + $0x124] ss:$16 sps:$4 sm:$0xff]  }
 0x112   :  { %2480 = vmatpush1.bf16.msra.mxu0 %v6583_v15  ;;  %v6622_v15 = vld [vmem:[%s9451_s3 + $0x120] ss:$16 sps:$4 sm:$0xff]  }
 0x113   :  { %2481 = vmatprep.subr.bf16.mxu0 %v6591_v17  ;;  %v6630_v17 = vld [vmem:[%s9451_s3 + $0x144] ss:$16 sps:$4 sm:$0xff]  }
 0x116   :  { %2482 = vmatpush1.bf16.msra.mxu0 %v6589_v18  ;;  %v6628_v18 = vld [vmem:[%s9451_s3 + $0x140] ss:$16 sps:$4 sm:$0xff]  }
 0x117   :  { %2483 = vmatprep.subr.bf16.mxu0 %v6597_v20  ;;  %v6636_v20 = vld [vmem:[%s9451_s3 + $0x164] ss:$16 sps:$4 sm:$0xff]  }
 0x11a   :  { %2484 = vmatpush1.bf16.msra.mxu0 %v6595_v21  ;;  %v6634_v21 = vld [vmem:[%s9451_s3 + $0x160] ss:$16 sps:$4 sm:$0xff]  }
 0x11b   :  { %2485 = vmatprep.subr.bf16.mxu0 %v6603_v23  ;;  %v6642_v23 = vld [vmem:[%s9451_s3 + $0x184] ss:$16 sps:$4 sm:$0xff]  }
 0x11e   :  { %2486 = vmatpush1.bf16.msra.mxu0 %v6601_v24  ;;  %v6640_v24 = vld [vmem:[%s9451_s3 + $0x180] ss:$16 sps:$4 sm:$0xff]  }
 0x11f   :  { %2487 = vmatprep.subr.bf16.mxu0 %v6609_v26  ;;  %v6648_v26 = vld [vmem:[%s9451_s3 + $0x1a4] ss:$16 sps:$4 sm:$0xff]  }
 0x122   :  { %2488 = vmatpush1.bf16.msra.mxu0 %v6607_v28  ;;  %v6651_v28 = vld [vmem:[%s9452_s1 + $0x1ac] ss:$16 sps:$4 sm:$0xff]  }
 0x123   :  { %2489 = vmatprep.subr.bf16.mxu0 %v6615_v22  ;;  %v6654_v22 = vld [vmem:[%s9451_s3 + $0x1c4] ss:$16 sps:$4 sm:$0xff]  }
 0x126   :  { %2490 = vmatpush1.bf16.msra.mxu0 %v6613_v30  ;;  %v6652_v30 = vld [vmem:[%s9451_s3 + $0x1c0] ss:$16 sps:$4 sm:$0xff]  }
 0x127   :  { %2491 = vmatprep.subr.bf16.mxu0 %v6621_v31  ;;  %v6657_v31 = vld [vmem:[%s9452_s1 + $0x1cc] ss:$16 sps:$4 sm:$0xff]  }
 0x12a   :  { %2492 = vmatpush1.bf16.msra.mxu0 %v6619_v32  ;;  %v6655_v32 = vld [vmem:[%s9452_s1 + $0x1c8] ss:$16 sps:$4 sm:$0xff]  }
 0x12b   :  { %2493 = vmatprep.subr.bf16.mxu0 %v6627_v33  ;;  %v6660_v33 = vld [vmem:[%s9451_s3 + $0x1e4] ss:$16 sps:$4 sm:$0xff]  }
 0x12e   :  { %2494 = vmatpush1.bf16.msra.mxu0 %v6625_v34  ;;  %v6658_v34 = vld [vmem:[%s9451_s3 + $0x1e0] ss:$16 sps:$4 sm:$0xff]  }
 0x12f   :  { %v7681_v25 = vpop.f32.mrb[0].mxu1  ;;  %2495 = vmatprep.subr.bf16.mxu0 %v6633_v35  ;;  %v6663_v35 = vld [vmem:[%s9452_s1 + $0x1ec] ss:$16 sps:$4 sm:$0xff]  }
 0x130   :  { %v7683_v16 = vpop.f32.mrb[1].mxu1 }
 0x131   :  { %v1232_v27 = vpop.f32.mrb[2].mxu1 }
 0x132   :  { %v1233_v29 = vpop.f32.mrb[3].mxu1  ;;  %2496 = vmatpush1.bf16.msra.mxu0 %v6631_v36  ;;  %v6646_v27 = vld [vmem:[%s9451_s3 + $0x1a0] ss:$16 sps:$4 sm:$0xff]   ;;  %v6661_v36 = vld [vmem:[%s9452_s1 + $0x1e8] ss:$16 sps:$4 sm:$0xff]  }
 0x133   :  { %2497 = vmatprep.subr.bf16.mxu0 %v6639_v37  ;;  %v6649_v29 = vld [vmem:[%s9452_s1 + $0x1a8] ss:$16 sps:$4 sm:$0xff]   ;;  %v6666_v37 = vld [vmem:[%s9451_s3 + $0xc] ss:$16 sps:$4 sm:$0xff]  }
 0x136   :  { %2498 = vmatpush1.bf16.msra.mxu0 %v6637_v38  ;;  %v1235_v38 = vld [vmem:[%s9418_s5] sm:$0x3] }
 0x137   :  { %2499 = vmatprep.subr.bf16.mxu0 %v6645_v40  ;;  %v1240_v40 = vrot.slane %v1235_v38, %v7728_v41  ;;  %v1244_v44 = vrot.slane %v1235_v38, %v7734_v43  ;;  %v6714_v38 = vld [vmem:[%s9452_s1 + $0x4] ss:$16 sps:$4 sm:$0xff]  }
 0x13a   :  { %2500 = vmatpush1.bf16.msra.mxu0 %v6643_v39  ;;  %v1498_v39 = vld [vmem:[%s9419_s8] sm:$0x3] }
 0x13b   :  { %2501 = vmatprep.subr.bf16.mxu0 %v6651_v28  ;;  %v6694_v28 = vld [vmem:[%s9451_s3 + $0x148] ss:$16 sps:$4 sm:$0xff]  }
 0x13e   :  { %2502 = vmatpush1.bf16.msra.mxu0 %v6649_v29  ;;  %v6699_v29 = vld [vmem:[%s9451_s3 + $0x16c] ss:$16 sps:$4 sm:$0xff]  }
 0x13f   :  { %2503 = vmatprep.subr.bf16.mxu0 %v6657_v31  ;;  %v6700_v31 = vld [vmem:[%s9451_s3 + $0x188] ss:$16 sps:$4 sm:$0xff]  }
 0x142   :  { %2504 = vmatpush1.bf16.msra.mxu0 %v6655_v32  ;;  %v6705_v32 = vld [vmem:[%s9451_s3 + $0x1ac] ss:$16 sps:$4 sm:$0xff]  }
 0x143   :  { %2505 = vmatprep.subr.bf16.mxu0 %v6663_v35  ;;  %v6706_v35 = vld [vmem:[%s9451_s3 + $0x1c8] ss:$16 sps:$4 sm:$0xff]  }
 0x146   :  { %2506 = vmatpush1.bf16.msra.mxu0 %v6661_v36  ;;  %v6711_v36 = vld [vmem:[%s9451_s3 + $0x1ec] ss:$16 sps:$4 sm:$0xff]  }
 0x1dc   :  { %v1061_v48 = vpop.f32.mrb[0].mxu0 }
 0x1dd   :  { %v1080_v51 = vmul.f32 %v1073_v45, %v1061_v48  ;;  %v1063_v52 = vpop.f32.mrb[1].mxu0  ;;  %v1512_v45 = vld [vmem:[%s9421_s9] sm:$0x3]  ;;  %v1247_v48 = vmul.f32 %v1240_v40, %v7681_v25  ;;  %v6717_v40 = vld [vmem:[%s9452_s1 + $0x24] ss:$16 sps:$4 sm:$0xff]  }
 0x1de   :  { %v1081_v53 = vmul.f32 %v1077_v46, %v1063_v52  ;;  %v1065_v54 = vpop.f32.mrb[2].mxu0  ;;  %v1503_v46 = vrot.slane %v1498_v39, %v7728_v41  ;;  %v1248_v52 = vmul.f32 %v1244_v44, %v7683_v16  ;;  %v6664_v16 = vld [vmem:[%s9451_s3 + $0x8] ss:$16 sps:$4 sm:$0xff]   ;;  %v6720_v44 = vld [vmem:[%s9452_s1 + $0x44] ss:$16 sps:$4 sm:$0xff]  }
 0x1df   :  { %v1094_v55 = vadd.f32 %v1087_v47, %v1080_v51  ;;  %v1066_v56 = vpop.f32.mrb[3].mxu0  ;;  %v1507_v47 = vrot.slane %v1498_v39, %v7734_v43  ;;  %v1517_v51 = vrot.slane %v1512_v45, %v7728_v41  ;;  %v6712_v39 = vld [vmem:[%s9452_s1] ss:$16 sps:$4 sm:$0xff]  }
 0x1e0   :  { %v1095_v57 = vadd.f32 %v1091_v50, %v1081_v53  ;;  %v1254_v50 = vrot.slane %v1249_v42, %v7728_v41  ;;  %v1258_v53 = vrot.slane %v1249_v42, %v7734_v43  ;;  %v6715_v42 = vld [vmem:[%s9452_s1 + $0x20] ss:$16 sps:$4 sm:$0xff]  }
 0x1e1   :  { %v1096_v58 = vmax.f32 %v1094_v55, 0.0  ;;  %v1521_v55 = vrot.slane %v1512_v45, %v7734_v43  ;;  %v6718_v45 = vld [vmem:[%s9452_s1 + $0x40] ss:$16 sps:$4 sm:$0xff]  }
 0x1e2   :  { %v1097_v59 = vmax.f32 %v1095_v57, 0.0 }
 0x1e3   :  { %v1263_v62 = vpack.c.bf16 %v1096_v58, %v1096_v58 }
 0x1e4   :  { %v1264_v60 = vpack.c.bf16 %v1097_v59, %v1097_v59 }
 0x1e6   :  { %1489 = vmatprep.mubr.bf16.mxu1 %v1264_v60  ;;  %v1261_v60 = vadd.f32 %v1254_v50, %v1247_v48  ;;  %v6726_v48 = vld [vmem:[%s9452_s1 + $0x84] ss:$16 sps:$4 sm:$0xff]   ;;  %v6724_v50 = vld [vmem:[%s9452_s1 + $0x80] ss:$16 sps:$4 sm:$0xff]  }
 0x1e7   :  { %1490 = vmatmul.mubr.bf16.vlgmr.msra.gmra.mrb[4].mxu1 %v1263_v62 }
 0x1e8   :  { %1917 = vmatpush1.bf16.msra.mxu1 %v6568_v61 }
 0x1e9   :  { %1918 = vmatprep.subr.bf16.mxu1 %v6576_v63  ;;  %v1262_v63 = vadd.f32 %v1258_v53, %v1248_v52  ;;  %v6727_v52 = vld [vmem:[%s9452_s1 + $0xa0] ss:$16 sps:$4 sm:$0xff]   ;;  %v6732_v53 = vld [vmem:[%s9452_s1 + $0xc4] ss:$16 sps:$4 sm:$0xff]  }
 0x1ec   :  { %1919 = vmatpush1.bf16.msra.mxu1 %v6574_v0 }
 0x1ed   :  { %1920 = vmatprep.subr.bf16.mxu1 %v6582_v19 }
 0x1f0   :  { %1921 = vmatpush1.bf16.msra.mxu1 %v6580_v1 }
 0x1f1   :  { %1922 = vmatprep.subr.bf16.mxu1 %v6588_v2 }
 0x1f4   :  { %1923 = vmatpush1.bf16.msra.mxu1 %v6586_v3 }
 0x1f5   :  { %1924 = vmatprep.subr.bf16.mxu1 %v6594_v4 }
 0x1f8   :  { %1925 = vmatpush1.bf16.msra.mxu1 %v6592_v5  ;;  %v6669_v5 = vld [vmem:[%s9451_s3 + $0x2c] ss:$16 sps:$4 sm:$0xff]  }
 0x1f9   :  { %1926 = vmatprep.subr.bf16.mxu1 %v6600_v6  ;;  %v6667_v6 = vld [vmem:[%s9451_s3 + $0x28] ss:$16 sps:$4 sm:$0xff]  }
 0x1fc   :  { %1927 = vmatpush1.bf16.msra.mxu1 %v6598_v7  ;;  %v6672_v7 = vld [vmem:[%s9451_s3 + $0x4c] ss:$16 sps:$4 sm:$0xff]  }
 0x1fd   :  { %1928 = vmatprep.subr.bf16.mxu1 %v6606_v49  ;;  %v6670_v49 = vld [vmem:[%s9451_s3 + $0x48] ss:$16 sps:$4 sm:$0xff]  }
 0x200   :  { %1929 = vmatpush1.bf16.msra.mxu1 %v6604_v8  ;;  %v6675_v8 = vld [vmem:[%s9451_s3 + $0x6c] ss:$16 sps:$4 sm:$0xff]  }
 0x201   :  { %1930 = vmatprep.subr.bf16.mxu1 %v6612_v9  ;;  %v6673_v9 = vld [vmem:[%s9451_s3 + $0x68] ss:$16 sps:$4 sm:$0xff]  }
 0x204   :  { %1931 = vmatpush1.bf16.msra.mxu1 %v6610_v10  ;;  %v6678_v10 = vld [vmem:[%s9451_s3 + $0x8c] ss:$16 sps:$4 sm:$0xff]  }
 0x205   :  { %1932 = vmatprep.subr.bf16.mxu1 %v6618_v11  ;;  %v6676_v11 = vld [vmem:[%s9451_s3 + $0x88] ss:$16 sps:$4 sm:$0xff]  }
 0x208   :  { %1933 = vmatpush1.bf16.msra.mxu1 %v6616_v12  ;;  %v6681_v12 = vld [vmem:[%s9451_s3 + $0xac] ss:$16 sps:$4 sm:$0xff]  }
 0x209   :  { %1934 = vmatprep.subr.bf16.mxu1 %v6624_v14  ;;  %v6679_v14 = vld [vmem:[%s9451_s3 + $0xa8] ss:$16 sps:$4 sm:$0xff]  }
 0x20c   :  { %1935 = vmatpush1.bf16.msra.mxu1 %v6622_v15  ;;  %v6684_v15 = vld [vmem:[%s9451_s3 + $0xcc] ss:$16 sps:$4 sm:$0xff]  }
 0x20d   :  { %1936 = vmatprep.subr.bf16.mxu1 %v6630_v17  ;;  %v6682_v17 = vld [vmem:[%s9451_s3 + $0xc8] ss:$16 sps:$4 sm:$0xff]  }
 0x210   :  { %1937 = vmatpush1.bf16.msra.mxu1 %v6628_v18  ;;  %v6687_v18 = vld [vmem:[%s9451_s3 + $0xec] ss:$16 sps:$4 sm:$0xff]  }
 0x211   :  { %1938 = vmatprep.subr.bf16.mxu1 %v6636_v20  ;;  %v6685_v20 = vld [vmem:[%s9451_s3 + $0xe8] ss:$16 sps:$4 sm:$0xff]  }
 0x214   :  { %1939 = vmatpush1.bf16.msra.mxu1 %v6634_v21  ;;  %v6690_v21 = vld [vmem:[%s9451_s3 + $0x10c] ss:$16 sps:$4 sm:$0xff]  }
 0x215   :  { %1940 = vmatprep.subr.bf16.mxu1 %v6642_v23  ;;  %v6688_v23 = vld [vmem:[%s9451_s3 + $0x108] ss:$16 sps:$4 sm:$0xff]  }
 0x218   :  { %1941 = vmatpush1.bf16.msra.mxu1 %v6640_v24  ;;  %v6693_v24 = vld [vmem:[%s9451_s3 + $0x12c] ss:$16 sps:$4 sm:$0xff]  }
 0x219   :  { %1942 = vmatprep.subr.bf16.mxu1 %v6648_v26  ;;  %v6691_v26 = vld [vmem:[%s9451_s3 + $0x128] ss:$16 sps:$4 sm:$0xff]  }
 0x21c   :  { %1943 = vmatpush1.bf16.msra.mxu1 %v6646_v27  ;;  %v6696_v27 = vld [vmem:[%s9451_s3 + $0x14c] ss:$16 sps:$4 sm:$0xff]  }
 0x21d   :  { %1944 = vmatprep.subr.bf16.mxu1 %v6654_v22  ;;  %v6697_v22 = vld [vmem:[%s9451_s3 + $0x168] ss:$16 sps:$4 sm:$0xff]  }
 0x220   :  { %1945 = vmatpush1.bf16.msra.mxu1 %v6652_v30  ;;  %v6702_v30 = vld [vmem:[%s9451_s3 + $0x18c] ss:$16 sps:$4 sm:$0xff]  }
 0x221   :  { %1946 = vmatprep.subr.bf16.mxu1 %v6660_v33  ;;  %v6703_v33 = vld [vmem:[%s9451_s3 + $0x1a8] ss:$16 sps:$4 sm:$0xff]  }
 0x224   :  { %1947 = vmatpush1.bf16.msra.mxu1 %v6658_v34  ;;  %v6708_v34 = vld [vmem:[%s9451_s3 + $0x1cc] ss:$16 sps:$4 sm:$0xff]  }
 0x225   :  { %1957 = vmatprep.subr.bf16.mxu1 %v6666_v37  ;;  %v6709_v37 = vld [vmem:[%s9451_s3 + $0x1e8] ss:$16 sps:$4 sm:$0xff]  }
 0x2ba   :  { %v1491_v54 = vpop.f32.mrb[4].mxu1 }
 0x2bb   :  { %v1510_v56 = vmul.f32 %v1503_v46, %v1491_v54  ;;  %v1493_v57 = vpop.f32.mrb[5].mxu1  ;;  %v6723_v46 = vld [vmem:[%s9452_s1 + $0x64] ss:$16 sps:$4 sm:$0xff]   ;;  %v6730_v54 = vld [vmem:[%s9452_s1 + $0xc0] ss:$16 sps:$4 sm:$0xff]  }
 0x2bc   :  { %v1511_v58 = vmul.f32 %v1507_v47, %v1493_v57  ;;  %v1495_v59 = vpop.f32.mrb[6].mxu1  ;;  %v6721_v47 = vld [vmem:[%s9452_s1 + $0x60] ss:$16 sps:$4 sm:$0xff]   ;;  %v6738_v57 = vld [vmem:[%s9452_s1 + $0x104] ss:$16 sps:$4 sm:$0xff]  }
 0x2bd   :  { %v1524_v61 = vadd.f32 %v1517_v51, %v1510_v56  ;;  %v1496_v62 = vpop.f32.mrb[7].mxu1  ;;  %v6729_v51 = vld [vmem:[%s9452_s1 + $0xa4] ss:$16 sps:$4 sm:$0xff]   ;;  %v6733_v56 = vld [vmem:[%s9452_s1 + $0xe0] ss:$16 sps:$4 sm:$0xff]  }
 0x2be   :  { %v1525_v25 = vadd.f32 %v1521_v55, %v1511_v58  ;;  %v6735_v55 = vld [vmem:[%s9452_s1 + $0xe4] ss:$16 sps:$4 sm:$0xff]   ;;  %v6736_v58 = vld [vmem:[%s9452_s1 + $0x100] ss:$16 sps:$4 sm:$0xff]  }
 0x2bf   :  { %v1526_v0 = vadd.f32 %v1524_v61, %v1261_v60  ;;  %v6741_v59 = vld [vmem:[%s9452_s1 + $0x124] ss:$16 sps:$4 sm:$0xff]   ;;  %v6739_v60 = vld [vmem:[%s9452_s1 + $0x120] ss:$16 sps:$4 sm:$0xff]  }
 0x2c0   :  { %v1527_v19 = vadd.f32 %v1525_v25, %v1262_v63  ;;  %v6744_v61 = vld [vmem:[%s9452_s1 + $0x144] ss:$16 sps:$4 sm:$0xff]   ;;  %v6742_v62 = vld [vmem:[%s9452_s1 + $0x140] ss:$16 sps:$4 sm:$0xff]  }
 0x2c1   :  { %v1528_v1 = vmax.f32 %v1526_v0, 0.0  ;;  %v6747_v63 = vld [vmem:[%s9452_s1 + $0x164] ss:$16 sps:$4 sm:$0xff]   ;;  %v6745_v25 = vld [vmem:[%s9452_s1 + $0x160] ss:$16 sps:$4 sm:$0xff]  }
 0x2c2   :  { %v1529_v2 = vmax.f32 %v1527_v19, 0.0  ;;  %v6750_v0 = vld [vmem:[%s9452_s1 + $0x184] ss:$16 sps:$4 sm:$0xff]   ;;  %v6748_v19 = vld [vmem:[%s9452_s1 + $0x180] ss:$16 sps:$4 sm:$0xff]  }
 0x2c3   :  { %v7884_v4 = vpack.c.bf16 %v1528_v1, %v1528_v1  ;;  %v6753_v1 = vld [vmem:[%s9452_s1 + $0x1a4] ss:$16 sps:$4 sm:$0xff]  }
 0x2c4   :  { %v7879_v3 = vpack.c.bf16 %v1529_v2, %v1529_v2  ;;  %v6751_v2 = vld [vmem:[%s9452_s1 + $0x1a0] ss:$16 sps:$4 sm:$0xff]  }
 0x2c6   :  { %1948 = vmatprep.mubr.bf16.mxu1 %v7879_v3  ;;  %2507 = vmatprep.mubr.bf16.mxu0 %v7879_v3 }
 0x2c7   :  { %1949 = vmatmul.mubr.bf16.vlgmr.msra.gmra.mrb[8].mxu1 %v7884_v4  ;;  %2508 = vmatmul.mubr.bf16.vlgmr.msra.gmra.mrb[4].mxu0 %v7884_v4 }
 0x2c8   :  { %1958 = vmatpush1.bf16.msra.mxu1 %v6664_v16  ;;  %1989 = vmatprep.mubr.bf16.mxu1 %v7879_v3  ;;  %v6754_v16 = vld [vmem:[%s9452_s1 + $0x1c0] ss:$16 sps:$4 sm:$0xff]  }
 0x2c9   :  { %1959 = vmatprep.subr.bf16.mxu1 %v6669_v5  ;;  %v6759_v5 = vld [vmem:[%s9452_s1 + $0x1e4] ss:$16 sps:$4 sm:$0xff]  }
 0x2cc   :  { %1960 = vmatpush1.bf16.msra.mxu1 %v6667_v6  ;;  %v6757_v6 = vld [vmem:[%s9452_s1 + $0x1e0] ss:$16 sps:$4 sm:$0xff]  }
 0x2cd   :  { %1961 = vmatprep.subr.bf16.mxu1 %v6672_v7  ;;  %v6760_v7 = vld [vmem:[%s9422_s16] ss:$16 sps:$4 sm:$0xff]  }
 0x2d0   :  { %1962 = vmatpush1.bf16.msra.mxu1 %v6670_v49  ;;  %v6762_v49 = vld [vmem:[%s9422_s16 + $0x4] ss:$16 sps:$4 sm:$0xff]  }
 0x2d1   :  { %1963 = vmatprep.subr.bf16.mxu1 %v6675_v8  ;;  %v6763_v8 = vld [vmem:[%s9422_s16 + $0x8] ss:$16 sps:$4 sm:$0xff]  }
 0x2d4   :  { %1964 = vmatpush1.bf16.msra.mxu1 %v6673_v9  ;;  %v6765_v9 = vld [vmem:[%s9422_s16 + $0xc] ss:$16 sps:$4 sm:$0xff]  }
 0x2d5   :  { %1965 = vmatprep.subr.bf16.mxu1 %v6678_v10  ;;  %v6768_v10 = vld [vmem:[%s9422_s16 + $0x24] ss:$16 sps:$4 sm:$0xff]   ;;  %3426 = vmatprep.subr.bf16.mxu0 %v6765_v9 }
 0x2d6   :  { %3427 = vmatpush1.bf16.msra.mxu0 %v6763_v8  ;;  %v6847_v8 = vld [vmem:[%s9422_s16 + $0x1c8] ss:$16 sps:$4 sm:$0xff]  }
 0x2d8   :  { %1966 = vmatpush1.bf16.msra.mxu1 %v6676_v11  ;;  %v6769_v11 = vld [vmem:[%s9422_s16 + $0x28] ss:$16 sps:$4 sm:$0xff]  }
 0x2d9   :  { %1967 = vmatprep.subr.bf16.mxu1 %v6681_v12  ;;  %v6771_v12 = vld [vmem:[%s9422_s16 + $0x2c] ss:$16 sps:$4 sm:$0xff]  }
 0x2da   :  { %3428 = vmatprep.subr.bf16.mxu0 %v6771_v12  ;;  %v6852_v12 = vld [vmem:[%s9422_s16 + $0x1e4] ss:$16 sps:$4 sm:$0xff]  }
 0x2db   :  { %3429 = vmatpush1.bf16.msra.mxu0 %v6769_v11 }
 0x2dc   :  { %1968 = vmatpush1.bf16.msra.mxu1 %v6679_v14  ;;  %v6774_v14 = vld [vmem:[%s9422_s16 + $0x44] ss:$16 sps:$4 sm:$0xff]  }
 0x2dd   :  { %1969 = vmatprep.subr.bf16.mxu1 %v6684_v15  ;;  %v6772_v15 = vld [vmem:[%s9422_s16 + $0x40] ss:$16 sps:$4 sm:$0xff]  }
 0x2e0   :  { %1970 = vmatpush1.bf16.msra.mxu1 %v6682_v17  ;;  %v6777_v17 = vld [vmem:[%s9422_s16 + $0x4c] ss:$16 sps:$4 sm:$0xff]  }
 0x2e1   :  { %1971 = vmatprep.subr.bf16.mxu1 %v6687_v18  ;;  %v6775_v18 = vld [vmem:[%s9422_s16 + $0x48] ss:$16 sps:$4 sm:$0xff]   ;;  %3430 = vmatprep.subr.bf16.mxu0 %v6777_v17 }
 0x2e2   :  { %3431 = vmatpush1.bf16.msra.mxu0 %v6775_v18  ;;  %v6853_v17 = vld [vmem:[%s9422_s16 + $0x1e8] ss:$16 sps:$4 sm:$0xff]   ;;  %v6858_v18 = vld [vmem:[%s9422_s16 + $0x204] ss:$16 sps:$4 sm:$0xff]  }
 0x2e4   :  { %1972 = vmatpush1.bf16.msra.mxu1 %v6685_v20  ;;  %v6780_v20 = vld [vmem:[%s9422_s16 + $0x64] ss:$16 sps:$4 sm:$0xff]  }
 0x2e5   :  { %1973 = vmatprep.subr.bf16.mxu1 %v6690_v21  ;;  %v6783_v21 = vld [vmem:[%s9422_s16 + $0x6c] ss:$16 sps:$4 sm:$0xff]  }
 0x2e6   :  { %3432 = vmatprep.subr.bf16.mxu0 %v6783_v21  ;;  %v8285_v21 = vsub.s32 2, %v7101_v13 }
 0x2e8   :  { %1974 = vmatpush1.bf16.msra.mxu1 %v6688_v23  ;;  %v6778_v23 = vld [vmem:[%s9422_s16 + $0x60] ss:$16 sps:$4 sm:$0xff]  }
 0x2e9   :  { %1975 = vmatprep.subr.bf16.mxu1 %v6693_v24  ;;  %v6781_v24 = vld [vmem:[%s9422_s16 + $0x68] ss:$16 sps:$4 sm:$0xff]  }
 0x2ea   :  { %3433 = vmatpush1.bf16.msra.mxu0 %v6781_v24 }
 0x2ec   :  { %1976 = vmatpush1.bf16.msra.mxu1 %v6691_v26  ;;  %v6786_v26 = vld [vmem:[%s9422_s16 + $0x84] ss:$16 sps:$4 sm:$0xff]  }
 0x2ed   :  { %1977 = vmatprep.subr.bf16.mxu1 %v6696_v27  ;;  %v6789_v27 = vld [vmem:[%s9422_s16 + $0x8c] ss:$16 sps:$4 sm:$0xff]  }
 0x2ee   :  { %3434 = vmatprep.subr.bf16.mxu0 %v6789_v27 }
 0x2f0   :  { %1978 = vmatpush1.bf16.msra.mxu1 %v6694_v28  ;;  %v6784_v28 = vld [vmem:[%s9422_s16 + $0x80] ss:$16 sps:$4 sm:$0xff]  }
 0x2f1   :  { %1979 = vmatprep.subr.bf16.mxu1 %v6699_v29  ;;  %v6787_v29 = vld [vmem:[%s9422_s16 + $0x88] ss:$16 sps:$4 sm:$0xff]  }
 0x2f2   :  { %3435 = vmatpush1.bf16.msra.mxu0 %v6787_v29 }
 0x2f4   :  { %1980 = vmatpush1.bf16.msra.mxu1 %v6697_v22  ;;  %v6792_v22 = vld [vmem:[%s9422_s16 + $0xa4] ss:$16 sps:$4 sm:$0xff]  }
 0x2f5   :  { %1981 = vmatprep.subr.bf16.mxu1 %v6702_v30  ;;  %v6795_v30 = vld [vmem:[%s9422_s16 + $0xac] ss:$16 sps:$4 sm:$0xff]  }
 0x2f6   :  { %3436 = vmatprep.subr.bf16.mxu0 %v6795_v30 }
 0x2f8   :  { %1982 = vmatpush1.bf16.msra.mxu1 %v6700_v31  ;;  %v6790_v31 = vld [vmem:[%s9422_s16 + $0xa0] ss:$16 sps:$4 sm:$0xff]  }
 0x2f9   :  { %1983 = vmatprep.subr.bf16.mxu1 %v6705_v32  ;;  %v6793_v32 = vld [vmem:[%s9422_s16 + $0xa8] ss:$16 sps:$4 sm:$0xff]  }
 0x2fa   :  { %3437 = vmatpush1.bf16.msra.mxu0 %v6793_v32 }
 0x2fc   :  { %1984 = vmatpush1.bf16.msra.mxu1 %v6703_v33  ;;  %v6798_v33 = vld [vmem:[%s9422_s16 + $0xc4] ss:$16 sps:$4 sm:$0xff]  }
 0x2fd   :  { %1985 = vmatprep.subr.bf16.mxu1 %v6708_v34  ;;  %v6801_v34 = vld [vmem:[%s9422_s16 + $0xcc] ss:$16 sps:$4 sm:$0xff]  }
 0x2fe   :  { %3438 = vmatprep.subr.bf16.mxu0 %v6801_v34  ;;  %v8311_v34 = vld [vmem:[%s9425_s11] sm:$0xf] }
 0x300   :  { %1986 = vmatpush1.bf16.msra.mxu1 %v6706_v35  ;;  %v6796_v35 = vld [vmem:[%s9422_s16 + $0xc0] ss:$16 sps:$4 sm:$0xff]  }
 0x301   :  { %1987 = vmatprep.subr.bf16.mxu1 %v6711_v36  ;;  %v6799_v36 = vld [vmem:[%s9422_s16 + $0xc8] ss:$16 sps:$4 sm:$0xff]  }
 0x302   :  { %3439 = vmatpush1.bf16.msra.mxu0 %v6799_v36  ;;  %v8318_v36 = vld [vmem:[%s9426_s12] sm:$0xf] }
 0x304   :  { %1988 = vmatpush1.bf16.msra.mxu1 %v6709_v37  ;;  %v6804_v37 = vld [vmem:[%s9422_s16 + $0xe4] ss:$16 sps:$4 sm:$0xff]  }
 0x305   :  { %2434 = vmatprep.subr.bf16.mxu1 %v6714_v38  ;;  %v6807_v38 = vld [vmem:[%s9422_s16 + $0xec] ss:$16 sps:$4 sm:$0xff]  }
 0x306   :  { %3440 = vmatprep.subr.bf16.mxu0 %v6807_v38  ;;  %v2525_v38 = vrot.slane %v8311_v34, %v7734_v43 }
 0x307   :  { %1990 = vmatmul.mubr.bf16.vlgmr.msra.gmra.mrb[12].mxu1 %v7884_v4 }
 0x308   :  { %2435 = vmatpush1.bf16.msra.mxu1 %v6712_v39  ;;  %2466 = vmatprep.mubr.bf16.mxu1 %v7879_v3  ;;  %v6756_v3 = vld [vmem:[%s9452_s1 + $0x1c4] ss:$16 sps:$4 sm:$0xff]   ;;  %v6802_v39 = vld [vmem:[%s9422_s16 + $0xe0] ss:$16 sps:$4 sm:$0xff]  }
 0x309   :  { %2436 = vmatprep.subr.bf16.mxu1 %v6717_v40  ;;  %v6805_v40 = vld [vmem:[%s9422_s16 + $0xe8] ss:$16 sps:$4 sm:$0xff]  }
 0x30a   :  { %3441 = vmatpush1.bf16.msra.mxu0 %v6805_v40 }
 0x30c   :  { %2437 = vmatpush1.bf16.msra.mxu1 %v6715_v42  ;;  %v6810_v42 = vld [vmem:[%s9422_s16 + $0x104] ss:$16 sps:$4 sm:$0xff]  }
 0x30d   :  { %2438 = vmatprep.subr.bf16.mxu1 %v6720_v44  ;;  %v6813_v44 = vld [vmem:[%s9422_s16 + $0x10c] ss:$16 sps:$4 sm:$0xff]  }
 0x30e   :  { %3442 = vmatprep.subr.bf16.mxu0 %v6813_v44 }
 0x310   :  { %2439 = vmatpush1.bf16.msra.mxu1 %v6718_v45  ;;  %v6808_v45 = vld [vmem:[%s9422_s16 + $0x100] ss:$16 sps:$4 sm:$0xff]  }
 0x311   :  { %2440 = vmatprep.subr.bf16.mxu1 %v6723_v46  ;;  %v6811_v46 = vld [vmem:[%s9422_s16 + $0x108] ss:$16 sps:$4 sm:$0xff]  }
 0x312   :  { %3443 = vmatpush1.bf16.msra.mxu0 %v6811_v46 }
 0x314   :  { %2441 = vmatpush1.bf16.msra.mxu1 %v6721_v47  ;;  %v6816_v47 = vld [vmem:[%s9422_s16 + $0x124] ss:$16 sps:$4 sm:$0xff]  }
 0x315   :  { %2442 = vmatprep.subr.bf16.mxu1 %v6726_v48  ;;  %v6819_v48 = vld [vmem:[%s9422_s16 + $0x12c] ss:$16 sps:$4 sm:$0xff]  }
 0x316   :  { %3444 = vmatprep.subr.bf16.mxu0 %v6819_v48 }
 0x318   :  { %2443 = vmatpush1.bf16.msra.mxu1 %v6724_v50  ;;  %v6814_v50 = vld [vmem:[%s9422_s16 + $0x120] ss:$16 sps:$4 sm:$0xff]  }
 0x319   :  { %2444 = vmatprep.subr.bf16.mxu1 %v6729_v51  ;;  %v6817_v51 = vld [vmem:[%s9422_s16 + $0x128] ss:$16 sps:$4 sm:$0xff]  }
 0x31a   :  { %3445 = vmatpush1.bf16.msra.mxu0 %v6817_v51 }
 0x31c   :  { %2445 = vmatpush1.bf16.msra.mxu1 %v6727_v52  ;;  %v6822_v52 = vld [vmem:[%s9422_s16 + $0x144] ss:$16 sps:$4 sm:$0xff]  }
 0x31d   :  { %2446 = vmatprep.subr.bf16.mxu1 %v6732_v53  ;;  %v6825_v53 = vld [vmem:[%s9422_s16 + $0x14c] ss:$16 sps:$4 sm:$0xff]  }
 0x31e   :  { %3446 = vmatprep.subr.bf16.mxu0 %v6825_v53 }
 0x320   :  { %2447 = vmatpush1.bf16.msra.mxu1 %v6730_v54  ;;  %v6820_v54 = vld [vmem:[%s9422_s16 + $0x140] ss:$16 sps:$4 sm:$0xff]  }
 0x321   :  { %2448 = vmatprep.subr.bf16.mxu1 %v6735_v55  ;;  %v6823_v55 = vld [vmem:[%s9422_s16 + $0x148] ss:$16 sps:$4 sm:$0xff]  }
 0x322   :  { %3447 = vmatpush1.bf16.msra.mxu0 %v6823_v55 }
 0x324   :  { %2449 = vmatpush1.bf16.msra.mxu1 %v6733_v56  ;;  %v6828_v56 = vld [vmem:[%s9422_s16 + $0x164] ss:$16 sps:$4 sm:$0xff]  }
 0x325   :  { %2450 = vmatprep.subr.bf16.mxu1 %v6738_v57  ;;  %v6831_v57 = vld [vmem:[%s9422_s16 + $0x16c] ss:$16 sps:$4 sm:$0xff]  }
 0x326   :  { %3448 = vmatprep.subr.bf16.mxu0 %v6831_v57 }
 0x328   :  { %2451 = vmatpush1.bf16.msra.mxu1 %v6736_v58  ;;  %v6826_v58 = vld [vmem:[%s9422_s16 + $0x160] ss:$16 sps:$4 sm:$0xff]  }
 0x329   :  { %2452 = vmatprep.subr.bf16.mxu1 %v6741_v59  ;;  %v6829_v59 = vld [vmem:[%s9422_s16 + $0x168] ss:$16 sps:$4 sm:$0xff]  }
 0x32a   :  { %3449 = vmatpush1.bf16.msra.mxu0 %v6829_v59  ;;  %v6856_v59 = vld [vmem:[%s9422_s16 + $0x200] ss:$16 sps:$4 sm:$0xff]  }
 0x32c   :  { %2453 = vmatpush1.bf16.msra.mxu1 %v6739_v60  ;;  %v6834_v60 = vld [vmem:[%s9422_s16 + $0x184] ss:$16 sps:$4 sm:$0xff]  }
 0x32d   :  { %2454 = vmatprep.subr.bf16.mxu1 %v6744_v61  ;;  %v6837_v61 = vld [vmem:[%s9422_s16 + $0x18c] ss:$16 sps:$4 sm:$0xff]  }
 0x32e   :  { %3450 = vmatprep.subr.bf16.mxu0 %v6837_v61 }
 0x330   :  { %2455 = vmatpush1.bf16.msra.mxu1 %v6742_v62  ;;  %v6832_v62 = vld [vmem:[%s9422_s16 + $0x180] ss:$16 sps:$4 sm:$0xff]  }
 0x331   :  { %2456 = vmatprep.subr.bf16.mxu1 %v6747_v63  ;;  %v6835_v63 = vld [vmem:[%s9422_s16 + $0x188] ss:$16 sps:$4 sm:$0xff]  }
 0x332   :  { %3451 = vmatpush1.bf16.msra.mxu0 %v6835_v63  ;;  %v6867_v63 = vld [vmem:[%s9422_s16 + $0x22c] ss:$16 sps:$4 sm:$0xff]  }
 0x334   :  { %2457 = vmatpush1.bf16.msra.mxu1 %v6745_v25  ;;  %v6840_v25 = vld [vmem:[%s9422_s16 + $0x1a4] ss:$16 sps:$4 sm:$0xff]  }
 0x335   :  { %2458 = vmatprep.subr.bf16.mxu1 %v6750_v0  ;;  %v6843_v0 = vld [vmem:[%s9422_s16 + $0x1ac] ss:$16 sps:$4 sm:$0xff]  }
 0x336   :  { %3452 = vmatprep.subr.bf16.mxu0 %v6843_v0  ;;  %v6862_v0 = vld [vmem:[%s9422_s16 + $0x220] ss:$16 sps:$4 sm:$0xff]  }
 0x338   :  { %2459 = vmatpush1.bf16.msra.mxu1 %v6748_v19  ;;  %v6838_v19 = vld [vmem:[%s9422_s16 + $0x1a0] ss:$16 sps:$4 sm:$0xff]  }
 0x339   :  { %2460 = vmatprep.subr.bf16.mxu1 %v6753_v1  ;;  %v6841_v1 = vld [vmem:[%s9422_s16 + $0x1a8] ss:$16 sps:$4 sm:$0xff]  }
 0x33a   :  { %3453 = vmatpush1.bf16.msra.mxu0 %v6841_v1  ;;  %v6870_v1 = vld [vmem:[%s9422_s16 + $0x244] ss:$16 sps:$4 sm:$0xff]  }
 0x33c   :  { %2461 = vmatpush1.bf16.msra.mxu1 %v6751_v2 }
 0x33d   :  { %2462 = vmatprep.subr.bf16.mxu1 %v6756_v3 }
 0x340   :  { %2463 = vmatpush1.bf16.msra.mxu1 %v6754_v16  ;;  %v6846_v16 = vld [vmem:[%s9422_s16 + $0x1c4] ss:$16 sps:$4 sm:$0xff]  }
 0x341   :  { %2464 = vmatprep.subr.bf16.mxu1 %v6759_v5  ;;  %v6849_v5 = vld [vmem:[%s9422_s16 + $0x1cc] ss:$16 sps:$4 sm:$0xff]  }
 0x342   :  { %3454 = vmatprep.subr.bf16.mxu0 %v6849_v5  ;;  %v6868_v5 = vld [vmem:[%s9422_s16 + $0x240] ss:$16 sps:$4 sm:$0xff]  }
 0x343   :  { %3455 = vmatpush1.bf16.msra.mxu0 %v6847_v8  ;;  %v6879_v8 = vld [vmem:[%s9422_s16 + $0x26c] ss:$16 sps:$4 sm:$0xff]  }
 0x344   :  { %2465 = vmatpush1.bf16.msra.mxu1 %v6757_v6 }
 0x345   :  { %3344 = vmatprep.subr.bf16.mxu1 %v6762_v49  ;;  %v6844_v49 = vld [vmem:[%s9422_s16 + $0x1c0] ss:$16 sps:$4 sm:$0xff]  }
 0x347   :  { %2467 = vmatmul.mubr.bf16.vlgmr.msra.gmra.mrb[16].mxu1 %v7884_v4  ;;  %v6766_v4 = vld [vmem:[%s9422_s16 + $0x20] ss:$16 sps:$4 sm:$0xff]  }
 0x348   :  { %3345 = vmatpush1.bf16.msra.mxu1 %v6760_v7 }
 0x349   :  { %3346 = vmatprep.subr.bf16.mxu1 %v6768_v10 }
 0x34c   :  { %3347 = vmatpush1.bf16.msra.mxu1 %v6766_v4 }
 0x34d   :  { %3348 = vmatprep.subr.bf16.mxu1 %v6774_v14  ;;  %v6855_v14 = vld [vmem:[%s9422_s16 + $0x1ec] ss:$16 sps:$4 sm:$0xff]  }
 0x34e   :  { %3456 = vmatprep.subr.bf16.mxu0 %v6855_v14  ;;  %v6883_v14 = vld [vmem:[%s9422_s16 + $0x288] ss:$16 sps:$4 sm:$0xff]  }
 0x34f   :  { %3457 = vmatpush1.bf16.msra.mxu0 %v6853_v17  ;;  %v6891_v17 = vld [vmem:[%s9422_s16 + $0x2ac] ss:$16 sps:$4 sm:$0xff]  }
 0x350   :  { %3349 = vmatpush1.bf16.msra.mxu1 %v6772_v15  ;;  %v6850_v15 = vld [vmem:[%s9422_s16 + $0x1e0] ss:$16 sps:$4 sm:$0xff]  }
 0x351   :  { %3350 = vmatprep.subr.bf16.mxu1 %v6780_v20  ;;  %v6861_v20 = vld [vmem:[%s9422_s16 + $0x20c] ss:$16 sps:$4 sm:$0xff]  }
 0x352   :  { %3467 = vmatprep.subr.bf16.mxu0 %v6861_v20  ;;  %v6889_v20 = vld [vmem:[%s9422_s16 + $0x2a8] ss:$16 sps:$4 sm:$0xff]  }
 0x354   :  { %3351 = vmatpush1.bf16.msra.mxu1 %v6778_v23  ;;  %v8290_v23 = vld [vmem:[%s9423_s14] sm:$0xf] }
 0x355   :  { %3352 = vmatprep.subr.bf16.mxu1 %v6786_v26  ;;  %v2011_v24 = vrot.slane %v8290_v23, %v8285_v21  ;;  %v8297_v26 = vld [vmem:[%s9424_s15] sm:$0xf] }
 0x356   :  { %v2037_v27 = vrot.slane %v8297_v26, %v8285_v21 }
 0x358   :  { %3353 = vmatpush1.bf16.msra.mxu1 %v6784_v28 }
 0x359   :  { %3354 = vmatprep.subr.bf16.mxu1 %v6792_v22 }
 0x35c   :  { %3355 = vmatpush1.bf16.msra.mxu1 %v6790_v31 }
 0x35d   :  { %3356 = vmatprep.subr.bf16.mxu1 %v6798_v33  ;;  %v8306_v33 = vsub.s32 3, %v7101_v13 }
 0x35f   :  { %v2559_v40 = vrot.slane %v8318_v36, %v8306_v33 }
 0x360   :  { %3357 = vmatpush1.bf16.msra.mxu1 %v6796_v35  ;;  %v2533_v35 = vrot.slane %v8311_v34, %v8306_v33 }
 0x361   :  { %3358 = vmatprep.subr.bf16.mxu1 %v6804_v37  ;;  %v2521_v37 = vrot.slane %v8311_v34, %v7728_v41 }
 0x364   :  { %3359 = vmatpush1.bf16.msra.mxu1 %v6802_v39 }
 0x365   :  { %3360 = vmatprep.subr.bf16.mxu1 %v6810_v42  ;;  %v2547_v42 = vrot.slane %v8318_v36, %v7728_v41 }
 0x368   :  { %3361 = vmatpush1.bf16.msra.mxu1 %v6808_v45  ;;  %v2551_v45 = vrot.slane %v8318_v36, %v7734_v43 }
 0x369   :  { %3362 = vmatprep.subr.bf16.mxu1 %v6816_v47 }
 0x36c   :  { %3363 = vmatpush1.bf16.msra.mxu1 %v6814_v50 }
 0x36d   :  { %3364 = vmatprep.subr.bf16.mxu1 %v6822_v52 }
 0x370   :  { %3365 = vmatpush1.bf16.msra.mxu1 %v6820_v54 }
 0x371   :  { %3366 = vmatprep.subr.bf16.mxu1 %v6828_v56 }
 0x374   :  { %3367 = vmatpush1.bf16.msra.mxu1 %v6826_v58 }
 0x375   :  { %3368 = vmatprep.subr.bf16.mxu1 %v6834_v60  ;;  %v6859_v60 = vld [vmem:[%s9422_s16 + $0x208] ss:$16 sps:$4 sm:$0xff]  }
 0x378   :  { %3369 = vmatpush1.bf16.msra.mxu1 %v6832_v62  ;;  %v6864_v62 = vld [vmem:[%s9422_s16 + $0x224] ss:$16 sps:$4 sm:$0xff]  }
 0x379   :  { %3370 = vmatprep.subr.bf16.mxu1 %v6840_v25 }
 0x37c   :  { %3371 = vmatpush1.bf16.msra.mxu1 %v6838_v19  ;;  %v6865_v19 = vld [vmem:[%s9422_s16 + $0x228] ss:$16 sps:$4 sm:$0xff]  }
 0x37d   :  { %3372 = vmatprep.subr.bf16.mxu1 %v6846_v16  ;;  %v6873_v16 = vld [vmem:[%s9422_s16 + $0x24c] ss:$16 sps:$4 sm:$0xff]  }
 0x380   :  { %3373 = vmatpush1.bf16.msra.mxu1 %v6844_v49  ;;  %v6876_v49 = vld [vmem:[%s9422_s16 + $0x264] ss:$16 sps:$4 sm:$0xff]  }
 0x381   :  { %3374 = vmatprep.subr.bf16.mxu1 %v6852_v12  ;;  %v6880_v12 = vld [vmem:[%s9422_s16 + $0x280] ss:$16 sps:$4 sm:$0xff]  }
 0x384   :  { %3375 = vmatpush1.bf16.msra.mxu1 %v6850_v15  ;;  %v6888_v15 = vld [vmem:[%s9422_s16 + $0x2a4] ss:$16 sps:$4 sm:$0xff]  }
 0x385   :  { %3385 = vmatprep.subr.bf16.mxu1 %v6858_v18  ;;  %v6886_v18 = vld [vmem:[%s9422_s16 + $0x2a0] ss:$16 sps:$4 sm:$0xff]  }
 0x39a   :  { %v8248_v2 = vpop.f32.mrb[8].mxu1  ;;  %v8250_v3 = vpop.f32.mrb[4].mxu0 }
 0x39b   :  { %v8258_v6 = vpop.f32.mrb[9].mxu1  ;;  %v2511_v7 = vpop.f32.mrb[5].mxu0 }
 0x39c   :  { %v1954_v9 = vpop.f32.mrb[10].mxu1  ;;  %v2513_v4 = vpop.f32.mrb[6].mxu0  ;;  %v2541_v39 = vmul.f32 %v2533_v35, %v2511_v7  ;;  %v6871_v7 = vld [vmem:[%s9422_s16 + $0x248] ss:$16 sps:$4 sm:$0xff]   ;;  %v6898_v35 = vld [vmem:[%s9422_s16 + $0x2e0] ss:$16 sps:$4 sm:$0xff]  }
 0x39d   :  { %v1955_v10 = vpop.f32.mrb[11].mxu1  ;;  %v2514_v11 = vpop.f32.mrb[7].mxu0  ;;  %v6874_v9 = vld [vmem:[%s9422_s16 + $0x260] ss:$16 sps:$4 sm:$0xff]   ;;  %v6877_v4 = vld [vmem:[%s9422_s16 + $0x268] ss:$16 sps:$4 sm:$0xff]  }
 0x39e   :  { %v2567_v51 = vadd.f32 %v2559_v40, %v2541_v39  ;;  %v6882_v10 = vld [vmem:[%s9422_s16 + $0x284] ss:$16 sps:$4 sm:$0xff]   ;;  %v6885_v11 = vld [vmem:[%s9422_s16 + $0x28c] ss:$16 sps:$4 sm:$0xff]   ;;  %v6904_v40 = vld [vmem:[%s9422_s16 + $0x300] ss:$16 sps:$4 sm:$0xff]  }
 0x39f   :  { %v6909_v39 = vld [vmem:[%s9422_s16 + $0x30c] ss:$16 sps:$4 sm:$0xff]  }
 0x3a0   :  { %v2571_v57 = vmax.f32 %v2567_v51, 0.0  ;;  %v6916_v51 = vld [vmem:[%s9422_s16 + $0x340] ss:$16 sps:$4 sm:$0xff]  }
 0x3a2   :  { %v2575_v25 = vpack.c.bf16 %v2571_v57, %v2571_v57  ;;  %v6930_v57 = vld [vmem:[%s9422_s16 + $0x384] ss:$16 sps:$4 sm:$0xff]  }
 0x3da   :  { %v1991_v28 = vpop.f32.mrb[12].mxu1 }
 0x3db   :  { %v2022_v29 = vmul.f32 %v2011_v24, %v1991_v28  ;;  %v8301_v22 = vpop.f32.mrb[13].mxu1  ;;  %v6894_v24 = vld [vmem:[%s9422_s16 + $0x2c4] ss:$16 sps:$4 sm:$0xff]   ;;  %v6892_v28 = vld [vmem:[%s9422_s16 + $0x2c0] ss:$16 sps:$4 sm:$0xff]  }
 0x3dc   :  { %v1995_v30 = vpop.f32.mrb[14].mxu1 }
 0x3dd   :  { %v8303_v31 = vadd.f32 %v2037_v27, %v2022_v29  ;;  %v1996_v32 = vpop.f32.mrb[15].mxu1  ;;  %v6897_v27 = vld [vmem:[%s9422_s16 + $0x2cc] ss:$16 sps:$4 sm:$0xff]   ;;  %v6895_v29 = vld [vmem:[%s9422_s16 + $0x2c8] ss:$16 sps:$4 sm:$0xff]  }
 0x3de   :  { %v6900_v30 = vld [vmem:[%s9422_s16 + $0x2e4] ss:$16 sps:$4 sm:$0xff]   ;;  %v6903_v32 = vld [vmem:[%s9422_s16 + $0x2ec] ss:$16 sps:$4 sm:$0xff]  }
 0x41a   :  { %v2468_v44 = vpop.f32.mrb[16].mxu1 }
 0x41b   :  { %v2538_v46 = vmul.f32 %v2521_v37, %v2468_v44  ;;  %v2470_v47 = vpop.f32.mrb[17].mxu1  ;;  %v6901_v37 = vld [vmem:[%s9422_s16 + $0x2e8] ss:$16 sps:$4 sm:$0xff]   ;;  %v6912_v44 = vld [vmem:[%s9422_s16 + $0x324] ss:$16 sps:$4 sm:$0xff]  }
 0x41c   :  { %v2539_v48 = vmul.f32 %v2525_v38, %v2470_v47  ;;  %v2472_v50 = vpop.f32.mrb[18].mxu1  ;;  %v6906_v38 = vld [vmem:[%s9422_s16 + $0x304] ss:$16 sps:$4 sm:$0xff]   ;;  %v6913_v47 = vld [vmem:[%s9422_s16 + $0x328] ss:$16 sps:$4 sm:$0xff]  }
 0x41d   :  { %v2564_v52 = vadd.f32 %v2547_v42, %v2538_v46  ;;  %v2473_v53 = vpop.f32.mrb[19].mxu1  ;;  %v6907_v42 = vld [vmem:[%s9422_s16 + $0x308] ss:$16 sps:$4 sm:$0xff]   ;;  %v6910_v46 = vld [vmem:[%s9422_s16 + $0x320] ss:$16 sps:$4 sm:$0xff]  }
 0x41e   :  { %v2565_v54 = vadd.f32 %v2551_v45, %v2539_v48  ;;  %v6915_v45 = vld [vmem:[%s9422_s16 + $0x32c] ss:$16 sps:$4 sm:$0xff]   ;;  %v6918_v48 = vld [vmem:[%s9422_s16 + $0x344] ss:$16 sps:$4 sm:$0xff]  }
 0x41f   :  { %v2568_v55 = vmax.f32 %v2564_v52, 0.0  ;;  %v6921_v50 = vld [vmem:[%s9422_s16 + $0x34c] ss:$16 sps:$4 sm:$0xff]   ;;  %v6919_v52 = vld [vmem:[%s9422_s16 + $0x348] ss:$16 sps:$4 sm:$0xff]  }
 0x420   :  { %v2569_v56 = vmax.f32 %v2565_v54, 0.0  ;;  %v6924_v53 = vld [vmem:[%s9422_s16 + $0x364] ss:$16 sps:$4 sm:$0xff]   ;;  %v6927_v54 = vld [vmem:[%s9422_s16 + $0x36c] ss:$16 sps:$4 sm:$0xff]  }
 0x421   :  { %v2572_v61 = vpack.c.bf16 %v2568_v55, %v2568_v55  ;;  %v6922_v55 = vld [vmem:[%s9422_s16 + $0x360] ss:$16 sps:$4 sm:$0xff]  }
 0x422   :  { %v2573_v58 = vpack.c.bf16 %v2569_v56, %v2569_v56  ;;  %v6925_v56 = vld [vmem:[%s9422_s16 + $0x368] ss:$16 sps:$4 sm:$0xff]  }
 0x424   :  { %3376 = vmatprep.mubr.bf16.mxu1 %v2573_v58  ;;  %3458 = vmatprep.mubr.bf16.mxu0 %v2573_v58  ;;  %v6933_v58 = vld [vmem:[%s9422_s16 + $0x38c] ss:$16 sps:$4 sm:$0xff]  }
 0x425   :  { %3377 = vmatmul.mubr.bf16.vlgmr.msra.gmra.mrb[20].mxu1 %v2572_v61  ;;  %3459 = vmatmul.mubr.bf16.vlgmr.msra.gmra.mrb[8].mxu0 %v2572_v61  ;;  %v2529_v61 = vrot.slane %v8311_v34, %v8285_v21  ;;  %v6937_v34 = vld [vmem:[%s9422_s16 + $0x3a8] ss:$16 sps:$4 sm:$0xff]  }
 0x426   :  { %3386 = vmatpush1.bf16.msra.mxu1 %v6856_v59  ;;  %3468 = vmatpush1.bf16.msra.mxu0 %v6859_v60  ;;  %v6928_v59 = vld [vmem:[%s9422_s16 + $0x380] ss:$16 sps:$4 sm:$0xff]   ;;  %v6931_v60 = vld [vmem:[%s9422_s16 + $0x388] ss:$16 sps:$4 sm:$0xff]  }
 0x427   :  { %3417 = vmatprep.mubr.bf16.mxu1 %v2575_v25  ;;  %3499 = vmatprep.mubr.bf16.mxu0 %v2575_v25  ;;  %v6934_v25 = vld [vmem:[%s9422_s16 + $0x3a0] ss:$16 sps:$4 sm:$0xff]  }
 0x428   :  { %3387 = vmatprep.subr.bf16.mxu1 %v6864_v62  ;;  %3469 = vmatprep.subr.bf16.mxu0 %v6867_v63  ;;  %v6936_v62 = vld [vmem:[%s9422_s16 + $0x3a4] ss:$16 sps:$4 sm:$0xff]   ;;  %v6939_v63 = vld [vmem:[%s9422_s16 + $0x3ac] ss:$16 sps:$4 sm:$0xff]  }
 0x42a   :  { %3388 = vmatpush1.bf16.msra.mxu1 %v6862_v0  ;;  %3470 = vmatpush1.bf16.msra.mxu0 %v6865_v19  ;;  %v2540_v0 = vmul.f32 %v2529_v61, %v8250_v3  ;;  %v2555_v19 = vrot.slane %v8318_v36, %v8285_v21  ;;  %v6943_v3 = vld [vmem:[%s9422_s16 + $0x3c8] ss:$16 sps:$4 sm:$0xff]  }
 0x42b   :  { %3389 = vmatprep.subr.bf16.mxu1 %v6870_v1  ;;  %3471 = vmatprep.subr.bf16.mxu0 %v6873_v16  ;;  %v6942_v1 = vld [vmem:[%s9422_s16 + $0x3c4] ss:$16 sps:$4 sm:$0xff]   ;;  %v6945_v16 = vld [vmem:[%s9422_s16 + $0x3cc] ss:$16 sps:$4 sm:$0xff]  }
 0x42c   :  { %v2566_v36 = vadd.f32 %v2555_v19, %v2540_v0  ;;  %v3613_v0 = vld [vmem:[%s9427_s19 + $0x148] sm:$0xff] }
 0x42d   :  { %v3617_v19 = vld [vmem:[%s9427_s19 + $0x168] sm:$0xff] }
 0x42e   :  { %3390 = vmatpush1.bf16.msra.mxu1 %v6868_v5  ;;  %3472 = vmatpush1.bf16.msra.mxu0 %v6871_v7  ;;  %v6940_v5 = vld [vmem:[%s9422_s16 + $0x3c0] ss:$16 sps:$4 sm:$0xff]   ;;  %v6948_v7 = vld [vmem:[%s9422_s16 + $0x3e4] ss:$16 sps:$4 sm:$0xff]  }
 0x42f   :  { %3391 = vmatprep.subr.bf16.mxu1 %v6876_v49  ;;  %3473 = vmatprep.subr.bf16.mxu0 %v6879_v8  ;;  %v6951_v49 = vld [vmem:[%s9422_s16 + $0x3ec] ss:$16 sps:$4 sm:$0xff]   ;;  %v3572_v8 = vld [vmem:[%s9427_s19] sm:$0xff] }
 0x432   :  { %3392 = vmatpush1.bf16.msra.mxu1 %v6874_v9  ;;  %3474 = vmatpush1.bf16.msra.mxu0 %v6877_v4  ;;  %v3576_v9 = vld [vmem:[%s9427_s19 + $0x20] sm:$0xff]  ;;  %v3573_v4 = vld [vmem:[%s9427_s19 + $0x8] sm:$0xff] }
 0x433   :  { %3393 = vmatprep.subr.bf16.mxu1 %v6882_v10  ;;  %3475 = vmatprep.subr.bf16.mxu0 %v6885_v11  ;;  %v3577_v10 = vld [vmem:[%s9427_s19 + $0x28] sm:$0xff]  ;;  %v6946_v11 = vld [vmem:[%s9422_s16 + $0x3e0] ss:$16 sps:$4 sm:$0xff]  }
 0x436   :  { %3394 = vmatpush1.bf16.msra.mxu1 %v6880_v12  ;;  %3476 = vmatpush1.bf16.msra.mxu0 %v6883_v14  ;;  %v6949_v12 = vld [vmem:[%s9422_s16 + $0x3e8] ss:$16 sps:$4 sm:$0xff]   ;;  %v2570_v14 = vmax.f32 %v2566_v36, 0.0  ;;  %v3620_v36 = vld [vmem:[%s9427_s19 + $0x180] sm:$0xff] }
 0x437   :  { %3395 = vmatprep.subr.bf16.mxu1 %v6888_v15  ;;  %3477 = vmatprep.subr.bf16.mxu0 %v6891_v17  ;;  %v6001_v15 = vcombine.high %v3572_v8, %v3576_v9  ;;  %v6003_v17 = vcombine.high %v3573_v4, %v3577_v10 }
 0x43a   :  { %3396 = vmatpush1.bf16.msra.mxu1 %v6886_v18  ;;  %3478 = vmatpush1.bf16.msra.mxu0 %v6889_v20  ;;  %v3580_v18 = vld [vmem:[%s9427_s19 + $0x40] sm:$0xff] }
 0x43b   :  { %3397 = vmatprep.subr.bf16.mxu1 %v6894_v24  ;;  %3479 = vmatprep.subr.bf16.mxu0 %v6897_v27  ;;  %v3584_v20 = vld [vmem:[%s9427_s19 + $0x60] sm:$0xff]  ;;  %v3581_v24 = vld [vmem:[%s9427_s19 + $0x48] sm:$0xff] }
 0x43c   :  { %v3585_v27 = vld [vmem:[%s9427_s19 + $0x68] sm:$0xff] }
 0x43e   :  { %3398 = vmatpush1.bf16.msra.mxu1 %v6892_v28  ;;  %3480 = vmatpush1.bf16.msra.mxu0 %v6895_v29  ;;  %v6000_v28 = vcombine.low %v3572_v8, %v3576_v9  ;;  %v6002_v29 = vcombine.low %v3573_v4, %v3577_v10  ;;  %v3625_v8 = vld [vmem:[%s9427_s19 + $0x1a8] sm:$0xff]  ;;  %v6042_v4 = vcombine.low %v3613_v0, %v3617_v19 }
 0x43f   :  { %3399 = vmatprep.subr.bf16.mxu1 %v6900_v30  ;;  %3481 = vmatprep.subr.bf16.mxu0 %v6903_v32  ;;  %v2574_v30 = vpack.c.bf16 %v2570_v14, %v2570_v14  ;;  %v6009_v32 = vcombine.high %v3580_v18, %v3584_v20  ;;  %v3632_v14 = vld [vmem:[%s9427_s19 + $0x1e0] sm:$0xff] }
 0x442   :  { %3400 = vmatpush1.bf16.msra.mxu1 %v6898_v35  ;;  %3482 = vmatpush1.bf16.msra.mxu0 %v6901_v37  ;;  %v6011_v35 = vcombine.high %v3581_v24, %v3585_v27  ;;  %v3588_v37 = vld [vmem:[%s9427_s19 + $0x80] sm:$0xff] }
 0x443   :  { %3401 = vmatprep.subr.bf16.mxu1 %v6906_v38  ;;  %3483 = vmatprep.subr.bf16.mxu0 %v6909_v39  ;;  %v3592_v38 = vld [vmem:[%s9427_s19 + $0xa0] sm:$0xff]  ;;  %v3589_v39 = vld [vmem:[%s9427_s19 + $0x88] sm:$0xff] }
 0x446   :  { %3402 = vmatpush1.bf16.msra.mxu1 %v6904_v40  ;;  %3484 = vmatpush1.bf16.msra.mxu0 %v6907_v42  ;;  %v3593_v40 = vld [vmem:[%s9427_s19 + $0xa8] sm:$0xff]  ;;  %v6008_v42 = vcombine.low %v3580_v18, %v3584_v20 }
 0x447   :  { %3403 = vmatprep.subr.bf16.mxu1 %v6912_v44  ;;  %3485 = vmatprep.subr.bf16.mxu0 %v6915_v45  ;;  %v6010_v44 = vcombine.low %v3581_v24, %v3585_v27  ;;  %v6017_v45 = vcombine.high %v3588_v37, %v3592_v38 }
 0x44a   :  { %3404 = vmatpush1.bf16.msra.mxu1 %v6910_v46  ;;  %3486 = vmatpush1.bf16.msra.mxu0 %v6913_v47  ;;  %v6019_v46 = vcombine.high %v3589_v39, %v3593_v40  ;;  %v3596_v47 = vld [vmem:[%s9427_s19 + $0xc0] sm:$0xff] }
 0x44b   :  { %3405 = vmatprep.subr.bf16.mxu1 %v6918_v48  ;;  %3487 = vmatprep.subr.bf16.mxu0 %v6921_v50  ;;  %v3600_v48 = vld [vmem:[%s9427_s19 + $0xe0] sm:$0xff]  ;;  %v3597_v50 = vld [vmem:[%s9427_s19 + $0xc8] sm:$0xff] }
 0x44e   :  { %3406 = vmatpush1.bf16.msra.mxu1 %v6916_v51  ;;  %3488 = vmatpush1.bf16.msra.mxu0 %v6919_v52  ;;  %v3601_v51 = vld [vmem:[%s9427_s19 + $0xe8] sm:$0xff]  ;;  %v6016_v52 = vcombine.low %v3588_v37, %v3592_v38 }
 0x44f   :  { %3407 = vmatprep.subr.bf16.mxu1 %v6924_v53  ;;  %3489 = vmatprep.subr.bf16.mxu0 %v6927_v54  ;;  %v6018_v53 = vcombine.low %v3589_v39, %v3593_v40  ;;  %v6025_v54 = vcombine.high %v3596_v47, %v3600_v48  ;;  %v6026_v61 = vcombine.low %v3597_v50, %v3601_v51  ;;  %v3644_v40 = vld [vmem:[%s9427_s19 + $0x240] sm:$0xff] }
 0x452   :  { %3408 = vmatpush1.bf16.msra.mxu1 %v6922_v55  ;;  %3490 = vmatpush1.bf16.msra.mxu0 %v6925_v56  ;;  %v6027_v55 = vcombine.high %v3597_v50, %v3601_v51  ;;  %v3604_v56 = vld [vmem:[%s9427_s19 + $0x100] sm:$0xff] }
 0x453   :  { %3409 = vmatprep.subr.bf16.mxu1 %v6930_v57  ;;  %3491 = vmatprep.subr.bf16.mxu0 %v6933_v58  ;;  %v3608_v57 = vld [vmem:[%s9427_s19 + $0x120] sm:$0xff]  ;;  %v3605_v58 = vld [vmem:[%s9427_s19 + $0x108] sm:$0xff] }
 0x454   :  { %v3652_v51 = vld [vmem:[%s9427_s19 + $0x280] sm:$0xff] }
 0x456   :  { %3410 = vmatpush1.bf16.msra.mxu1 %v6928_v59  ;;  %3492 = vmatpush1.bf16.msra.mxu0 %v6931_v60  ;;  %v3609_v59 = vld [vmem:[%s9427_s19 + $0x128] sm:$0xff]  ;;  %v6024_v60 = vcombine.low %v3596_v47, %v3600_v48 }
 0x457   :  { %3411 = vmatprep.subr.bf16.mxu1 %v6936_v62  ;;  %3493 = vmatprep.subr.bf16.mxu0 %v6939_v63  ;;  %v6033_v62 = vcombine.high %v3604_v56, %v3608_v57  ;;  %v6035_v63 = vcombine.high %v3605_v58, %v3609_v59 }
 0x45a   :  { %3412 = vmatpush1.bf16.msra.mxu1 %v6934_v25  ;;  %3494 = vmatpush1.bf16.msra.mxu0 %v6937_v34  ;;  %v3612_v25 = vld [vmem:[%s9427_s19 + $0x140] sm:$0xff] }
 0x45b   :  { %3413 = vmatprep.subr.bf16.mxu1 %v6942_v1  ;;  %3495 = vmatprep.subr.bf16.mxu0 %v6945_v16  ;;  %v3616_v34 = vld [vmem:[%s9427_s19 + $0x160] sm:$0xff]  ;;  %v6032_v1 = vcombine.low %v3604_v56, %v3608_v57  ;;  %v6034_v16 = vcombine.low %v3605_v58, %v3609_v59 }
 0x45c   :  { %v6040_v9 = vcombine.low %v3612_v25, %v3616_v34  ;;  %v3660_v59 = vld [vmem:[%s9427_s19 + $0x2c0] sm:$0xff] }
 0x45e   :  { %3414 = vmatpush1.bf16.msra.mxu1 %v6940_v5  ;;  %3496 = vmatpush1.bf16.msra.mxu0 %v6943_v3  ;;  %v6041_v5 = vcombine.high %v3612_v25, %v3616_v34  ;;  %v6043_v3 = vcombine.high %v3613_v0, %v3617_v19  ;;  %v3668_v19 = vld [vmem:[%s9427_s19 + $0x300] sm:$0xff] }
 0x45f   :  { %3415 = vmatprep.subr.bf16.mxu1 %v6948_v7  ;;  %3497 = vmatprep.subr.bf16.mxu0 %v6951_v49  ;;  %v3624_v7 = vld [vmem:[%s9427_s19 + $0x1a0] sm:$0xff]  ;;  %v3621_v49 = vld [vmem:[%s9427_s19 + $0x188] sm:$0xff] }
 0x460   :  { %v6049_v10 = vcombine.high %v3620_v36, %v3624_v7  ;;  %v6048_v18 = vcombine.low %v3620_v36, %v3624_v7  ;;  %v6050_v20 = vcombine.low %v3621_v49, %v3625_v8 }
 0x462   :  { %3416 = vmatpush1.bf16.msra.mxu1 %v6946_v11  ;;  %3498 = vmatpush1.bf16.msra.mxu0 %v6949_v12  ;;  %v6051_v11 = vcombine.high %v3621_v49, %v3625_v8  ;;  %v3628_v12 = vld [vmem:[%s9427_s19 + $0x1c0] sm:$0xff] }
 0x463   :  { %5150 = vmatprep.subr.bf16.mxu1 %v6001_v15  ;;  %5232 = vmatprep.subr.bf16.mxu0 %v6003_v17  ;;  %v3629_v15 = vld [vmem:[%s9427_s19 + $0x1c8] sm:$0xff]  ;;  %v6057_v24 = vcombine.high %v3628_v12, %v3632_v14 }
 0x464   :  { %v3633_v17 = vld [vmem:[%s9427_s19 + $0x1e8] sm:$0xff] }
 0x465   :  { %3418 = vmatmul.mubr.bf16.vlgmr.msra.gmra.mrb[20].mxu1 %v2574_v30  ;;  %3500 = vmatmul.mubr.bf16.vlgmr.msra.gmra.mrb[8].mxu0 %v2574_v30  ;;  %v6059_v27 = vcombine.high %v3629_v15, %v3633_v17  ;;  %v3637_v30 = vld [vmem:[%s9427_s19 + $0x208] sm:$0xff]  ;;  %v6058_v37 = vcombine.low %v3629_v15, %v3633_v17 }
 0x466   :  { %5151 = vmatpush1.bf16.msra.mxu1 %v6000_v28  ;;  %5233 = vmatpush1.bf16.msra.mxu0 %v6002_v29  ;;  %v3636_v28 = vld [vmem:[%s9427_s19 + $0x200] sm:$0xff] }
 0x467   :  { %5152 = vmatprep.subr.bf16.mxu1 %v6009_v32  ;;  %5234 = vmatprep.subr.bf16.mxu0 %v6011_v35  ;;  %v3640_v29 = vld [vmem:[%s9427_s19 + $0x220] sm:$0xff]  ;;  %v3641_v32 = vld [vmem:[%s9427_s19 + $0x228] sm:$0xff]  ;;  %v6056_v35 = vcombine.low %v3628_v12, %v3632_v14 }
 0x468   :  { %v6065_v38 = vcombine.high %v3636_v28, %v3640_v29  ;;  %v6067_v39 = vcombine.high %v3637_v30, %v3641_v32  ;;  %v6066_v47 = vcombine.low %v3637_v30, %v3641_v32  ;;  %v3681_v14 = vld [vmem:[%s9427_s19 + $0x368] sm:$0xff] }
 0x46a   :  { %5153 = vmatpush1.bf16.msra.mxu1 %v6008_v42  ;;  %5235 = vmatpush1.bf16.msra.mxu0 %v6010_v44  ;;  %v3648_v42 = vld [vmem:[%s9427_s19 + $0x260] sm:$0xff]  ;;  %v3645_v44 = vld [vmem:[%s9427_s19 + $0x248] sm:$0xff] }
 0x46b   :  { %5154 = vmatprep.subr.bf16.mxu1 %v6017_v45  ;;  %5236 = vmatprep.subr.bf16.mxu0 %v6019_v46  ;;  %v3649_v45 = vld [vmem:[%s9427_s19 + $0x268] sm:$0xff]  ;;  %v6064_v46 = vcombine.low %v3636_v28, %v3640_v29  ;;  %v6073_v48 = vcombine.high %v3644_v40, %v3648_v42 }
 0x46c   :  { %v6075_v50 = vcombine.high %v3645_v44, %v3649_v45  ;;  %v6074_v56 = vcombine.low %v3645_v44, %v3649_v45  ;;  %v3689_v29 = vld [vmem:[%s9427_s19 + $0x3a8] sm:$0xff] }
 0x46e   :  { %5155 = vmatpush1.bf16.msra.mxu1 %v6016_v52  ;;  %5237 = vmatpush1.bf16.msra.mxu0 %v6018_v53  ;;  %v3656_v52 = vld [vmem:[%s9427_s19 + $0x2a0] sm:$0xff]  ;;  %v3653_v53 = vld [vmem:[%s9427_s19 + $0x288] sm:$0xff] }
 0x46f   :  { %5156 = vmatprep.subr.bf16.mxu1 %v6025_v54  ;;  %5238 = vmatprep.subr.bf16.mxu0 %v6027_v55  ;;  %v3657_v54 = vld [vmem:[%s9427_s19 + $0x2a8] sm:$0xff]  ;;  %v6072_v55 = vcombine.low %v3644_v40, %v3648_v42  ;;  %v6081_v57 = vcombine.high %v3652_v51, %v3656_v52 }
 0x470   :  { %v6083_v58 = vcombine.high %v3653_v53, %v3657_v54  ;;  %v6082_v25 = vcombine.low %v3653_v53, %v3657_v54  ;;  %v3697_v42 = vld [vmem:[%s9427_s19 + $0x3e8] sm:$0xff] }
 0x472   :  { %5157 = vmatpush1.bf16.msra.mxu1 %v6024_v60  ;;  %5239 = vmatpush1.bf16.msra.mxu0 %v6026_v61  ;;  %v3664_v60 = vld [vmem:[%s9427_s19 + $0x2e0] sm:$0xff]  ;;  %v3661_v61 = vld [vmem:[%s9427_s19 + $0x2c8] sm:$0xff] }
 0x473   :  { %5158 = vmatprep.subr.bf16.mxu1 %v6033_v62  ;;  %5240 = vmatprep.subr.bf16.mxu0 %v6035_v63  ;;  %v3665_v62 = vld [vmem:[%s9427_s19 + $0x2e8] sm:$0xff]  ;;  %v6080_v63 = vcombine.low %v3652_v51, %v3656_v52  ;;  %v6089_v34 = vcombine.high %v3660_v59, %v3664_v60 }
 0x474   :  { %v6091_v0 = vcombine.high %v3661_v61, %v3665_v62  ;;  %v6090_v36 = vcombine.low %v3661_v61, %v3665_v62  ;;  %v8733_v52 = vld [vmem:[%s9427_s19 + $0x428] sm:$0xff] }
 0x476   :  { %5159 = vmatpush1.bf16.msra.mxu1 %v6032_v1  ;;  %5241 = vmatpush1.bf16.msra.mxu0 %v6034_v16  ;;  %v3672_v1 = vld [vmem:[%s9427_s19 + $0x320] sm:$0xff]  ;;  %v3669_v16 = vld [vmem:[%s9427_s19 + $0x308] sm:$0xff] }
 0x477   :  { %5160 = vmatprep.subr.bf16.mxu1 %v6041_v5  ;;  %5242 = vmatprep.subr.bf16.mxu0 %v6043_v3  ;;  %v3673_v5 = vld [vmem:[%s9427_s19 + $0x328] sm:$0xff]  ;;  %v6088_v3 = vcombine.low %v3660_v59, %v3664_v60  ;;  %v6097_v7 = vcombine.high %v3668_v19, %v3672_v1  ;;  %v6096_v8 = vcombine.low %v3668_v19, %v3672_v1  ;;  %v3534_v60 = vld [vmem:[%s9429_s18] sm:$0xf] }
 0x478   :  { %v6099_v49 = vcombine.high %v3669_v16, %v3673_v5  ;;  %v2015_v59 = vrot.slane %v8290_v23, %v8306_v33  ;;  %v2041_v19 = vrot.slane %v8297_v26, %v8306_v33  ;;  %v3539_v1 = vrot.slane %v3534_v60, %v7728_v41 }
 0x47a   :  { %5161 = vmatpush1.bf16.msra.mxu1 %v6040_v9  ;;  %5243 = vmatpush1.bf16.msra.mxu0 %v6042_v4  ;;  %v6098_v9 = vcombine.low %v3669_v16, %v3673_v5  ;;  %v3676_v4 = vld [vmem:[%s9427_s19 + $0x340] sm:$0xff]  ;;  %v3547_v16 = vrot.slane %v3534_v60, %v8285_v21 }
 0x47b   :  { %5162 = vmatprep.subr.bf16.mxu1 %v6049_v10  ;;  %5244 = vmatprep.subr.bf16.mxu0 %v6051_v11  ;;  %v3680_v10 = vld [vmem:[%s9427_s19 + $0x360] sm:$0xff]  ;;  %v3677_v11 = vld [vmem:[%s9427_s19 + $0x348] sm:$0xff] }
 0x47c   :  { %v6105_v12 = vcombine.high %v3676_v4, %v3680_v10  ;;  %v6104_v15 = vcombine.low %v3676_v4, %v3680_v10  ;;  %v6106_v17 = vcombine.low %v3677_v11, %v3681_v14 }
 0x47e   :  { %5163 = vmatpush1.bf16.msra.mxu1 %v6048_v18  ;;  %5245 = vmatpush1.bf16.msra.mxu0 %v6050_v20  ;;  %v6107_v18 = vcombine.high %v3677_v11, %v3681_v14  ;;  %v3684_v20 = vld [vmem:[%s9427_s19 + $0x380] sm:$0xff] }
 0x47f   :  { %5164 = vmatprep.subr.bf16.mxu1 %v6057_v24  ;;  %5246 = vmatprep.subr.bf16.mxu0 %v6059_v27  ;;  %v3688_v24 = vld [vmem:[%s9427_s19 + $0x3a0] sm:$0xff]  ;;  %v3685_v27 = vld [vmem:[%s9427_s19 + $0x388] sm:$0xff] }
 0x480   :  { %v6113_v28 = vcombine.high %v3684_v20, %v3688_v24  ;;  %v6112_v30 = vcombine.low %v3684_v20, %v3688_v24  ;;  %v6114_v32 = vcombine.low %v3685_v27, %v3689_v29 }
 0x482   :  { %5165 = vmatpush1.bf16.msra.mxu1 %v6056_v35  ;;  %5247 = vmatpush1.bf16.msra.mxu0 %v6058_v37  ;;  %v6115_v35 = vcombine.high %v3685_v27, %v3689_v29  ;;  %v3692_v37 = vld [vmem:[%s9427_s19 + $0x3c0] sm:$0xff] }
 0x483   :  { %5166 = vmatprep.subr.bf16.mxu1 %v6065_v38  ;;  %5248 = vmatprep.subr.bf16.mxu0 %v6067_v39  ;;  %v3696_v38 = vld [vmem:[%s9427_s19 + $0x3e0] sm:$0xff]  ;;  %v3693_v39 = vld [vmem:[%s9427_s19 + $0x3c8] sm:$0xff] }
 0x484   :  { %v6121_v40 = vcombine.high %v3692_v37, %v3696_v38  ;;  %v6120_v44 = vcombine.low %v3692_v37, %v3696_v38  ;;  %v6122_v45 = vcombine.low %v3693_v39, %v3697_v42 }
 0x486   :  { %5167 = vmatpush1.bf16.msra.mxu1 %v6064_v46  ;;  %5249 = vmatpush1.bf16.msra.mxu0 %v6066_v47  ;;  %v6123_v46 = vcombine.high %v3693_v39, %v3697_v42  ;;  %v8716_v47 = vld [vmem:[%s9427_s19 + $0x400] sm:$0xff] }
 0x487   :  { %5168 = vmatprep.subr.bf16.mxu1 %v6073_v48  ;;  %5250 = vmatprep.subr.bf16.mxu0 %v6075_v50  ;;  %v8721_v48 = vld [vmem:[%s9427_s19 + $0x420] sm:$0xff]  ;;  %v8726_v50 = vld [vmem:[%s9427_s19 + $0x408] sm:$0xff] }
 0x488   :  { %v6129_v51 = vcombine.high %v8716_v47, %v8721_v48  ;;  %v6128_v53 = vcombine.low %v8716_v47, %v8721_v48  ;;  %v6130_v54 = vcombine.low %v8726_v50, %v8733_v52  ;;  %v3708_v39 = vld [vmem:[%s9427_s19 + $0x440] sm:$0xff]  ;;  %v3725_v48 = vld [vmem:[%s9427_s19 + $0x4c8] sm:$0xff] }
 0x489   :  { %v3712_v42 = vld [vmem:[%s9427_s19 + $0x460] sm:$0xff] }
 0x48a   :  { %5169 = vmatpush1.bf16.msra.mxu1 %v6072_v55  ;;  %5251 = vmatpush1.bf16.msra.mxu0 %v6074_v56  ;;  %v6131_v55 = vcombine.high %v8726_v50, %v8733_v52  ;;  %v3508_v56 = vld [vmem:[%s9428_s17] sm:$0xf]  ;;  %v3729_v50 = vld [vmem:[%s9427_s19 + $0x4e8] sm:$0xff] }
 0x48b   :  { %5170 = vmatprep.subr.bf16.mxu1 %v6081_v57  ;;  %5252 = vmatprep.subr.bf16.mxu0 %v6083_v58  ;;  %v2003_v57 = vrot.slane %v8290_v23, %v7728_v41  ;;  %v2007_v58 = vrot.slane %v8290_v23, %v7734_v43  ;;  %v3513_v61 = vrot.slane %v3508_v56, %v7728_v41  ;;  %v3728_v47 = vld [vmem:[%s9427_s19 + $0x4e0] sm:$0xff] }
 0x48c   :  { %v3521_v62 = vrot.slane %v3508_v56, %v8285_v21 }
 0x48d   :  { %v2020_v23 = vmul.f32 %v2003_v57, %v8248_v2  ;;  %v2021_v5 = vmul.f32 %v2007_v58, %v8258_v6  ;;  %v3720_v57 = vld [vmem:[%s9427_s19 + $0x4a0] sm:$0xff]  ;;  %v3717_v58 = vld [vmem:[%s9427_s19 + $0x488] sm:$0xff] }
 0x48e   :  { %5171 = vmatpush1.bf16.msra.mxu1 %v6080_v63  ;;  %5253 = vmatpush1.bf16.msra.mxu0 %v6082_v25  ;;  %v2029_v63 = vrot.slane %v8297_v26, %v7728_v41  ;;  %v2033_v25 = vrot.slane %v8297_v26, %v7734_v43 }
 0x48f   :  { %5172 = vmatprep.subr.bf16.mxu1 %v6089_v34  ;;  %5254 = vmatprep.subr.bf16.mxu0 %v6091_v0  ;;  %v3517_v34 = vrot.slane %v3508_v56, %v7734_v43  ;;  %v3525_v0 = vrot.slane %v3508_v56, %v8306_v33 }
 0x492   :  { %5173 = vmatpush1.bf16.msra.mxu1 %v6088_v3  ;;  %5255 = vmatpush1.bf16.msra.mxu0 %v6090_v36  ;;  %v2023_v3 = vmul.f32 %v2015_v59, %v8301_v22  ;;  %v2047_v22 = vadd.f32 %v2033_v25, %v2021_v5  ;;  %v3721_v59 = vld [vmem:[%s9427_s19 + $0x4a8] sm:$0xff] }
 0x493   :  { %5174 = vmatprep.subr.bf16.mxu1 %v6097_v7  ;;  %5256 = vmatprep.subr.bf16.mxu0 %v6099_v49  ;;  %v3543_v49 = vrot.slane %v3534_v60, %v7734_v43  ;;  %v6147_v25 = vcombine.high %v3717_v58, %v3721_v59 }
 0x494   :  { %v2049_v24 = vadd.f32 %v2041_v19, %v2023_v3  ;;  %v3736_v19 = vld [vmem:[%s9427_s19 + $0x520] sm:$0xff]  ;;  %v6154_v3 = vcombine.low %v3725_v48, %v3729_v50 }
 0x496   :  { %5175 = vmatpush1.bf16.msra.mxu1 %v6096_v8  ;;  %5257 = vmatpush1.bf16.msra.mxu0 %v6098_v9  ;;  %v3551_v8 = vrot.slane %v3534_v60, %v8306_v33 }
 0x497   :  { %5176 = vmatprep.subr.bf16.mxu1 %v6105_v12  ;;  %5258 = vmatprep.subr.bf16.mxu0 %v6107_v18 }
 0x49a   :  { %5177 = vmatpush1.bf16.msra.mxu1 %v6104_v15  ;;  %5259 = vmatpush1.bf16.msra.mxu0 %v6106_v17  ;;  %v2046_v15 = vadd.f32 %v2029_v63, %v2020_v23  ;;  %v3732_v23 = vld [vmem:[%s9427_s19 + $0x500] sm:$0xff] }
 0x49b   :  { %5178 = vmatprep.subr.bf16.mxu1 %v6113_v28  ;;  %5260 = vmatprep.subr.bf16.mxu0 %v6115_v35 }
 0x49e   :  { %5179 = vmatpush1.bf16.msra.mxu1 %v6112_v30  ;;  %5261 = vmatpush1.bf16.msra.mxu0 %v6114_v32 }
 0x49f   :  { %5180 = vmatprep.subr.bf16.mxu1 %v6121_v40  ;;  %5262 = vmatprep.subr.bf16.mxu0 %v6123_v46 }
 0x4a2   :  { %5181 = vmatpush1.bf16.msra.mxu1 %v6120_v44  ;;  %5263 = vmatpush1.bf16.msra.mxu0 %v6122_v45  ;;  %v3709_v44 = vld [vmem:[%s9427_s19 + $0x448] sm:$0xff] }
 0x4a3   :  { %5191 = vmatprep.subr.bf16.mxu1 %v6129_v51  ;;  %5273 = vmatprep.subr.bf16.mxu0 %v6131_v55  ;;  %v3716_v51 = vld [vmem:[%s9427_s19 + $0x480] sm:$0xff]  ;;  %v6137_v55 = vcombine.high %v3708_v39, %v3712_v42 }
 0x4a4   :  { %v6145_v63 = vcombine.high %v3716_v51, %v3720_v57  ;;  %v6144_v52 = vcombine.low %v3716_v51, %v3720_v57  ;;  %v3772_v57 = vld [vmem:[%s9427_s19 + $0x640] sm:$0xff] }
 0x538   :  { %v3419_v36 = vpop.f32.mrb[20].mxu1  ;;  %v3501_v7 = vpop.f32.mrb[8].mxu0 }
 0x539   :  { %v3530_v9 = vmul.f32 %v3513_v61, %v3419_v36  ;;  %v3532_v4 = vmul.f32 %v3521_v62, %v3501_v7  ;;  %v3421_v2 = vpop.f32.mrb[21].mxu1  ;;  %v3503_v10 = vpop.f32.mrb[9].mxu0  ;;  %v6136_v61 = vcombine.low %v3708_v39, %v3712_v42  ;;  %v6161_v36 = vcombine.high %v3732_v23, %v3736_v19  ;;  %v3764_v39 = vld [vmem:[%s9427_s19 + $0x600] sm:$0xff]  ;;  %v3765_v42 = vld [vmem:[%s9427_s19 + $0x608] sm:$0xff] }
 0x53a   :  { %v3531_v11 = vmul.f32 %v3517_v34, %v3421_v2  ;;  %v3533_v26 = vmul.f32 %v3525_v0, %v3503_v10  ;;  %v3423_v12 = vpop.f32.mrb[22].mxu1  ;;  %v3505_v14 = vpop.f32.mrb[10].mxu0  ;;  %v3724_v34 = vld [vmem:[%s9427_s19 + $0x4c0] sm:$0xff]  ;;  %v6155_v0 = vcombine.high %v3725_v48, %v3729_v50  ;;  %v6160_v2 = vcombine.low %v3732_v23, %v3736_v19  ;;  %v3781_v50 = vld [vmem:[%s9427_s19 + $0x688] sm:$0xff] }
 0x53b   :  { %v3556_v17 = vadd.f32 %v3539_v1, %v3530_v9  ;;  %v3558_v18 = vadd.f32 %v3547_v16, %v3532_v4  ;;  %v3424_v6 = vpop.f32.mrb[23].mxu1  ;;  %v3506_v20 = vpop.f32.mrb[11].mxu0  ;;  %v3733_v1 = vld [vmem:[%s9427_s19 + $0x508] sm:$0xff]  ;;  %v6152_v5 = vcombine.low %v3724_v34, %v3728_v47  ;;  %v3748_v12 = vld [vmem:[%s9427_s19 + $0x580] sm:$0xff] }
 0x53c   :  { %v3557_v27 = vadd.f32 %v3543_v49, %v3531_v11  ;;  %v3559_v28 = vadd.f32 %v3551_v8, %v3533_v26  ;;  %v3737_v16 = vld [vmem:[%s9427_s19 + $0x528] sm:$0xff]  ;;  %v3740_v49 = vld [vmem:[%s9427_s19 + $0x540] sm:$0xff] }
 0x53d   :  { %v3560_v29 = vadd.f32 %v3556_v17, %v2046_v15  ;;  %v8771_v30 = vadd.f32 %v3558_v18, %v8303_v31  ;;  %v3713_v31 = vld [vmem:[%s9427_s19 + $0x468] sm:$0xff]  ;;  %v6163_v7 = vcombine.high %v3733_v1, %v3737_v16  ;;  %v3744_v8 = vld [vmem:[%s9427_s19 + $0x560] sm:$0xff]  ;;  %v6162_v10 = vcombine.low %v3733_v1, %v3737_v16 }
 0x53e   :  { %v3561_v32 = vadd.f32 %v3557_v27, %v2047_v22  ;;  %v3563_v35 = vadd.f32 %v3559_v28, %v2049_v24  ;;  %v6139_v56 = vcombine.high %v3709_v44, %v3713_v31  ;;  %v6138_v62 = vcombine.low %v3709_v44, %v3713_v31  ;;  %v3741_v9 = vld [vmem:[%s9427_s19 + $0x548] sm:$0xff]  ;;  %v3752_v14 = vld [vmem:[%s9427_s19 + $0x5a0] sm:$0xff] }
 0x53f   :  { %v3564_v37 = vmax.f32 %v3560_v29, 0.0  ;;  %v3745_v4 = vld [vmem:[%s9427_s19 + $0x568] sm:$0xff]  ;;  %v6169_v11 = vcombine.high %v3740_v49, %v3744_v8  ;;  %v6168_v18 = vcombine.low %v3740_v49, %v3744_v8  ;;  %v6177_v20 = vcombine.high %v3748_v12, %v3752_v14  ;;  %v3756_v24 = vld [vmem:[%s9427_s19 + $0x5c0] sm:$0xff] }
 0x540   :  { %v3565_v38 = vmax.f32 %v3561_v32, 0.0  ;;  %v3567_v40 = vmax.f32 %v3563_v35, 0.0  ;;  %v6171_v26 = vcombine.high %v3741_v9, %v3745_v4  ;;  %v3749_v15 = vld [vmem:[%s9427_s19 + $0x588] sm:$0xff]  ;;  %v6170_v6 = vcombine.low %v3741_v9, %v3745_v4  ;;  %v3760_v27 = vld [vmem:[%s9427_s19 + $0x5e0] sm:$0xff] }
 0x541   :  { %v8787_v46 = vpack.c.bf16 %v3564_v37, %v3564_v37  ;;  %v3753_v17 = vld [vmem:[%s9427_s19 + $0x5a8] sm:$0xff]  ;;  %v6176_v32 = vcombine.low %v3748_v12, %v3752_v14  ;;  %v6185_v37 = vcombine.high %v3756_v24, %v3760_v27  ;;  %v6184_v31 = vcombine.low %v3756_v24, %v3760_v27  ;;  %v3784_v48 = vld [vmem:[%s9427_s19 + $0x6a0] sm:$0xff] }
 0x542   :  { %v8785_v45 = vpack.c.bf16 %v3565_v38, %v3565_v38  ;;  %v8803_v60 = vpack.c.bf16 %v3567_v40, %v3567_v40  ;;  %v6179_v22 = vcombine.high %v3749_v15, %v3753_v17  ;;  %v3757_v28 = vld [vmem:[%s9427_s19 + $0x5c8] sm:$0xff]  ;;  %v6178_v35 = vcombine.low %v3749_v15, %v3753_v17  ;;  %v3768_v40 = vld [vmem:[%s9427_s19 + $0x620] sm:$0xff] }
 0x543   :  { %v3761_v29 = vld [vmem:[%s9427_s19 + $0x5e8] sm:$0xff]  ;;  %v3788_v19 = vld [vmem:[%s9427_s19 + $0x6c0] sm:$0xff] }
 0x544   :  { %5182 = vmatprep.mubr.bf16.mxu1 %v8785_v45  ;;  %5264 = vmatprep.mubr.bf16.mxu0 %v8785_v45  ;;  %v6187_v38 = vcombine.high %v3757_v28, %v3761_v29  ;;  %v3769_v44 = vld [vmem:[%s9427_s19 + $0x628] sm:$0xff]  ;;  %v6186_v51 = vcombine.low %v3757_v28, %v3761_v29  ;;  %v3792_v1 = vld [vmem:[%s9427_s19 + $0x6e0] sm:$0xff] }
 0x545   :  { %5183 = vmatmul.mubr.bf16.vlgmr.msra.gmra.mrb[24].mxu1 %v8787_v46  ;;  %5265 = vmatmul.mubr.bf16.vlgmr.msra.gmra.mrb[12].mxu0 %v8787_v46  ;;  %v3789_v16 = vld [vmem:[%s9427_s19 + $0x6c8] sm:$0xff]  ;;  %v3796_v8 = vld [vmem:[%s9427_s19 + $0x700] sm:$0xff] }
 0x546   :  { %5192 = vmatpush1.bf16.msra.mxu1 %v6128_v53  ;;  %5274 = vmatpush1.bf16.msra.mxu0 %v6130_v54  ;;  %v6146_v53 = vcombine.low %v3717_v58, %v3721_v59  ;;  %v6153_v54 = vcombine.high %v3724_v34, %v3728_v47  ;;  %v3776_v58 = vld [vmem:[%s9427_s19 + $0x660] sm:$0xff]  ;;  %v3773_v59 = vld [vmem:[%s9427_s19 + $0x648] sm:$0xff] }
 0x547   :  { %5223 = vmatprep.mubr.bf16.mxu1 %v8803_v60  ;;  %5305 = vmatprep.mubr.bf16.mxu0 %v8803_v60  ;;  %v3780_v47 = vld [vmem:[%s9427_s19 + $0x680] sm:$0xff]  ;;  %v3797_v4 = vld [vmem:[%s9427_s19 + $0x708] sm:$0xff] }
 0x548   :  { %5193 = vmatprep.subr.bf16.mxu1 %v6137_v55  ;;  %5275 = vmatprep.subr.bf16.mxu0 %v6139_v56  ;;  %v6193_v55 = vcombine.high %v3764_v39, %v3768_v40  ;;  %v6195_v56 = vcombine.high %v3765_v42, %v3769_v44  ;;  %v3800_v9 = vld [vmem:[%s9427_s19 + $0x720] sm:$0xff]  ;;  %v3805_v17 = vld [vmem:[%s9427_s19 + $0x748] sm:$0xff] }
 0x549   :  { %v3804_v14 = vld [vmem:[%s9427_s19 + $0x740] sm:$0xff]  ;;  %v3813_v29 = vld [vmem:[%s9427_s19 + $0x788] sm:$0xff] }
 0x54a   :  { %5194 = vmatpush1.bf16.msra.mxu1 %v6136_v61  ;;  %5276 = vmatpush1.bf16.msra.mxu0 %v6138_v62  ;;  %v3777_v61 = vld [vmem:[%s9427_s19 + $0x668] sm:$0xff]  ;;  %v6192_v62 = vcombine.low %v3764_v39, %v3768_v40  ;;  %v3808_v15 = vld [vmem:[%s9427_s19 + $0x760] sm:$0xff] }
 0x54b   :  { %5195 = vmatprep.subr.bf16.mxu1 %v6145_v63  ;;  %5277 = vmatprep.subr.bf16.mxu0 %v6147_v25  ;;  %v6194_v63 = vcombine.low %v3765_v42, %v3769_v44  ;;  %v6201_v25 = vcombine.high %v3772_v57, %v3776_v58  ;;  %v6203_v34 = vcombine.high %v3773_v59, %v3777_v61  ;;  %v3812_v27 = vld [vmem:[%s9427_s19 + $0x780] sm:$0xff]  ;;  %v3821_v44 = vld [vmem:[%s9427_s19 + $0x7c8] sm:$0xff] }
 0x54c   :  { %v3816_v28 = vld [vmem:[%s9427_s19 + $0x7a0] sm:$0xff] }
 0x54d   :  { %v3820_v40 = vld [vmem:[%s9427_s19 + $0x7c0] sm:$0xff] }
 0x54e   :  { %5196 = vmatpush1.bf16.msra.mxu1 %v6144_v52  ;;  %5278 = vmatpush1.bf16.msra.mxu0 %v6146_v53  ;;  %v3785_v52 = vld [vmem:[%s9427_s19 + $0x6a8] sm:$0xff]  ;;  %v6200_v53 = vcombine.low %v3772_v57, %v3776_v58  ;;  %v3824_v42 = vld [vmem:[%s9427_s19 + $0x7e0] sm:$0xff]  ;;  %v3574_v58 = vld [vmem:[%s9427_s19 + $0x10] sm:$0xff] }
 0x54f   :  { %5197 = vmatprep.subr.bf16.mxu1 %v6153_v54  ;;  %5279 = vmatprep.subr.bf16.mxu0 %v6155_v0  ;;  %v6202_v54 = vcombine.low %v3773_v59, %v3777_v61  ;;  %v6209_v0 = vcombine.high %v3780_v47, %v3784_v48  ;;  %v6211_v23 = vcombine.high %v3781_v50, %v3785_v52  ;;  %v3578_v59 = vld [vmem:[%s9427_s19 + $0x30] sm:$0xff]  ;;  %v3575_v61 = vld [vmem:[%s9427_s19 + $0x18] sm:$0xff] }
 0x552   :  { %5198 = vmatpush1.bf16.msra.mxu1 %v6152_v5  ;;  %5280 = vmatpush1.bf16.msra.mxu0 %v6154_v3  ;;  %v3793_v5 = vld [vmem:[%s9427_s19 + $0x6e8] sm:$0xff]  ;;  %v6208_v3 = vcombine.low %v3780_v47, %v3784_v48  ;;  %v6005_v47 = vcombine.high %v3574_v58, %v3578_v59 }
 0x553   :  { %5199 = vmatprep.subr.bf16.mxu1 %v6161_v36  ;;  %5281 = vmatprep.subr.bf16.mxu0 %v6163_v7  ;;  %v6210_v36 = vcombine.low %v3781_v50, %v3785_v52  ;;  %v6217_v7 = vcombine.high %v3788_v19, %v3792_v1  ;;  %v6219_v49 = vcombine.high %v3789_v16, %v3793_v5  ;;  %v3582_v50 = vld [vmem:[%s9427_s19 + $0x50] sm:$0xff] }
 0x554   :  { %v3586_v52 = vld [vmem:[%s9427_s19 + $0x70] sm:$0xff] }
 0x556   :  { %5200 = vmatpush1.bf16.msra.mxu1 %v6160_v2  ;;  %5282 = vmatpush1.bf16.msra.mxu0 %v6162_v10  ;;  %v3801_v2 = vld [vmem:[%s9427_s19 + $0x728] sm:$0xff]  ;;  %v6216_v10 = vcombine.low %v3788_v19, %v3792_v1  ;;  %v6013_v19 = vcombine.high %v3582_v50, %v3586_v52 }
 0x557   :  { %5201 = vmatprep.subr.bf16.mxu1 %v6169_v11  ;;  %5283 = vmatprep.subr.bf16.mxu0 %v6171_v26  ;;  %v6218_v11 = vcombine.low %v3789_v16, %v3793_v5  ;;  %v6225_v26 = vcombine.high %v3796_v8, %v3800_v9  ;;  %v6227_v12 = vcombine.high %v3797_v4, %v3801_v2  ;;  %v3590_v16 = vld [vmem:[%s9427_s19 + $0x90] sm:$0xff] }
 0x558   :  { %v3594_v5 = vld [vmem:[%s9427_s19 + $0xb0] sm:$0xff] }
 0x55a   :  { %5202 = vmatpush1.bf16.msra.mxu1 %v6168_v18  ;;  %5284 = vmatpush1.bf16.msra.mxu0 %v6170_v6  ;;  %v3809_v18 = vld [vmem:[%s9427_s19 + $0x768] sm:$0xff]  ;;  %v6224_v6 = vcombine.low %v3796_v8, %v3800_v9  ;;  %v6021_v8 = vcombine.high %v3590_v16, %v3594_v5 }
 0x55b   :  { %5203 = vmatprep.subr.bf16.mxu1 %v6177_v20  ;;  %5285 = vmatprep.subr.bf16.mxu0 %v6179_v22  ;;  %v6226_v20 = vcombine.low %v3797_v4, %v3801_v2  ;;  %v6233_v22 = vcombine.high %v3804_v14, %v3808_v15  ;;  %v6235_v24 = vcombine.high %v3805_v17, %v3809_v18  ;;  %v3598_v4 = vld [vmem:[%s9427_s19 + $0xd0] sm:$0xff] }
 0x55c   :  { %v3602_v2 = vld [vmem:[%s9427_s19 + $0xf0] sm:$0xff] }
 0x55e   :  { %5204 = vmatpush1.bf16.msra.mxu1 %v6176_v32  ;;  %5286 = vmatpush1.bf16.msra.mxu0 %v6178_v35  ;;  %v3817_v32 = vld [vmem:[%s9427_s19 + $0x7a8] sm:$0xff]  ;;  %v6232_v35 = vcombine.low %v3804_v14, %v3808_v15  ;;  %v3606_v15 = vld [vmem:[%s9427_s19 + $0x110] sm:$0xff] }
 0x55f   :  { %5205 = vmatprep.subr.bf16.mxu1 %v6185_v37  ;;  %5287 = vmatprep.subr.bf16.mxu0 %v6187_v38  ;;  %v6234_v37 = vcombine.low %v3805_v17, %v3809_v18  ;;  %v6241_v38 = vcombine.high %v3812_v27, %v3816_v28  ;;  %v6243_v39 = vcombine.high %v3813_v29, %v3817_v32  ;;  %v3610_v17 = vld [vmem:[%s9427_s19 + $0x130] sm:$0xff]  ;;  %v3607_v18 = vld [vmem:[%s9427_s19 + $0x118] sm:$0xff] }
 0x562   :  { %5206 = vmatpush1.bf16.msra.mxu1 %v6184_v31  ;;  %5288 = vmatpush1.bf16.msra.mxu0 %v6186_v51  ;;  %v3825_v31 = vld [vmem:[%s9427_s19 + $0x7e8] sm:$0xff]  ;;  %v6240_v51 = vcombine.low %v3812_v27, %v3816_v28  ;;  %v3614_v28 = vld [vmem:[%s9427_s19 + $0x150] sm:$0xff] }
 0x563   :  { %5207 = vmatprep.subr.bf16.mxu1 %v6193_v55  ;;  %5289 = vmatprep.subr.bf16.mxu0 %v6195_v56  ;;  %v6242_v55 = vcombine.low %v3813_v29, %v3817_v32  ;;  %v6249_v56 = vcombine.high %v3820_v40, %v3824_v42  ;;  %v6251_v57 = vcombine.high %v3821_v44, %v3825_v31  ;;  %v3618_v29 = vld [vmem:[%s9427_s19 + $0x170] sm:$0xff]  ;;  %v3615_v32 = vld [vmem:[%s9427_s19 + $0x158] sm:$0xff] }
 0x566   :  { %5208 = vmatpush1.bf16.msra.mxu1 %v6192_v62  ;;  %5290 = vmatpush1.bf16.msra.mxu0 %v6194_v63  ;;  %v3579_v62 = vld [vmem:[%s9427_s19 + $0x38] sm:$0xff]  ;;  %v6248_v63 = vcombine.low %v3820_v40, %v3824_v42  ;;  %v3622_v42 = vld [vmem:[%s9427_s19 + $0x190] sm:$0xff] }
 0x567   :  { %5209 = vmatprep.subr.bf16.mxu1 %v6201_v25  ;;  %5291 = vmatprep.subr.bf16.mxu0 %v6203_v34  ;;  %v6250_v25 = vcombine.low %v3821_v44, %v3825_v31  ;;  %v3566_v34 = vmax.f32 %v8771_v30, 0.0  ;;  %v6007_v48 = vcombine.high %v3575_v61, %v3579_v62  ;;  %v3587_v30 = vld [vmem:[%s9427_s19 + $0x78] sm:$0xff]  ;;  %v3626_v44 = vld [vmem:[%s9427_s19 + $0x1b0] sm:$0xff] }
 0x568   :  { %v3623_v31 = vld [vmem:[%s9427_s19 + $0x198] sm:$0xff] }
 0x56a   :  { %5210 = vmatpush1.bf16.msra.mxu1 %v6200_v53  ;;  %5292 = vmatpush1.bf16.msra.mxu0 %v6202_v54  ;;  %v3583_v53 = vld [vmem:[%s9427_s19 + $0x58] sm:$0xff]  ;;  %v6004_v54 = vcombine.low %v3574_v58, %v3578_v59  ;;  %v3630_v59 = vld [vmem:[%s9427_s19 + $0x1d0] sm:$0xff] }
 0x56b   :  { %5211 = vmatprep.subr.bf16.mxu1 %v6209_v0  ;;  %5293 = vmatprep.subr.bf16.mxu0 %v6211_v23  ;;  %v8996_v0 = vpack.c.bf16 %v3566_v34, %v3566_v34  ;;  %v6006_v23 = vcombine.low %v3575_v61, %v3579_v62  ;;  %v6015_v1 = vcombine.high %v3583_v53, %v3587_v30  ;;  %v3634_v61 = vld [vmem:[%s9427_s19 + $0x1f0] sm:$0xff]  ;;  %v3631_v62 = vld [vmem:[%s9427_s19 + $0x1d8] sm:$0xff] }
 0x56e   :  { %5212 = vmatpush1.bf16.msra.mxu1 %v6208_v3  ;;  %5294 = vmatpush1.bf16.msra.mxu0 %v6210_v36  ;;  %v3591_v3 = vld [vmem:[%s9427_s19 + $0x98] sm:$0xff] }
 0x56f   :  { %5213 = vmatprep.subr.bf16.mxu1 %v6217_v7  ;;  %5295 = vmatprep.subr.bf16.mxu0 %v6219_v49  ;;  %v3595_v36 = vld [vmem:[%s9427_s19 + $0xb8] sm:$0xff]  ;;  %v6012_v7 = vcombine.low %v3582_v50, %v3586_v52  ;;  %v6014_v49 = vcombine.low %v3583_v53, %v3587_v30  ;;  %v3638_v50 = vld [vmem:[%s9427_s19 + $0x210] sm:$0xff] }
 0x570   :  { %v6023_v9 = vcombine.high %v3591_v3, %v3595_v36  ;;  %v3642_v52 = vld [vmem:[%s9427_s19 + $0x230] sm:$0xff]  ;;  %v3639_v53 = vld [vmem:[%s9427_s19 + $0x218] sm:$0xff] }
 0x571   :  { %v3643_v30 = vld [vmem:[%s9427_s19 + $0x238] sm:$0xff] }
 0x572   :  { %5214 = vmatpush1.bf16.msra.mxu1 %v6216_v10  ;;  %5296 = vmatpush1.bf16.msra.mxu0 %v6218_v11  ;;  %v3599_v10 = vld [vmem:[%s9427_s19 + $0xd8] sm:$0xff]  ;;  %v6020_v11 = vcombine.low %v3590_v16, %v3594_v5  ;;  %v3646_v16 = vld [vmem:[%s9427_s19 + $0x250] sm:$0xff] }
 0x573   :  { %5215 = vmatprep.subr.bf16.mxu1 %v6225_v26  ;;  %5297 = vmatprep.subr.bf16.mxu0 %v6227_v12  ;;  %v6022_v26 = vcombine.low %v3591_v3, %v3595_v36  ;;  %v6029_v12 = vcombine.high %v3598_v4, %v3602_v2  ;;  %v3650_v5 = vld [vmem:[%s9427_s19 + $0x270] sm:$0xff]  ;;  %v3647_v3 = vld [vmem:[%s9427_s19 + $0x258] sm:$0xff] }
 0x574   :  { %v3651_v36 = vld [vmem:[%s9427_s19 + $0x278] sm:$0xff] }
 0x576   :  { %5216 = vmatpush1.bf16.msra.mxu1 %v6224_v6  ;;  %5298 = vmatpush1.bf16.msra.mxu0 %v6226_v20  ;;  %v3611_v6 = vld [vmem:[%s9427_s19 + $0x138] sm:$0xff]  ;;  %v6028_v20 = vcombine.low %v3598_v4, %v3602_v2  ;;  %v3654_v4 = vld [vmem:[%s9427_s19 + $0x290] sm:$0xff] }
 0x577   :  { %5217 = vmatprep.subr.bf16.mxu1 %v6233_v22  ;;  %5299 = vmatprep.subr.bf16.mxu0 %v6235_v24  ;;  %v6037_v24 = vcombine.high %v3606_v15, %v3610_v17  ;;  %v6039_v27 = vcombine.high %v3607_v18, %v3611_v6  ;;  %v3658_v2 = vld [vmem:[%s9427_s19 + $0x2b0] sm:$0xff] }
 0x57a   :  { %5218 = vmatpush1.bf16.msra.mxu1 %v6232_v35  ;;  %5300 = vmatpush1.bf16.msra.mxu0 %v6234_v37  ;;  %v3619_v35 = vld [vmem:[%s9427_s19 + $0x178] sm:$0xff]  ;;  %v6036_v37 = vcombine.low %v3606_v15, %v3610_v17  ;;  %v3662_v15 = vld [vmem:[%s9427_s19 + $0x2d0] sm:$0xff] }
 0x57b   :  { %5219 = vmatprep.subr.bf16.mxu1 %v6241_v38  ;;  %5301 = vmatprep.subr.bf16.mxu0 %v6243_v39  ;;  %v6038_v38 = vcombine.low %v3607_v18, %v3611_v6  ;;  %v6045_v39 = vcombine.high %v3614_v28, %v3618_v29  ;;  %v6047_v40 = vcombine.high %v3615_v32, %v3619_v35  ;;  %v3666_v17 = vld [vmem:[%s9427_s19 + $0x2f0] sm:$0xff]  ;;  %v3663_v18 = vld [vmem:[%s9427_s19 + $0x2d8] sm:$0xff] }
 0x57c   :  { %v3667_v6 = vld [vmem:[%s9427_s19 + $0x2f8] sm:$0xff] }
 0x57e   :  { %5220 = vmatpush1.bf16.msra.mxu1 %v6240_v51  ;;  %5302 = vmatpush1.bf16.msra.mxu0 %v6242_v55  ;;  %v3627_v51 = vld [vmem:[%s9427_s19 + $0x1b8] sm:$0xff]  ;;  %v6044_v55 = vcombine.low %v3614_v28, %v3618_v29  ;;  %v3670_v28 = vld [vmem:[%s9427_s19 + $0x310] sm:$0xff] }
 0x57f   :  { %5221 = vmatprep.subr.bf16.mxu1 %v6249_v56  ;;  %5303 = vmatprep.subr.bf16.mxu0 %v6251_v57  ;;  %v6046_v56 = vcombine.low %v3615_v32, %v3619_v35  ;;  %v6053_v57 = vcombine.high %v3622_v42, %v3626_v44  ;;  %v6055_v58 = vcombine.high %v3623_v31, %v3627_v51  ;;  %v3674_v29 = vld [vmem:[%s9427_s19 + $0x330] sm:$0xff]  ;;  %v3671_v32 = vld [vmem:[%s9427_s19 + $0x318] sm:$0xff] }
 0x580   :  { %v6054_v34 = vcombine.low %v3623_v31, %v3627_v51  ;;  %v3675_v35 = vld [vmem:[%s9427_s19 + $0x338] sm:$0xff] }
 0x581   :  { %v3679_v31 = vld [vmem:[%s9427_s19 + $0x358] sm:$0xff] }
 0x582   :  { %5222 = vmatpush1.bf16.msra.mxu1 %v6248_v63  ;;  %5304 = vmatpush1.bf16.msra.mxu0 %v6250_v25  ;;  %v3635_v63 = vld [vmem:[%s9427_s19 + $0x1f8] sm:$0xff]  ;;  %v6052_v25 = vcombine.low %v3622_v42, %v3626_v44  ;;  %v3678_v42 = vld [vmem:[%s9427_s19 + $0x350] sm:$0xff] }
 0x583   :  { %5314 = vmatprep.subr.bf16.mxu1 %v6005_v47  ;;  %5396 = vmatprep.subr.bf16.mxu0 %v6007_v48  ;;  %v6061_v47 = vcombine.high %v3630_v59, %v3634_v61  ;;  %v6063_v48 = vcombine.high %v3631_v62, %v3635_v63  ;;  %v3682_v44 = vld [vmem:[%s9427_s19 + $0x370] sm:$0xff]  ;;  %v3683_v51 = vld [vmem:[%s9427_s19 + $0x378] sm:$0xff] }
 0x585   :  { %5224 = vmatmul.mubr.bf16.vlgmr.msra.gmra.mrb[24].mxu1 %v8996_v0  ;;  %5306 = vmatmul.mubr.bf16.vlgmr.msra.gmra.mrb[12].mxu0 %v8996_v0 }
 0x586   :  { %5315 = vmatpush1.bf16.msra.mxu1 %v6004_v54  ;;  %5346 = vmatprep.mubr.bf16.mxu1 %v8785_v45  ;;  %v6060_v54 = vcombine.low %v3630_v59, %v3634_v61  ;;  %v3686_v59 = vld [vmem:[%s9427_s19 + $0x390] sm:$0xff] }
 0x587   :  { %5397 = vmatpush1.bf16.msra.mxu0 %v6006_v23  ;;  %5428 = vmatprep.mubr.bf16.mxu0 %v8785_v45  ;;  %v3603_v45 = vld [vmem:[%s9427_s19 + $0xf8] sm:$0xff]  ;;  %v6062_v23 = vcombine.low %v3631_v62, %v3635_v63  ;;  %v3690_v61 = vld [vmem:[%s9427_s19 + $0x3b0] sm:$0xff] }
 0x588   :  { %5316 = vmatprep.subr.bf16.mxu1 %v6013_v19  ;;  %5398 = vmatprep.subr.bf16.mxu0 %v6015_v1  ;;  %v6031_v14 = vcombine.high %v3599_v10, %v3603_v45  ;;  %v6030_v22 = vcombine.low %v3599_v10, %v3603_v45  ;;  %v6069_v19 = vcombine.high %v3638_v50, %v3642_v52  ;;  %v3655_v10 = vld [vmem:[%s9427_s19 + $0x298] sm:$0xff] }
 0x589   :  { %v6071_v1 = vcombine.high %v3639_v53, %v3643_v30  ;;  %v3659_v45 = vld [vmem:[%s9427_s19 + $0x2b8] sm:$0xff] }
 0x58a   :  { %5317 = vmatpush1.bf16.msra.mxu1 %v6012_v7  ;;  %v6068_v7 = vcombine.low %v3638_v50, %v3642_v52  ;;  %v3687_v62 = vld [vmem:[%s9427_s19 + $0x398] sm:$0xff]  ;;  %v3694_v50 = vld [vmem:[%s9427_s19 + $0x3d0] sm:$0xff] }
 0x58b   :  { %5399 = vmatpush1.bf16.msra.mxu0 %v6014_v49  ;;  %5318 = vmatprep.subr.bf16.mxu1 %v6021_v8  ;;  %v6070_v49 = vcombine.low %v3639_v53, %v3643_v30  ;;  %v6077_v8 = vcombine.high %v3646_v16, %v3650_v5  ;;  %v3691_v63 = vld [vmem:[%s9427_s19 + $0x3b8] sm:$0xff]  ;;  %v3698_v52 = vld [vmem:[%s9427_s19 + $0x3f0] sm:$0xff] }
 0x58c   :  { %5400 = vmatprep.subr.bf16.mxu0 %v6023_v9  ;;  %v6079_v9 = vcombine.high %v3647_v3, %v3651_v36  ;;  %v3695_v53 = vld [vmem:[%s9427_s19 + $0x3d8] sm:$0xff] }
 0x58d   :  { %v3699_v30 = vld [vmem:[%s9427_s19 + $0x3f8] sm:$0xff] }
 0x58e   :  { %5319 = vmatpush1.bf16.msra.mxu1 %v6020_v11  ;;  %v6076_v11 = vcombine.low %v3646_v16, %v3650_v5  ;;  %v3702_v16 = vld [vmem:[%s9427_s19 + $0x410] sm:$0xff] }
 0x58f   :  { %5401 = vmatpush1.bf16.msra.mxu0 %v6022_v26  ;;  %5320 = vmatprep.subr.bf16.mxu1 %v6029_v12  ;;  %v6078_v26 = vcombine.low %v3647_v3, %v3651_v36  ;;  %v6085_v12 = vcombine.high %v3654_v4, %v3658_v2  ;;  %v3706_v5 = vld [vmem:[%s9427_s19 + $0x430] sm:$0xff]  ;;  %v3703_v3 = vld [vmem:[%s9427_s19 + $0x418] sm:$0xff] }
 0x590   :  { %5402 = vmatprep.subr.bf16.mxu0 %v6031_v14  ;;  %v6087_v14 = vcombine.high %v3655_v10, %v3659_v45  ;;  %v3707_v36 = vld [vmem:[%s9427_s19 + $0x438] sm:$0xff] }
 0x592   :  { %5321 = vmatpush1.bf16.msra.mxu1 %v6028_v20  ;;  %v6084_v20 = vcombine.low %v3654_v4, %v3658_v2  ;;  %v3710_v4 = vld [vmem:[%s9427_s19 + $0x450] sm:$0xff] }
 0x593   :  { %5403 = vmatpush1.bf16.msra.mxu0 %v6030_v22  ;;  %5322 = vmatprep.subr.bf16.mxu1 %v6037_v24  ;;  %v6086_v22 = vcombine.low %v3655_v10, %v3659_v45  ;;  %v6093_v24 = vcombine.high %v3662_v15, %v3666_v17  ;;  %v3714_v2 = vld [vmem:[%s9427_s19 + $0x470] sm:$0xff]  ;;  %v6132_v10 = vcombine.low %v3702_v16, %v3706_v5  ;;  %v3711_v45 = vld [vmem:[%s9427_s19 + $0x458] sm:$0xff] }
 0x594   :  { %5404 = vmatprep.subr.bf16.mxu0 %v6039_v27  ;;  %v6095_v27 = vcombine.high %v3663_v18, %v3667_v6 }
 0x596   :  { %5323 = vmatpush1.bf16.msra.mxu1 %v6036_v37  ;;  %v6092_v37 = vcombine.low %v3662_v15, %v3666_v17  ;;  %v3722_v15 = vld [vmem:[%s9427_s19 + $0x4b0] sm:$0xff] }
 0x597   :  { %5405 = vmatpush1.bf16.msra.mxu0 %v6038_v38  ;;  %5324 = vmatprep.subr.bf16.mxu1 %v6045_v39  ;;  %v6094_v38 = vcombine.low %v3663_v18, %v3667_v6  ;;  %v6101_v39 = vcombine.high %v3670_v28, %v3674_v29  ;;  %v3719_v18 = vld [vmem:[%s9427_s19 + $0x498] sm:$0xff] }
 0x598   :  { %5406 = vmatprep.subr.bf16.mxu0 %v6047_v40  ;;  %v6103_v40 = vcombine.high %v3671_v32, %v3675_v35  ;;  %v3723_v6 = vld [vmem:[%s9427_s19 + $0x4b8] sm:$0xff] }
 0x59a   :  { %5325 = vmatpush1.bf16.msra.mxu1 %v6044_v55  ;;  %v6100_v55 = vcombine.low %v3670_v28, %v3674_v29  ;;  %v3726_v28 = vld [vmem:[%s9427_s19 + $0x4d0] sm:$0xff] }
 0x59b   :  { %5407 = vmatpush1.bf16.msra.mxu0 %v6046_v56  ;;  %5326 = vmatprep.subr.bf16.mxu1 %v6053_v57  ;;  %v6102_v56 = vcombine.low %v3671_v32, %v3675_v35  ;;  %v6109_v57 = vcombine.high %v3678_v42, %v3682_v44  ;;  %v3730_v29 = vld [vmem:[%s9427_s19 + $0x4f0] sm:$0xff]  ;;  %v3731_v32 = vld [vmem:[%s9427_s19 + $0x4f8] sm:$0xff]  ;;  %v6150_v35 = vcombine.low %v3719_v18, %v3723_v6 }
 0x59c   :  { %5408 = vmatprep.subr.bf16.mxu0 %v6055_v58  ;;  %v6111_v58 = vcombine.high %v3679_v31, %v3683_v51 }
 0x59e   :  { %5327 = vmatpush1.bf16.msra.mxu1 %v6052_v25  ;;  %v6108_v25 = vcombine.low %v3678_v42, %v3682_v44  ;;  %v3735_v42 = vld [vmem:[%s9427_s19 + $0x518] sm:$0xff] }
 0x59f   :  { %5409 = vmatpush1.bf16.msra.mxu0 %v6054_v34  ;;  %5328 = vmatprep.subr.bf16.mxu1 %v6061_v47  ;;  %v6110_v34 = vcombine.low %v3679_v31, %v3683_v51  ;;  %v6117_v47 = vcombine.high %v3686_v59, %v3690_v61  ;;  %v3739_v44 = vld [vmem:[%s9427_s19 + $0x538] sm:$0xff]  ;;  %v6156_v31 = vcombine.low %v3726_v28, %v3730_v29 }
 0x5a0   :  { %5410 = vmatprep.subr.bf16.mxu0 %v6063_v48  ;;  %v6119_v48 = vcombine.high %v3687_v62, %v3691_v63 }
 0x5a2   :  { %5329 = vmatpush1.bf16.msra.mxu1 %v6060_v54  ;;  %v6116_v54 = vcombine.low %v3686_v59, %v3690_v61  ;;  %v3743_v59 = vld [vmem:[%s9427_s19 + $0x558] sm:$0xff] }
 0x5a3   :  { %5411 = vmatpush1.bf16.msra.mxu0 %v6062_v23  ;;  %5330 = vmatprep.subr.bf16.mxu1 %v6069_v19  ;;  %v6118_v23 = vcombine.low %v3687_v62, %v3691_v63  ;;  %v6125_v19 = vcombine.high %v3694_v50, %v3698_v52  ;;  %v3747_v61 = vld [vmem:[%s9427_s19 + $0x578] sm:$0xff]  ;;  %v6166_v63 = vcombine.low %v3735_v42, %v3739_v44 }
 0x5a4   :  { %5412 = vmatprep.subr.bf16.mxu0 %v6071_v1  ;;  %v6127_v1 = vcombine.high %v3695_v53, %v3699_v30 }
 0x5a6   :  { %5331 = vmatpush1.bf16.msra.mxu1 %v6068_v7  ;;  %v6124_v7 = vcombine.low %v3694_v50, %v3698_v52  ;;  %v3751_v50 = vld [vmem:[%s9427_s19 + $0x598] sm:$0xff] }
 0x5a7   :  { %5413 = vmatpush1.bf16.msra.mxu0 %v6070_v49  ;;  %5332 = vmatprep.subr.bf16.mxu1 %v6077_v8  ;;  %v6126_v49 = vcombine.low %v3695_v53, %v3699_v30  ;;  %v6133_v8 = vcombine.high %v3702_v16, %v3706_v5  ;;  %v3755_v52 = vld [vmem:[%s9427_s19 + $0x5b8] sm:$0xff]  ;;  %v6174_v30 = vcombine.low %v3743_v59, %v3747_v61 }
 0x5a8   :  { %5414 = vmatprep.subr.bf16.mxu0 %v6079_v9  ;;  %v6135_v9 = vcombine.high %v3703_v3, %v3707_v36  ;;  %v3759_v16 = vld [vmem:[%s9427_s19 + $0x5d8] sm:$0xff] }
 0x5a9   :  { %v3763_v5 = vld [vmem:[%s9427_s19 + $0x5f8] sm:$0xff] }
 0x5aa   :  { %5333 = vmatpush1.bf16.msra.mxu1 %v6076_v11  ;;  %v3715_v11 = vld [vmem:[%s9427_s19 + $0x478] sm:$0xff] }
 0x5ab   :  { %5415 = vmatpush1.bf16.msra.mxu0 %v6078_v26  ;;  %5334 = vmatprep.subr.bf16.mxu1 %v6085_v12  ;;  %v6134_v26 = vcombine.low %v3703_v3, %v3707_v36  ;;  %v6141_v12 = vcombine.high %v3710_v4, %v3714_v2  ;;  %v6143_v17 = vcombine.high %v3711_v45, %v3715_v11 }
 0x5ac   :  { %5416 = vmatprep.subr.bf16.mxu0 %v6087_v14  ;;  %v3718_v14 = vld [vmem:[%s9427_s19 + $0x490] sm:$0xff]  ;;  %v6182_v36 = vcombine.low %v3751_v50, %v3755_v52 }
 0x5ae   :  { %5335 = vmatpush1.bf16.msra.mxu1 %v6084_v20  ;;  %v6140_v20 = vcombine.low %v3710_v4, %v3714_v2  ;;  %v3767_v4 = vld [vmem:[%s9427_s19 + $0x618] sm:$0xff] }
 0x5af   :  { %5417 = vmatpush1.bf16.msra.mxu0 %v6086_v22  ;;  %5336 = vmatprep.subr.bf16.mxu1 %v6093_v24  ;;  %v6142_v22 = vcombine.low %v3711_v45, %v3715_v11  ;;  %v6149_v24 = vcombine.high %v3718_v14, %v3722_v15  ;;  %v3771_v2 = vld [vmem:[%s9427_s19 + $0x638] sm:$0xff]  ;;  %v6190_v45 = vcombine.low %v3759_v16, %v3763_v5 }
 0x5b0   :  { %5418 = vmatprep.subr.bf16.mxu0 %v6095_v27  ;;  %v6151_v27 = vcombine.high %v3719_v18, %v3723_v6  ;;  %v6198_v6 = vcombine.low %v3767_v4, %v3771_v2 }
 0x5b2   :  { %5337 = vmatpush1.bf16.msra.mxu1 %v6092_v37  ;;  %v6157_v37 = vcombine.high %v3726_v28, %v3730_v29  ;;  %v3783_v28 = vld [vmem:[%s9427_s19 + $0x698] sm:$0xff] }
 0x5b3   :  { %5419 = vmatpush1.bf16.msra.mxu0 %v6094_v38  ;;  %5338 = vmatprep.subr.bf16.mxu1 %v6101_v39  ;;  %v3734_v39 = vld [vmem:[%s9427_s19 + $0x510] sm:$0xff]  ;;  %v3787_v29 = vld [vmem:[%s9427_s19 + $0x6b8] sm:$0xff] }
 0x5b4   :  { %5420 = vmatprep.subr.bf16.mxu0 %v6103_v40  ;;  %v3738_v40 = vld [vmem:[%s9427_s19 + $0x530] sm:$0xff] }
 0x5b5   :  { %v6164_v62 = vcombine.low %v3734_v39, %v3738_v40 }
 0x5b6   :  { %5339 = vmatpush1.bf16.msra.mxu1 %v6100_v55  ;;  %v6165_v55 = vcombine.high %v3734_v39, %v3738_v40  ;;  %v3791_v39 = vld [vmem:[%s9427_s19 + $0x6d8] sm:$0xff] }
 0x5b7   :  { %5421 = vmatpush1.bf16.msra.mxu0 %v6102_v56  ;;  %5340 = vmatprep.subr.bf16.mxu1 %v6109_v57  ;;  %v6167_v56 = vcombine.high %v3735_v42, %v3739_v44  ;;  %v3742_v57 = vld [vmem:[%s9427_s19 + $0x550] sm:$0xff]  ;;  %v3795_v40 = vld [vmem:[%s9427_s19 + $0x6f8] sm:$0xff]  ;;  %v6214_v44 = vcombine.low %v3783_v28, %v3787_v29 }
 0x5b8   :  { %5422 = vmatprep.subr.bf16.mxu0 %v6111_v58  ;;  %v3746_v58 = vld [vmem:[%s9427_s19 + $0x570] sm:$0xff] }
 0x5b9   :  { %v6172_v53 = vcombine.low %v3742_v57, %v3746_v58 }
 0x5ba   :  { %5341 = vmatpush1.bf16.msra.mxu1 %v6108_v25  ;;  %v6173_v25 = vcombine.high %v3742_v57, %v3746_v58  ;;  %v3799_v57 = vld [vmem:[%s9427_s19 + $0x718] sm:$0xff] }
 0x5bb   :  { %5423 = vmatpush1.bf16.msra.mxu0 %v6110_v34  ;;  %5342 = vmatprep.subr.bf16.mxu1 %v6117_v47  ;;  %v6175_v34 = vcombine.high %v3743_v59, %v3747_v61  ;;  %v3750_v47 = vld [vmem:[%s9427_s19 + $0x590] sm:$0xff]  ;;  %v3803_v58 = vld [vmem:[%s9427_s19 + $0x738] sm:$0xff]  ;;  %v6222_v61 = vcombine.low %v3791_v39, %v3795_v40 }
 0x5bc   :  { %5424 = vmatprep.subr.bf16.mxu0 %v6119_v48  ;;  %v3754_v48 = vld [vmem:[%s9427_s19 + $0x5b0] sm:$0xff] }
 0x5bd   :  { %v6180_v3 = vcombine.low %v3750_v47, %v3754_v48 }
 0x5be   :  { %5343 = vmatpush1.bf16.msra.mxu1 %v6116_v54  ;;  %v6181_v54 = vcombine.high %v3750_v47, %v3754_v48  ;;  %v3807_v47 = vld [vmem:[%s9427_s19 + $0x758] sm:$0xff] }
 0x5bf   :  { %5425 = vmatpush1.bf16.msra.mxu0 %v6118_v23  ;;  %5344 = vmatprep.subr.bf16.mxu1 %v6125_v19  ;;  %v6183_v23 = vcombine.high %v3751_v50, %v3755_v52  ;;  %v3758_v19 = vld [vmem:[%s9427_s19 + $0x5d0] sm:$0xff]  ;;  %v3811_v48 = vld [vmem:[%s9427_s19 + $0x778] sm:$0xff]  ;;  %v6230_v52 = vcombine.low %v3799_v57, %v3803_v58 }
 0x5c0   :  { %5426 = vmatprep.subr.bf16.mxu0 %v6127_v1  ;;  %v3762_v1 = vld [vmem:[%s9427_s19 + $0x5f0] sm:$0xff] }
 0x5c2   :  { %5345 = vmatpush1.bf16.msra.mxu1 %v6124_v7  ;;  %v6189_v7 = vcombine.high %v3758_v19, %v3762_v1 }
 0x5c3   :  { %5427 = vmatpush1.bf16.msra.mxu0 %v6126_v49  ;;  %5355 = vmatprep.subr.bf16.mxu1 %v6133_v8  ;;  %v6191_v49 = vcombine.high %v3759_v16, %v3763_v5  ;;  %v3766_v8 = vld [vmem:[%s9427_s19 + $0x610] sm:$0xff]  ;;  %v6238_v5 = vcombine.low %v3807_v47, %v3811_v48 }
 0x5c4   :  { %5437 = vmatprep.subr.bf16.mxu0 %v6135_v9  ;;  %v3770_v9 = vld [vmem:[%s9427_s19 + $0x630] sm:$0xff] }
 0x5c5   :  { %5347 = vmatmul.mubr.bf16.vlgmr.msra.gmra.mrb[28].mxu1 %v8787_v46  ;;  %v6197_v11 = vcombine.high %v3766_v8, %v3770_v9  ;;  %v6196_v18 = vcombine.low %v3766_v8, %v3770_v9  ;;  %v3823_v8 = vld [vmem:[%s9427_s19 + $0x7d8] sm:$0xff] }
 0x5c6   :  { %5429 = vmatmul.mubr.bf16.vlgmr.msra.gmra.mrb[16].mxu0 %v8787_v46  ;;  %5356 = vmatpush1.bf16.msra.mxu1 %v6132_v10  ;;  %v3727_v46 = vld [vmem:[%s9427_s19 + $0x4d8] sm:$0xff]  ;;  %v6188_v10 = vcombine.low %v3758_v19, %v3762_v1 }
 0x5c7   :  { %5387 = vmatprep.mubr.bf16.mxu1 %v8803_v60  ;;  %5438 = vmatpush1.bf16.msra.mxu0 %v6134_v26  ;;  %v6159_v38 = vcombine.high %v3727_v46, %v3731_v32  ;;  %v6158_v51 = vcombine.low %v3727_v46, %v3731_v32  ;;  %v6199_v26 = vcombine.high %v3767_v4, %v3771_v2  ;;  %v3815_v19 = vld [vmem:[%s9427_s19 + $0x798] sm:$0xff] }
 0x5c8   :  { %5469 = vmatprep.mubr.bf16.mxu0 %v8803_v60  ;;  %5357 = vmatprep.subr.bf16.mxu1 %v6141_v12  ;;  %v6148_v60 = vcombine.low %v3718_v14, %v3722_v15  ;;  %v3774_v12 = vld [vmem:[%s9427_s19 + $0x650] sm:$0xff]  ;;  %v3775_v15 = vld [vmem:[%s9427_s19 + $0x658] sm:$0xff] }
 0x5c9   :  { %5439 = vmatprep.subr.bf16.mxu0 %v6143_v17  ;;  %v3778_v14 = vld [vmem:[%s9427_s19 + $0x670] sm:$0xff]  ;;  %v3779_v17 = vld [vmem:[%s9427_s19 + $0x678] sm:$0xff] }
 0x5ca   :  { %5358 = vmatpush1.bf16.msra.mxu1 %v6140_v20  ;;  %v6205_v20 = vcombine.high %v3774_v12, %v3778_v14  ;;  %v6204_v46 = vcombine.low %v3774_v12, %v3778_v14  ;;  %v6206_v32 = vcombine.low %v3775_v15, %v3779_v17  ;;  %v3819_v1 = vld [vmem:[%s9427_s19 + $0x7b8] sm:$0xff]  ;;  %v3828_v12 = vld [vmem:[%s9430_s20] sm:$0xff] }
 0x5cb   :  { %5440 = vmatpush1.bf16.msra.mxu0 %v6142_v22  ;;  %5359 = vmatprep.subr.bf16.mxu1 %v6149_v24  ;;  %v6207_v22 = vcombine.high %v3775_v15, %v3779_v17  ;;  %v3782_v24 = vld [vmem:[%s9427_s19 + $0x690] sm:$0xff]  ;;  %v3827_v9 = vld [vmem:[%s9427_s19 + $0x7f8] sm:$0xff]  ;;  %v6246_v2 = vcombine.low %v3815_v19, %v3819_v1  ;;  %v3833_v14 = vrot.slane %v3828_v12, %v7728_v41  ;;  %v9376_v17 = vld [vmem:[%s9431_s21] sm:$0xff] }
 0x5cc   :  { %5441 = vmatprep.subr.bf16.mxu0 %v6151_v27  ;;  %v3786_v27 = vld [vmem:[%s9427_s19 + $0x6b0] sm:$0xff]  ;;  %v3841_v15 = vrot.slane %v3828_v12, %v8285_v21 }
 0x5cd   :  { %v6212_v42 = vcombine.low %v3782_v24, %v3786_v27 }
 0x5ce   :  { %5360 = vmatpush1.bf16.msra.mxu1 %v6148_v60  ;;  %v6213_v60 = vcombine.high %v3782_v24, %v3786_v27  ;;  %v5491_v24 = vrot.slane %v9376_v17, %v7728_v41 }
 0x5cf   :  { %5442 = vmatpush1.bf16.msra.mxu0 %v6150_v35  ;;  %5361 = vmatprep.subr.bf16.mxu1 %v6157_v37  ;;  %v6215_v35 = vcombine.high %v3783_v28, %v3787_v29  ;;  %v3790_v37 = vld [vmem:[%s9427_s19 + $0x6d0] sm:$0xff] }
 0x5d0   :  { %5443 = vmatprep.subr.bf16.mxu0 %v6159_v38  ;;  %v3794_v38 = vld [vmem:[%s9427_s19 + $0x6f0] sm:$0xff] }
 0x5d1   :  { %v6220_v59 = vcombine.low %v3790_v37, %v3794_v38 }
 0x5d2   :  { %5362 = vmatpush1.bf16.msra.mxu1 %v6156_v31  ;;  %v6221_v31 = vcombine.high %v3790_v37, %v3794_v38 }
 0x5d3   :  { %5444 = vmatpush1.bf16.msra.mxu0 %v6158_v51  ;;  %5363 = vmatprep.subr.bf16.mxu1 %v6165_v55  ;;  %v6223_v51 = vcombine.high %v3791_v39, %v3795_v40  ;;  %v3798_v55 = vld [vmem:[%s9427_s19 + $0x710] sm:$0xff] }
 0x5d4   :  { %5445 = vmatprep.subr.bf16.mxu0 %v6167_v56  ;;  %v3802_v56 = vld [vmem:[%s9427_s19 + $0x730] sm:$0xff] }
 0x5d5   :  { %v6228_v50 = vcombine.low %v3798_v55, %v3802_v56 }
 0x5d6   :  { %5364 = vmatpush1.bf16.msra.mxu1 %v6164_v62  ;;  %v6229_v62 = vcombine.high %v3798_v55, %v3802_v56 }
 0x5d7   :  { %5446 = vmatpush1.bf16.msra.mxu0 %v6166_v63  ;;  %5365 = vmatprep.subr.bf16.mxu1 %v6173_v25  ;;  %v6231_v63 = vcombine.high %v3799_v57, %v3803_v58  ;;  %v3806_v25 = vld [vmem:[%s9427_s19 + $0x750] sm:$0xff] }
 0x5d8   :  { %5447 = vmatprep.subr.bf16.mxu0 %v6175_v34  ;;  %v3810_v34 = vld [vmem:[%s9427_s19 + $0x770] sm:$0xff] }
 0x5d9   :  { %v6236_v16 = vcombine.low %v3806_v25, %v3810_v34 }
 0x5da   :  { %5366 = vmatpush1.bf16.msra.mxu1 %v6172_v53  ;;  %v6237_v53 = vcombine.high %v3806_v25, %v3810_v34  ;;  %v28_v34 = vstv %s9432_s22 }
 0x5db   :  { %5448 = vmatpush1.bf16.msra.mxu0 %v6174_v30  ;;  %5367 = vmatprep.subr.bf16.mxu1 %v6181_v54  ;;  %v6239_v30 = vcombine.high %v3807_v47, %v3811_v48  ;;  %v3814_v54 = vld [vmem:[%s9427_s19 + $0x790] sm:$0xff]  ;;  %29 = vst [vmem:[#allocation2] sm:$0x1] %v28_v34  ;;  %v3856_v47 = vsub.s32 6, %v7101_v13  ;;  %v3852_v48 = vsub.s32 5, %v7101_v13 }
 0x5dc   :  { %5449 = vmatprep.subr.bf16.mxu0 %v6183_v23  ;;  %v3818_v23 = vld [vmem:[%s9427_s19 + $0x7b0] sm:$0xff] }
 0x5dd   :  { %v6244_v4 = vcombine.low %v3814_v54, %v3818_v23 }
 0x5de   :  { %5368 = vmatpush1.bf16.msra.mxu1 %v6180_v3  ;;  %v6245_v3 = vcombine.high %v3814_v54, %v3818_v23 }
 0x5df   :  { %5450 = vmatpush1.bf16.msra.mxu0 %v6182_v36  ;;  %5369 = vmatprep.subr.bf16.mxu1 %v6189_v7  ;;  %v6247_v36 = vcombine.high %v3815_v19, %v3819_v1  ;;  %v3822_v7 = vld [vmem:[%s9427_s19 + $0x7d0] sm:$0xff] }
 0x5e0   :  { %5451 = vmatprep.subr.bf16.mxu0 %v6191_v49  ;;  %v3826_v49 = vld [vmem:[%s9427_s19 + $0x7f0] sm:$0xff] }
 0x5e2   :  { %5370 = vmatpush1.bf16.msra.mxu1 %v6188_v10  ;;  %v6253_v10 = vcombine.high %v3822_v7, %v3826_v49 }
 0x5e3   :  { %5452 = vmatpush1.bf16.msra.mxu0 %v6190_v45  ;;  %5371 = vmatprep.subr.bf16.mxu1 %v6197_v11  ;;  %v6255_v45 = vcombine.high %v3823_v8, %v3827_v9  ;;  %v6252_v11 = vcombine.low %v3822_v7, %v3826_v49  ;;  %v5511_v7 = vrot.slane %v9376_v17, %v3852_v48 }
 0x5e4   :  { %5453 = vmatprep.subr.bf16.mxu0 %v6199_v26  ;;  %v6254_v26 = vcombine.low %v3823_v8, %v3827_v9 }
 0x5e6   :  { %5372 = vmatpush1.bf16.msra.mxu1 %v6196_v18  ;;  %v3837_v18 = vrot.slane %v3828_v12, %v7734_v43 }
 0x5e7   :  { %5454 = vmatpush1.bf16.msra.mxu0 %v6198_v6  ;;  %5373 = vmatprep.subr.bf16.mxu1 %v6205_v20  ;;  %v3845_v6 = vrot.slane %v3828_v12, %v8306_v33 }
 0x5e8   :  { %5455 = vmatprep.subr.bf16.mxu0 %v6207_v22 }
 0x5ea   :  { %5374 = vmatpush1.bf16.msra.mxu1 %v6204_v46  ;;  %v5499_v46 = vrot.slane %v9376_v17, %v8285_v21 }
 0x5eb   :  { %5456 = vmatpush1.bf16.msra.mxu0 %v6206_v32  ;;  %5375 = vmatprep.subr.bf16.mxu1 %v6213_v60  ;;  %v5495_v60 = vrot.slane %v9376_v17, %v7734_v43 }
 0x5ec   :  { %5457 = vmatprep.subr.bf16.mxu0 %v6215_v35 }
 0x5ee   :  { %5376 = vmatpush1.bf16.msra.mxu1 %v6212_v42 }
 0x5ef   :  { %5458 = vmatpush1.bf16.msra.mxu0 %v6214_v44  ;;  %5377 = vmatprep.subr.bf16.mxu1 %v6221_v31 }
 0x5f0   :  { %5459 = vmatprep.subr.bf16.mxu0 %v6223_v51  ;;  %v5503_v51 = vrot.slane %v9376_v17, %v8306_v33  ;;  %v3848_v33 = vsub.s32 4, %v7101_v13 }
 0x5f2   :  { %5378 = vmatpush1.bf16.msra.mxu1 %v6220_v59  ;;  %v5507_v1 = vrot.slane %v9376_v17, %v3848_v33 }
 0x5f3   :  { %5460 = vmatpush1.bf16.msra.mxu0 %v6222_v61  ;;  %5379 = vmatprep.subr.bf16.mxu1 %v6229_v62 }
 0x5f4   :  { %5461 = vmatprep.subr.bf16.mxu0 %v6231_v63 }
 0x5f6   :  { %5380 = vmatpush1.bf16.msra.mxu1 %v6228_v50  ;;  %v3860_v50 = vsub.s32 7, %v7101_v13 }
 0x5f7   :  { %5462 = vmatpush1.bf16.msra.mxu0 %v6230_v52  ;;  %5381 = vmatprep.subr.bf16.mxu1 %v6237_v53  ;;  %v3849_v52 = vrot.slane %v3828_v12, %v3848_v33  ;;  %v3857_v53 = vrot.slane %v3828_v12, %v3856_v47 }
 0x5f8   :  { %5463 = vmatprep.subr.bf16.mxu0 %v6239_v30  ;;  %v3853_v30 = vrot.slane %v3828_v12, %v3852_v48  ;;  %v3861_v54 = vrot.slane %v3828_v12, %v3860_v50 }
 0x5fa   :  { %5382 = vmatpush1.bf16.msra.mxu1 %v6236_v16 }
 0x5fb   :  { %5464 = vmatpush1.bf16.msra.mxu0 %v6238_v5  ;;  %5383 = vmatprep.subr.bf16.mxu1 %v6245_v3 }
 0x5fc   :  { %5465 = vmatprep.subr.bf16.mxu0 %v6247_v36 }
 0x5fe   :  { %5384 = vmatpush1.bf16.msra.mxu1 %v6244_v4  ;;  %v5515_v4 = vrot.slane %v9376_v17, %v3856_v47 }
 0x5ff   :  { %5466 = vmatpush1.bf16.msra.mxu0 %v6246_v2  ;;  %5385 = vmatprep.subr.bf16.mxu1 %v6253_v10 }
 0x600   :  { %5467 = vmatprep.subr.bf16.mxu0 %v6255_v45 }
 0x602   :  { %5386 = vmatpush1.bf16.msra.mxu1 %v6252_v11 }
 0x603   :  { %5468 = vmatpush1.bf16.msra.mxu0 %v6254_v26 }
 0x605   :  { %5388 = vmatmul.mubr.bf16.vlgmr.msra.gmra.mrb[28].mxu1 %v8996_v0 }
 0x606   :  { %5470 = vmatmul.mubr.bf16.vlgmr.msra.gmra.mrb[16].mxu0 %v8996_v0 }
 0x658   :  { %v5225_v20 = vpop.f32.mrb[24].mxu1  ;;  %v5307_v22 = vpop.f32.mrb[12].mxu0 }
 0x659   :  { %v6257_v0 = vadd.f32 %v5225_v20, %v3833_v14  ;;  %v6259_v27 = vadd.f32 %v5307_v22, %v3841_v15  ;;  %v5227_v28 = vpop.f32.mrb[25].mxu1  ;;  %v5309_v29 = vpop.f32.mrb[13].mxu0  ;;  %v5519_v15 = vrot.slane %v9376_v17, %v3860_v50 }
 0x65a   :  { %v6258_v32 = vadd.f32 %v5227_v28, %v3837_v18  ;;  %v6260_v35 = vadd.f32 %v5309_v29, %v3845_v6  ;;  %v5229_v37 = vpop.f32.mrb[26].mxu1  ;;  %v5311_v38 = vpop.f32.mrb[14].mxu0 }
 0x65b   :  { %v5478_v39 = vmax.f32 %v6257_v0, 0.0  ;;  %v5480_v40 = vmax.f32 %v6259_v27, 0.0  ;;  %v5230_v42 = vpop.f32.mrb[27].mxu1  ;;  %v5312_v44 = vpop.f32.mrb[15].mxu0 }
 0x65c   :  { %v5479_v31 = vmax.f32 %v6258_v32, 0.0  ;;  %v5481_v41 = vmax.f32 %v6260_v35, 0.0 }
 0x65d   :  { %v5528_v55 = vmul.f32 %v5491_v24, %v5478_v39  ;;  %v5530_v56 = vmul.f32 %v5499_v46, %v5480_v40 }
 0x65e   :  { %v5529_v21 = vmul.f32 %v5495_v60, %v5479_v31  ;;  %v5531_v58 = vmul.f32 %v5503_v51, %v5481_v41  ;;  %v6256_v60 = vld [vmem:[#allocation2] ss:$0 sm:$0xff] }
 0x65f   :  { %v5537_v57 = vsel %vm5536_vm0, %v5528_v55, 0.0  ;;  %v5540_v61 = vsel %vm5536_vm0, %v5530_v56, 0.0 }
 0x660   :  { %v5538_v43 = vsel %vm5536_vm0, %v5529_v21, 0.0  ;;  %v5542_v63 = vsel %vm5536_vm0, %v5531_v58, 0.0 }
 0x661   :  { %v5539_v59 = vadd.f32 %v5538_v43, %v5537_v57 }
 0x663   :  { %v5541_v62 = vadd.f32 %v5540_v61, %v5539_v59 }
 0x665   :  { %v5543_v25 = vadd.f32 %v5542_v63, %v5541_v62 }
 0x6d8   :  { %v5389_v23 = vpop.f32.mrb[28].mxu1 }
 0x6d9   :  { %v6261_v19 = vadd.f32 %v5389_v23, %v3849_v52  ;;  %v5471_v16 = vpop.f32.mrb[16].mxu0  ;;  %v5391_v5 = vpop.f32.mrb[29].mxu1 }
 0x6da   :  { %v6263_v3 = vadd.f32 %v5471_v16, %v3857_v53  ;;  %v6262_v36 = vadd.f32 %v5391_v5, %v3853_v30  ;;  %v5473_v49 = vpop.f32.mrb[17].mxu0  ;;  %v5393_v8 = vpop.f32.mrb[30].mxu1 }
 0x6db   :  { %v5482_v9 = vmax.f32 %v6261_v19, 0.0  ;;  %v6264_v13 = vadd.f32 %v5473_v49, %v3861_v54  ;;  %v5475_v2 = vpop.f32.mrb[18].mxu0  ;;  %v5394_v10 = vpop.f32.mrb[31].mxu1 }
 0x6dc   :  { %v5484_v45 = vmax.f32 %v6263_v3, 0.0  ;;  %v5483_v11 = vmax.f32 %v6262_v36, 0.0  ;;  %v5476_v26 = vpop.f32.mrb[19].mxu0 }
 0x6dd   :  { %v5532_v12 = vmul.f32 %v5507_v1, %v5482_v9  ;;  %v5485_v14 = vmax.f32 %v6264_v13, 0.0 }
 0x6de   :  { %v5533_v18 = vmul.f32 %v5511_v7, %v5483_v11  ;;  %v5534_v20 = vmul.f32 %v5515_v4, %v5484_v45 }
 0x6df   :  { %v5544_v6 = vsel %vm5536_vm0, %v5532_v12, 0.0  ;;  %v5535_v24 = vmul.f32 %v5519_v15, %v5485_v14 }
 0x6e0   :  { %v5545_v22 = vadd.f32 %v5544_v6, %v5543_v25  ;;  %v5546_v0 = vsel %vm5536_vm0, %v5533_v18, 0.0  ;;  %v5548_v28 = vsel %vm5536_vm0, %v5534_v20, 0.0 }
 0x6e1   :  { %v5550_v46 = vsel %vm5536_vm0, %v5535_v24, 0.0 }
 0x6e2   :  { %v5547_v27 = vadd.f32 %v5546_v0, %v5545_v22 }
 0x6e4   :  { %v5549_v29 = vadd.f32 %v5548_v28, %v5547_v27 }
 0x6e6   :  { %v5551_v32 = vadd.f32 %v5550_v46, %v5549_v29 }
 0x6e8   :  { %5552 = vadd.xlane.f32.xlu0 %v5551_v32 }
 0x775   :  { %v5553_v35 = vpop.xlane.xlu0 %5552 }
 0x776   :  { %v5561_v17 = vadd.f32 %v6256_v60, %v5553_v35 }
 0x778   :  { %5563 = vst.msk [vmem:[%s9433_s23] sm:$0x3] %vm5562_vm1, %v5561_v17 }

</bundles_post_ra>
